<compile_context>
chip_gen: v6e
topology: v6e:2x2x1
jax: 0.10.0
libtpu: 0.0.40
codegen_flags: <defaults>
</compile_context>

<pallas_src>
import numpy as np
import jax
import jax.numpy as jnp
from jax.experimental import pallas as pl
from jax.experimental.pallas import tpu as pltpu

# ----------------------------------------------------------------------------
# Model configuration (mirrors the PyTorch model_config)
#   encoder_stages = [[8, 1], [16, 1]], decoder_stages = [[8, 1]],
#   quantize = False, linear_kernel = False, shuffle_size = 1
# ----------------------------------------------------------------------------
H = W = 16
P = H * W                 # 256 pixels per image (the lane dimension)
C_IN = 4                  # size_in
C_RED = C_IN // 2         # red_size = 2 (filter output channels)
C_E0, C_E1, C_D0 = 8, 16, 8

_OFFS = [(oy, ox) for oy in (-1, 0, 1) for ox in (-1, 0, 1)]
_OFFS_FULL = [oy * W + ox for (oy, ox) in _OFFS]            # full-res 3x3 tap offsets
_OFFS_HALF = [2 * oy * W + 2 * ox for (oy, ox) in _OFFS]    # stride-2 lattice offsets


# ----------------------------------------------------------------------------
# Fused kernel
# ----------------------------------------------------------------------------
def _wnet_kernel(x_ref,
                 we0_ref, be0_ref, we1_ref, be1_ref, wd0_ref, bd0_ref,
                 wf02_ref, bf02_ref, wf1_ref, bf1_ref,
                 mfull_ref, mhalf_ref, npar_ref, bwx_ref, bwy_ref,
                 o_ref):
    f32, bf16 = jnp.float32, jnp.bfloat16
    n = x_ref.shape[-1]

    def at_offset(v, off):
        # Value whose lane p holds v[:, p + off] (lane roll on the XLU).  Wrapped
        # lanes are always multiplied by a zero mask / weight by the callers.
        sh = (-off) % n
        return v if sh == 0 else pltpu.roll(v, sh, axis=1)

    def conv3x3(act, w_ref, b_ref, masks, offs):
        # 3x3 conv = 9 masked shifted taps -> (Cout,Cin)@(Cin,N) matmuls.
        # bf16 MXU operands, f32 accumulation; masks/taps stay f32 on the VPU.
        acc = None
        for t in range(9):
            tap = (masks[t:t + 1, :] * at_offset(act, offs[t])).astype(bf16)
            y = jnp.dot(w_ref[t], tap, preferred_element_type=f32)
            acc = y if acc is None else acc + y
        return acc + b_ref[...]

    def softmax_rows(logits):
        m = jnp.max(logits, axis=0, keepdims=True)
        e = jnp.exp(logits - m)
        s = jnp.sum(e, axis=0, keepdims=True)
        # approx reciprocal runs on the EUP slot; ~1e-3 relative error only.
        return e * pl.reciprocal(s, approx=True)

    x = x_ref[...]                 # (C_IN, N) f32, pixels in lanes
    mfull = mfull_ref[...]         # (9, N) full-res 3x3 tap validity
    mhalf = mhalf_ref[...]         # (9, N) half-res (stride-2) tap validity

    # ---------------- EncoderDecoder ----------------
    e0 = jnp.maximum(conv3x3(x, we0_ref, be0_ref, mfull, _OFFS_FULL), 0.0)     # (8, N)

    # 2x2 max pool; result valid at "representative" lanes (even y, even x).
    p0 = jnp.maximum(jnp.maximum(e0, at_offset(e0, 1)),
                     jnp.maximum(at_offset(e0, W), at_offset(e0, W + 1)))

    e1 = jnp.maximum(conv3x3(p0, we1_ref, be1_ref, mhalf, _OFFS_HALF), 0.0)    # (16, N)

    # nearest 2x upsample of e1 back onto every lane (4 rolls + parity masks).
    npar = npar_ref[...]
    u = None
    for idx, (a, b) in enumerate(((0, 0), (0, 1), (1, 0), (1, 1))):
        term = npar[idx:idx + 1, :] * at_offset(e1, -(a * W + b))
        u = term if u is None else u + term

    cat = jnp.concatenate([e0, u], axis=0)                                     # (24, N)
    d0 = jnp.maximum(conv3x3(cat, wd0_ref, bd0_ref, mfull, _OFFS_FULL), 0.0)   # (8, N)

    # ---------------- FilterNetwork ----------------
    # Fused 1x1 coefficient heads sharing d0: rows [0:18] -> fs_dwn0,
    # rows [18:28] -> fs_ups0 (skip coefficient is the last logit).
    logits = jnp.dot(wf02_ref[...], d0.astype(bf16),
                     preferred_element_type=f32) + bf02_ref[...]               # (28, N)
    k0 = softmax_rows(logits[0:18, :])
    k2 = softmax_rows(logits[18:28, :])

    # fs_dwn0: per-pixel 3x3 filtering of x (4 channels = 2 filter groups of 2).
    xf = None
    for t in range(9):
        tap = mfull[t:t + 1, :] * at_offset(x, _OFFS_FULL[t])                  # (4, N)
        term = k0[t:t + 1, :] * tap[0:2, :] + k0[9 + t:10 + t, :] * tap[2:4, :]
        xf = term if xf is None else xf + term                                 # (2, N)

    # 2x2 avg pool (valid at representative lanes).
    yr = 0.25 * (xf + at_offset(xf, 1) + at_offset(xf, W) + at_offset(xf, W + 1))

    # fs_dwn1 (half resolution): coefficients from e1, filtering of yr.
    k1 = softmax_rows(jnp.dot(wf1_ref[...], e1.astype(bf16),
                              preferred_element_type=f32) + bf1_ref[...])      # (9, N)
    yr2 = None
    for t in range(9):
        tap = mhalf[t:t + 1, :] * at_offset(yr, _OFFS_HALF[t])                 # (2, N)
        term = k1[t:t + 1, :] * tap
        yr2 = term if yr2 is None else yr2 + term

    # bilinear 2x upsample (align_corners=False), separable: x pass then y pass.
    bwx = bwx_ref[...]
    bwy = bwy_ref[...]
    xup = None
    for j, d in enumerate((-1, 0, 1, 2)):
        term = bwx[j:j + 1, :] * at_offset(yr2, -d)
        xup = term if xup is None else xup + term
    y = None
    for j, d in enumerate((-W, 0, W, 2 * W)):
        term = bwy[j:j + 1, :] * at_offset(xup, -d)
        y = term if y is None else y + term                                    # (2, N)

    # fs_ups0: 3x3 filtering of y plus skip tap on xf (skip coeff = last logit).
    out = k2[9:10, :] * xf
    for t in range(9):
        tap = mfull[t:t + 1, :] * at_offset(y, _OFFS_FULL[t])
        out = out + k2[t:t + 1, :] * tap

    o_ref[...] = out                                                           # (2, N)


# ----------------------------------------------------------------------------
# Per-lane constants (masks / resampling weights), host side
# ----------------------------------------------------------------------------
_LANE_CONST_CACHE = {}


def _lane_consts(b_tile):
    """Per-lane masks & resampling weights, tiled to N = b_tile * 256 lanes."""
    if b_tile in _LANE_CONST_CACHE:
        return _LANE_CONST_CACHE[b_tile]
    yy, xx = np.divmod(np.arange(P), W)          # per-pixel (y, x), pixel-major

    def tile(m):
        return jnp.asarray(np.tile(np.asarray(m, np.float32), (1, b_tile)))

    mfull = np.stack([(yy + oy >= 0) & (yy + oy < H) & (xx + ox >= 0) & (xx + ox < W)
                      for (oy, ox) in _OFFS])
    yh, xh = yy // 2, xx // 2
    mhalf = np.stack([(yh + oy >= 0) & (yh + oy < H // 2)
                      & (xh + ox >= 0) & (xh + ox < W // 2)
                      for (oy, ox) in _OFFS])
    npar = np.stack([(yy % 2 == a) & (xx % 2 == b) for a in (0, 1) for b in (0, 1)])

    def bil_w(coord, size):
        # Per-output-pixel weights for source offsets delta in (-1, 0, +1, +2)
        # (in pixels on that axis), 2x bilinear, align_corners=False, clamped.
        even = coord % 2 == 0
        first = coord == 0
        last = coord == size - 1
        w = np.zeros((4, coord.size), np.float32)
        w[0] = np.where(~even & ~last, 0.25, 0.0)                   # delta = -1
        w[1] = np.where(even, np.where(first, 1.0, 0.75), 0.0)      # delta =  0
        w[2] = np.where(~even, np.where(last, 1.0, 0.75), 0.0)      # delta = +1
        w[3] = np.where(even & ~first, 0.25, 0.0)                   # delta = +2
        return w

    consts = (tile(mfull), tile(mhalf), tile(npar),
              tile(bil_w(xx, W)), tile(bil_w(yy, H)))
    _LANE_CONST_CACHE[b_tile] = consts
    return consts


# ----------------------------------------------------------------------------
# Parameter construction (deterministic, in-script)
# ----------------------------------------------------------------------------
def init_wnet_params(key):
    ks = jax.random.split(key, 9)

    def conv3(k, cin, cout, scale=0.1):
        w = scale * jax.random.normal(k, (3, 3, cout, cin), jnp.float32)
        # (9, cout, cin): per-tap weights, ready for W_t @ tap with tap (cin, N).
        return w.reshape(9, cout, cin).astype(jnp.bfloat16)

    def head(k, cin, cout, scale=0.1):
        return (scale * jax.random.normal(k, (cout, cin), jnp.float32)
                ).astype(jnp.bfloat16)

    def bias(k, cout, scale=0.05):
        return scale * jax.random.normal(k, (cout, 1), jnp.float32)

    we0 = conv3(ks[0], C_IN, C_E0)
    we1 = conv3(ks[1], C_E0, C_E1)
    wd0 = conv3(ks[2], C_E0 + C_E1, C_D0)
    be0 = bias(ks[3], C_E0)
    be1 = bias(ks[4], C_E1)
    bd0 = bias(ks[5], C_D0)

    # 1x1 coefficient heads (bias.data.fill_(0) in the reference model).
    wf0 = head(ks[6], C_D0, 2 * 9)          # fs_dwn0: num_filters=2 -> 18 logits
    wf2 = head(ks[7], C_D0, 1 * 9 + 1)      # fs_ups0: skip=True     -> 10 logits
    wf1 = head(ks[8], C_E1, 1 * 9)          # fs_dwn1:               ->  9 logits
    wf02 = jnp.concatenate([wf0, wf2], axis=0)      # fused shared-d0 head (28, 8)
    bf02 = jnp.zeros((28, 1), jnp.float32)
    bf1 = jnp.zeros((9, 1), jnp.float32)

    return dict(we0=we0, be0=be0, we1=we1, be1=be1, wd0=wd0, bd0=bd0,
                wf02=wf02, bf02=bf02, wf1=wf1, bf1=bf1)


# ----------------------------------------------------------------------------
# Forward wrapper: NCHW in / NCHW out, single fused pallas_call
# ----------------------------------------------------------------------------
def _pick_b_tile(batch, max_tile=8):
    """Largest batch tile <= max_tile that still leaves >= 2 grid steps
    (keeps both v7x TensorCores busy); batch == 1 falls back to a single step."""
    if batch <= 1:
        return 1
    best = 1
    for t in range(1, min(batch // 2, max_tile) + 1):
        if batch % t == 0:
            best = t
    return best


def wnet_forward(params, x_nchw, b_tile=None):
    B, c_in, h, w = x_nchw.shape
    assert (c_in, h, w) == (C_IN, H, W), x_nchw.shape
    if b_tile is None:
        b_tile = _pick_b_tile(B)
    assert B % b_tile == 0
    n = b_tile * P

    # Channel-major, pixel-in-lane input: (C_IN, B*P).  Input quantization is
    # identity (quantize=False in the config).
    x_cm = jnp.transpose(x_nchw.astype(jnp.float32), (1, 0, 2, 3)).reshape(C_IN, B * P)

    weights = [params[k] for k in
               ("we0", "be0", "we1", "be1", "wd0", "bd0",
                "wf02", "bf02", "wf1", "bf1")]
    consts = _lane_consts(b_tile)

    def full_spec(a):
        return pl.BlockSpec(a.shape, lambda g, _nd=a.ndim: (0,) * _nd)

    in_specs = ([pl.BlockSpec((C_IN, n), lambda g: (0, g))]
                + [full_spec(a) for a in weights]
                + [full_spec(a) for a in consts])

    out = pl.pallas_call(
        _wnet_kernel,
        out_shape=jax.ShapeDtypeStruct((C_RED, B * P), jnp.float32),
        grid=(B // b_tile,),
        in_specs=in_specs,
        out_specs=pl.BlockSpec((C_RED, n), lambda g: (0, g)),
        compiler_params=pltpu.CompilerParams(dimension_semantics=("parallel",)),
    )(x_cm, *weights, *consts)

    # (C_RED, B*P) -> NCHW (lane-dense output; only a cheap host-side reshape).
    return jnp.transpose(out.reshape(C_RED, B, H, W), (1, 0, 2, 3))


# ----------------------------------------------------------------------------
if __name__ == "__main__":
    B = 4
    key = jax.random.PRNGKey(0)
    k_param, k_x = jax.random.split(key)
    params = init_wnet_params(k_param)
    x = jax.random.normal(k_x, (B, C_IN, H, W), jnp.float32)

    fwd = jax.jit(wnet_forward)
    y = jax.block_until_ready(fwd(params, x))

    assert y.shape == (B, C_RED, H, W), y.shape
    assert bool(jnp.all(jnp.isfinite(y)))
    print("KERNEL_OK")
</pallas_src>

<mosaic_0001>
module attributes {stable_mosaic.version = 11 : i64} {
  func.func @_wnet_kernel(%arg0: i32, %arg1: memref<4x512xf32, #tpu.memory_space<vmem>>, %arg2: memref<9x8x4xbf16, #tpu.memory_space<vmem>>, %arg3: memref<8x1xf32, #tpu.memory_space<vmem>>, %arg4: memref<9x16x8xbf16, #tpu.memory_space<vmem>>, %arg5: memref<16x1xf32, #tpu.memory_space<vmem>>, %arg6: memref<9x8x24xbf16, #tpu.memory_space<vmem>>, %arg7: memref<8x1xf32, #tpu.memory_space<vmem>>, %arg8: memref<28x8xbf16, #tpu.memory_space<vmem>>, %arg9: memref<28x1xf32, #tpu.memory_space<vmem>>, %arg10: memref<9x16xbf16, #tpu.memory_space<vmem>>, %arg11: memref<9x1xf32, #tpu.memory_space<vmem>>, %arg12: memref<9x512xf32, #tpu.memory_space<vmem>>, %arg13: memref<9x512xf32, #tpu.memory_space<vmem>>, %arg14: memref<4x512xf32, #tpu.memory_space<vmem>>, %arg15: memref<4x512xf32, #tpu.memory_space<vmem>>, %arg16: memref<4x512xf32, #tpu.memory_space<vmem>>, %arg17: memref<2x512xf32, #tpu.memory_space<vmem>>) attributes {dimension_semantics = [#tpu.dimension_semantics<parallel>], iteration_bounds = array<i64: 2>, scalar_prefetch = 0 : i64, scratch_operands = 0 : i64, tpu.core_type = #tpu.core_type<tc>, window_params = [{transform_indices = @transform_0, window_bounds = array<i64: 4, 512>}, {pipeline_mode = #tpu.pipeline_mode<synchronous>, transform_indices = @transform_1, window_bounds = array<i64: 9, 8, 4>}, {pipeline_mode = #tpu.pipeline_mode<synchronous>, transform_indices = @transform_2, window_bounds = array<i64: 8, 1>}, {pipeline_mode = #tpu.pipeline_mode<synchronous>, transform_indices = @transform_3, window_bounds = array<i64: 9, 16, 8>}, {pipeline_mode = #tpu.pipeline_mode<synchronous>, transform_indices = @transform_4, window_bounds = array<i64: 16, 1>}, {pipeline_mode = #tpu.pipeline_mode<synchronous>, transform_indices = @transform_5, window_bounds = array<i64: 9, 8, 24>}, {pipeline_mode = #tpu.pipeline_mode<synchronous>, transform_indices = @transform_6, window_bounds = array<i64: 8, 1>}, {pipeline_mode = #tpu.pipeline_mode<synchronous>, transform_indices = @transform_7, window_bounds = array<i64: 28, 8>}, {pipeline_mode = #tpu.pipeline_mode<synchronous>, transform_indices = @transform_8, window_bounds = array<i64: 28, 1>}, {pipeline_mode = #tpu.pipeline_mode<synchronous>, transform_indices = @transform_9, window_bounds = array<i64: 9, 16>}, {pipeline_mode = #tpu.pipeline_mode<synchronous>, transform_indices = @transform_10, window_bounds = array<i64: 9, 1>}, {pipeline_mode = #tpu.pipeline_mode<synchronous>, transform_indices = @transform_11, window_bounds = array<i64: 9, 512>}, {pipeline_mode = #tpu.pipeline_mode<synchronous>, transform_indices = @transform_12, window_bounds = array<i64: 9, 512>}, {pipeline_mode = #tpu.pipeline_mode<synchronous>, transform_indices = @transform_13, window_bounds = array<i64: 4, 512>}, {pipeline_mode = #tpu.pipeline_mode<synchronous>, transform_indices = @transform_14, window_bounds = array<i64: 4, 512>}, {pipeline_mode = #tpu.pipeline_mode<synchronous>, transform_indices = @transform_15, window_bounds = array<i64: 4, 512>}, {transform_indices = @transform_16, window_bounds = array<i64: 2, 512>}]} {
    %c0 = arith.constant 0 : index
    %c0_0 = arith.constant 0 : index
    %0 = vector.load %arg1[%c0, %c0_0] : memref<4x512xf32, #tpu.memory_space<vmem>>, vector<4x512xf32>
    %c0_1 = arith.constant 0 : index
    %c0_2 = arith.constant 0 : index
    %1 = vector.load %arg12[%c0_1, %c0_2] : memref<9x512xf32, #tpu.memory_space<vmem>>, vector<9x512xf32>
    %c0_3 = arith.constant 0 : index
    %c0_4 = arith.constant 0 : index
    %2 = vector.load %arg13[%c0_3, %c0_4] : memref<9x512xf32, #tpu.memory_space<vmem>>, vector<9x512xf32>
    %3 = vector.extract_strided_slice %1 {offsets = [0, 0], sizes = [1, 512], strides = [1, 1]} : vector<9x512xf32> to vector<1x512xf32>
    %c17_i32 = arith.constant 17 : i32
    %4 = tpu.dynamic_rotate %0 by %c17_i32 dim 1 : vector<4x512xf32>, i32 -> vector<4x512xf32>
    %5 = vector.broadcast %3 : vector<1x512xf32> to vector<4x512xf32>
    %6 = arith.mulf %5, %4 : vector<4x512xf32>
    %7 = arith.truncf %6 : vector<4x512xf32> to vector<4x512xbf16>
    %c0_5 = arith.constant 0 : index
    %c0_6 = arith.constant 0 : index
    %c0_7 = arith.constant 0 : index
    %8 = vector.load %arg2[%c0_5, %c0_6, %c0_7] : memref<9x8x4xbf16, #tpu.memory_space<vmem>>, vector<1x8x4xbf16>
    %9 = vector.shape_cast %8 : vector<1x8x4xbf16> to vector<8x4xbf16>
    %cst = arith.constant dense<0.000000e+00> : vector<8x512xf32>
    %10 = tpu.matmul %9, %7, %cst {dimension_numbers = #tpu.dot_dimension_numbers<[1], [0], [0], [1], [0, 0, 1, 1], [], []>} : vector<8x4xbf16>, vector<4x512xbf16>, vector<8x512xf32> -> vector<8x512xf32>
    %11 = vector.extract_strided_slice %1 {offsets = [1, 0], sizes = [1, 512], strides = [1, 1]} : vector<9x512xf32> to vector<1x512xf32>
    %c16_i32 = arith.constant 16 : i32
    %12 = tpu.dynamic_rotate %0 by %c16_i32 dim 1 : vector<4x512xf32>, i32 -> vector<4x512xf32>
    %13 = vector.broadcast %11 : vector<1x512xf32> to vector<4x512xf32>
    %14 = arith.mulf %13, %12 : vector<4x512xf32>
    %15 = arith.truncf %14 : vector<4x512xf32> to vector<4x512xbf16>
    %c1 = arith.constant 1 : index
    %c0_8 = arith.constant 0 : index
    %c0_9 = arith.constant 0 : index
    %16 = vector.load %arg2[%c1, %c0_8, %c0_9] : memref<9x8x4xbf16, #tpu.memory_space<vmem>>, vector<1x8x4xbf16>
    %17 = vector.shape_cast %16 : vector<1x8x4xbf16> to vector<8x4xbf16>
    %cst_10 = arith.constant dense<0.000000e+00> : vector<8x512xf32>
    %18 = tpu.matmul %17, %15, %cst_10 {dimension_numbers = #tpu.dot_dimension_numbers<[1], [0], [0], [1], [0, 0, 1, 1], [], []>} : vector<8x4xbf16>, vector<4x512xbf16>, vector<8x512xf32> -> vector<8x512xf32>
    %19 = arith.addf %10, %18 : vector<8x512xf32>
    %20 = vector.extract_strided_slice %1 {offsets = [2, 0], sizes = [1, 512], strides = [1, 1]} : vector<9x512xf32> to vector<1x512xf32>
    %c15_i32 = arith.constant 15 : i32
    %21 = tpu.dynamic_rotate %0 by %c15_i32 dim 1 : vector<4x512xf32>, i32 -> vector<4x512xf32>
    %22 = vector.broadcast %20 : vector<1x512xf32> to vector<4x512xf32>
    %23 = arith.mulf %22, %21 : vector<4x512xf32>
    %24 = arith.truncf %23 : vector<4x512xf32> to vector<4x512xbf16>
    %c2 = arith.constant 2 : index
    %c0_11 = arith.constant 0 : index
    %c0_12 = arith.constant 0 : index
    %25 = vector.load %arg2[%c2, %c0_11, %c0_12] : memref<9x8x4xbf16, #tpu.memory_space<vmem>>, vector<1x8x4xbf16>
    %26 = vector.shape_cast %25 : vector<1x8x4xbf16> to vector<8x4xbf16>
    %cst_13 = arith.constant dense<0.000000e+00> : vector<8x512xf32>
    %27 = tpu.matmul %26, %24, %cst_13 {dimension_numbers = #tpu.dot_dimension_numbers<[1], [0], [0], [1], [0, 0, 1, 1], [], []>} : vector<8x4xbf16>, vector<4x512xbf16>, vector<8x512xf32> -> vector<8x512xf32>
    %28 = arith.addf %19, %27 : vector<8x512xf32>
    %29 = vector.extract_strided_slice %1 {offsets = [3, 0], sizes = [1, 512], strides = [1, 1]} : vector<9x512xf32> to vector<1x512xf32>
    %c1_i32 = arith.constant 1 : i32
    %30 = tpu.dynamic_rotate %0 by %c1_i32 dim 1 : vector<4x512xf32>, i32 -> vector<4x512xf32>
    %31 = vector.broadcast %29 : vector<1x512xf32> to vector<4x512xf32>
    %32 = arith.mulf %31, %30 : vector<4x512xf32>
    %33 = arith.truncf %32 : vector<4x512xf32> to vector<4x512xbf16>
    %c3 = arith.constant 3 : index
    %c0_14 = arith.constant 0 : index
    %c0_15 = arith.constant 0 : index
    %34 = vector.load %arg2[%c3, %c0_14, %c0_15] : memref<9x8x4xbf16, #tpu.memory_space<vmem>>, vector<1x8x4xbf16>
    %35 = vector.shape_cast %34 : vector<1x8x4xbf16> to vector<8x4xbf16>
    %cst_16 = arith.constant dense<0.000000e+00> : vector<8x512xf32>
    %36 = tpu.matmul %35, %33, %cst_16 {dimension_numbers = #tpu.dot_dimension_numbers<[1], [0], [0], [1], [0, 0, 1, 1], [], []>} : vector<8x4xbf16>, vector<4x512xbf16>, vector<8x512xf32> -> vector<8x512xf32>
    %37 = arith.addf %28, %36 : vector<8x512xf32>
    %38 = vector.extract_strided_slice %1 {offsets = [4, 0], sizes = [1, 512], strides = [1, 1]} : vector<9x512xf32> to vector<1x512xf32>
    %39 = vector.broadcast %38 : vector<1x512xf32> to vector<4x512xf32>
    %40 = arith.mulf %39, %0 : vector<4x512xf32>
    %41 = arith.truncf %40 : vector<4x512xf32> to vector<4x512xbf16>
    %c4 = arith.constant 4 : index
    %c0_17 = arith.constant 0 : index
    %c0_18 = arith.constant 0 : index
    %42 = vector.load %arg2[%c4, %c0_17, %c0_18] : memref<9x8x4xbf16, #tpu.memory_space<vmem>>, vector<1x8x4xbf16>
    %43 = vector.shape_cast %42 : vector<1x8x4xbf16> to vector<8x4xbf16>
    %cst_19 = arith.constant dense<0.000000e+00> : vector<8x512xf32>
    %44 = tpu.matmul %43, %41, %cst_19 {dimension_numbers = #tpu.dot_dimension_numbers<[1], [0], [0], [1], [0, 0, 1, 1], [], []>} : vector<8x4xbf16>, vector<4x512xbf16>, vector<8x512xf32> -> vector<8x512xf32>
    %45 = arith.addf %37, %44 : vector<8x512xf32>
    %46 = vector.extract_strided_slice %1 {offsets = [5, 0], sizes = [1, 512], strides = [1, 1]} : vector<9x512xf32> to vector<1x512xf32>
    %c511_i32 = arith.constant 511 : i32
    %47 = tpu.dynamic_rotate %0 by %c511_i32 dim 1 : vector<4x512xf32>, i32 -> vector<4x512xf32>
    %48 = vector.broadcast %46 : vector<1x512xf32> to vector<4x512xf32>
    %49 = arith.mulf %48, %47 : vector<4x512xf32>
    %50 = arith.truncf %49 : vector<4x512xf32> to vector<4x512xbf16>
    %c5 = arith.constant 5 : index
    %c0_20 = arith.constant 0 : index
    %c0_21 = arith.constant 0 : index
    %51 = vector.load %arg2[%c5, %c0_20, %c0_21] : memref<9x8x4xbf16, #tpu.memory_space<vmem>>, vector<1x8x4xbf16>
    %52 = vector.shape_cast %51 : vector<1x8x4xbf16> to vector<8x4xbf16>
    %cst_22 = arith.constant dense<0.000000e+00> : vector<8x512xf32>
    %53 = tpu.matmul %52, %50, %cst_22 {dimension_numbers = #tpu.dot_dimension_numbers<[1], [0], [0], [1], [0, 0, 1, 1], [], []>} : vector<8x4xbf16>, vector<4x512xbf16>, vector<8x512xf32> -> vector<8x512xf32>
    %54 = arith.addf %45, %53 : vector<8x512xf32>
    %55 = vector.extract_strided_slice %1 {offsets = [6, 0], sizes = [1, 512], strides = [1, 1]} : vector<9x512xf32> to vector<1x512xf32>
    %c497_i32 = arith.constant 497 : i32
    %56 = tpu.dynamic_rotate %0 by %c497_i32 dim 1 : vector<4x512xf32>, i32 -> vector<4x512xf32>
    %57 = vector.broadcast %55 : vector<1x512xf32> to vector<4x512xf32>
    %58 = arith.mulf %57, %56 : vector<4x512xf32>
    %59 = arith.truncf %58 : vector<4x512xf32> to vector<4x512xbf16>
    %c6 = arith.constant 6 : index
    %c0_23 = arith.constant 0 : index
    %c0_24 = arith.constant 0 : index
    %60 = vector.load %arg2[%c6, %c0_23, %c0_24] : memref<9x8x4xbf16, #tpu.memory_space<vmem>>, vector<1x8x4xbf16>
    %61 = vector.shape_cast %60 : vector<1x8x4xbf16> to vector<8x4xbf16>
    %cst_25 = arith.constant dense<0.000000e+00> : vector<8x512xf32>
    %62 = tpu.matmul %61, %59, %cst_25 {dimension_numbers = #tpu.dot_dimension_numbers<[1], [0], [0], [1], [0, 0, 1, 1], [], []>} : vector<8x4xbf16>, vector<4x512xbf16>, vector<8x512xf32> -> vector<8x512xf32>
    %63 = arith.addf %54, %62 : vector<8x512xf32>
    %64 = vector.extract_strided_slice %1 {offsets = [7, 0], sizes = [1, 512], strides = [1, 1]} : vector<9x512xf32> to vector<1x512xf32>
    %c496_i32 = arith.constant 496 : i32
    %65 = tpu.dynamic_rotate %0 by %c496_i32 dim 1 : vector<4x512xf32>, i32 -> vector<4x512xf32>
    %66 = vector.broadcast %64 : vector<1x512xf32> to vector<4x512xf32>
    %67 = arith.mulf %66, %65 : vector<4x512xf32>
    %68 = arith.truncf %67 : vector<4x512xf32> to vector<4x512xbf16>
    %c7 = arith.constant 7 : index
    %c0_26 = arith.constant 0 : index
    %c0_27 = arith.constant 0 : index
    %69 = vector.load %arg2[%c7, %c0_26, %c0_27] : memref<9x8x4xbf16, #tpu.memory_space<vmem>>, vector<1x8x4xbf16>
    %70 = vector.shape_cast %69 : vector<1x8x4xbf16> to vector<8x4xbf16>
    %cst_28 = arith.constant dense<0.000000e+00> : vector<8x512xf32>
    %71 = tpu.matmul %70, %68, %cst_28 {dimension_numbers = #tpu.dot_dimension_numbers<[1], [0], [0], [1], [0, 0, 1, 1], [], []>} : vector<8x4xbf16>, vector<4x512xbf16>, vector<8x512xf32> -> vector<8x512xf32>
    %72 = arith.addf %63, %71 : vector<8x512xf32>
    %73 = vector.extract_strided_slice %1 {offsets = [8, 0], sizes = [1, 512], strides = [1, 1]} : vector<9x512xf32> to vector<1x512xf32>
    %c495_i32 = arith.constant 495 : i32
    %74 = tpu.dynamic_rotate %0 by %c495_i32 dim 1 : vector<4x512xf32>, i32 -> vector<4x512xf32>
    %75 = vector.broadcast %73 : vector<1x512xf32> to vector<4x512xf32>
    %76 = arith.mulf %75, %74 : vector<4x512xf32>
    %77 = arith.truncf %76 : vector<4x512xf32> to vector<4x512xbf16>
    %c8 = arith.constant 8 : index
    %c0_29 = arith.constant 0 : index
    %c0_30 = arith.constant 0 : index
    %78 = vector.load %arg2[%c8, %c0_29, %c0_30] : memref<9x8x4xbf16, #tpu.memory_space<vmem>>, vector<1x8x4xbf16>
    %79 = vector.shape_cast %78 : vector<1x8x4xbf16> to vector<8x4xbf16>
    %cst_31 = arith.constant dense<0.000000e+00> : vector<8x512xf32>
    %80 = tpu.matmul %79, %77, %cst_31 {dimension_numbers = #tpu.dot_dimension_numbers<[1], [0], [0], [1], [0, 0, 1, 1], [], []>} : vector<8x4xbf16>, vector<4x512xbf16>, vector<8x512xf32> -> vector<8x512xf32>
    %81 = arith.addf %72, %80 : vector<8x512xf32>
    %c0_32 = arith.constant 0 : index
    %c0_33 = arith.constant 0 : index
    %82 = vector.load %arg3[%c0_32, %c0_33] : memref<8x1xf32, #tpu.memory_space<vmem>>, vector<8x1xf32>
    %83 = vector.broadcast %82 : vector<8x1xf32> to vector<8x512xf32>
    %84 = arith.addf %81, %83 : vector<8x512xf32>
    %cst_34 = arith.constant 0.000000e+00 : f32
    %85 = vector.broadcast %cst_34 : f32 to vector<8x512xf32>
    %86 = arith.maximumf %84, %85 : vector<8x512xf32>
    %c511_i32_35 = arith.constant 511 : i32
    %87 = tpu.dynamic_rotate %86 by %c511_i32_35 dim 1 : vector<8x512xf32>, i32 -> vector<8x512xf32>
    %88 = arith.maximumf %86, %87 : vector<8x512xf32>
    %c496_i32_36 = arith.constant 496 : i32
    %89 = tpu.dynamic_rotate %86 by %c496_i32_36 dim 1 : vector<8x512xf32>, i32 -> vector<8x512xf32>
    %c495_i32_37 = arith.constant 495 : i32
    %90 = tpu.dynamic_rotate %86 by %c495_i32_37 dim 1 : vector<8x512xf32>, i32 -> vector<8x512xf32>
    %91 = arith.maximumf %89, %90 : vector<8x512xf32>
    %92 = arith.maximumf %88, %91 : vector<8x512xf32>
    %93 = vector.extract_strided_slice %2 {offsets = [0, 0], sizes = [1, 512], strides = [1, 1]} : vector<9x512xf32> to vector<1x512xf32>
    %c34_i32 = arith.constant 34 : i32
    %94 = tpu.dynamic_rotate %92 by %c34_i32 dim 1 : vector<8x512xf32>, i32 -> vector<8x512xf32>
    %95 = vector.broadcast %93 : vector<1x512xf32> to vector<8x512xf32>
    %96 = arith.mulf %95, %94 : vector<8x512xf32>
    %97 = arith.truncf %96 : vector<8x512xf32> to vector<8x512xbf16>
    %c0_38 = arith.constant 0 : index
    %c0_39 = arith.constant 0 : index
    %c0_40 = arith.constant 0 : index
    %98 = vector.load %arg4[%c0_38, %c0_39, %c0_40] : memref<9x16x8xbf16, #tpu.memory_space<vmem>>, vector<1x16x8xbf16>
    %99 = vector.shape_cast %98 : vector<1x16x8xbf16> to vector<16x8xbf16>
    %cst_41 = arith.constant dense<0.000000e+00> : vector<16x512xf32>
    %100 = tpu.matmul %99, %97, %cst_41 {dimension_numbers = #tpu.dot_dimension_numbers<[1], [0], [0], [1], [0, 0, 1, 1], [], []>} : vector<16x8xbf16>, vector<8x512xbf16>, vector<16x512xf32> -> vector<16x512xf32>
    %101 = vector.extract_strided_slice %2 {offsets = [1, 0], sizes = [1, 512], strides = [1, 1]} : vector<9x512xf32> to vector<1x512xf32>
    %c32_i32 = arith.constant 32 : i32
    %102 = tpu.dynamic_rotate %92 by %c32_i32 dim 1 : vector<8x512xf32>, i32 -> vector<8x512xf32>
    %103 = vector.broadcast %101 : vector<1x512xf32> to vector<8x512xf32>
    %104 = arith.mulf %103, %102 : vector<8x512xf32>
    %105 = arith.truncf %104 : vector<8x512xf32> to vector<8x512xbf16>
    %c1_42 = arith.constant 1 : index
    %c0_43 = arith.constant 0 : index
    %c0_44 = arith.constant 0 : index
    %106 = vector.load %arg4[%c1_42, %c0_43, %c0_44] : memref<9x16x8xbf16, #tpu.memory_space<vmem>>, vector<1x16x8xbf16>
    %107 = vector.shape_cast %106 : vector<1x16x8xbf16> to vector<16x8xbf16>
    %cst_45 = arith.constant dense<0.000000e+00> : vector<16x512xf32>
    %108 = tpu.matmul %107, %105, %cst_45 {dimension_numbers = #tpu.dot_dimension_numbers<[1], [0], [0], [1], [0, 0, 1, 1], [], []>} : vector<16x8xbf16>, vector<8x512xbf16>, vector<16x512xf32> -> vector<16x512xf32>
    %109 = arith.addf %100, %108 : vector<16x512xf32>
    %110 = vector.extract_strided_slice %2 {offsets = [2, 0], sizes = [1, 512], strides = [1, 1]} : vector<9x512xf32> to vector<1x512xf32>
    %c30_i32 = arith.constant 30 : i32
    %111 = tpu.dynamic_rotate %92 by %c30_i32 dim 1 : vector<8x512xf32>, i32 -> vector<8x512xf32>
    %112 = vector.broadcast %110 : vector<1x512xf32> to vector<8x512xf32>
    %113 = arith.mulf %112, %111 : vector<8x512xf32>
    %114 = arith.truncf %113 : vector<8x512xf32> to vector<8x512xbf16>
    %c2_46 = arith.constant 2 : index
    %c0_47 = arith.constant 0 : index
    %c0_48 = arith.constant 0 : index
    %115 = vector.load %arg4[%c2_46, %c0_47, %c0_48] : memref<9x16x8xbf16, #tpu.memory_space<vmem>>, vector<1x16x8xbf16>
    %116 = vector.shape_cast %115 : vector<1x16x8xbf16> to vector<16x8xbf16>
    %cst_49 = arith.constant dense<0.000000e+00> : vector<16x512xf32>
    %117 = tpu.matmul %116, %114, %cst_49 {dimension_numbers = #tpu.dot_dimension_numbers<[1], [0], [0], [1], [0, 0, 1, 1], [], []>} : vector<16x8xbf16>, vector<8x512xbf16>, vector<16x512xf32> -> vector<16x512xf32>
    %118 = arith.addf %109, %117 : vector<16x512xf32>
    %119 = vector.extract_strided_slice %2 {offsets = [3, 0], sizes = [1, 512], strides = [1, 1]} : vector<9x512xf32> to vector<1x512xf32>
    %c2_i32 = arith.constant 2 : i32
    %120 = tpu.dynamic_rotate %92 by %c2_i32 dim 1 : vector<8x512xf32>, i32 -> vector<8x512xf32>
    %121 = vector.broadcast %119 : vector<1x512xf32> to vector<8x512xf32>
    %122 = arith.mulf %121, %120 : vector<8x512xf32>
    %123 = arith.truncf %122 : vector<8x512xf32> to vector<8x512xbf16>
    %c3_50 = arith.constant 3 : index
    %c0_51 = arith.constant 0 : index
    %c0_52 = arith.constant 0 : index
    %124 = vector.load %arg4[%c3_50, %c0_51, %c0_52] : memref<9x16x8xbf16, #tpu.memory_space<vmem>>, vector<1x16x8xbf16>
    %125 = vector.shape_cast %124 : vector<1x16x8xbf16> to vector<16x8xbf16>
    %cst_53 = arith.constant dense<0.000000e+00> : vector<16x512xf32>
    %126 = tpu.matmul %125, %123, %cst_53 {dimension_numbers = #tpu.dot_dimension_numbers<[1], [0], [0], [1], [0, 0, 1, 1], [], []>} : vector<16x8xbf16>, vector<8x512xbf16>, vector<16x512xf32> -> vector<16x512xf32>
    %127 = arith.addf %118, %126 : vector<16x512xf32>
    %128 = vector.extract_strided_slice %2 {offsets = [4, 0], sizes = [1, 512], strides = [1, 1]} : vector<9x512xf32> to vector<1x512xf32>
    %129 = vector.broadcast %128 : vector<1x512xf32> to vector<8x512xf32>
    %130 = arith.mulf %129, %92 : vector<8x512xf32>
    %131 = arith.truncf %130 : vector<8x512xf32> to vector<8x512xbf16>
    %c4_54 = arith.constant 4 : index
    %c0_55 = arith.constant 0 : index
    %c0_56 = arith.constant 0 : index
    %132 = vector.load %arg4[%c4_54, %c0_55, %c0_56] : memref<9x16x8xbf16, #tpu.memory_space<vmem>>, vector<1x16x8xbf16>
    %133 = vector.shape_cast %132 : vector<1x16x8xbf16> to vector<16x8xbf16>
    %cst_57 = arith.constant dense<0.000000e+00> : vector<16x512xf32>
    %134 = tpu.matmul %133, %131, %cst_57 {dimension_numbers = #tpu.dot_dimension_numbers<[1], [0], [0], [1], [0, 0, 1, 1], [], []>} : vector<16x8xbf16>, vector<8x512xbf16>, vector<16x512xf32> -> vector<16x512xf32>
    %135 = arith.addf %127, %134 : vector<16x512xf32>
    %136 = vector.extract_strided_slice %2 {offsets = [5, 0], sizes = [1, 512], strides = [1, 1]} : vector<9x512xf32> to vector<1x512xf32>
    %c510_i32 = arith.constant 510 : i32
    %137 = tpu.dynamic_rotate %92 by %c510_i32 dim 1 : vector<8x512xf32>, i32 -> vector<8x512xf32>
    %138 = vector.broadcast %136 : vector<1x512xf32> to vector<8x512xf32>
    %139 = arith.mulf %138, %137 : vector<8x512xf32>
    %140 = arith.truncf %139 : vector<8x512xf32> to vector<8x512xbf16>
    %c5_58 = arith.constant 5 : index
    %c0_59 = arith.constant 0 : index
    %c0_60 = arith.constant 0 : index
    %141 = vector.load %arg4[%c5_58, %c0_59, %c0_60] : memref<9x16x8xbf16, #tpu.memory_space<vmem>>, vector<1x16x8xbf16>
    %142 = vector.shape_cast %141 : vector<1x16x8xbf16> to vector<16x8xbf16>
    %cst_61 = arith.constant dense<0.000000e+00> : vector<16x512xf32>
    %143 = tpu.matmul %142, %140, %cst_61 {dimension_numbers = #tpu.dot_dimension_numbers<[1], [0], [0], [1], [0, 0, 1, 1], [], []>} : vector<16x8xbf16>, vector<8x512xbf16>, vector<16x512xf32> -> vector<16x512xf32>
    %144 = arith.addf %135, %143 : vector<16x512xf32>
    %145 = vector.extract_strided_slice %2 {offsets = [6, 0], sizes = [1, 512], strides = [1, 1]} : vector<9x512xf32> to vector<1x512xf32>
    %c482_i32 = arith.constant 482 : i32
    %146 = tpu.dynamic_rotate %92 by %c482_i32 dim 1 : vector<8x512xf32>, i32 -> vector<8x512xf32>
    %147 = vector.broadcast %145 : vector<1x512xf32> to vector<8x512xf32>
    %148 = arith.mulf %147, %146 : vector<8x512xf32>
    %149 = arith.truncf %148 : vector<8x512xf32> to vector<8x512xbf16>
    %c6_62 = arith.constant 6 : index
    %c0_63 = arith.constant 0 : index
    %c0_64 = arith.constant 0 : index
    %150 = vector.load %arg4[%c6_62, %c0_63, %c0_64] : memref<9x16x8xbf16, #tpu.memory_space<vmem>>, vector<1x16x8xbf16>
    %151 = vector.shape_cast %150 : vector<1x16x8xbf16> to vector<16x8xbf16>
    %cst_65 = arith.constant dense<0.000000e+00> : vector<16x512xf32>
    %152 = tpu.matmul %151, %149, %cst_65 {dimension_numbers = #tpu.dot_dimension_numbers<[1], [0], [0], [1], [0, 0, 1, 1], [], []>} : vector<16x8xbf16>, vector<8x512xbf16>, vector<16x512xf32> -> vector<16x512xf32>
    %153 = arith.addf %144, %152 : vector<16x512xf32>
    %154 = vector.extract_strided_slice %2 {offsets = [7, 0], sizes = [1, 512], strides = [1, 1]} : vector<9x512xf32> to vector<1x512xf32>
    %c480_i32 = arith.constant 480 : i32
    %155 = tpu.dynamic_rotate %92 by %c480_i32 dim 1 : vector<8x512xf32>, i32 -> vector<8x512xf32>
    %156 = vector.broadcast %154 : vector<1x512xf32> to vector<8x512xf32>
    %157 = arith.mulf %156, %155 : vector<8x512xf32>
    %158 = arith.truncf %157 : vector<8x512xf32> to vector<8x512xbf16>
    %c7_66 = arith.constant 7 : index
    %c0_67 = arith.constant 0 : index
    %c0_68 = arith.constant 0 : index
    %159 = vector.load %arg4[%c7_66, %c0_67, %c0_68] : memref<9x16x8xbf16, #tpu.memory_space<vmem>>, vector<1x16x8xbf16>
    %160 = vector.shape_cast %159 : vector<1x16x8xbf16> to vector<16x8xbf16>
    %cst_69 = arith.constant dense<0.000000e+00> : vector<16x512xf32>
    %161 = tpu.matmul %160, %158, %cst_69 {dimension_numbers = #tpu.dot_dimension_numbers<[1], [0], [0], [1], [0, 0, 1, 1], [], []>} : vector<16x8xbf16>, vector<8x512xbf16>, vector<16x512xf32> -> vector<16x512xf32>
    %162 = arith.addf %153, %161 : vector<16x512xf32>
    %163 = vector.extract_strided_slice %2 {offsets = [8, 0], sizes = [1, 512], strides = [1, 1]} : vector<9x512xf32> to vector<1x512xf32>
    %c478_i32 = arith.constant 478 : i32
    %164 = tpu.dynamic_rotate %92 by %c478_i32 dim 1 : vector<8x512xf32>, i32 -> vector<8x512xf32>
    %165 = vector.broadcast %163 : vector<1x512xf32> to vector<8x512xf32>
    %166 = arith.mulf %165, %164 : vector<8x512xf32>
    %167 = arith.truncf %166 : vector<8x512xf32> to vector<8x512xbf16>
    %c8_70 = arith.constant 8 : index
    %c0_71 = arith.constant 0 : index
    %c0_72 = arith.constant 0 : index
    %168 = vector.load %arg4[%c8_70, %c0_71, %c0_72] : memref<9x16x8xbf16, #tpu.memory_space<vmem>>, vector<1x16x8xbf16>
    %169 = vector.shape_cast %168 : vector<1x16x8xbf16> to vector<16x8xbf16>
    %cst_73 = arith.constant dense<0.000000e+00> : vector<16x512xf32>
    %170 = tpu.matmul %169, %167, %cst_73 {dimension_numbers = #tpu.dot_dimension_numbers<[1], [0], [0], [1], [0, 0, 1, 1], [], []>} : vector<16x8xbf16>, vector<8x512xbf16>, vector<16x512xf32> -> vector<16x512xf32>
    %171 = arith.addf %162, %170 : vector<16x512xf32>
    %c0_74 = arith.constant 0 : index
    %c0_75 = arith.constant 0 : index
    %172 = vector.load %arg5[%c0_74, %c0_75] : memref<16x1xf32, #tpu.memory_space<vmem>>, vector<16x1xf32>
    %173 = vector.broadcast %172 : vector<16x1xf32> to vector<16x512xf32>
    %174 = arith.addf %171, %173 : vector<16x512xf32>
    %cst_76 = arith.constant 0.000000e+00 : f32
    %175 = vector.broadcast %cst_76 : f32 to vector<16x512xf32>
    %176 = arith.maximumf %174, %175 : vector<16x512xf32>
    %c0_77 = arith.constant 0 : index
    %c0_78 = arith.constant 0 : index
    %177 = vector.load %arg14[%c0_77, %c0_78] : memref<4x512xf32, #tpu.memory_space<vmem>>, vector<4x512xf32>
    %178 = vector.extract_strided_slice %177 {offsets = [0, 0], sizes = [1, 512], strides = [1, 1]} : vector<4x512xf32> to vector<1x512xf32>
    %179 = vector.broadcast %178 : vector<1x512xf32> to vector<16x512xf32>
    %180 = arith.mulf %179, %176 : vector<16x512xf32>
    %181 = vector.extract_strided_slice %177 {offsets = [1, 0], sizes = [1, 512], strides = [1, 1]} : vector<4x512xf32> to vector<1x512xf32>
    %c1_i32_79 = arith.constant 1 : i32
    %182 = tpu.dynamic_rotate %176 by %c1_i32_79 dim 1 : vector<16x512xf32>, i32 -> vector<16x512xf32>
    %183 = vector.broadcast %181 : vector<1x512xf32> to vector<16x512xf32>
    %184 = arith.mulf %183, %182 : vector<16x512xf32>
    %185 = arith.addf %180, %184 : vector<16x512xf32>
    %186 = vector.extract_strided_slice %177 {offsets = [2, 0], sizes = [1, 512], strides = [1, 1]} : vector<4x512xf32> to vector<1x512xf32>
    %c16_i32_80 = arith.constant 16 : i32
    %187 = tpu.dynamic_rotate %176 by %c16_i32_80 dim 1 : vector<16x512xf32>, i32 -> vector<16x512xf32>
    %188 = vector.broadcast %186 : vector<1x512xf32> to vector<16x512xf32>
    %189 = arith.mulf %188, %187 : vector<16x512xf32>
    %190 = arith.addf %185, %189 : vector<16x512xf32>
    %191 = vector.extract_strided_slice %177 {offsets = [3, 0], sizes = [1, 512], strides = [1, 1]} : vector<4x512xf32> to vector<1x512xf32>
    %c17_i32_81 = arith.constant 17 : i32
    %192 = tpu.dynamic_rotate %176 by %c17_i32_81 dim 1 : vector<16x512xf32>, i32 -> vector<16x512xf32>
    %193 = vector.broadcast %191 : vector<1x512xf32> to vector<16x512xf32>
    %194 = arith.mulf %193, %192 : vector<16x512xf32>
    %195 = arith.addf %190, %194 : vector<16x512xf32>
    %196 = tpu.concatenate %86, %195 in 0 : vector<8x512xf32>, vector<16x512xf32> -> vector<24x512xf32>
    %197 = vector.extract_strided_slice %1 {offsets = [0, 0], sizes = [1, 512], strides = [1, 1]} : vector<9x512xf32> to vector<1x512xf32>
    %c17_i32_82 = arith.constant 17 : i32
    %198 = tpu.dynamic_rotate %196 by %c17_i32_82 dim 1 : vector<24x512xf32>, i32 -> vector<24x512xf32>
    %199 = vector.broadcast %197 : vector<1x512xf32> to vector<24x512xf32>
    %200 = arith.mulf %199, %198 : vector<24x512xf32>
    %201 = arith.truncf %200 : vector<24x512xf32> to vector<24x512xbf16>
    %c0_83 = arith.constant 0 : index
    %c0_84 = arith.constant 0 : index
    %c0_85 = arith.constant 0 : index
    %202 = vector.load %arg6[%c0_83, %c0_84, %c0_85] : memref<9x8x24xbf16, #tpu.memory_space<vmem>>, vector<1x8x24xbf16>
    %203 = vector.shape_cast %202 : vector<1x8x24xbf16> to vector<8x24xbf16>
    %cst_86 = arith.constant dense<0.000000e+00> : vector<8x512xf32>
    %204 = tpu.matmul %203, %201, %cst_86 {dimension_numbers = #tpu.dot_dimension_numbers<[1], [0], [0], [1], [0, 0, 1, 1], [], []>} : vector<8x24xbf16>, vector<24x512xbf16>, vector<8x512xf32> -> vector<8x512xf32>
    %205 = vector.extract_strided_slice %1 {offsets = [1, 0], sizes = [1, 512], strides = [1, 1]} : vector<9x512xf32> to vector<1x512xf32>
    %c16_i32_87 = arith.constant 16 : i32
    %206 = tpu.dynamic_rotate %196 by %c16_i32_87 dim 1 : vector<24x512xf32>, i32 -> vector<24x512xf32>
    %207 = vector.broadcast %205 : vector<1x512xf32> to vector<24x512xf32>
    %208 = arith.mulf %207, %206 : vector<24x512xf32>
    %209 = arith.truncf %208 : vector<24x512xf32> to vector<24x512xbf16>
    %c1_88 = arith.constant 1 : index
    %c0_89 = arith.constant 0 : index
    %c0_90 = arith.constant 0 : index
    %210 = vector.load %arg6[%c1_88, %c0_89, %c0_90] : memref<9x8x24xbf16, #tpu.memory_space<vmem>>, vector<1x8x24xbf16>
    %211 = vector.shape_cast %210 : vector<1x8x24xbf16> to vector<8x24xbf16>
    %cst_91 = arith.constant dense<0.000000e+00> : vector<8x512xf32>
    %212 = tpu.matmul %211, %209, %cst_91 {dimension_numbers = #tpu.dot_dimension_numbers<[1], [0], [0], [1], [0, 0, 1, 1], [], []>} : vector<8x24xbf16>, vector<24x512xbf16>, vector<8x512xf32> -> vector<8x512xf32>
    %213 = arith.addf %204, %212 : vector<8x512xf32>
    %214 = vector.extract_strided_slice %1 {offsets = [2, 0], sizes = [1, 512], strides = [1, 1]} : vector<9x512xf32> to vector<1x512xf32>
    %c15_i32_92 = arith.constant 15 : i32
    %215 = tpu.dynamic_rotate %196 by %c15_i32_92 dim 1 : vector<24x512xf32>, i32 -> vector<24x512xf32>
    %216 = vector.broadcast %214 : vector<1x512xf32> to vector<24x512xf32>
    %217 = arith.mulf %216, %215 : vector<24x512xf32>
    %218 = arith.truncf %217 : vector<24x512xf32> to vector<24x512xbf16>
    %c2_93 = arith.constant 2 : index
    %c0_94 = arith.constant 0 : index
    %c0_95 = arith.constant 0 : index
    %219 = vector.load %arg6[%c2_93, %c0_94, %c0_95] : memref<9x8x24xbf16, #tpu.memory_space<vmem>>, vector<1x8x24xbf16>
    %220 = vector.shape_cast %219 : vector<1x8x24xbf16> to vector<8x24xbf16>
    %cst_96 = arith.constant dense<0.000000e+00> : vector<8x512xf32>
    %221 = tpu.matmul %220, %218, %cst_96 {dimension_numbers = #tpu.dot_dimension_numbers<[1], [0], [0], [1], [0, 0, 1, 1], [], []>} : vector<8x24xbf16>, vector<24x512xbf16>, vector<8x512xf32> -> vector<8x512xf32>
    %222 = arith.addf %213, %221 : vector<8x512xf32>
    %223 = vector.extract_strided_slice %1 {offsets = [3, 0], sizes = [1, 512], strides = [1, 1]} : vector<9x512xf32> to vector<1x512xf32>
    %c1_i32_97 = arith.constant 1 : i32
    %224 = tpu.dynamic_rotate %196 by %c1_i32_97 dim 1 : vector<24x512xf32>, i32 -> vector<24x512xf32>
    %225 = vector.broadcast %223 : vector<1x512xf32> to vector<24x512xf32>
    %226 = arith.mulf %225, %224 : vector<24x512xf32>
    %227 = arith.truncf %226 : vector<24x512xf32> to vector<24x512xbf16>
    %c3_98 = arith.constant 3 : index
    %c0_99 = arith.constant 0 : index
    %c0_100 = arith.constant 0 : index
    %228 = vector.load %arg6[%c3_98, %c0_99, %c0_100] : memref<9x8x24xbf16, #tpu.memory_space<vmem>>, vector<1x8x24xbf16>
    %229 = vector.shape_cast %228 : vector<1x8x24xbf16> to vector<8x24xbf16>
    %cst_101 = arith.constant dense<0.000000e+00> : vector<8x512xf32>
    %230 = tpu.matmul %229, %227, %cst_101 {dimension_numbers = #tpu.dot_dimension_numbers<[1], [0], [0], [1], [0, 0, 1, 1], [], []>} : vector<8x24xbf16>, vector<24x512xbf16>, vector<8x512xf32> -> vector<8x512xf32>
    %231 = arith.addf %222, %230 : vector<8x512xf32>
    %232 = vector.extract_strided_slice %1 {offsets = [4, 0], sizes = [1, 512], strides = [1, 1]} : vector<9x512xf32> to vector<1x512xf32>
    %233 = vector.broadcast %232 : vector<1x512xf32> to vector<24x512xf32>
    %234 = arith.mulf %233, %196 : vector<24x512xf32>
    %235 = arith.truncf %234 : vector<24x512xf32> to vector<24x512xbf16>
    %c4_102 = arith.constant 4 : index
    %c0_103 = arith.constant 0 : index
    %c0_104 = arith.constant 0 : index
    %236 = vector.load %arg6[%c4_102, %c0_103, %c0_104] : memref<9x8x24xbf16, #tpu.memory_space<vmem>>, vector<1x8x24xbf16>
    %237 = vector.shape_cast %236 : vector<1x8x24xbf16> to vector<8x24xbf16>
    %cst_105 = arith.constant dense<0.000000e+00> : vector<8x512xf32>
    %238 = tpu.matmul %237, %235, %cst_105 {dimension_numbers = #tpu.dot_dimension_numbers<[1], [0], [0], [1], [0, 0, 1, 1], [], []>} : vector<8x24xbf16>, vector<24x512xbf16>, vector<8x512xf32> -> vector<8x512xf32>
    %239 = arith.addf %231, %238 : vector<8x512xf32>
    %240 = vector.extract_strided_slice %1 {offsets = [5, 0], sizes = [1, 512], strides = [1, 1]} : vector<9x512xf32> to vector<1x512xf32>
    %c511_i32_106 = arith.constant 511 : i32
    %241 = tpu.dynamic_rotate %196 by %c511_i32_106 dim 1 : vector<24x512xf32>, i32 -> vector<24x512xf32>
    %242 = vector.broadcast %240 : vector<1x512xf32> to vector<24x512xf32>
    %243 = arith.mulf %242, %241 : vector<24x512xf32>
    %244 = arith.truncf %243 : vector<24x512xf32> to vector<24x512xbf16>
    %c5_107 = arith.constant 5 : index
    %c0_108 = arith.constant 0 : index
    %c0_109 = arith.constant 0 : index
    %245 = vector.load %arg6[%c5_107, %c0_108, %c0_109] : memref<9x8x24xbf16, #tpu.memory_space<vmem>>, vector<1x8x24xbf16>
    %246 = vector.shape_cast %245 : vector<1x8x24xbf16> to vector<8x24xbf16>
    %cst_110 = arith.constant dense<0.000000e+00> : vector<8x512xf32>
    %247 = tpu.matmul %246, %244, %cst_110 {dimension_numbers = #tpu.dot_dimension_numbers<[1], [0], [0], [1], [0, 0, 1, 1], [], []>} : vector<8x24xbf16>, vector<24x512xbf16>, vector<8x512xf32> -> vector<8x512xf32>
    %248 = arith.addf %239, %247 : vector<8x512xf32>
    %249 = vector.extract_strided_slice %1 {offsets = [6, 0], sizes = [1, 512], strides = [1, 1]} : vector<9x512xf32> to vector<1x512xf32>
    %c497_i32_111 = arith.constant 497 : i32
    %250 = tpu.dynamic_rotate %196 by %c497_i32_111 dim 1 : vector<24x512xf32>, i32 -> vector<24x512xf32>
    %251 = vector.broadcast %249 : vector<1x512xf32> to vector<24x512xf32>
    %252 = arith.mulf %251, %250 : vector<24x512xf32>
    %253 = arith.truncf %252 : vector<24x512xf32> to vector<24x512xbf16>
    %c6_112 = arith.constant 6 : index
    %c0_113 = arith.constant 0 : index
    %c0_114 = arith.constant 0 : index
    %254 = vector.load %arg6[%c6_112, %c0_113, %c0_114] : memref<9x8x24xbf16, #tpu.memory_space<vmem>>, vector<1x8x24xbf16>
    %255 = vector.shape_cast %254 : vector<1x8x24xbf16> to vector<8x24xbf16>
    %cst_115 = arith.constant dense<0.000000e+00> : vector<8x512xf32>
    %256 = tpu.matmul %255, %253, %cst_115 {dimension_numbers = #tpu.dot_dimension_numbers<[1], [0], [0], [1], [0, 0, 1, 1], [], []>} : vector<8x24xbf16>, vector<24x512xbf16>, vector<8x512xf32> -> vector<8x512xf32>
    %257 = arith.addf %248, %256 : vector<8x512xf32>
    %258 = vector.extract_strided_slice %1 {offsets = [7, 0], sizes = [1, 512], strides = [1, 1]} : vector<9x512xf32> to vector<1x512xf32>
    %c496_i32_116 = arith.constant 496 : i32
    %259 = tpu.dynamic_rotate %196 by %c496_i32_116 dim 1 : vector<24x512xf32>, i32 -> vector<24x512xf32>
    %260 = vector.broadcast %258 : vector<1x512xf32> to vector<24x512xf32>
    %261 = arith.mulf %260, %259 : vector<24x512xf32>
    %262 = arith.truncf %261 : vector<24x512xf32> to vector<24x512xbf16>
    %c7_117 = arith.constant 7 : index
    %c0_118 = arith.constant 0 : index
    %c0_119 = arith.constant 0 : index
    %263 = vector.load %arg6[%c7_117, %c0_118, %c0_119] : memref<9x8x24xbf16, #tpu.memory_space<vmem>>, vector<1x8x24xbf16>
    %264 = vector.shape_cast %263 : vector<1x8x24xbf16> to vector<8x24xbf16>
    %cst_120 = arith.constant dense<0.000000e+00> : vector<8x512xf32>
    %265 = tpu.matmul %264, %262, %cst_120 {dimension_numbers = #tpu.dot_dimension_numbers<[1], [0], [0], [1], [0, 0, 1, 1], [], []>} : vector<8x24xbf16>, vector<24x512xbf16>, vector<8x512xf32> -> vector<8x512xf32>
    %266 = arith.addf %257, %265 : vector<8x512xf32>
    %267 = vector.extract_strided_slice %1 {offsets = [8, 0], sizes = [1, 512], strides = [1, 1]} : vector<9x512xf32> to vector<1x512xf32>
    %c495_i32_121 = arith.constant 495 : i32
    %268 = tpu.dynamic_rotate %196 by %c495_i32_121 dim 1 : vector<24x512xf32>, i32 -> vector<24x512xf32>
    %269 = vector.broadcast %267 : vector<1x512xf32> to vector<24x512xf32>
    %270 = arith.mulf %269, %268 : vector<24x512xf32>
    %271 = arith.truncf %270 : vector<24x512xf32> to vector<24x512xbf16>
    %c8_122 = arith.constant 8 : index
    %c0_123 = arith.constant 0 : index
    %c0_124 = arith.constant 0 : index
    %272 = vector.load %arg6[%c8_122, %c0_123, %c0_124] : memref<9x8x24xbf16, #tpu.memory_space<vmem>>, vector<1x8x24xbf16>
    %273 = vector.shape_cast %272 : vector<1x8x24xbf16> to vector<8x24xbf16>
    %cst_125 = arith.constant dense<0.000000e+00> : vector<8x512xf32>
    %274 = tpu.matmul %273, %271, %cst_125 {dimension_numbers = #tpu.dot_dimension_numbers<[1], [0], [0], [1], [0, 0, 1, 1], [], []>} : vector<8x24xbf16>, vector<24x512xbf16>, vector<8x512xf32> -> vector<8x512xf32>
    %275 = arith.addf %266, %274 : vector<8x512xf32>
    %c0_126 = arith.constant 0 : index
    %c0_127 = arith.constant 0 : index
    %276 = vector.load %arg7[%c0_126, %c0_127] : memref<8x1xf32, #tpu.memory_space<vmem>>, vector<8x1xf32>
    %277 = vector.broadcast %276 : vector<8x1xf32> to vector<8x512xf32>
    %278 = arith.addf %275, %277 : vector<8x512xf32>
    %cst_128 = arith.constant 0.000000e+00 : f32
    %279 = vector.broadcast %cst_128 : f32 to vector<8x512xf32>
    %280 = arith.maximumf %278, %279 : vector<8x512xf32>
    %c0_129 = arith.constant 0 : index
    %c0_130 = arith.constant 0 : index
    %281 = vector.load %arg8[%c0_129, %c0_130] : memref<28x8xbf16, #tpu.memory_space<vmem>>, vector<28x8xbf16>
    %282 = arith.truncf %280 : vector<8x512xf32> to vector<8x512xbf16>
    %cst_131 = arith.constant dense<0.000000e+00> : vector<28x512xf32>
    %283 = tpu.matmul %281, %282, %cst_131 {dimension_numbers = #tpu.dot_dimension_numbers<[1], [0], [0], [1], [0, 0, 1, 1], [], []>} : vector<28x8xbf16>, vector<8x512xbf16>, vector<28x512xf32> -> vector<28x512xf32>
    %c0_132 = arith.constant 0 : index
    %c0_133 = arith.constant 0 : index
    %284 = vector.load %arg9[%c0_132, %c0_133] : memref<28x1xf32, #tpu.memory_space<vmem>>, vector<28x1xf32>
    %285 = vector.broadcast %284 : vector<28x1xf32> to vector<28x512xf32>
    %286 = arith.addf %283, %285 : vector<28x512xf32>
    %287 = vector.extract_strided_slice %286 {offsets = [0, 0], sizes = [18, 512], strides = [1, 1]} : vector<28x512xf32> to vector<18x512xf32>
    %cst_134 = arith.constant dense<0xFF800000> : vector<512xf32>
    %288 = vector.multi_reduction <maximumf>, %287, %cst_134 [0] : vector<18x512xf32> to vector<512xf32>
    %289 = vector.shape_cast %288 : vector<512xf32> to vector<1x512xf32>
    %290 = vector.broadcast %289 : vector<1x512xf32> to vector<18x512xf32>
    %291 = arith.subf %287, %290 : vector<18x512xf32>
    %292 = math.exp %291 : vector<18x512xf32>
    %cst_135 = arith.constant dense<0.000000e+00> : vector<512xf32>
    %293 = vector.multi_reduction <add>, %292, %cst_135 [0] : vector<18x512xf32> to vector<512xf32>
    %294 = vector.shape_cast %293 : vector<512xf32> to vector<1x512xf32>
    %295 = tpu.reciprocal %294 {approx = true} : vector<1x512xf32> -> vector<1x512xf32>
    %296 = vector.broadcast %295 : vector<1x512xf32> to vector<18x512xf32>
    %297 = arith.mulf %292, %296 : vector<18x512xf32>
    %298 = vector.extract_strided_slice %286 {offsets = [18, 0], sizes = [10, 512], strides = [1, 1]} : vector<28x512xf32> to vector<10x512xf32>
    %cst_136 = arith.constant dense<0xFF800000> : vector<512xf32>
    %299 = vector.multi_reduction <maximumf>, %298, %cst_136 [0] : vector<10x512xf32> to vector<512xf32>
    %300 = vector.shape_cast %299 : vector<512xf32> to vector<1x512xf32>
    %301 = vector.broadcast %300 : vector<1x512xf32> to vector<10x512xf32>
    %302 = arith.subf %298, %301 : vector<10x512xf32>
    %303 = math.exp %302 : vector<10x512xf32>
    %cst_137 = arith.constant dense<0.000000e+00> : vector<512xf32>
    %304 = vector.multi_reduction <add>, %303, %cst_137 [0] : vector<10x512xf32> to vector<512xf32>
    %305 = vector.shape_cast %304 : vector<512xf32> to vector<1x512xf32>
    %306 = tpu.reciprocal %305 {approx = true} : vector<1x512xf32> -> vector<1x512xf32>
    %307 = vector.broadcast %306 : vector<1x512xf32> to vector<10x512xf32>
    %308 = arith.mulf %303, %307 : vector<10x512xf32>
    %309 = vector.extract_strided_slice %1 {offsets = [0, 0], sizes = [1, 512], strides = [1, 1]} : vector<9x512xf32> to vector<1x512xf32>
    %c17_i32_138 = arith.constant 17 : i32
    %310 = tpu.dynamic_rotate %0 by %c17_i32_138 dim 1 : vector<4x512xf32>, i32 -> vector<4x512xf32>
    %311 = vector.broadcast %309 : vector<1x512xf32> to vector<4x512xf32>
    %312 = arith.mulf %311, %310 : vector<4x512xf32>
    %313 = vector.extract_strided_slice %297 {offsets = [0, 0], sizes = [1, 512], strides = [1, 1]} : vector<18x512xf32> to vector<1x512xf32>
    %314 = vector.extract_strided_slice %312 {offsets = [0, 0], sizes = [2, 512], strides = [1, 1]} : vector<4x512xf32> to vector<2x512xf32>
    %315 = vector.broadcast %313 : vector<1x512xf32> to vector<2x512xf32>
    %316 = arith.mulf %315, %314 : vector<2x512xf32>
    %317 = vector.extract_strided_slice %297 {offsets = [9, 0], sizes = [1, 512], strides = [1, 1]} : vector<18x512xf32> to vector<1x512xf32>
    %318 = vector.extract_strided_slice %312 {offsets = [2, 0], sizes = [2, 512], strides = [1, 1]} : vector<4x512xf32> to vector<2x512xf32>
    %319 = vector.broadcast %317 : vector<1x512xf32> to vector<2x512xf32>
    %320 = arith.mulf %319, %318 : vector<2x512xf32>
    %321 = arith.addf %316, %320 : vector<2x512xf32>
    %322 = vector.extract_strided_slice %1 {offsets = [1, 0], sizes = [1, 512], strides = [1, 1]} : vector<9x512xf32> to vector<1x512xf32>
    %c16_i32_139 = arith.constant 16 : i32
    %323 = tpu.dynamic_rotate %0 by %c16_i32_139 dim 1 : vector<4x512xf32>, i32 -> vector<4x512xf32>
    %324 = vector.broadcast %322 : vector<1x512xf32> to vector<4x512xf32>
    %325 = arith.mulf %324, %323 : vector<4x512xf32>
    %326 = vector.extract_strided_slice %297 {offsets = [1, 0], sizes = [1, 512], strides = [1, 1]} : vector<18x512xf32> to vector<1x512xf32>
    %327 = vector.extract_strided_slice %325 {offsets = [0, 0], sizes = [2, 512], strides = [1, 1]} : vector<4x512xf32> to vector<2x512xf32>
    %328 = vector.broadcast %326 : vector<1x512xf32> to vector<2x512xf32>
    %329 = arith.mulf %328, %327 : vector<2x512xf32>
    %330 = vector.extract_strided_slice %297 {offsets = [10, 0], sizes = [1, 512], strides = [1, 1]} : vector<18x512xf32> to vector<1x512xf32>
    %331 = vector.extract_strided_slice %325 {offsets = [2, 0], sizes = [2, 512], strides = [1, 1]} : vector<4x512xf32> to vector<2x512xf32>
    %332 = vector.broadcast %330 : vector<1x512xf32> to vector<2x512xf32>
    %333 = arith.mulf %332, %331 : vector<2x512xf32>
    %334 = arith.addf %329, %333 : vector<2x512xf32>
    %335 = arith.addf %321, %334 : vector<2x512xf32>
    %336 = vector.extract_strided_slice %1 {offsets = [2, 0], sizes = [1, 512], strides = [1, 1]} : vector<9x512xf32> to vector<1x512xf32>
    %c15_i32_140 = arith.constant 15 : i32
    %337 = tpu.dynamic_rotate %0 by %c15_i32_140 dim 1 : vector<4x512xf32>, i32 -> vector<4x512xf32>
    %338 = vector.broadcast %336 : vector<1x512xf32> to vector<4x512xf32>
    %339 = arith.mulf %338, %337 : vector<4x512xf32>
    %340 = vector.extract_strided_slice %297 {offsets = [2, 0], sizes = [1, 512], strides = [1, 1]} : vector<18x512xf32> to vector<1x512xf32>
    %341 = vector.extract_strided_slice %339 {offsets = [0, 0], sizes = [2, 512], strides = [1, 1]} : vector<4x512xf32> to vector<2x512xf32>
    %342 = vector.broadcast %340 : vector<1x512xf32> to vector<2x512xf32>
    %343 = arith.mulf %342, %341 : vector<2x512xf32>
    %344 = vector.extract_strided_slice %297 {offsets = [11, 0], sizes = [1, 512], strides = [1, 1]} : vector<18x512xf32> to vector<1x512xf32>
    %345 = vector.extract_strided_slice %339 {offsets = [2, 0], sizes = [2, 512], strides = [1, 1]} : vector<4x512xf32> to vector<2x512xf32>
    %346 = vector.broadcast %344 : vector<1x512xf32> to vector<2x512xf32>
    %347 = arith.mulf %346, %345 : vector<2x512xf32>
    %348 = arith.addf %343, %347 : vector<2x512xf32>
    %349 = arith.addf %335, %348 : vector<2x512xf32>
    %350 = vector.extract_strided_slice %1 {offsets = [3, 0], sizes = [1, 512], strides = [1, 1]} : vector<9x512xf32> to vector<1x512xf32>
    %c1_i32_141 = arith.constant 1 : i32
    %351 = tpu.dynamic_rotate %0 by %c1_i32_141 dim 1 : vector<4x512xf32>, i32 -> vector<4x512xf32>
    %352 = vector.broadcast %350 : vector<1x512xf32> to vector<4x512xf32>
    %353 = arith.mulf %352, %351 : vector<4x512xf32>
    %354 = vector.extract_strided_slice %297 {offsets = [3, 0], sizes = [1, 512], strides = [1, 1]} : vector<18x512xf32> to vector<1x512xf32>
    %355 = vector.extract_strided_slice %353 {offsets = [0, 0], sizes = [2, 512], strides = [1, 1]} : vector<4x512xf32> to vector<2x512xf32>
    %356 = vector.broadcast %354 : vector<1x512xf32> to vector<2x512xf32>
    %357 = arith.mulf %356, %355 : vector<2x512xf32>
    %358 = vector.extract_strided_slice %297 {offsets = [12, 0], sizes = [1, 512], strides = [1, 1]} : vector<18x512xf32> to vector<1x512xf32>
    %359 = vector.extract_strided_slice %353 {offsets = [2, 0], sizes = [2, 512], strides = [1, 1]} : vector<4x512xf32> to vector<2x512xf32>
    %360 = vector.broadcast %358 : vector<1x512xf32> to vector<2x512xf32>
    %361 = arith.mulf %360, %359 : vector<2x512xf32>
    %362 = arith.addf %357, %361 : vector<2x512xf32>
    %363 = arith.addf %349, %362 : vector<2x512xf32>
    %364 = vector.extract_strided_slice %1 {offsets = [4, 0], sizes = [1, 512], strides = [1, 1]} : vector<9x512xf32> to vector<1x512xf32>
    %365 = vector.broadcast %364 : vector<1x512xf32> to vector<4x512xf32>
    %366 = arith.mulf %365, %0 : vector<4x512xf32>
    %367 = vector.extract_strided_slice %297 {offsets = [4, 0], sizes = [1, 512], strides = [1, 1]} : vector<18x512xf32> to vector<1x512xf32>
    %368 = vector.extract_strided_slice %366 {offsets = [0, 0], sizes = [2, 512], strides = [1, 1]} : vector<4x512xf32> to vector<2x512xf32>
    %369 = vector.broadcast %367 : vector<1x512xf32> to vector<2x512xf32>
    %370 = arith.mulf %369, %368 : vector<2x512xf32>
    %371 = vector.extract_strided_slice %297 {offsets = [13, 0], sizes = [1, 512], strides = [1, 1]} : vector<18x512xf32> to vector<1x512xf32>
    %372 = vector.extract_strided_slice %366 {offsets = [2, 0], sizes = [2, 512], strides = [1, 1]} : vector<4x512xf32> to vector<2x512xf32>
    %373 = vector.broadcast %371 : vector<1x512xf32> to vector<2x512xf32>
    %374 = arith.mulf %373, %372 : vector<2x512xf32>
    %375 = arith.addf %370, %374 : vector<2x512xf32>
    %376 = arith.addf %363, %375 : vector<2x512xf32>
    %377 = vector.extract_strided_slice %1 {offsets = [5, 0], sizes = [1, 512], strides = [1, 1]} : vector<9x512xf32> to vector<1x512xf32>
    %c511_i32_142 = arith.constant 511 : i32
    %378 = tpu.dynamic_rotate %0 by %c511_i32_142 dim 1 : vector<4x512xf32>, i32 -> vector<4x512xf32>
    %379 = vector.broadcast %377 : vector<1x512xf32> to vector<4x512xf32>
    %380 = arith.mulf %379, %378 : vector<4x512xf32>
    %381 = vector.extract_strided_slice %297 {offsets = [5, 0], sizes = [1, 512], strides = [1, 1]} : vector<18x512xf32> to vector<1x512xf32>
    %382 = vector.extract_strided_slice %380 {offsets = [0, 0], sizes = [2, 512], strides = [1, 1]} : vector<4x512xf32> to vector<2x512xf32>
    %383 = vector.broadcast %381 : vector<1x512xf32> to vector<2x512xf32>
    %384 = arith.mulf %383, %382 : vector<2x512xf32>
    %385 = vector.extract_strided_slice %297 {offsets = [14, 0], sizes = [1, 512], strides = [1, 1]} : vector<18x512xf32> to vector<1x512xf32>
    %386 = vector.extract_strided_slice %380 {offsets = [2, 0], sizes = [2, 512], strides = [1, 1]} : vector<4x512xf32> to vector<2x512xf32>
    %387 = vector.broadcast %385 : vector<1x512xf32> to vector<2x512xf32>
    %388 = arith.mulf %387, %386 : vector<2x512xf32>
    %389 = arith.addf %384, %388 : vector<2x512xf32>
    %390 = arith.addf %376, %389 : vector<2x512xf32>
    %391 = vector.extract_strided_slice %1 {offsets = [6, 0], sizes = [1, 512], strides = [1, 1]} : vector<9x512xf32> to vector<1x512xf32>
    %c497_i32_143 = arith.constant 497 : i32
    %392 = tpu.dynamic_rotate %0 by %c497_i32_143 dim 1 : vector<4x512xf32>, i32 -> vector<4x512xf32>
    %393 = vector.broadcast %391 : vector<1x512xf32> to vector<4x512xf32>
    %394 = arith.mulf %393, %392 : vector<4x512xf32>
    %395 = vector.extract_strided_slice %297 {offsets = [6, 0], sizes = [1, 512], strides = [1, 1]} : vector<18x512xf32> to vector<1x512xf32>
    %396 = vector.extract_strided_slice %394 {offsets = [0, 0], sizes = [2, 512], strides = [1, 1]} : vector<4x512xf32> to vector<2x512xf32>
    %397 = vector.broadcast %395 : vector<1x512xf32> to vector<2x512xf32>
    %398 = arith.mulf %397, %396 : vector<2x512xf32>
    %399 = vector.extract_strided_slice %297 {offsets = [15, 0], sizes = [1, 512], strides = [1, 1]} : vector<18x512xf32> to vector<1x512xf32>
    %400 = vector.extract_strided_slice %394 {offsets = [2, 0], sizes = [2, 512], strides = [1, 1]} : vector<4x512xf32> to vector<2x512xf32>
    %401 = vector.broadcast %399 : vector<1x512xf32> to vector<2x512xf32>
    %402 = arith.mulf %401, %400 : vector<2x512xf32>
    %403 = arith.addf %398, %402 : vector<2x512xf32>
    %404 = arith.addf %390, %403 : vector<2x512xf32>
    %405 = vector.extract_strided_slice %1 {offsets = [7, 0], sizes = [1, 512], strides = [1, 1]} : vector<9x512xf32> to vector<1x512xf32>
    %c496_i32_144 = arith.constant 496 : i32
    %406 = tpu.dynamic_rotate %0 by %c496_i32_144 dim 1 : vector<4x512xf32>, i32 -> vector<4x512xf32>
    %407 = vector.broadcast %405 : vector<1x512xf32> to vector<4x512xf32>
    %408 = arith.mulf %407, %406 : vector<4x512xf32>
    %409 = vector.extract_strided_slice %297 {offsets = [7, 0], sizes = [1, 512], strides = [1, 1]} : vector<18x512xf32> to vector<1x512xf32>
    %410 = vector.extract_strided_slice %408 {offsets = [0, 0], sizes = [2, 512], strides = [1, 1]} : vector<4x512xf32> to vector<2x512xf32>
    %411 = vector.broadcast %409 : vector<1x512xf32> to vector<2x512xf32>
    %412 = arith.mulf %411, %410 : vector<2x512xf32>
    %413 = vector.extract_strided_slice %297 {offsets = [16, 0], sizes = [1, 512], strides = [1, 1]} : vector<18x512xf32> to vector<1x512xf32>
    %414 = vector.extract_strided_slice %408 {offsets = [2, 0], sizes = [2, 512], strides = [1, 1]} : vector<4x512xf32> to vector<2x512xf32>
    %415 = vector.broadcast %413 : vector<1x512xf32> to vector<2x512xf32>
    %416 = arith.mulf %415, %414 : vector<2x512xf32>
    %417 = arith.addf %412, %416 : vector<2x512xf32>
    %418 = arith.addf %404, %417 : vector<2x512xf32>
    %419 = vector.extract_strided_slice %1 {offsets = [8, 0], sizes = [1, 512], strides = [1, 1]} : vector<9x512xf32> to vector<1x512xf32>
    %c495_i32_145 = arith.constant 495 : i32
    %420 = tpu.dynamic_rotate %0 by %c495_i32_145 dim 1 : vector<4x512xf32>, i32 -> vector<4x512xf32>
    %421 = vector.broadcast %419 : vector<1x512xf32> to vector<4x512xf32>
    %422 = arith.mulf %421, %420 : vector<4x512xf32>
    %423 = vector.extract_strided_slice %297 {offsets = [8, 0], sizes = [1, 512], strides = [1, 1]} : vector<18x512xf32> to vector<1x512xf32>
    %424 = vector.extract_strided_slice %422 {offsets = [0, 0], sizes = [2, 512], strides = [1, 1]} : vector<4x512xf32> to vector<2x512xf32>
    %425 = vector.broadcast %423 : vector<1x512xf32> to vector<2x512xf32>
    %426 = arith.mulf %425, %424 : vector<2x512xf32>
    %427 = vector.extract_strided_slice %297 {offsets = [17, 0], sizes = [1, 512], strides = [1, 1]} : vector<18x512xf32> to vector<1x512xf32>
    %428 = vector.extract_strided_slice %422 {offsets = [2, 0], sizes = [2, 512], strides = [1, 1]} : vector<4x512xf32> to vector<2x512xf32>
    %429 = vector.broadcast %427 : vector<1x512xf32> to vector<2x512xf32>
    %430 = arith.mulf %429, %428 : vector<2x512xf32>
    %431 = arith.addf %426, %430 : vector<2x512xf32>
    %432 = arith.addf %418, %431 : vector<2x512xf32>
    %c511_i32_146 = arith.constant 511 : i32
    %433 = tpu.dynamic_rotate %432 by %c511_i32_146 dim 1 : vector<2x512xf32>, i32 -> vector<2x512xf32>
    %434 = arith.addf %432, %433 : vector<2x512xf32>
    %c496_i32_147 = arith.constant 496 : i32
    %435 = tpu.dynamic_rotate %432 by %c496_i32_147 dim 1 : vector<2x512xf32>, i32 -> vector<2x512xf32>
    %436 = arith.addf %434, %435 : vector<2x512xf32>
    %c495_i32_148 = arith.constant 495 : i32
    %437 = tpu.dynamic_rotate %432 by %c495_i32_148 dim 1 : vector<2x512xf32>, i32 -> vector<2x512xf32>
    %438 = arith.addf %436, %437 : vector<2x512xf32>
    %cst_149 = arith.constant 2.500000e-01 : f32
    %439 = vector.broadcast %cst_149 : f32 to vector<2x512xf32>
    %440 = arith.mulf %439, %438 : vector<2x512xf32>
    %c0_150 = arith.constant 0 : index
    %c0_151 = arith.constant 0 : index
    %441 = vector.load %arg10[%c0_150, %c0_151] : memref<9x16xbf16, #tpu.memory_space<vmem>>, vector<9x16xbf16>
    %442 = arith.truncf %176 : vector<16x512xf32> to vector<16x512xbf16>
    %cst_152 = arith.constant dense<0.000000e+00> : vector<9x512xf32>
    %443 = tpu.matmul %441, %442, %cst_152 {dimension_numbers = #tpu.dot_dimension_numbers<[1], [0], [0], [1], [0, 0, 1, 1], [], []>} : vector<9x16xbf16>, vector<16x512xbf16>, vector<9x512xf32> -> vector<9x512xf32>
    %c0_153 = arith.constant 0 : index
    %c0_154 = arith.constant 0 : index
    %444 = vector.load %arg11[%c0_153, %c0_154] : memref<9x1xf32, #tpu.memory_space<vmem>>, vector<9x1xf32>
    %445 = vector.broadcast %444 : vector<9x1xf32> to vector<9x512xf32>
    %446 = arith.addf %443, %445 : vector<9x512xf32>
    %cst_155 = arith.constant dense<0xFF800000> : vector<512xf32>
    %447 = vector.multi_reduction <maximumf>, %446, %cst_155 [0] : vector<9x512xf32> to vector<512xf32>
    %448 = vector.shape_cast %447 : vector<512xf32> to vector<1x512xf32>
    %449 = vector.broadcast %448 : vector<1x512xf32> to vector<9x512xf32>
    %450 = arith.subf %446, %449 : vector<9x512xf32>
    %451 = math.exp %450 : vector<9x512xf32>
    %cst_156 = arith.constant dense<0.000000e+00> : vector<512xf32>
    %452 = vector.multi_reduction <add>, %451, %cst_156 [0] : vector<9x512xf32> to vector<512xf32>
    %453 = vector.shape_cast %452 : vector<512xf32> to vector<1x512xf32>
    %454 = tpu.reciprocal %453 {approx = true} : vector<1x512xf32> -> vector<1x512xf32>
    %455 = vector.broadcast %454 : vector<1x512xf32> to vector<9x512xf32>
    %456 = arith.mulf %451, %455 : vector<9x512xf32>
    %457 = vector.extract_strided_slice %2 {offsets = [0, 0], sizes = [1, 512], strides = [1, 1]} : vector<9x512xf32> to vector<1x512xf32>
    %c34_i32_157 = arith.constant 34 : i32
    %458 = tpu.dynamic_rotate %440 by %c34_i32_157 dim 1 : vector<2x512xf32>, i32 -> vector<2x512xf32>
    %459 = vector.broadcast %457 : vector<1x512xf32> to vector<2x512xf32>
    %460 = arith.mulf %459, %458 : vector<2x512xf32>
    %461 = vector.extract_strided_slice %456 {offsets = [0, 0], sizes = [1, 512], strides = [1, 1]} : vector<9x512xf32> to vector<1x512xf32>
    %462 = vector.broadcast %461 : vector<1x512xf32> to vector<2x512xf32>
    %463 = arith.mulf %462, %460 : vector<2x512xf32>
    %464 = vector.extract_strided_slice %2 {offsets = [1, 0], sizes = [1, 512], strides = [1, 1]} : vector<9x512xf32> to vector<1x512xf32>
    %c32_i32_158 = arith.constant 32 : i32
    %465 = tpu.dynamic_rotate %440 by %c32_i32_158 dim 1 : vector<2x512xf32>, i32 -> vector<2x512xf32>
    %466 = vector.broadcast %464 : vector<1x512xf32> to vector<2x512xf32>
    %467 = arith.mulf %466, %465 : vector<2x512xf32>
    %468 = vector.extract_strided_slice %456 {offsets = [1, 0], sizes = [1, 512], strides = [1, 1]} : vector<9x512xf32> to vector<1x512xf32>
    %469 = vector.broadcast %468 : vector<1x512xf32> to vector<2x512xf32>
    %470 = arith.mulf %469, %467 : vector<2x512xf32>
    %471 = arith.addf %463, %470 : vector<2x512xf32>
    %472 = vector.extract_strided_slice %2 {offsets = [2, 0], sizes = [1, 512], strides = [1, 1]} : vector<9x512xf32> to vector<1x512xf32>
    %c30_i32_159 = arith.constant 30 : i32
    %473 = tpu.dynamic_rotate %440 by %c30_i32_159 dim 1 : vector<2x512xf32>, i32 -> vector<2x512xf32>
    %474 = vector.broadcast %472 : vector<1x512xf32> to vector<2x512xf32>
    %475 = arith.mulf %474, %473 : vector<2x512xf32>
    %476 = vector.extract_strided_slice %456 {offsets = [2, 0], sizes = [1, 512], strides = [1, 1]} : vector<9x512xf32> to vector<1x512xf32>
    %477 = vector.broadcast %476 : vector<1x512xf32> to vector<2x512xf32>
    %478 = arith.mulf %477, %475 : vector<2x512xf32>
    %479 = arith.addf %471, %478 : vector<2x512xf32>
    %480 = vector.extract_strided_slice %2 {offsets = [3, 0], sizes = [1, 512], strides = [1, 1]} : vector<9x512xf32> to vector<1x512xf32>
    %c2_i32_160 = arith.constant 2 : i32
    %481 = tpu.dynamic_rotate %440 by %c2_i32_160 dim 1 : vector<2x512xf32>, i32 -> vector<2x512xf32>
    %482 = vector.broadcast %480 : vector<1x512xf32> to vector<2x512xf32>
    %483 = arith.mulf %482, %481 : vector<2x512xf32>
    %484 = vector.extract_strided_slice %456 {offsets = [3, 0], sizes = [1, 512], strides = [1, 1]} : vector<9x512xf32> to vector<1x512xf32>
    %485 = vector.broadcast %484 : vector<1x512xf32> to vector<2x512xf32>
    %486 = arith.mulf %485, %483 : vector<2x512xf32>
    %487 = arith.addf %479, %486 : vector<2x512xf32>
    %488 = vector.extract_strided_slice %2 {offsets = [4, 0], sizes = [1, 512], strides = [1, 1]} : vector<9x512xf32> to vector<1x512xf32>
    %489 = vector.broadcast %488 : vector<1x512xf32> to vector<2x512xf32>
    %490 = arith.mulf %489, %440 : vector<2x512xf32>
    %491 = vector.extract_strided_slice %456 {offsets = [4, 0], sizes = [1, 512], strides = [1, 1]} : vector<9x512xf32> to vector<1x512xf32>
    %492 = vector.broadcast %491 : vector<1x512xf32> to vector<2x512xf32>
    %493 = arith.mulf %492, %490 : vector<2x512xf32>
    %494 = arith.addf %487, %493 : vector<2x512xf32>
    %495 = vector.extract_strided_slice %2 {offsets = [5, 0], sizes = [1, 512], strides = [1, 1]} : vector<9x512xf32> to vector<1x512xf32>
    %c510_i32_161 = arith.constant 510 : i32
    %496 = tpu.dynamic_rotate %440 by %c510_i32_161 dim 1 : vector<2x512xf32>, i32 -> vector<2x512xf32>
    %497 = vector.broadcast %495 : vector<1x512xf32> to vector<2x512xf32>
    %498 = arith.mulf %497, %496 : vector<2x512xf32>
    %499 = vector.extract_strided_slice %456 {offsets = [5, 0], sizes = [1, 512], strides = [1, 1]} : vector<9x512xf32> to vector<1x512xf32>
    %500 = vector.broadcast %499 : vector<1x512xf32> to vector<2x512xf32>
    %501 = arith.mulf %500, %498 : vector<2x512xf32>
    %502 = arith.addf %494, %501 : vector<2x512xf32>
    %503 = vector.extract_strided_slice %2 {offsets = [6, 0], sizes = [1, 512], strides = [1, 1]} : vector<9x512xf32> to vector<1x512xf32>
    %c482_i32_162 = arith.constant 482 : i32
    %504 = tpu.dynamic_rotate %440 by %c482_i32_162 dim 1 : vector<2x512xf32>, i32 -> vector<2x512xf32>
    %505 = vector.broadcast %503 : vector<1x512xf32> to vector<2x512xf32>
    %506 = arith.mulf %505, %504 : vector<2x512xf32>
    %507 = vector.extract_strided_slice %456 {offsets = [6, 0], sizes = [1, 512], strides = [1, 1]} : vector<9x512xf32> to vector<1x512xf32>
    %508 = vector.broadcast %507 : vector<1x512xf32> to vector<2x512xf32>
    %509 = arith.mulf %508, %506 : vector<2x512xf32>
    %510 = arith.addf %502, %509 : vector<2x512xf32>
    %511 = vector.extract_strided_slice %2 {offsets = [7, 0], sizes = [1, 512], strides = [1, 1]} : vector<9x512xf32> to vector<1x512xf32>
    %c480_i32_163 = arith.constant 480 : i32
    %512 = tpu.dynamic_rotate %440 by %c480_i32_163 dim 1 : vector<2x512xf32>, i32 -> vector<2x512xf32>
    %513 = vector.broadcast %511 : vector<1x512xf32> to vector<2x512xf32>
    %514 = arith.mulf %513, %512 : vector<2x512xf32>
    %515 = vector.extract_strided_slice %456 {offsets = [7, 0], sizes = [1, 512], strides = [1, 1]} : vector<9x512xf32> to vector<1x512xf32>
    %516 = vector.broadcast %515 : vector<1x512xf32> to vector<2x512xf32>
    %517 = arith.mulf %516, %514 : vector<2x512xf32>
    %518 = arith.addf %510, %517 : vector<2x512xf32>
    %519 = vector.extract_strided_slice %2 {offsets = [8, 0], sizes = [1, 512], strides = [1, 1]} : vector<9x512xf32> to vector<1x512xf32>
    %c478_i32_164 = arith.constant 478 : i32
    %520 = tpu.dynamic_rotate %440 by %c478_i32_164 dim 1 : vector<2x512xf32>, i32 -> vector<2x512xf32>
    %521 = vector.broadcast %519 : vector<1x512xf32> to vector<2x512xf32>
    %522 = arith.mulf %521, %520 : vector<2x512xf32>
    %523 = vector.extract_strided_slice %456 {offsets = [8, 0], sizes = [1, 512], strides = [1, 1]} : vector<9x512xf32> to vector<1x512xf32>
    %524 = vector.broadcast %523 : vector<1x512xf32> to vector<2x512xf32>
    %525 = arith.mulf %524, %522 : vector<2x512xf32>
    %526 = arith.addf %518, %525 : vector<2x512xf32>
    %c0_165 = arith.constant 0 : index
    %c0_166 = arith.constant 0 : index
    %527 = vector.load %arg15[%c0_165, %c0_166] : memref<4x512xf32, #tpu.memory_space<vmem>>, vector<4x512xf32>
    %c0_167 = arith.constant 0 : index
    %c0_168 = arith.constant 0 : index
    %528 = vector.load %arg16[%c0_167, %c0_168] : memref<4x512xf32, #tpu.memory_space<vmem>>, vector<4x512xf32>
    %529 = vector.extract_strided_slice %527 {offsets = [0, 0], sizes = [1, 512], strides = [1, 1]} : vector<4x512xf32> to vector<1x512xf32>
    %c511_i32_169 = arith.constant 511 : i32
    %530 = tpu.dynamic_rotate %526 by %c511_i32_169 dim 1 : vector<2x512xf32>, i32 -> vector<2x512xf32>
    %531 = vector.broadcast %529 : vector<1x512xf32> to vector<2x512xf32>
    %532 = arith.mulf %531, %530 : vector<2x512xf32>
    %533 = vector.extract_strided_slice %527 {offsets = [1, 0], sizes = [1, 512], strides = [1, 1]} : vector<4x512xf32> to vector<1x512xf32>
    %534 = vector.broadcast %533 : vector<1x512xf32> to vector<2x512xf32>
    %535 = arith.mulf %534, %526 : vector<2x512xf32>
    %536 = arith.addf %532, %535 : vector<2x512xf32>
    %537 = vector.extract_strided_slice %527 {offsets = [2, 0], sizes = [1, 512], strides = [1, 1]} : vector<4x512xf32> to vector<1x512xf32>
    %c1_i32_170 = arith.constant 1 : i32
    %538 = tpu.dynamic_rotate %526 by %c1_i32_170 dim 1 : vector<2x512xf32>, i32 -> vector<2x512xf32>
    %539 = vector.broadcast %537 : vector<1x512xf32> to vector<2x512xf32>
    %540 = arith.mulf %539, %538 : vector<2x512xf32>
    %541 = arith.addf %536, %540 : vector<2x512xf32>
    %542 = vector.extract_strided_slice %527 {offsets = [3, 0], sizes = [1, 512], strides = [1, 1]} : vector<4x512xf32> to vector<1x512xf32>
    %c2_i32_171 = arith.constant 2 : i32
    %543 = tpu.dynamic_rotate %526 by %c2_i32_171 dim 1 : vector<2x512xf32>, i32 -> vector<2x512xf32>
    %544 = vector.broadcast %542 : vector<1x512xf32> to vector<2x512xf32>
    %545 = arith.mulf %544, %543 : vector<2x512xf32>
    %546 = arith.addf %541, %545 : vector<2x512xf32>
    %547 = vector.extract_strided_slice %528 {offsets = [0, 0], sizes = [1, 512], strides = [1, 1]} : vector<4x512xf32> to vector<1x512xf32>
    %c496_i32_172 = arith.constant 496 : i32
    %548 = tpu.dynamic_rotate %546 by %c496_i32_172 dim 1 : vector<2x512xf32>, i32 -> vector<2x512xf32>
    %549 = vector.broadcast %547 : vector<1x512xf32> to vector<2x512xf32>
    %550 = arith.mulf %549, %548 : vector<2x512xf32>
    %551 = vector.extract_strided_slice %528 {offsets = [1, 0], sizes = [1, 512], strides = [1, 1]} : vector<4x512xf32> to vector<1x512xf32>
    %552 = vector.broadcast %551 : vector<1x512xf32> to vector<2x512xf32>
    %553 = arith.mulf %552, %546 : vector<2x512xf32>
    %554 = arith.addf %550, %553 : vector<2x512xf32>
    %555 = vector.extract_strided_slice %528 {offsets = [2, 0], sizes = [1, 512], strides = [1, 1]} : vector<4x512xf32> to vector<1x512xf32>
    %c16_i32_173 = arith.constant 16 : i32
    %556 = tpu.dynamic_rotate %546 by %c16_i32_173 dim 1 : vector<2x512xf32>, i32 -> vector<2x512xf32>
    %557 = vector.broadcast %555 : vector<1x512xf32> to vector<2x512xf32>
    %558 = arith.mulf %557, %556 : vector<2x512xf32>
    %559 = arith.addf %554, %558 : vector<2x512xf32>
    %560 = vector.extract_strided_slice %528 {offsets = [3, 0], sizes = [1, 512], strides = [1, 1]} : vector<4x512xf32> to vector<1x512xf32>
    %c32_i32_174 = arith.constant 32 : i32
    %561 = tpu.dynamic_rotate %546 by %c32_i32_174 dim 1 : vector<2x512xf32>, i32 -> vector<2x512xf32>
    %562 = vector.broadcast %560 : vector<1x512xf32> to vector<2x512xf32>
    %563 = arith.mulf %562, %561 : vector<2x512xf32>
    %564 = arith.addf %559, %563 : vector<2x512xf32>
    %565 = vector.extract_strided_slice %308 {offsets = [9, 0], sizes = [1, 512], strides = [1, 1]} : vector<10x512xf32> to vector<1x512xf32>
    %566 = vector.broadcast %565 : vector<1x512xf32> to vector<2x512xf32>
    %567 = arith.mulf %566, %432 : vector<2x512xf32>
    %568 = vector.extract_strided_slice %1 {offsets = [0, 0], sizes = [1, 512], strides = [1, 1]} : vector<9x512xf32> to vector<1x512xf32>
    %c17_i32_175 = arith.constant 17 : i32
    %569 = tpu.dynamic_rotate %564 by %c17_i32_175 dim 1 : vector<2x512xf32>, i32 -> vector<2x512xf32>
    %570 = vector.broadcast %568 : vector<1x512xf32> to vector<2x512xf32>
    %571 = arith.mulf %570, %569 : vector<2x512xf32>
    %572 = vector.extract_strided_slice %308 {offsets = [0, 0], sizes = [1, 512], strides = [1, 1]} : vector<10x512xf32> to vector<1x512xf32>
    %573 = vector.broadcast %572 : vector<1x512xf32> to vector<2x512xf32>
    %574 = arith.mulf %573, %571 : vector<2x512xf32>
    %575 = arith.addf %567, %574 : vector<2x512xf32>
    %576 = vector.extract_strided_slice %1 {offsets = [1, 0], sizes = [1, 512], strides = [1, 1]} : vector<9x512xf32> to vector<1x512xf32>
    %c16_i32_176 = arith.constant 16 : i32
    %577 = tpu.dynamic_rotate %564 by %c16_i32_176 dim 1 : vector<2x512xf32>, i32 -> vector<2x512xf32>
    %578 = vector.broadcast %576 : vector<1x512xf32> to vector<2x512xf32>
    %579 = arith.mulf %578, %577 : vector<2x512xf32>
    %580 = vector.extract_strided_slice %308 {offsets = [1, 0], sizes = [1, 512], strides = [1, 1]} : vector<10x512xf32> to vector<1x512xf32>
    %581 = vector.broadcast %580 : vector<1x512xf32> to vector<2x512xf32>
    %582 = arith.mulf %581, %579 : vector<2x512xf32>
    %583 = arith.addf %575, %582 : vector<2x512xf32>
    %584 = vector.extract_strided_slice %1 {offsets = [2, 0], sizes = [1, 512], strides = [1, 1]} : vector<9x512xf32> to vector<1x512xf32>
    %c15_i32_177 = arith.constant 15 : i32
    %585 = tpu.dynamic_rotate %564 by %c15_i32_177 dim 1 : vector<2x512xf32>, i32 -> vector<2x512xf32>
    %586 = vector.broadcast %584 : vector<1x512xf32> to vector<2x512xf32>
    %587 = arith.mulf %586, %585 : vector<2x512xf32>
    %588 = vector.extract_strided_slice %308 {offsets = [2, 0], sizes = [1, 512], strides = [1, 1]} : vector<10x512xf32> to vector<1x512xf32>
    %589 = vector.broadcast %588 : vector<1x512xf32> to vector<2x512xf32>
    %590 = arith.mulf %589, %587 : vector<2x512xf32>
    %591 = arith.addf %583, %590 : vector<2x512xf32>
    %592 = vector.extract_strided_slice %1 {offsets = [3, 0], sizes = [1, 512], strides = [1, 1]} : vector<9x512xf32> to vector<1x512xf32>
    %c1_i32_178 = arith.constant 1 : i32
    %593 = tpu.dynamic_rotate %564 by %c1_i32_178 dim 1 : vector<2x512xf32>, i32 -> vector<2x512xf32>
    %594 = vector.broadcast %592 : vector<1x512xf32> to vector<2x512xf32>
    %595 = arith.mulf %594, %593 : vector<2x512xf32>
    %596 = vector.extract_strided_slice %308 {offsets = [3, 0], sizes = [1, 512], strides = [1, 1]} : vector<10x512xf32> to vector<1x512xf32>
    %597 = vector.broadcast %596 : vector<1x512xf32> to vector<2x512xf32>
    %598 = arith.mulf %597, %595 : vector<2x512xf32>
    %599 = arith.addf %591, %598 : vector<2x512xf32>
    %600 = vector.extract_strided_slice %1 {offsets = [4, 0], sizes = [1, 512], strides = [1, 1]} : vector<9x512xf32> to vector<1x512xf32>
    %601 = vector.broadcast %600 : vector<1x512xf32> to vector<2x512xf32>
    %602 = arith.mulf %601, %564 : vector<2x512xf32>
    %603 = vector.extract_strided_slice %308 {offsets = [4, 0], sizes = [1, 512], strides = [1, 1]} : vector<10x512xf32> to vector<1x512xf32>
    %604 = vector.broadcast %603 : vector<1x512xf32> to vector<2x512xf32>
    %605 = arith.mulf %604, %602 : vector<2x512xf32>
    %606 = arith.addf %599, %605 : vector<2x512xf32>
    %607 = vector.extract_strided_slice %1 {offsets = [5, 0], sizes = [1, 512], strides = [1, 1]} : vector<9x512xf32> to vector<1x512xf32>
    %c511_i32_179 = arith.constant 511 : i32
    %608 = tpu.dynamic_rotate %564 by %c511_i32_179 dim 1 : vector<2x512xf32>, i32 -> vector<2x512xf32>
    %609 = vector.broadcast %607 : vector<1x512xf32> to vector<2x512xf32>
    %610 = arith.mulf %609, %608 : vector<2x512xf32>
    %611 = vector.extract_strided_slice %308 {offsets = [5, 0], sizes = [1, 512], strides = [1, 1]} : vector<10x512xf32> to vector<1x512xf32>
    %612 = vector.broadcast %611 : vector<1x512xf32> to vector<2x512xf32>
    %613 = arith.mulf %612, %610 : vector<2x512xf32>
    %614 = arith.addf %606, %613 : vector<2x512xf32>
    %615 = vector.extract_strided_slice %1 {offsets = [6, 0], sizes = [1, 512], strides = [1, 1]} : vector<9x512xf32> to vector<1x512xf32>
    %c497_i32_180 = arith.constant 497 : i32
    %616 = tpu.dynamic_rotate %564 by %c497_i32_180 dim 1 : vector<2x512xf32>, i32 -> vector<2x512xf32>
    %617 = vector.broadcast %615 : vector<1x512xf32> to vector<2x512xf32>
    %618 = arith.mulf %617, %616 : vector<2x512xf32>
    %619 = vector.extract_strided_slice %308 {offsets = [6, 0], sizes = [1, 512], strides = [1, 1]} : vector<10x512xf32> to vector<1x512xf32>
    %620 = vector.broadcast %619 : vector<1x512xf32> to vector<2x512xf32>
    %621 = arith.mulf %620, %618 : vector<2x512xf32>
    %622 = arith.addf %614, %621 : vector<2x512xf32>
    %623 = vector.extract_strided_slice %1 {offsets = [7, 0], sizes = [1, 512], strides = [1, 1]} : vector<9x512xf32> to vector<1x512xf32>
    %c496_i32_181 = arith.constant 496 : i32
    %624 = tpu.dynamic_rotate %564 by %c496_i32_181 dim 1 : vector<2x512xf32>, i32 -> vector<2x512xf32>
    %625 = vector.broadcast %623 : vector<1x512xf32> to vector<2x512xf32>
    %626 = arith.mulf %625, %624 : vector<2x512xf32>
    %627 = vector.extract_strided_slice %308 {offsets = [7, 0], sizes = [1, 512], strides = [1, 1]} : vector<10x512xf32> to vector<1x512xf32>
    %628 = vector.broadcast %627 : vector<1x512xf32> to vector<2x512xf32>
    %629 = arith.mulf %628, %626 : vector<2x512xf32>
    %630 = arith.addf %622, %629 : vector<2x512xf32>
    %631 = vector.extract_strided_slice %1 {offsets = [8, 0], sizes = [1, 512], strides = [1, 1]} : vector<9x512xf32> to vector<1x512xf32>
    %c495_i32_182 = arith.constant 495 : i32
    %632 = tpu.dynamic_rotate %564 by %c495_i32_182 dim 1 : vector<2x512xf32>, i32 -> vector<2x512xf32>
    %633 = vector.broadcast %631 : vector<1x512xf32> to vector<2x512xf32>
    %634 = arith.mulf %633, %632 : vector<2x512xf32>
    %635 = vector.extract_strided_slice %308 {offsets = [8, 0], sizes = [1, 512], strides = [1, 1]} : vector<10x512xf32> to vector<1x512xf32>
    %636 = vector.broadcast %635 : vector<1x512xf32> to vector<2x512xf32>
    %637 = arith.mulf %636, %634 : vector<2x512xf32>
    %638 = arith.addf %630, %637 : vector<2x512xf32>
    %c0_183 = arith.constant 0 : index
    %c0_184 = arith.constant 0 : index
    %639 = vector.load %arg17[%c0_183, %c0_184] : memref<2x512xf32, #tpu.memory_space<vmem>>, vector<2x512xf32>
    tpu.vector_store %arg17[%c0_183, %c0_184], %638 {strides = array<i32>} : memref<2x512xf32, #tpu.memory_space<vmem>>, vector<2x512xf32>,
    return
  }
  func.func @transform_0(%arg0: i32) -> (i32, i32) {
    %c0_i32 = arith.constant 0 : i32
    %c0_i32_0 = arith.constant 0 : i32
    return %c0_i32, %arg0 : i32, i32
  }
  func.func @transform_1(%arg0: i32) -> (i32, i32, i32) {
    %c0_i32 = arith.constant 0 : i32
    %c0_i32_0 = arith.constant 0 : i32
    %c0_i32_1 = arith.constant 0 : i32
    %c0_i32_2 = arith.constant 0 : i32
    return %c0_i32, %c0_i32_0, %c0_i32_1 : i32, i32, i32
  }
  func.func @transform_2(%arg0: i32) -> (i32, i32) {
    %c0_i32 = arith.constant 0 : i32
    %c0_i32_0 = arith.constant 0 : i32
    %c0_i32_1 = arith.constant 0 : i32
    return %c0_i32, %c0_i32_0 : i32, i32
  }
  func.func @transform_3(%arg0: i32) -> (i32, i32, i32) {
    %c0_i32 = arith.constant 0 : i32
    %c0_i32_0 = arith.constant 0 : i32
    %c0_i32_1 = arith.constant 0 : i32
    %c0_i32_2 = arith.constant 0 : i32
    return %c0_i32, %c0_i32_0, %c0_i32_1 : i32, i32, i32
  }
  func.func @transform_4(%arg0: i32) -> (i32, i32) {
    %c0_i32 = arith.constant 0 : i32
    %c0_i32_0 = arith.constant 0 : i32
    %c0_i32_1 = arith.constant 0 : i32
    return %c0_i32, %c0_i32_0 : i32, i32
  }
  func.func @transform_5(%arg0: i32) -> (i32, i32, i32) {
    %c0_i32 = arith.constant 0 : i32
    %c0_i32_0 = arith.constant 0 : i32
    %c0_i32_1 = arith.constant 0 : i32
    %c0_i32_2 = arith.constant 0 : i32
    return %c0_i32, %c0_i32_0, %c0_i32_1 : i32, i32, i32
  }
  func.func @transform_6(%arg0: i32) -> (i32, i32) {
    %c0_i32 = arith.constant 0 : i32
    %c0_i32_0 = arith.constant 0 : i32
    %c0_i32_1 = arith.constant 0 : i32
    return %c0_i32, %c0_i32_0 : i32, i32
  }
  func.func @transform_7(%arg0: i32) -> (i32, i32) {
    %c0_i32 = arith.constant 0 : i32
    %c0_i32_0 = arith.constant 0 : i32
    %c0_i32_1 = arith.constant 0 : i32
    return %c0_i32, %c0_i32_0 : i32, i32
  }
  func.func @transform_8(%arg0: i32) -> (i32, i32) {
    %c0_i32 = arith.constant 0 : i32
    %c0_i32_0 = arith.constant 0 : i32
    %c0_i32_1 = arith.constant 0 : i32
    return %c0_i32, %c0_i32_0 : i32, i32
  }
  func.func @transform_9(%arg0: i32) -> (i32, i32) {
    %c0_i32 = arith.constant 0 : i32
    %c0_i32_0 = arith.constant 0 : i32
    %c0_i32_1 = arith.constant 0 : i32
    return %c0_i32, %c0_i32_0 : i32, i32
  }
  func.func @transform_10(%arg0: i32) -> (i32, i32) {
    %c0_i32 = arith.constant 0 : i32
    %c0_i32_0 = arith.constant 0 : i32
    %c0_i32_1 = arith.constant 0 : i32
    return %c0_i32, %c0_i32_0 : i32, i32
  }
  func.func @transform_11(%arg0: i32) -> (i32, i32) {
    %c0_i32 = arith.constant 0 : i32
    %c0_i32_0 = arith.constant 0 : i32
    %c0_i32_1 = arith.constant 0 : i32
    return %c0_i32, %c0_i32_0 : i32, i32
  }
  func.func @transform_12(%arg0: i32) -> (i32, i32) {
    %c0_i32 = arith.constant 0 : i32
    %c0_i32_0 = arith.constant 0 : i32
    %c0_i32_1 = arith.constant 0 : i32
    return %c0_i32, %c0_i32_0 : i32, i32
  }
  func.func @transform_13(%arg0: i32) -> (i32, i32) {
    %c0_i32 = arith.constant 0 : i32
    %c0_i32_0 = arith.constant 0 : i32
    %c0_i32_1 = arith.constant 0 : i32
    return %c0_i32, %c0_i32_0 : i32, i32
  }
  func.func @transform_14(%arg0: i32) -> (i32, i32) {
    %c0_i32 = arith.constant 0 : i32
    %c0_i32_0 = arith.constant 0 : i32
    %c0_i32_1 = arith.constant 0 : i32
    return %c0_i32, %c0_i32_0 : i32, i32
  }
  func.func @transform_15(%arg0: i32) -> (i32, i32) {
    %c0_i32 = arith.constant 0 : i32
    %c0_i32_0 = arith.constant 0 : i32
    %c0_i32_1 = arith.constant 0 : i32
    return %c0_i32, %c0_i32_0 : i32, i32
  }
  func.func @transform_16(%arg0: i32) -> (i32, i32) {
    %c0_i32 = arith.constant 0 : i32
    %c0_i32_0 = arith.constant 0 : i32
    return %c0_i32, %arg0 : i32, i32
  }
}

</mosaic_0001>

<bundles_post_ra>
// kernel: wnet_forward.1
= control target key start
LH: loop header
LB: loop body
LE: loop exit
PB: predicated region body
PF: predicated region fallthrough
CT: control target
= control target key end

     0   :  { %s7746_s21 = smov 0   ;;  %s11772_s0 = inlined_call_operand.vmem [shape: f32[4,1024], index: 0, kind: input, shape index: {}]   ;;  %s11773_s1 = inlined_call_operand.vmem [shape: bf16[9,8,4], index: 1, kind: input, shape index: {}]   ;;  %s11774_s2 = inlined_call_operand.vmem [shape: f32[8,1], index: 2, kind: input, shape index: {}]   ;;  %s11775_s3 = inlined_call_operand.vmem [shape: bf16[9,16,8], index: 3, kind: input, shape index: {}]   ;;  %s11776_s4 = inlined_call_operand.vmem [shape: f32[16,1], index: 4, kind: input, shape index: {}]   ;;  %s11777_s5 = inlined_call_operand.vmem [shape: bf16[9,8,24], index: 5, kind: input, shape index: {}]   ;;  %s11778_s6 = inlined_call_operand.vmem [shape: f32[8,1], index: 6, kind: input, shape index: {}]   ;;  %s11779_s7 = inlined_call_operand.vmem [shape: bf16[28,8], index: 7, kind: input, shape index: {}]   ;;  %s11780_s8 = inlined_call_operand.vmem [shape: f32[28,1], index: 8, kind: input, shape index: {}]   ;;  %s11781_s9 = inlined_call_operand.vmem [shape: bf16[9,16], index: 9, kind: input, shape index: {}]   ;;  %s11782_s10 = inlined_call_operand.vmem [shape: f32[9,1], index: 10, kind: input, shape index: {}]   ;;  %s11783_s11 = inlined_call_operand.vmem [shape: f32[9,512], index: 11, kind: input, shape index: {}]   ;;  %s11784_s12 = inlined_call_operand.vmem [shape: f32[9,512], index: 12, kind: input, shape index: {}]   ;;  %s11785_s13 = inlined_call_operand.vmem [shape: f32[4,512], index: 13, kind: input, shape index: {}]   ;;  %s11786_s14 = inlined_call_operand.vmem [shape: f32[4,512], index: 14, kind: input, shape index: {}]   ;;  %s11787_s15 = inlined_call_operand.vmem [shape: f32[4,512], index: 15, kind: input, shape index: {}]   ;;  %s11788_s16 = inlined_call_operand.vmem [shape: f32[2,1024], index: 16, kind: output, shape index: {}]  }
   0x1   :  { %12117 = sst [smem:[#allocation158_spill]] %s11772_s0 }
   0x2   :  { %12118 = sst [smem:[#allocation159_spill]] %s11773_s1 }
   0x3 LB: > { %s7322_s22 = sadd.s32 4294967295, %s7641_s21   ;;  %p7326_p0 = scmp.ge.s32.totalorder %s7641_s21, 1  ;;  %s7641_s21 = sphi %s7746_s21, %s26_s21  }
   0x4   : > { %p463_p1 = scmp.lt.s32.totalorder %s7641_s21, 3 }
   0x6   : > { %p464_p2 = pnand %p7326_p0, %p463_p1 }
   0x8   : > { %467 = sbr.rel (%p464_p2) target bundleno = 2700 (0xa8c), region = 84 }
   0xd   : > { %s7327_s23 = sshll.u32 %s7322_s22, 2  ;;  %s12119_s27 = sld [smem:[#allocation158_spill]]  ;;  %v11803_v4 = vmov 0   ;;  %v1792_v5 = vld [vmem:[%s11774_s2] sm:$0xff]  ;;  %v558_v6 = vlaneseq  ;;  %v7858_v11 = vld [vmem:[%s11783_s11 + $0x18] sm:$0xff]  ;;  %v7863_v12 = vld [vmem:[%s11783_s11 + $0x8] sm:$0xff] }
   0xe   : > { %p514_p3 = scmp.lt.s32.totalorder %s7327_s23, 7  ;;  %s12042_s29 = smov 16   ;;  %678 = vmatprep.mubr.bf16.mxu0 %v11803_v4  ;;  %719 = vmatprep.mubr.bf16.mxu1 %v11803_v4  ;;  %v7850_v9 = vld [vmem:[%s11783_s11] sm:$0xff]  ;;  %v7868_v13 = vld [vmem:[%s11783_s11 + $0x10] sm:$0xff]  ;;  %vm633_vm2 = vcmask 1041408   ;;  %vm629_vm3 = vcmask 31744  }
   0xf   : > { %7527 = vset.pattern.permute.xlu0 %v11803_v4  ;;  %7528 = vset.pattern.permute.xlu1 %v11803_v4  ;;  %s12115_s30 = smov 17   ;;  %s11793_s0 = smov 15   ;;  %v7843_v7 = vshrl.u32 %v558_v6, 7  ;;  %v7845_v8 = vand.u32 127, %v558_v6  ;;  %vm1942_vm11 = vcmask 1043456   ;;  %vm1938_vm13 = vcmask 64512  }
  0x10   : > { %s12621_s23 = smov (!%p514_p3, %s7327_s23), 7  ;;  %s11791_s17 = smov 1  }
  0x11   : > { %s7328_s24 = sshll.u32 %s12621_s23, 2  ;;  %s11961_s18 = smov 127   ;;  %12120 = vst [vmem:[#allocation2_spill] sm:$0xff] %v7843_v7  ;;  %12121 = vst [vmem:[#allocation3_spill] sm:$0xff] %v7845_v8  ;;  %v7853_v10 = vsub.s32 1, %v7843_v7  ;;  %v7871_v16 = vsub.s32 0, %v7843_v7 }
  0x12   : > { %s11789_s19 = smov 113   ;;  %s11959_s20 = smov 112   ;;  %vm598_vm0 = vcmp.lt.s32.totalorder %v7845_v8, 16  ;;  %vm12074_vm1 = vcmp.lt.s32.totalorder %v7845_v8, 17  ;;  %v7926_v39 = vsub.s32 2, %v7843_v7  ;;  %vm833_vm4 = vcmp.lt.s32.totalorder %v7845_v8, 15 }
  0x13   : > { %s517_s28 = scalar_lea.vmem %s12119_s27, %s7328_s24  ;;  %s11957_s22 = smov 111   ;;  %12122 = vst [vmem:[#allocation4_spill] sm:$0xff] %v7853_v10  ;;  %12123 = vst [vmem:[#allocation5_spill] sm:$0xff] %v7871_v16  ;;  %v7876_v17 = vrot.slane %v7850_v9, %v7853_v10  ;;  %v7880_v18 = vrot.slane %v7858_v11, %v7853_v10  ;;  %v7884_v19 = vrot.slane %v7863_v12, %v7853_v10  ;;  %v7984_v62 = vsub.s32 3, %v7843_v7 }
  0x14   : > { %v7760_v0 = vld [vmem:[%s517_s28 + $0x8] sm:$0xff]  ;;  %v7762_v1 = vld [vmem:[%s517_s28] sm:$0xff]  ;;  %v7888_v20 = vrot.slane %v7868_v13, %v7853_v10  ;;  %v7893_v23 = vrot.slane %v7863_v12, %v7871_v16  ;;  %12133 = vst [vmem:[#allocation15_spill] sm:$0xff] %v7926_v39  ;;  %v7930_v40 = vrot.slane %v7850_v9, %v7871_v16  ;;  %v7934_v41 = vrot.slane %v7868_v13, %v7871_v16  ;;  %s12138_s1 = sld [smem:[#allocation159_spill]]  ;;  %s11955_s26 = smov 34  }
  0x15   : > { %594 = vrot.lane.b32.xlu1 %v7760_v0, %s12042_s29  ;;  %590 = vrot.lane.b32.xlu0 %v7762_v1, %s12042_s29  ;;  %v7770_v2 = vcombine.high %v7760_v0, %v7760_v0  ;;  %v7774_v3 = vcombine.high %v7762_v1, %v7762_v1  ;;  %12124 = vst [vmem:[#allocation6_spill] sm:$0xff] %v7876_v17  ;;  %12125 = vst [vmem:[#allocation7_spill] sm:$0xff] %v7880_v18  ;;  %vm973_vm5 = vcmp.lt.s32.totalorder %v7845_v8, 1  ;;  %s11932_s27 = smov 30   ;;  %s11930_s28 = smov 2  }
  0x16   : > { %12126 = vst [vmem:[#allocation8_spill] sm:$0xff] %v7884_v19  ;;  %12127 = vst [vmem:[#allocation9_spill] sm:$0xff] %v7888_v20  ;;  %v7945_v45 = vrot.slane %v7858_v11, %v7871_v16  ;;  %v7960_v53 = vrot.slane %v7863_v12, %v7926_v39  ;;  %v7994_v6 = vrot.slane %v7868_v13, %v7926_v39  ;;  %vm1240_vm6 = vcmp.lt.s32.totalorder %v7845_v8, 127  ;;  %s11924_s24 = smov 126   ;;  %s11922_s25 = smov 98  }
  0x17   : > { %12128 = vst [vmem:[#allocation10_spill] sm:$0xff] %v7893_v23  ;;  %12134 = vst [vmem:[#allocation16_spill] sm:$0xff] %v7930_v40  ;;  %vm1380_vm7 = vcmp.lt.s32.totalorder %v7845_v8, 113  ;;  %vm1520_vm8 = vcmp.lt.s32.totalorder %v7845_v8, 112  ;;  %vm1660_vm9 = vcmp.lt.s32.totalorder %v7845_v8, 111  ;;  %vm1901_vm10 = vcmp.lt.s32.totalorder %v7845_v8, 32 }
  0x18   : > { %12135 = vst [vmem:[#allocation17_spill] sm:$0xff] %v7934_v41  ;;  %12137 = vst [vmem:[#allocation19_spill] sm:$0xff] %v7945_v45  ;;  %vm1862_vm12 = vcmp.lt.s32.totalorder %v7845_v8, 34  ;;  %vm2155_vm14 = vcmp.lt.s32.totalorder %v7845_v8, 30  ;;  %vm11949_vm15 = vcmp.lt.s32.totalorder %v7845_v8, 2 }
  0x19   : > { %596 = vrot.lane.b32.xlu1 %v7770_v2, %s12042_s29  ;;  %592 = vrot.lane.b32.xlu0 %v7774_v3, %s12042_s29  ;;  %12139 = vst [vmem:[#allocation20_spill] sm:$0xff] %v7960_v53  ;;  %12143 = vst [vmem:[#allocation24_spill] sm:$0xff] %v7984_v62 }
  0x1a   : > { %v7331_v46 = vld [vmem:[%s12138_s1 + $0x4] sm:$0xf]  ;;  %12145 = vst [vmem:[#allocation26_spill] sm:$0xff] %v7994_v6 }
  0x1d   : > { %552 = vrot.lane.b32.xlu1 %v7774_v3, %s12115_s30  ;;  %550 = vrot.lane.b32.xlu0 %v7762_v1, %s12115_s30 }
  0x21   : > { %556 = vrot.lane.b32.xlu1 %v7770_v2, %s12115_s30  ;;  %554 = vrot.lane.b32.xlu0 %v7760_v0, %s12115_s30 }
  0x25   : > { %827 = vrot.lane.b32.xlu1 %v7774_v3, %s11793_s0  ;;  %825 = vrot.lane.b32.xlu0 %v7762_v1, %s11793_s0 }
  0x29   : > { %831 = vrot.lane.b32.xlu1 %v7770_v2, %s11793_s0  ;;  %829 = vrot.lane.b32.xlu0 %v7760_v0, %s11793_s0  ;;  %s11928_s0 = smov 96  }
  0x2d   : > { %967 = vrot.lane.b32.xlu1 %v7774_v3, %s11791_s17  ;;  %965 = vrot.lane.b32.xlu0 %v7762_v1, %s11791_s17 }
  0x31   : > { %971 = vrot.lane.b32.xlu1 %v7770_v2, %s11791_s17  ;;  %969 = vrot.lane.b32.xlu0 %v7760_v0, %s11791_s17  ;;  %s11926_s17 = smov 94  }
  0x35   : > { %1234 = vrot.lane.b32.xlu1 %v7774_v3, %s11961_s18  ;;  %1232 = vrot.lane.b32.xlu0 %v7762_v1, %s11961_s18 }
  0x39   : > { %1238 = vrot.lane.b32.xlu1 %v7770_v2, %s11961_s18  ;;  %1236 = vrot.lane.b32.xlu0 %v7760_v0, %s11961_s18 }
  0x3d   : > { %1374 = vrot.lane.b32.xlu1 %v7774_v3, %s11789_s19  ;;  %1372 = vrot.lane.b32.xlu0 %v7762_v1, %s11789_s19 }
  0x41   : > { %1378 = vrot.lane.b32.xlu1 %v7770_v2, %s11789_s19  ;;  %1376 = vrot.lane.b32.xlu0 %v7760_v0, %s11789_s19  ;;  %s11934_s19 = smov 32  }
  0x45   : > { %1514 = vrot.lane.b32.xlu1 %v7774_v3, %s11959_s20  ;;  %1512 = vrot.lane.b32.xlu0 %v7762_v1, %s11959_s20 }
  0x49   : > { %1518 = vrot.lane.b32.xlu1 %v7770_v2, %s11959_s20  ;;  %1516 = vrot.lane.b32.xlu0 %v7760_v0, %s11959_s20 }
  0x4d   : > { %1654 = vrot.lane.b32.xlu1 %v7774_v3, %s11957_s22  ;;  %1652 = vrot.lane.b32.xlu0 %v7762_v1, %s11957_s22 }
  0x51   : > { %1658 = vrot.lane.b32.xlu1 %v7770_v2, %s11957_s22  ;;  %1656 = vrot.lane.b32.xlu0 %v7760_v0, %s11957_s22 }
  0x55   : > { %1795 = vperm.xlu0 %7527, %v1792_v5   ;;  %v7990_v5 = vrot.slane %v7850_v9, %v7926_v39 }
  0x57   : > { %12144 = vst [vmem:[#allocation25_spill] sm:$0xff] %v7990_v5 }
  0x87   : > { %v595_v14 = vpop.permute.xlu1 %594  ;;  %v591_v15 = vpop.permute.xlu0 %590 }
  0x8b   : > { %v597_v21 = vpop.permute.xlu1 %596  ;;  %v593_v22 = vpop.permute.xlu0 %592 }
  0x8c   : > { %v599_v24 = vsel %vm598_vm0, %v595_v14, %v597_v21  ;;  %v602_v25 = vsel %vm598_vm0, %v597_v21, %v591_v15  ;;  %v600_v26 = vsel %vm598_vm0, %v593_v22, %v595_v14  ;;  %v601_v27 = vsel %vm598_vm0, %v591_v15, %v593_v22 }
  0x8d   : > { %v7904_v28 = vmul.f32 %v7876_v17, %v602_v25  ;;  %v7907_v29 = vmul.f32 %v7880_v18, %v599_v24  ;;  %v7910_v30 = vmul.f32 %v7884_v19, %v601_v27  ;;  %v7913_v31 = vmul.f32 %v7888_v20, %v600_v26  ;;  %v589_v25 = vld [vmem:[%s12138_s1] sm:$0xf] }
  0x8e   : > { %v8004_v22 = vrot.slane %v7858_v11, %v7926_v39  ;;  %v8007_v24 = vsub.s32 4, %v7843_v7 }
  0x8f   : > { %12129 = vst [vmem:[#allocation11_spill] sm:$0xff] %v7904_v28  ;;  %12130 = vst [vmem:[#allocation12_spill] sm:$0xff] %v7907_v29  ;;  %v553_v32 = vpop.permute.xlu1 %552  ;;  %v551_v33 = vpop.permute.xlu0 %550  ;;  %v624_v34 = vpack.c.bf16 %v7910_v30, %v7910_v30  ;;  %v626_v35 = vpack.c.bf16 %v7907_v29, %v7907_v29  ;;  %v623_v36 = vpack.c.bf16 %v7904_v28, %v7904_v28 }
  0x90   : > { %12131 = vst [vmem:[#allocation13_spill] sm:$0xff] %v7910_v30  ;;  %12132 = vst [vmem:[#allocation14_spill] sm:$0xff] %v7913_v31  ;;  %v625_v37 = vpack.c.bf16 %v7913_v31, %v7913_v31  ;;  %v563_v38 = vsel %vm12074_vm1, %v551_v33, %v553_v32 }
  0x91   : > { %v7937_v42 = vmul.f32 %v7893_v23, %v563_v38  ;;  %7332 = vmatprep.subr.msk.bf16.mxu0 %vm633_vm2, %v624_v34  ;;  %7334 = vmatprep.subr.msk.bf16.mxu1 %vm633_vm2, %v626_v35  ;;  %v635_v43 = vsel %vm633_vm2, %v623_v36, 0  ;;  %12147 = vst [vmem:[#allocation28_spill] sm:$0xff] %v8004_v22  ;;  %12148 = vst [vmem:[#allocation29_spill] sm:$0xff] %v8007_v24  ;;  %v8022_v36 = vrot.slane %v7863_v12, %v7984_v62 }
  0x92   : > { %v641_v44 = vsel %vm633_vm2, %v625_v37, 0  ;;  %661 = vmatpush1.bf16.msra.mxu0 %v635_v43 }
  0x93   : > { %12136 = vst [vmem:[#allocation18_spill] sm:$0xff] %v7937_v42  ;;  %702 = vmatpush1.bf16.msra.mxu1 %v641_v44  ;;  %v557_v47 = vpop.permute.xlu1 %556  ;;  %v555_v48 = vpop.permute.xlu0 %554  ;;  %v586_v49 = vpack.c.bf16 %v7937_v42, %v7937_v42  ;;  %12149 = vst [vmem:[#allocation30_spill] sm:$0xff] %v8022_v36  ;;  %v8040_v44 = vrot.slane %v7863_v12, %v8007_v24 }
  0x94   : > { %v564_v50 = vsel %vm12074_vm1, %v557_v47, %v551_v33  ;;  %v561_v51 = vsel %vm12074_vm1, %v555_v48, %v557_v47  ;;  %v562_v52 = vsel %vm12074_vm1, %v553_v32, %v555_v48  ;;  %v8048_v47 = vrot.slane %v7850_v9, %v8007_v24 }
  0x95   : > { %v7963_v54 = vmul.f32 %v7930_v40, %v564_v50  ;;  %v7966_v55 = vmul.f32 %v7934_v41, %v562_v52  ;;  %v7969_v56 = vmul.f32 %v7945_v45, %v561_v51  ;;  %7333 = vmatmul.mubr.msk.bf16.vlgmr.msra.gmra.mxu0 %vm629_vm3, %v7331_v46  ;;  %7336 = vmatprep.subr.msk.bf16.mxu0 %vm633_vm2, %v586_v49 }
  0x96   : > { %7335 = vmatmul.mubr.msk.bf16.vlgmr.msra.gmra.mxu1 %vm629_vm3, %v7331_v46  ;;  %775 = vmatprep.mubr.bf16.mxu0 %v11803_v4  ;;  %12153 = vst [vmem:[#allocation34_spill] sm:$0xff] %v8040_v44  ;;  %v8044_v46 = vrot.slane %v7858_v11, %v8007_v24  ;;  %12155 = vst [vmem:[#allocation36_spill] sm:$0xff] %v8048_v47 }
  0x97   : > { %12140 = vst [vmem:[#allocation21_spill] sm:$0xff] %v7963_v54  ;;  %12141 = vst [vmem:[#allocation22_spill] sm:$0xff] %v7966_v55  ;;  %v828_v57 = vpop.permute.xlu1 %827  ;;  %v826_v58 = vpop.permute.xlu0 %825  ;;  %v588_v59 = vpack.c.bf16 %v7969_v56, %v7969_v56  ;;  %v585_v60 = vpack.c.bf16 %v7963_v54, %v7963_v54  ;;  %v587_v61 = vpack.c.bf16 %v7966_v55, %v7966_v55  ;;  %816 = vmatprep.mubr.bf16.mxu1 %v11803_v4 }
  0x98   : > { %12142 = vst [vmem:[#allocation23_spill] sm:$0xff] %v7969_v56  ;;  %v836_v63 = vsel %vm833_vm4, %v826_v58, %v828_v57  ;;  %12154 = vst [vmem:[#allocation35_spill] sm:$0xff] %v8044_v46  ;;  %v8162_v56 = vsub.s32 6, %v7843_v7 }
  0x99   : > { %v7997_v14 = vmul.f32 %v7960_v53, %v836_v63  ;;  %7338 = vmatprep.subr.msk.bf16.mxu1 %vm633_vm2, %v588_v59  ;;  %v732_v15 = vsel %vm633_vm2, %v585_v60, 0  ;;  %v738_v21 = vsel %vm633_vm2, %v587_v61, 0  ;;  %v8068_v60 = vrot.slane %v7850_v9, %v7984_v62 }
  0x9a   : > { %758 = vmatpush1.bf16.msra.mxu0 %v732_v15  ;;  %799 = vmatpush1.bf16.msra.mxu1 %v738_v21  ;;  %v8072_v61 = vrot.slane %v7868_v13, %v7984_v62  ;;  %12173 = vst [vmem:[#allocation54_spill] sm:$0xff] %v8162_v56 }
  0x9b   : > { %12146 = vst [vmem:[#allocation27_spill] sm:$0xff] %v7997_v14  ;;  %v832_v26 = vpop.permute.xlu1 %831  ;;  %v830_v27 = vpop.permute.xlu0 %829  ;;  %v859_v32 = vpack.c.bf16 %v7997_v14, %v7997_v14  ;;  %12158 = vst [vmem:[#allocation39_spill] sm:$0xff] %v8068_v60 }
  0x9c   : > { %v837_v33 = vsel %vm833_vm4, %v832_v26, %v826_v58  ;;  %v834_v34 = vsel %vm833_vm4, %v830_v27, %v832_v26  ;;  %v835_v35 = vsel %vm833_vm4, %v828_v57, %v830_v27  ;;  %v8059_v57 = vrot.slane %v7868_v13, %v8007_v24  ;;  %12159 = vst [vmem:[#allocation40_spill] sm:$0xff] %v8072_v61  ;;  %v7340_v26 = vld [vmem:[%s12138_s1 + $0x8] sm:$0xf] }
  0x9d   : > { %v8025_v37 = vmul.f32 %v7990_v5, %v837_v33  ;;  %v8028_v38 = vmul.f32 %v7994_v6, %v835_v35  ;;  %v8031_v43 = vmul.f32 %v8004_v22, %v834_v34  ;;  %7337 = vmatmul.mubr.msk.bf16.vlgmr.msra.gmra.mxu0 %vm629_vm3, %v589_v25  ;;  %7341 = vmatprep.subr.msk.bf16.mxu0 %vm633_vm2, %v859_v32  ;;  %v8062_v58 = vsub.s32 5, %v7843_v7 }
  0x9e   : > { %7339 = vmatmul.mubr.msk.bf16.vlgmr.msra.gmra.mxu1 %vm629_vm3, %v589_v25  ;;  %911 = vmatprep.mubr.bf16.mxu0 %v11803_v4  ;;  %12156 = vst [vmem:[#allocation37_spill] sm:$0xff] %v8059_v57  ;;  %v8082_v25 = vrot.slane %v7858_v11, %v7984_v62  ;;  %v8089_v27 = vmul.f32 %v8040_v44, %v7774_v3 }
  0x9f   : > { %12150 = vst [vmem:[#allocation31_spill] sm:$0xff] %v8025_v37  ;;  %12151 = vst [vmem:[#allocation32_spill] sm:$0xff] %v8028_v38  ;;  %v968_v48 = vpop.permute.xlu1 %967  ;;  %v966_v49 = vpop.permute.xlu0 %965  ;;  %v861_v50 = vpack.c.bf16 %v8031_v43, %v8031_v43  ;;  %v858_v51 = vpack.c.bf16 %v8025_v37, %v8025_v37  ;;  %v860_v52 = vpack.c.bf16 %v8028_v38, %v8028_v38  ;;  %952 = vmatprep.mubr.bf16.mxu1 %v11803_v4 }
  0xa0   : > { %12152 = vst [vmem:[#allocation33_spill] sm:$0xff] %v8031_v43  ;;  %12157 = vst [vmem:[#allocation38_spill] sm:$0xff] %v8062_v58  ;;  %v976_v59 = vsel %vm973_vm5, %v966_v49, %v968_v48  ;;  %v8093_v32 = vmul.f32 %v8044_v46, %v7770_v2  ;;  %v8097_v33 = vmul.f32 %v8048_v47, %v7762_v1 }
  0xa1   : > { %v8075_v63 = vmul.f32 %v8022_v36, %v976_v59  ;;  %7343 = vmatprep.subr.msk.bf16.mxu1 %vm633_vm2, %v861_v50  ;;  %v868_v15 = vsel %vm633_vm2, %v858_v51, 0  ;;  %v874_v21 = vsel %vm633_vm2, %v860_v52, 0  ;;  %12161 = vst [vmem:[#allocation42_spill] sm:$0xff] %v8082_v25  ;;  %12162 = vst [vmem:[#allocation43_spill] sm:$0xff] %v8089_v27  ;;  %v8103_v51 = vmul.f32 %v8059_v57, %v7760_v0 }
  0xa2   : > { %894 = vmatpush1.bf16.msra.mxu0 %v868_v15  ;;  %935 = vmatpush1.bf16.msra.mxu1 %v874_v21  ;;  %12163 = vst [vmem:[#allocation44_spill] sm:$0xff] %v8093_v32  ;;  %12164 = vst [vmem:[#allocation45_spill] sm:$0xff] %v8097_v33  ;;  %v8113_v1 = vrot.slane %v7850_v9, %v8062_v58  ;;  %v1125_v21 = vpack.c.bf16 %v8097_v33, %v8097_v33 }
  0xa3   : > { %12160 = vst [vmem:[#allocation41_spill] sm:$0xff] %v8075_v63  ;;  %v972_v34 = vpop.permute.xlu1 %971  ;;  %v970_v35 = vpop.permute.xlu0 %969  ;;  %v999_v50 = vpack.c.bf16 %v8075_v63, %v8075_v63  ;;  %12165 = vst [vmem:[#allocation46_spill] sm:$0xff] %v8103_v51  ;;  %v8155_v29 = vrot.slane %v7863_v12, %v8062_v58 }
  0xa4   : > { %v977_v3 = vsel %vm973_vm5, %v972_v34, %v966_v49  ;;  %v974_v2 = vsel %vm973_vm5, %v970_v35, %v972_v34  ;;  %v975_v52 = vsel %vm973_vm5, %v968_v48, %v970_v35  ;;  %12166 = vst [vmem:[#allocation47_spill] sm:$0xff] %v8113_v1  ;;  %v1126_v48 = vpack.c.bf16 %v8089_v27, %v8089_v27 }
  0xa5   : > { %v8116_v59 = vmul.f32 %v8068_v60, %v977_v3  ;;  %v8119_v15 = vmul.f32 %v8072_v61, %v975_v52  ;;  %v8122_v0 = vmul.f32 %v8082_v25, %v974_v2  ;;  %7342 = vmatmul.mubr.msk.bf16.vlgmr.msra.gmra.mxu0 %vm629_vm3, %v7340_v26  ;;  %7346 = vmatprep.subr.msk.bf16.mxu0 %vm633_vm2, %v999_v50 }
  0xa6   : > { %7344 = vmatmul.mubr.msk.bf16.vlgmr.msra.gmra.mxu1 %vm629_vm3, %v7340_v26  ;;  %1051 = vmatprep.mubr.bf16.mxu0 %v11803_v4  ;;  %v1128_v49 = vpack.c.bf16 %v8093_v32, %v8093_v32  ;;  %v1127_v2 = vpack.c.bf16 %v8103_v51, %v8103_v51  ;;  %v8148_v32 = vrot.slane %v7858_v11, %v8062_v58 }
  0xa7   : > { %12167 = vst [vmem:[#allocation48_spill] sm:$0xff] %v8116_v59  ;;  %12168 = vst [vmem:[#allocation49_spill] sm:$0xff] %v8119_v15  ;;  %v1001_v34 = vpack.c.bf16 %v8122_v0, %v8122_v0  ;;  %v998_v26 = vpack.c.bf16 %v8116_v59, %v8116_v59  ;;  %v1000_v35 = vpack.c.bf16 %v8119_v15, %v8119_v15  ;;  %v1235_v50 = vpop.permute.xlu1 %1234  ;;  %v1233_v3 = vpop.permute.xlu0 %1232  ;;  %1092 = vmatprep.mubr.bf16.mxu1 %v11803_v4 }
  0xa8   : > { %12169 = vst [vmem:[#allocation50_spill] sm:$0xff] %v8122_v0  ;;  %v1243_v52 = vsel %vm1240_vm6, %v1233_v3, %v1235_v50  ;;  %12170 = vst [vmem:[#allocation51_spill] sm:$0xff] %v8148_v32  ;;  %v8159_v4 = vrot.slane %v7868_v13, %v8062_v58  ;;  %v1135_v15 = vsel %vm633_vm2, %v1125_v21, 0  ;;  %v1141_v38 = vsel %vm633_vm2, %v1127_v2, 0 }
  0xa9   : > { %7348 = vmatprep.subr.msk.bf16.mxu1 %vm633_vm2, %v1001_v34  ;;  %v1008_v0 = vsel %vm633_vm2, %v998_v26, 0  ;;  %v1014_v43 = vsel %vm633_vm2, %v1000_v35, 0  ;;  %12171 = vst [vmem:[#allocation52_spill] sm:$0xff] %v8155_v29  ;;  %v8165_v51 = vmul.f32 %v8113_v1, %v1243_v52  ;;  %v7345_v34 = vld [vmem:[%s12138_s1 + $0xc] sm:$0xf] }
  0xaa   : > { %12172 = vst [vmem:[#allocation53_spill] sm:$0xff] %v8159_v4  ;;  %1034 = vmatpush1.bf16.msra.mxu0 %v1008_v0  ;;  %1075 = vmatpush1.bf16.msra.mxu1 %v1014_v43 }
  0xab   : > { %12174 = vst [vmem:[#allocation55_spill] sm:$0xff] %v8165_v51  ;;  %v1239_v26 = vpop.permute.xlu1 %1238  ;;  %v1237_v35 = vpop.permute.xlu0 %1236  ;;  %7351 = vmatprep.subr.msk.bf16.mxu0 %vm633_vm2, %v1126_v48  ;;  %7353 = vmatprep.subr.msk.bf16.mxu1 %vm633_vm2, %v1128_v49 }
  0xac   : > { %v1244_v43 = vsel %vm1240_vm6, %v1239_v26, %v1233_v3  ;;  %v1241_v0 = vsel %vm1240_vm6, %v1237_v35, %v1239_v26  ;;  %v1242_v52 = vsel %vm1240_vm6, %v1235_v50, %v1237_v35  ;;  %v8194_v50 = vrot.slane %v7850_v9, %v8162_v56 }
  0xad   : > { %7347 = vmatmul.mubr.msk.bf16.vlgmr.msra.gmra.mxu0 %vm629_vm3, %v7345_v34  ;;  %v8183_v48 = vmul.f32 %v8148_v32, %v1244_v43  ;;  %v8186_v49 = vmul.f32 %v8155_v29, %v1242_v52  ;;  %v8189_v21 = vmul.f32 %v8159_v4, %v1241_v0  ;;  %v1265_v3 = vpack.c.bf16 %v8165_v51, %v8165_v51 }
  0xae   : > { %7349 = vmatmul.mubr.msk.bf16.vlgmr.msra.gmra.mxu1 %vm629_vm3, %v7345_v34  ;;  %1161 = vmatpush1.bf16.msra.mxu0 %v1135_v15  ;;  %12178 = vst [vmem:[#allocation59_spill] sm:$0xff] %v8194_v50  ;;  %v12179_v26 = vmov 0   ;;  %v8212_v0 = vrot.slane %v7858_v11, %v8162_v56  ;;  %v8216_v52 = vrot.slane %v7863_v12, %v8162_v56 }
  0xaf   : > { %12175 = vst [vmem:[#allocation56_spill] sm:$0xff] %v8183_v48  ;;  %12176 = vst [vmem:[#allocation57_spill] sm:$0xff] %v8186_v49  ;;  %1202 = vmatpush1.bf16.msra.mxu1 %v1141_v38  ;;  %v1375_v2 = vpop.permute.xlu1 %1374  ;;  %v1373_v34 = vpop.permute.xlu0 %1372  ;;  %1178 = vmatprep.mubr.bf16.mxu0 %v12179_v26  ;;  %v1266_v35 = vpack.c.bf16 %v8186_v49, %v8186_v49  ;;  %v1268_v15 = vpack.c.bf16 %v8183_v48, %v8183_v48 }
  0xb0   : > { %12177 = vst [vmem:[#allocation58_spill] sm:$0xff] %v8189_v21  ;;  %1219 = vmatprep.mubr.bf16.mxu1 %v12179_v26  ;;  %v1267_v38 = vpack.c.bf16 %v8189_v21, %v8189_v21  ;;  %v1383_v43 = vsel %vm1380_vm7, %v1373_v34, %v1375_v2  ;;  %12180 = vst [vmem:[#allocation60_spill] sm:$0xff] %v8212_v0  ;;  %v8220_v48 = vrot.slane %v7868_v13, %v8162_v56 }
  0xb1   : > { %7356 = vmatprep.subr.msk.bf16.mxu0 %vm633_vm2, %v1266_v35  ;;  %7358 = vmatprep.subr.msk.bf16.mxu1 %vm633_vm2, %v1268_v15  ;;  %12181 = vst [vmem:[#allocation61_spill] sm:$0xff] %v8216_v52  ;;  %v8223_v21 = vsub.s32 7, %v7843_v7  ;;  %v8226_v31 = vmul.f32 %v8194_v50, %v1383_v43  ;;  %v7350_v35 = vld [vmem:[%s12138_s1 + $0x10] sm:$0xf]  ;;  %v1275_v15 = vsel %vm633_vm2, %v1265_v3, 0 }
  0xb2   : > { %12182 = vst [vmem:[#allocation62_spill] sm:$0xff] %v8220_v48  ;;  %v1281_v27 = vsel %vm633_vm2, %v1267_v38, 0 }
  0xb3   : > { %12183 = vst [vmem:[#allocation63_spill] sm:$0xff] %v8223_v21  ;;  %12184 = vst [vmem:[#allocation64_spill] sm:$0xff] %v8226_v31  ;;  %v1379_v55 = vpop.permute.xlu1 %1378  ;;  %v1377_v49 = vpop.permute.xlu0 %1376 }
  0xb4   : > { %v1384_v63 = vsel %vm1380_vm7, %v1379_v55, %v1373_v34  ;;  %v1381_v7 = vsel %vm1380_vm7, %v1377_v49, %v1379_v55  ;;  %v1382_v43 = vsel %vm1380_vm7, %v1375_v2, %v1377_v49  ;;  %v8253_v55 = vrot.slane %v7850_v9, %v8223_v21 }
  0xb5   : > { %7352 = vmatmul.mubr.msk.bf16.vlgmr.msra.gmra.mxu0 %vm629_vm3, %v7350_v35  ;;  %v8242_v14 = vmul.f32 %v8212_v0, %v1384_v63  ;;  %v8245_v3 = vmul.f32 %v8216_v52, %v1382_v43  ;;  %v8248_v38 = vmul.f32 %v8220_v48, %v1381_v7  ;;  %v1405_v49 = vpack.c.bf16 %v8226_v31, %v8226_v31 }
  0xb6   : > { %7354 = vmatmul.mubr.msk.bf16.vlgmr.msra.gmra.mxu1 %vm629_vm3, %v7350_v35  ;;  %1301 = vmatpush1.bf16.msra.mxu0 %v1275_v15  ;;  %12188 = vst [vmem:[#allocation68_spill] sm:$0xff] %v8253_v55  ;;  %v8271_v35 = vrot.slane %v7858_v11, %v8223_v21  ;;  %v8275_v15 = vrot.slane %v7863_v12, %v8223_v21 }
  0xb7   : > { %12185 = vst [vmem:[#allocation65_spill] sm:$0xff] %v8242_v14  ;;  %12186 = vst [vmem:[#allocation66_spill] sm:$0xff] %v8245_v3  ;;  %1342 = vmatpush1.bf16.msra.mxu1 %v1281_v27  ;;  %v1515_v2 = vpop.permute.xlu1 %1514  ;;  %v1513_v63 = vpop.permute.xlu0 %1512  ;;  %1318 = vmatprep.mubr.bf16.mxu0 %v12179_v26  ;;  %v1406_v7 = vpack.c.bf16 %v8245_v3, %v8245_v3  ;;  %v1408_v34 = vpack.c.bf16 %v8242_v14, %v8242_v14 }
  0xb8   : > { %12187 = vst [vmem:[#allocation67_spill] sm:$0xff] %v8248_v38  ;;  %1359 = vmatprep.mubr.bf16.mxu1 %v12179_v26  ;;  %v1407_v27 = vpack.c.bf16 %v8248_v38, %v8248_v38  ;;  %v1523_v9 = vsel %vm1520_vm8, %v1513_v63, %v1515_v2  ;;  %12189 = vst [vmem:[#allocation69_spill] sm:$0xff] %v8271_v35  ;;  %v8279_v43 = vrot.slane %v7868_v13, %v8223_v21 }
  0xb9   : > { %7361 = vmatprep.subr.msk.bf16.mxu0 %vm633_vm2, %v1406_v7  ;;  %7363 = vmatprep.subr.msk.bf16.mxu1 %vm633_vm2, %v1408_v34  ;;  %12190 = vst [vmem:[#allocation70_spill] sm:$0xff] %v8275_v15  ;;  %v8282_v14 = vmul.f32 %v8253_v55, %v1523_v9  ;;  %v7355_v7 = vld [vmem:[%s12138_s1 + $0x14] sm:$0xf]  ;;  %v1415_v34 = vsel %vm633_vm2, %v1405_v49, 0 }
  0xba   : > { %12191 = vst [vmem:[#allocation71_spill] sm:$0xff] %v8279_v43  ;;  %v1421_v3 = vsel %vm633_vm2, %v1407_v27, 0 }
  0xbb   : > { %12192 = vst [vmem:[#allocation72_spill] sm:$0xff] %v8282_v14  ;;  %v1519_v38 = vpop.permute.xlu1 %1518  ;;  %v1517_v11 = vpop.permute.xlu0 %1516 }
  0xbc   : > { %v1524_v12 = vsel %vm1520_vm8, %v1519_v38, %v1513_v63  ;;  %v1521_v13 = vsel %vm1520_vm8, %v1517_v11, %v1519_v38  ;;  %v1522_v9 = vsel %vm1520_vm8, %v1515_v2, %v1517_v11  ;;  %v1545_v38 = vpack.c.bf16 %v8282_v14, %v8282_v14  ;;  %v7370_v63 = vld [vmem:[%s11783_s11 + $0x20] ss:$0 sm:$0xff] }
  0xbd   : > { %7357 = vmatmul.mubr.msk.bf16.vlgmr.msra.gmra.mxu0 %vm629_vm3, %v7355_v7  ;;  %v8298_v30 = vmul.f32 %v8271_v35, %v1524_v12  ;;  %v8301_v49 = vmul.f32 %v8275_v15, %v1522_v9  ;;  %v8304_v27 = vmul.f32 %v8279_v43, %v1521_v13  ;;  %v7360_v13 = vld [vmem:[%s12138_s1 + $0x18] sm:$0xf] }
  0xbe   : > { %7359 = vmatmul.mubr.msk.bf16.vlgmr.msra.gmra.mxu1 %vm629_vm3, %v7355_v7  ;;  %1441 = vmatpush1.bf16.msra.mxu0 %v1415_v34  ;;  %v1555_v42 = vsel %vm633_vm2, %v1545_v38, 0 }
  0xbf   : > { %12193 = vst [vmem:[#allocation73_spill] sm:$0xff] %v8298_v30  ;;  %12194 = vst [vmem:[#allocation74_spill] sm:$0xff] %v8301_v49  ;;  %1482 = vmatpush1.bf16.msra.mxu1 %v1421_v3  ;;  %v1655_v2 = vpop.permute.xlu1 %1654  ;;  %v1653_v7 = vpop.permute.xlu0 %1652  ;;  %1458 = vmatprep.mubr.bf16.mxu0 %v12179_v26  ;;  %v1546_v11 = vpack.c.bf16 %v8301_v49, %v8301_v49  ;;  %v1548_v34 = vpack.c.bf16 %v8298_v30, %v8298_v30  ;;  %v7373_v30 = vld [vmem:[%s11783_s11 + $0x38] ss:$0 sm:$0xff]  ;;  %v7372_v49 = vld [vmem:[%s11783_s11 + $0x30] ss:$0 sm:$0xff] }
  0xc0   : > { %12195 = vst [vmem:[#allocation75_spill] sm:$0xff] %v8304_v27  ;;  %1499 = vmatprep.mubr.bf16.mxu1 %v12179_v26  ;;  %v1547_v3 = vpack.c.bf16 %v8304_v27, %v8304_v27  ;;  %v1663_v12 = vsel %vm1660_vm9, %v1653_v7, %v1655_v2  ;;  %v7371_v27 = vld [vmem:[%s11783_s11 + $0x28] ss:$0 sm:$0xff] }
  0xc1   : > { %7366 = vmatprep.subr.msk.bf16.mxu0 %vm633_vm2, %v1546_v11  ;;  %7368 = vmatprep.subr.msk.bf16.mxu1 %vm633_vm2, %v1548_v34  ;;  %v8327_v9 = vmul.f32 %v7370_v63, %v1663_v12 }
  0xc2   : > { %v1561_v34 = vsel %vm633_vm2, %v1547_v3, 0 }
  0xc3   : > { %12196 = vst [vmem:[#allocation76_spill] sm:$0xff] %v8327_v9  ;;  %v1659_v14 = vpop.permute.xlu1 %1658  ;;  %v1657_v11 = vpop.permute.xlu0 %1656 }
  0xc4   : > { %v1664_v63 = vsel %vm1660_vm9, %v1659_v14, %v1653_v7  ;;  %v1661_v12 = vsel %vm1660_vm9, %v1657_v11, %v1659_v14  ;;  %v1662_v31 = vsel %vm1660_vm9, %v1655_v2, %v1657_v11  ;;  %v1685_v7 = vpack.c.bf16 %v8327_v9, %v8327_v9  ;;  %v7374_v2 = vld [vmem:[%s12138_s1 + $0x20] sm:$0xf] }
  0xc5   : > { %7362 = vmatmul.mubr.msk.bf16.vlgmr.msra.gmra.mxu0 %vm629_vm3, %v7360_v13  ;;  %v8348_v51 = vmul.f32 %v7373_v30, %v1664_v63  ;;  %v8350_v38 = vmul.f32 %v7371_v27, %v1662_v31  ;;  %v8352_v33 = vmul.f32 %v7372_v49, %v1661_v12 }
  0xc6   : > { %7364 = vmatmul.mubr.msk.bf16.vlgmr.msra.gmra.mxu1 %vm629_vm3, %v7360_v13  ;;  %1581 = vmatpush1.bf16.msra.mxu0 %v1555_v42  ;;  %v7365_v42 = vld [vmem:[%s12138_s1 + $0x1c] sm:$0xf]  ;;  %v1695_v49 = vsel %vm633_vm2, %v1685_v7, 0 }
  0xc7   : > { %12197 = vst [vmem:[#allocation77_spill] sm:$0xff] %v8348_v51  ;;  %12198 = vst [vmem:[#allocation78_spill] sm:$0xff] %v8350_v38  ;;  %1622 = vmatpush1.bf16.msra.mxu1 %v1561_v34  ;;  %1598 = vmatprep.mubr.bf16.mxu0 %v12179_v26  ;;  %v1686_v14 = vpack.c.bf16 %v8350_v38, %v8350_v38  ;;  %v1688_v30 = vpack.c.bf16 %v8348_v51, %v8348_v51 }
  0xc8   : > { %12199 = vst [vmem:[#allocation79_spill] sm:$0xff] %v8352_v33  ;;  %1639 = vmatprep.mubr.bf16.mxu1 %v12179_v26  ;;  %v1687_v31 = vpack.c.bf16 %v8352_v33, %v8352_v33 }
  0xc9   : > { %7375 = vmatprep.subr.msk.bf16.mxu0 %vm633_vm2, %v1686_v14  ;;  %7377 = vmatprep.subr.msk.bf16.mxu1 %vm633_vm2, %v1688_v30 }
  0xca   : > { %v1701_v27 = vsel %vm633_vm2, %v1687_v31, 0 }
  0xcd   : > { %7367 = vmatmul.mubr.msk.bf16.vlgmr.msra.gmra.mxu0 %vm629_vm3, %v7365_v42 }
  0xce   : > { %7369 = vmatmul.mubr.msk.bf16.vlgmr.msra.gmra.mxu1 %vm629_vm3, %v7365_v42  ;;  %1721 = vmatpush1.bf16.msra.mxu0 %v1695_v49 }
  0xcf   : > { %1762 = vmatpush1.bf16.msra.mxu1 %v1701_v27  ;;  %1738 = vmatprep.mubr.bf16.mxu0 %v12179_v26 }
  0xd0   : > { %1779 = vmatprep.mubr.bf16.mxu1 %v12179_v26 }
  0xd5   : > { %7376 = vmatmul.mubr.msk.bf16.vlgmr.msra.gmra.mxu0 %vm629_vm3, %v7374_v2 }
  0xd6   : > { %7378 = vmatmul.mubr.msk.bf16.vlgmr.msra.gmra.mxu1 %vm629_vm3, %v7374_v2  ;;  %1987 = vmatprep.mubr.bf16.mxu0 %v12179_v26  ;;  %vm11954_vm3 = vcmp.lt.s32.totalorder %v7845_v8, 126 }
  0xd7   : > { %2030 = vmatprep.mubr.bf16.mxu1 %v12179_v26 }
 0x155   : > { %v680_v3 = vpop.f32.mrf.mxu0 }
 0x156   : > { %v721_v13 = vpop.f32.mrf.mxu1 }
 0x157   : > { %v682_v11 = vpop.f32.mrf.mxu0 }
 0x158   : > { %v723_v34 = vpop.f32.mrf.mxu1 }
 0x159   : > { %v684_v63 = vpop.f32.mrf.mxu0 }
 0x15a   : > { %v725_v12 = vpop.f32.mrf.mxu1 }
 0x15b   : > { %v685_v7 = vpop.f32.mrf.mxu0 }
 0x15c   : > { %v726_v14 = vpop.f32.mrf.mxu1 }
 0x15d   : > { %v777_v30 = vpop.f32.mrf.mxu0 }
 0x15e   : > { %v818_v31 = vpop.f32.mrf.mxu1  ;;  %v778_v5 = vadd.f32 %v777_v30, %v680_v3 }
 0x15f   : > { %v779_v42 = vpop.f32.mrf.mxu0  ;;  %v819_v6 = vadd.f32 %v818_v31, %v721_v13 }
 0x160   : > { %v820_v49 = vpop.f32.mrf.mxu1 }
 0x161   : > { %v781_v27 = vpop.f32.mrf.mxu0  ;;  %v821_v41 = vadd.f32 %v820_v49, %v723_v34 }
 0x162   : > { %v822_v51 = vpop.f32.mrf.mxu1 }
 0x163   : > { %v782_v33 = vpop.f32.mrf.mxu0 }
 0x164   : > { %v823_v2 = vpop.f32.mrf.mxu1 }
 0x165   : > { %v913_v38 = vpop.f32.mrf.mxu0 }
 0x166   : > { %v954_v9 = vpop.f32.mrf.mxu1 }
 0x167   : > { %v915_v59 = vpop.f32.mrf.mxu0 }
 0x168   : > { %v956_v37 = vpop.f32.mrf.mxu1 }
 0x169   : > { %v917_v28 = vpop.f32.mrf.mxu0 }
 0x16a   : > { %v958_v54 = vpop.f32.mrf.mxu1 }
 0x16b   : > { %v918_v35 = vpop.f32.mrf.mxu0 }
 0x16c   : > { %v959_v43 = vpop.f32.mrf.mxu1 }
 0x16d   : > { %v1053_v63 = vpop.f32.mrf.mxu0 }
 0x16e   : > { %v1094_v12 = vpop.f32.mrf.mxu1 }
 0x16f   : > { %v1055_v7 = vpop.f32.mrf.mxu0 }
 0x170   : > { %v1096_v14 = vpop.f32.mrf.mxu1 }
 0x171   : > { %v1057_v0 = vpop.f32.mrf.mxu0 }
 0x172   : > { %v1098_v48 = vpop.f32.mrf.mxu1 }
 0x173   : > { %v1058_v52 = vpop.f32.mrf.mxu0 }
 0x174   : > { %v1099_v50 = vpop.f32.mrf.mxu1 }
 0x175   : > { %v1180_v27 = vpop.f32.mrf.mxu0 }
 0x176   : > { %v1221_v51 = vpop.f32.mrf.mxu1 }
 0x177   : > { %v1182_v33 = vpop.f32.mrf.mxu0 }
 0x178   : > { %v1223_v2 = vpop.f32.mrf.mxu1 }
 0x179   : > { %v1184_v15 = vpop.f32.mrf.mxu0 }
 0x17a   : > { %v1225_v55 = vpop.f32.mrf.mxu1  ;;  %v780_v15 = vadd.f32 %v779_v42, %v682_v11 }
 0x17b   : > { %v1185_v32 = vpop.f32.mrf.mxu0  ;;  %v961_v55 = vadd.f32 %v913_v38, %v778_v5 }
 0x17c   : > { %v1226_v25 = vpop.f32.mrf.mxu1  ;;  %v963_v32 = vadd.f32 %v954_v9, %v819_v6  ;;  %v962_v23 = vadd.f32 %v915_v59, %v780_v15 }
 0x17d   : > { %v1320_v28 = vpop.f32.mrf.mxu0  ;;  %v1101_v18 = vadd.f32 %v1053_v63, %v961_v55 }
 0x17e   : > { %v1361_v54 = vpop.f32.mrf.mxu1  ;;  %v1102_v17 = vadd.f32 %v1055_v7, %v962_v23 }
 0x17f   : > { %v1322_v35 = vpop.f32.mrf.mxu0  ;;  %v1228_v20 = vadd.f32 %v1180_v27, %v1101_v18  ;;  %v1796_v18 = vpop.permute.xlu0 %1795 }
 0x180   : > { %v1363_v43 = vpop.f32.mrf.mxu1 }
 0x181   : > { %v1324_v60 = vpop.f32.mrf.mxu0 }
 0x182   : > { %v1365_v61 = vpop.f32.mrf.mxu1  ;;  %v1103_v60 = vadd.f32 %v1094_v12, %v963_v32 }
 0x183   : > { %v1325_v36 = vpop.f32.mrf.mxu0 }
 0x184   : > { %v1366_v22 = vpop.f32.mrf.mxu1  ;;  %v1230_v19 = vadd.f32 %v1221_v51, %v1103_v60 }
 0x185   : > { %v1460_v0 = vpop.f32.mrf.mxu0  ;;  %v964_v22 = vadd.f32 %v956_v37, %v821_v41 }
 0x186   : > { %v1501_v48 = vpop.f32.mrf.mxu1  ;;  %v1370_v11 = vadd.f32 %v1361_v54, %v1230_v19 }
 0x187   : > { %v1462_v52 = vpop.f32.mrf.mxu0  ;;  %v1104_v13 = vadd.f32 %v1096_v14, %v964_v22 }
 0x188   : > { %v1503_v50 = vpop.f32.mrf.mxu1  ;;  %v1510_v59 = vadd.f32 %v1501_v48, %v1370_v11 }
 0x189   : > { %v1464_v53 = vpop.f32.mrf.mxu0  ;;  %v1231_v9 = vadd.f32 %v1223_v2, %v1104_v13 }
 0x18a   : > { %v1505_v45 = vpop.f32.mrf.mxu1  ;;  %v1229_v53 = vadd.f32 %v1182_v33, %v1102_v17 }
 0x18b   : > { %v1465_v25 = vpop.f32.mrf.mxu0  ;;  %v1368_v45 = vadd.f32 %v1320_v28, %v1228_v20  ;;  %v1371_v31 = vadd.f32 %v1363_v43, %v1231_v9 }
 0x18c   : > { %v1506_v40 = vpop.f32.mrf.mxu1 }
 0x18d   : > { %v1600_v61 = vpop.f32.mrf.mxu0  ;;  %v1369_v40 = vadd.f32 %v1322_v35, %v1229_v53  ;;  %v1508_v38 = vadd.f32 %v1460_v0, %v1368_v45  ;;  %v1511_v63 = vadd.f32 %v1503_v50, %v1371_v31 }
 0x18e   : > { %v1641_v36 = vpop.f32.mrf.mxu1 }
 0x18f   : > { %v1602_v4 = vpop.f32.mrf.mxu0  ;;  %v1509_v42 = vadd.f32 %v1462_v52, %v1369_v40  ;;  %v1648_v41 = vadd.f32 %v1600_v61, %v1508_v38  ;;  %v1650_v23 = vadd.f32 %v1641_v36, %v1510_v59 }
 0x190   : > { %v1643_v3 = vpop.f32.mrf.mxu1 }
 0x191   : > { %v1604_v5 = vpop.f32.mrf.mxu0  ;;  %v1649_v12 = vadd.f32 %v1602_v4, %v1509_v42  ;;  %v1651_v14 = vadd.f32 %v1643_v3, %v1511_v63 }
 0x192   : > { %v1645_v6 = vpop.f32.mrf.mxu1 }
 0x193   : > { %v1605_v34 = vpop.f32.mrf.mxu0 }
 0x194   : > { %v1646_v30 = vpop.f32.mrf.mxu1 }
 0x195   : > { %v1740_v37 = vpop.f32.mrf.mxu0 }
 0x196   : > { %v1781_v49 = vpop.f32.mrf.mxu1  ;;  %v1788_v17 = vadd.f32 %v1740_v37, %v1648_v41 }
 0x197   : > { %v1790_v20 = vadd.f32 %v1781_v49, %v1650_v23  ;;  %v1742_v7 = vpop.f32.mrf.mxu0 }
 0x198   : > { %v1783_v19 = vpop.f32.mrf.mxu1  ;;  %v1798_v27 = vadd.f32 %v1796_v18, %v1788_v17  ;;  %v1789_v33 = vadd.f32 %v1742_v7, %v1649_v12 }
 0x199   : > { %v1800_v51 = vadd.f32 %v1796_v18, %v1790_v20  ;;  %v1744_v2 = vpop.f32.mrf.mxu0  ;;  %v1791_v54 = vadd.f32 %v1783_v19, %v1651_v14 }
 0x19a   : > { %v1785_v28 = vpop.f32.mrf.mxu1  ;;  %v8382_v35 = vmax.f32 %v1798_v27, 0.0  ;;  %v1799_v0 = vadd.f32 %v1796_v18, %v1789_v33  ;;  %v3213_v33 = vld [vmem:[%s11776_s4 + $0x8] sm:$0xff]  ;;  %v3212_v2 = vld [vmem:[%s11776_s4] sm:$0xff] }
 0x19b   : > { %v8384_v43 = vmax.f32 %v1800_v51, 0.0  ;;  %v1745_v48 = vpop.f32.mrf.mxu0  ;;  %v1801_v4 = vadd.f32 %v1796_v18, %v1791_v54  ;;  %v8577_v28 = vld [vmem:[%s11784_s12 + $0x8] sm:$0xff] }
 0x19c   : > { %12200 = vst [vmem:[#allocation80_spill] sm:$0xff] %v8382_v35  ;;  %v1786_v52 = vpop.f32.mrf.mxu1  ;;  %1806 = vrot.lane.b32.xlu1 %v8382_v35, %s11961_s18  ;;  %v8390_v50 = vmax.f32 %v1799_v0, 0.0  ;;  %v8582_v54 = vrot.slane %v8577_v28, %v7853_v10 }
 0x19d   : > { %12201 = vst [vmem:[#allocation81_spill] sm:$0xff] %v8384_v43  ;;  %1810 = vrot.lane.b32.xlu0 %v8384_v43, %s11961_s18  ;;  %v8396_v15 = vmax.f32 %v1801_v4, 0.0  ;;  %v8587_v52 = vld [vmem:[%s11784_s12 + $0x10] sm:$0xff] }
 0x19e   : > { %12202 = vst [vmem:[#allocation82_spill] sm:$0xff] %v8390_v50  ;;  %12217 = vst [vmem:[#allocation96_spill] sm:$0xff] %v8582_v54 }
 0x19f   : > { %12203 = vst [vmem:[#allocation83_spill] sm:$0xff] %v8396_v15 }
 0x1a0   : > { %1808 = vrot.lane.b32.xlu1 %v8390_v50, %s11961_s18 }
 0x1a1   : > { %1822 = vrot.lane.b32.xlu0 %v8382_v35, %s11959_s20 }
 0x1a4   : > { %1812 = vrot.lane.b32.xlu1 %v8396_v15, %s11961_s18  ;;  %s12288_s18 = smov 127  }
 0x1a5   : > { %1826 = vrot.lane.b32.xlu0 %v8384_v43, %s11959_s20 }
 0x1a8   : > { %1824 = vrot.lane.b32.xlu1 %v8390_v50, %s11959_s20 }
 0x1a9   : > { %1834 = vrot.lane.b32.xlu0 %v8382_v35, %s11957_s22 }
 0x1ac   : > { %1828 = vrot.lane.b32.xlu1 %v8396_v15, %s11959_s20  ;;  %s12291_s20 = smov 112  }
 0x1ad   : > { %1838 = vrot.lane.b32.xlu0 %v8384_v43, %s11957_s22 }
 0x1b0   : > { %1836 = vrot.lane.b32.xlu1 %v8390_v50, %s11957_s22 }
 0x1b4   : > { %1840 = vrot.lane.b32.xlu1 %v8396_v15, %s11957_s22  ;;  %s12295_s22 = smov 111  }
 0x20e   : > { %v1807_v32 = vpop.permute.xlu1 %1806 }
 0x20f   : > { %v1811_v55 = vpop.permute.xlu0 %1810 }
 0x212   : > { %v1809_v60 = vpop.permute.xlu1 %1808 }
 0x213   : > { %v1823_v25 = vpop.permute.xlu0 %1822  ;;  %v8416_v53 = vsel %vm1240_vm6, %v1809_v60, %v1811_v55  ;;  %v8420_v45 = vsel %vm1240_vm6, %v1807_v32, %v1809_v60 }
 0x214   : > { %12204 = vst [vmem:[#allocation84_spill] sm:$0xff] %v8416_v53  ;;  %12205 = vst [vmem:[#allocation85_spill] sm:$0xff] %v8420_v45  ;;  %v1818_v59 = vmax.f32 %v8382_v35, %v8420_v45  ;;  %v1819_v34 = vmax.f32 %v8390_v50, %v8416_v53 }
 0x216   : > { %v1813_v36 = vpop.permute.xlu1 %1812 }
 0x217   : > { %v1827_v61 = vpop.permute.xlu0 %1826  ;;  %v8448_v42 = vsel %vm1240_vm6, %v1811_v55, %v1813_v36  ;;  %v8452_v41 = vsel %vm1240_vm6, %v1813_v36, %v1807_v32  ;;  %v8593_v55 = vrot.slane %v8587_v52, %v7853_v10  ;;  %v8598_v32 = vld [vmem:[%s11784_s12] sm:$0xff] }
 0x218   : > { %12210 = vst [vmem:[#allocation90_spill] sm:$0xff] %v8448_v42  ;;  %12211 = vst [vmem:[#allocation91_spill] sm:$0xff] %v8452_v41  ;;  %v1820_v20 = vmax.f32 %v8384_v43, %v8448_v42  ;;  %v1821_v19 = vmax.f32 %v8396_v15, %v8452_v41 }
 0x219   : > { %12218 = vst [vmem:[#allocation97_spill] sm:$0xff] %v8593_v55 }
 0x21a   : > { %v1825_v22 = vpop.permute.xlu1 %1824 }
 0x21b   : > { %v1835_v3 = vpop.permute.xlu0 %1834  ;;  %v8424_v6 = vsel %vm1520_vm8, %v1825_v22, %v1827_v61  ;;  %v8428_v9 = vsel %vm1520_vm8, %v1823_v25, %v1825_v22 }
 0x21c   : > { %12206 = vst [vmem:[#allocation86_spill] sm:$0xff] %v8424_v6  ;;  %12207 = vst [vmem:[#allocation87_spill] sm:$0xff] %v8428_v9 }
 0x21e   : > { %v1829_v13 = vpop.permute.xlu1 %1828 }
 0x21f   : > { %v1839_v11 = vpop.permute.xlu0 %1838  ;;  %v8460_v49 = vsel %vm1520_vm8, %v1827_v61, %v1829_v13  ;;  %v8464_v63 = vsel %vm1520_vm8, %v1829_v13, %v1823_v25  ;;  %v8603_v25 = vld [vmem:[%s11784_s12 + $0x18] sm:$0xff]  ;;  %v8608_v61 = vrot.slane %v8598_v32, %v7853_v10 }
 0x220   : > { %12212 = vst [vmem:[#allocation92_spill] sm:$0xff] %v8460_v49  ;;  %12213 = vst [vmem:[#allocation93_spill] sm:$0xff] %v8464_v63  ;;  %v8612_v36 = vrot.slane %v8603_v25, %v7853_v10 }
 0x221   : > { %12219 = vst [vmem:[#allocation98_spill] sm:$0xff] %v8608_v61 }
 0x222   : > { %v1837_v5 = vpop.permute.xlu1 %1836  ;;  %12220 = vst [vmem:[#allocation99_spill] sm:$0xff] %v8612_v36 }
 0x223   : > { %v8432_v40 = vsel %vm1660_vm9, %v1837_v5, %v1839_v11  ;;  %v8436_v38 = vsel %vm1660_vm9, %v1835_v3, %v1837_v5 }
 0x224   : > { %12208 = vst [vmem:[#allocation88_spill] sm:$0xff] %v8432_v40  ;;  %12209 = vst [vmem:[#allocation89_spill] sm:$0xff] %v8436_v38  ;;  %v1846_v30 = vmax.f32 %v8428_v9, %v8436_v38  ;;  %v1847_v31 = vmax.f32 %v8424_v6, %v8432_v40 }
 0x226   : > { %v8454_v23 = vmax.f32 %v1818_v59, %v1846_v30  ;;  %v8456_v18 = vmax.f32 %v1819_v34, %v1847_v31  ;;  %v1841_v37 = vpop.permute.xlu1 %1840 }
 0x227   : > { %v8468_v12 = vsel %vm1660_vm9, %v1839_v11, %v1841_v37  ;;  %v8472_v17 = vsel %vm1660_vm9, %v1841_v37, %v1835_v3  ;;  %v8627_v37 = vrot.slane %v8577_v28, %v7871_v16 }
 0x228   : > { %12214 = vst [vmem:[#allocation94_spill] sm:$0xff] %v8468_v12  ;;  %12215 = vst [vmem:[#allocation95_spill] sm:$0xff] %v8472_v17  ;;  %v1848_v7 = vmax.f32 %v8460_v49, %v8468_v12  ;;  %v1849_v14 = vmax.f32 %v8464_v63, %v8472_v17  ;;  %1893 = vrot.lane.b32.xlu0 %v8454_v23, %s11934_s19  ;;  %1895 = vrot.lane.b32.xlu1 %v8456_v18, %s11934_s19 }
 0x229   : > { %12221 = vst [vmem:[#allocation100_spill] sm:$0xff] %v8627_v37 }
 0x22a   : > { %v8486_v27 = vmax.f32 %v1820_v20, %v1848_v7  ;;  %v8488_v51 = vmax.f32 %v1821_v19, %v1849_v14 }
 0x22c   : > { %1897 = vrot.lane.b32.xlu0 %v8486_v27, %s11934_s19  ;;  %1899 = vrot.lane.b32.xlu1 %v8488_v51, %s11934_s19  ;;  %s12461_s19 = smov 34  }
 0x230   : > { %1854 = vrot.lane.b32.xlu0 %v8454_v23, %s11955_s26  ;;  %1856 = vrot.lane.b32.xlu1 %v8456_v18, %s11955_s26 }
 0x234   : > { %1858 = vrot.lane.b32.xlu0 %v8486_v27, %s11955_s26  ;;  %1860 = vrot.lane.b32.xlu1 %v8488_v51, %s11955_s26  ;;  %s12466_s26 = smov 98  }
 0x238   : > { %2147 = vrot.lane.b32.xlu0 %v8454_v23, %s11932_s27  ;;  %2149 = vrot.lane.b32.xlu1 %v8456_v18, %s11932_s27 }
 0x23c   : > { %2151 = vrot.lane.b32.xlu0 %v8486_v27, %s11932_s27  ;;  %2153 = vrot.lane.b32.xlu1 %v8488_v51, %s11932_s27  ;;  %s12462_s27 = smov 32  }
 0x240   : > { %2301 = vrot.lane.b32.xlu0 %v8454_v23, %s11930_s28  ;;  %2303 = vrot.lane.b32.xlu1 %v8456_v18, %s11930_s28 }
 0x244   : > { %2305 = vrot.lane.b32.xlu0 %v8486_v27, %s11930_s28  ;;  %2307 = vrot.lane.b32.xlu1 %v8488_v51, %s11930_s28  ;;  %s12264_s28 = smov 1  }
 0x248   : > { %2596 = vrot.lane.b32.xlu0 %v8454_v23, %s11924_s24  ;;  %2598 = vrot.lane.b32.xlu1 %v8456_v18, %s11924_s24 }
 0x24c   : > { %2600 = vrot.lane.b32.xlu0 %v8486_v27, %s11924_s24  ;;  %2602 = vrot.lane.b32.xlu1 %v8488_v51, %s11924_s24  ;;  %s12463_s24 = smov 30  }
 0x250   : > { %2750 = vrot.lane.b32.xlu0 %v8454_v23, %s11922_s25  ;;  %2752 = vrot.lane.b32.xlu1 %v8456_v18, %s11922_s25 }
 0x254   : > { %2754 = vrot.lane.b32.xlu0 %v8486_v27, %s11922_s25  ;;  %2756 = vrot.lane.b32.xlu1 %v8488_v51, %s11922_s25  ;;  %s12464_s25 = smov 2  }
 0x258   : > { %2904 = vrot.lane.b32.xlu0 %v8454_v23, %s11928_s0  ;;  %2906 = vrot.lane.b32.xlu1 %v8456_v18, %s11928_s0 }
 0x25c   : > { %2908 = vrot.lane.b32.xlu0 %v8486_v27, %s11928_s0  ;;  %2910 = vrot.lane.b32.xlu1 %v8488_v51, %s11928_s0  ;;  %s12276_s0 = smov 113  }
 0x260   : > { %3058 = vrot.lane.b32.xlu0 %v8454_v23, %s11926_s17  ;;  %3060 = vrot.lane.b32.xlu1 %v8456_v18, %s11926_s17 }
 0x264   : > { %3062 = vrot.lane.b32.xlu0 %v8486_v27, %s11926_s17  ;;  %3064 = vrot.lane.b32.xlu1 %v8488_v51, %s11926_s17  ;;  %s12216_s17 = smov 15  }
 0x268   : > { %3221 = vperm.xlu0 %7527, %v3213_v33   ;;  %3216 = vperm.xlu1 %7528, %v3212_v2  }
 0x26c   : > { %3573 = vrot.lane.b32.xlu0 %v8382_v35, %s12042_s29 }
 0x270   : > { %3579 = vrot.lane.b32.xlu0 %v8390_v50, %s12042_s29 }
 0x274   : > { %3585 = vrot.lane.b32.xlu0 %v8384_v43, %s12042_s29 }
 0x278   : > { %3591 = vrot.lane.b32.xlu0 %v8396_v15, %s12042_s29 }
 0x27c   : > { %3516 = vrot.lane.b32.xlu0 %v8382_v35, %s12115_s30 }
 0x280   : > { %3522 = vrot.lane.b32.xlu0 %v8390_v50, %s12115_s30 }
 0x284   : > { %3528 = vrot.lane.b32.xlu0 %v8384_v43, %s12115_s30 }
 0x288   : > { %3534 = vrot.lane.b32.xlu0 %v8396_v15, %s12115_s30 }
 0x28c   : > { %3826 = vrot.lane.b32.xlu0 %v8382_v35, %s12216_s17 }
 0x29a   : > { %v1894_v0 = vpop.permute.xlu0 %1893  ;;  %v1896_v48 = vpop.permute.xlu1 %1895 }
 0x29b   : > { %v1904_v4 = vsel %vm1901_vm10, %v1894_v0, %v1896_v48 }
 0x29c   : > { %v1923_v60 = vmul.f32 %v8582_v54, %v1904_v4 }
 0x29e   : > { %v1898_v22 = vpop.permute.xlu0 %1897  ;;  %v1927_v3 = vpack.c.bf16 %v1923_v60, %v1923_v60  ;;  %v1900_v11 = vpop.permute.xlu1 %1899 }
 0x29f   : > { %v1903_v13 = vsel %vm1901_vm10, %v1896_v48, %v1898_v22  ;;  %v1902_v59 = vsel %vm1901_vm10, %v1898_v22, %v1900_v11  ;;  %v1905_v34 = vsel %vm1901_vm10, %v1900_v11, %v1894_v0  ;;  %v8634_v48 = vrot.slane %v8587_v52, %v7871_v16 }
 0x2a0   : > { %v1924_v5 = vmul.f32 %v8593_v55, %v1903_v13  ;;  %v1922_v30 = vmul.f32 %v8608_v61, %v1905_v34  ;;  %v1925_v31 = vmul.f32 %v8612_v36, %v1902_v59  ;;  %7382 = vmatprep.subr.msk.bf16.mxu0 %vm1942_vm11, %v1927_v3  ;;  %v8641_v22 = vrot.slane %v8598_v32, %v7871_v16  ;;  %v7531_v13 = vld [vmem:[%s11775_s3 + $0x8] sm:$0xff]  }
 0x2a1   : > { %12222 = vst [vmem:[#allocation101_spill] sm:$0xff] %v8634_v48  ;;  %v8645_v3 = vrot.slane %v8603_v25, %v7871_v16 }
 0x2a2   : > { %v1928_v20 = vpack.c.bf16 %v1924_v5, %v1924_v5  ;;  %v1855_v19 = vpop.permute.xlu0 %1854  ;;  %v1926_v7 = vpack.c.bf16 %v1922_v30, %v1922_v30  ;;  %v1929_v14 = vpack.c.bf16 %v1925_v31, %v1925_v31  ;;  %v1857_v33 = vpop.permute.xlu1 %1856  ;;  %12223 = vst [vmem:[#allocation102_spill] sm:$0xff] %v8641_v22 }
 0x2a3   : > { %v1865_v2 = vsel %vm1862_vm12, %v1855_v19, %v1857_v33  ;;  %12224 = vst [vmem:[#allocation103_spill] sm:$0xff] %v8645_v3 }
 0x2a4   : > { %v1950_v0 = vsel %vm1942_vm11, %v1928_v20, 0  ;;  %v1884_v4 = vmul.f32 %v8627_v37, %v1865_v2  ;;  %7384 = vmatprep.subr.msk.bf16.mxu1 %vm1942_vm11, %v1929_v14  ;;  %v1944_v60 = vsel %vm1942_vm11, %v1926_v7, 0 }
 0x2a5   : > { %1970 = vmatpush1.bf16.msra.mxu0 %v1944_v60  ;;  %2013 = vmatpush1.bf16.msra.mxu1 %v1950_v0 }
 0x2a6   : > { %v1859_v11 = vpop.permute.xlu0 %1858  ;;  %v1888_v5 = vpack.c.bf16 %v1884_v4, %v1884_v4  ;;  %v1861_v34 = vpop.permute.xlu1 %1860 }
 0x2a7   : > { %v1864_v59 = vsel %vm1862_vm12, %v1857_v33, %v1859_v11  ;;  %v1863_v31 = vsel %vm1862_vm12, %v1859_v11, %v1861_v34  ;;  %v1866_v20 = vsel %vm1862_vm12, %v1861_v34, %v1855_v19  ;;  %v8664_v33 = vrot.slane %v8577_v28, %v7926_v39 }
 0x2a8   : > { %v1885_v30 = vmul.f32 %v8634_v48, %v1864_v59  ;;  %v1883_v7 = vmul.f32 %v8641_v22, %v1866_v20  ;;  %v1886_v14 = vmul.f32 %v8645_v3, %v1863_v31  ;;  %7383 = vmatmul.mubr.msk.bf16.vlgmr.msra.gmra.mxu0 %vm1938_vm13, %v7531_v13  ;;  %7385 = vmatmul.mubr.msk.bf16.vlgmr.msra.gmra.mxu1 %vm1938_vm13, %v7531_v13  ;;  %v7532_v20 = vld [vmem:[%s11775_s3] sm:$0xff]  }
 0x2a9   : > { %12225 = vst [vmem:[#allocation104_spill] sm:$0xff] %v8664_v33  ;;  %7387 = vmatprep.subr.msk.bf16.mxu0 %vm1942_vm11, %v1888_v5  ;;  %2093 = vmatprep.mubr.bf16.mxu0 %v12179_v26  ;;  %v8674_v59 = vrot.slane %v8587_v52, %v7926_v39  ;;  %v8685_v31 = vrot.slane %v8603_v25, %v7926_v39 }
 0x2aa   : > { %v1889_v2 = vpack.c.bf16 %v1885_v30, %v1885_v30  ;;  %v2148_v0 = vpop.permute.xlu0 %2147  ;;  %v1887_v19 = vpack.c.bf16 %v1883_v7, %v1883_v7  ;;  %v1890_v4 = vpack.c.bf16 %v1886_v14, %v1886_v14  ;;  %v2150_v60 = vpop.permute.xlu1 %2149  ;;  %2136 = vmatprep.mubr.bf16.mxu1 %v12179_v26  ;;  %v8681_v30 = vrot.slane %v8598_v32, %v7926_v39 }
 0x2ab   : > { %v2158_v13 = vsel %vm2155_vm14, %v2148_v0, %v2150_v60  ;;  %12226 = vst [vmem:[#allocation105_spill] sm:$0xff] %v8674_v59  ;;  %12228 = vst [vmem:[#allocation107_spill] sm:$0xff] %v8685_v31 }
 0x2ac   : > { %v2056_v11 = vsel %vm1942_vm11, %v1889_v2, 0  ;;  %v2177_v34 = vmul.f32 %v8664_v33, %v2158_v13  ;;  %7389 = vmatprep.subr.msk.bf16.mxu1 %vm1942_vm11, %v1890_v4  ;;  %v2050_v5 = vsel %vm1942_vm11, %v1887_v19, 0  ;;  %12227 = vst [vmem:[#allocation106_spill] sm:$0xff] %v8681_v30 }
 0x2ad   : > { %2076 = vmatpush1.bf16.msra.mxu0 %v2050_v5  ;;  %2119 = vmatpush1.bf16.msra.mxu1 %v2056_v11 }
 0x2ae   : > { %v2152_v7 = vpop.permute.xlu0 %2151  ;;  %v2181_v14 = vpack.c.bf16 %v2177_v34, %v2177_v34  ;;  %v2154_v19 = vpop.permute.xlu1 %2153 }
 0x2af   : > { %v2157_v2 = vsel %vm2155_vm14, %v2150_v60, %v2152_v7  ;;  %v2156_v13 = vsel %vm2155_vm14, %v2152_v7, %v2154_v19  ;;  %v2159_v3 = vsel %vm2155_vm14, %v2154_v19, %v2148_v0  ;;  %v8704_v60 = vrot.slane %v8577_v28, %v7984_v62 }
 0x2b0   : > { %v2178_v4 = vmul.f32 %v8674_v59, %v2157_v2  ;;  %v2176_v33 = vmul.f32 %v8681_v30, %v2159_v3  ;;  %v2179_v36 = vmul.f32 %v8685_v31, %v2156_v13  ;;  %7388 = vmatmul.mubr.msk.bf16.vlgmr.msra.gmra.mxu0 %vm1938_vm13, %v7532_v20  ;;  %7390 = vmatmul.mubr.msk.bf16.vlgmr.msra.gmra.mxu1 %vm1938_vm13, %v7532_v20  ;;  %v7533_v59 = vld [vmem:[%s11775_s3 + $0x10] sm:$0xff]  }
 0x2b1   : > { %12229 = vst [vmem:[#allocation108_spill] sm:$0xff] %v8704_v60  ;;  %7394 = vmatprep.subr.msk.bf16.mxu0 %vm1942_vm11, %v2181_v14  ;;  %2239 = vmatprep.mubr.bf16.mxu0 %v12179_v26  ;;  %v8710_v3 = vrot.slane %v8577_v28, %v8007_v24  ;;  %v8715_v20 = vrot.slane %v8603_v25, %v8007_v24 }
 0x2b2   : > { %v2182_v11 = vpack.c.bf16 %v2178_v4, %v2178_v4  ;;  %v2302_v34 = vpop.permute.xlu0 %2301  ;;  %v2180_v0 = vpack.c.bf16 %v2176_v33, %v2176_v33  ;;  %v2183_v5 = vpack.c.bf16 %v2179_v36, %v2179_v36  ;;  %v2304_v7 = vpop.permute.xlu1 %2303  ;;  %2282 = vmatprep.mubr.bf16.mxu1 %v12179_v26  ;;  %v8719_v2 = vrot.slane %v8598_v32, %v8007_v24 }
 0x2b3   : > { %12230 = vst [vmem:[#allocation109_spill] sm:$0xff] %v8710_v3  ;;  %12231 = vst [vmem:[#allocation110_spill] sm:$0xff] %v8715_v20  ;;  %v2312_v14 = vsel %vm11949_vm15, %v2302_v34, %v2304_v7  ;;  %v8726_v33 = vrot.slane %v8587_v52, %v7984_v62  ;;  %v8730_v36 = vrot.slane %v8587_v52, %v8007_v24 }
 0x2b4   : > { %12232 = vst [vmem:[#allocation111_spill] sm:$0xff] %v8719_v2  ;;  %v2202_v19 = vsel %vm1942_vm11, %v2182_v11, 0  ;;  %v2331_v4 = vmul.f32 %v8704_v60, %v2312_v14  ;;  %7396 = vmatprep.subr.msk.bf16.mxu1 %vm1942_vm11, %v2183_v5  ;;  %v2196_v13 = vsel %vm1942_vm11, %v2180_v0, 0  ;;  %v8737_v31 = vrot.slane %v8598_v32, %v7984_v62 }
 0x2b5   : > { %12233 = vst [vmem:[#allocation112_spill] sm:$0xff] %v8726_v33  ;;  %12234 = vst [vmem:[#allocation113_spill] sm:$0xff] %v8730_v36  ;;  %v8741_v11 = vrot.slane %v8603_v25, %v7984_v62  ;;  %2222 = vmatpush1.bf16.msra.mxu0 %v2196_v13  ;;  %2265 = vmatpush1.bf16.msra.mxu1 %v2202_v19  ;;  %v2472_v5 = vmul.f32 %v8710_v3, %v8456_v18 }
 0x2b6   : > { %12235 = vst [vmem:[#allocation114_spill] sm:$0xff] %v8737_v31  ;;  %v2306_v48 = vpop.permute.xlu0 %2305  ;;  %v2335_v14 = vpack.c.bf16 %v2331_v4, %v2331_v4  ;;  %v2308_v60 = vpop.permute.xlu1 %2307  ;;  %v2474_v55 = vmul.f32 %v8715_v20, %v8488_v51  ;;  %v2471_v37 = vmul.f32 %v8719_v2, %v8454_v23  ;;  %v2473_v18 = vmul.f32 %v8730_v36, %v8486_v27 }
 0x2b7   : > { %12236 = vst [vmem:[#allocation115_spill] sm:$0xff] %v8741_v11  ;;  %v2311_v0 = vsel %vm11949_vm15, %v2304_v7, %v2306_v48  ;;  %v2310_v19 = vsel %vm11949_vm15, %v2306_v48, %v2308_v60  ;;  %v2313_v13 = vsel %vm11949_vm15, %v2308_v60, %v2302_v34  ;;  %v2476_v48 = vpack.c.bf16 %v2472_v5, %v2472_v5 }
 0x2b8   : > { %v2332_v30 = vmul.f32 %v8726_v33, %v2311_v0  ;;  %v2330_v7 = vmul.f32 %v8737_v31, %v2313_v13  ;;  %v2333_v4 = vmul.f32 %v8741_v11, %v2310_v19  ;;  %7395 = vmatmul.mubr.msk.bf16.vlgmr.msra.gmra.mxu0 %vm1938_vm13, %v7533_v59  ;;  %7397 = vmatmul.mubr.msk.bf16.vlgmr.msra.gmra.mxu1 %vm1938_vm13, %v7533_v59  ;;  %vm11953_vm15 = vcmp.lt.s32.totalorder %v7845_v8, 98 }
 0x2b9   : > { %7401 = vmatprep.subr.msk.bf16.mxu0 %vm1942_vm11, %v2335_v14  ;;  %2393 = vmatprep.mubr.bf16.mxu0 %v12179_v26  ;;  %v2478_v0 = vpack.c.bf16 %v2474_v55, %v2474_v55  ;;  %v2475_v19 = vpack.c.bf16 %v2471_v37, %v2471_v37  ;;  %v8771_v13 = vrot.slane %v8598_v32, %v8062_v58 }
 0x2ba   : > { %v2336_v23 = vpack.c.bf16 %v2332_v30, %v2332_v30  ;;  %v2597_v51 = vpop.permute.xlu0 %2596  ;;  %v2334_v60 = vpack.c.bf16 %v2330_v7, %v2330_v7  ;;  %v2337_v34 = vpack.c.bf16 %v2333_v4, %v2333_v4  ;;  %v2599_v27 = vpop.permute.xlu1 %2598  ;;  %2436 = vmatprep.mubr.bf16.mxu1 %v12179_v26  ;;  %v8776_v30 = vrot.slane %v8577_v28, %v8062_v58  ;;  %v7534_v4 = vld [vmem:[%s11775_s3 + $0x18] sm:$0xff]  }
 0x2bb   : > { %12237 = vst [vmem:[#allocation116_spill] sm:$0xff] %v8771_v13  ;;  %v2477_v5 = vpack.c.bf16 %v2473_v18, %v2473_v18  ;;  %v2607_v14 = vsel %vm11954_vm3, %v2597_v51, %v2599_v27  ;;  %v8784_v37 = vrot.slane %v8587_v52, %v8062_v58  ;;  %v8788_v7 = vrot.slane %v8603_v25, %v8062_v58 }
 0x2bc   : > { %v2356_v59 = vsel %vm1942_vm11, %v2336_v23, 0  ;;  %12238 = vst [vmem:[#allocation117_spill] sm:$0xff] %v8776_v30  ;;  %7403 = vmatprep.subr.msk.bf16.mxu1 %vm1942_vm11, %v2337_v34  ;;  %v2350_v55 = vsel %vm1942_vm11, %v2334_v60, 0  ;;  %v2625_v34 = vmul.f32 %v8771_v13, %v2607_v14 }
 0x2bd   : > { %12239 = vst [vmem:[#allocation118_spill] sm:$0xff] %v8784_v37  ;;  %12240 = vst [vmem:[#allocation119_spill] sm:$0xff] %v8788_v7  ;;  %2376 = vmatpush1.bf16.msra.mxu0 %v2350_v55  ;;  %2419 = vmatpush1.bf16.msra.mxu1 %v2356_v59 }
 0x2be   : > { %v2601_v18 = vpop.permute.xlu0 %2600  ;;  %7408 = vmatprep.subr.msk.bf16.mxu0 %vm1942_vm11, %v2476_v48  ;;  %7410 = vmatprep.subr.msk.bf16.mxu1 %vm1942_vm11, %v2478_v0  ;;  %v2603_v60 = vpop.permute.xlu1 %2602  ;;  %v2491_v48 = vsel %vm1942_vm11, %v2475_v19, 0  ;;  %v8815_v19 = vrot.slane %v8577_v28, %v8162_v56 }
 0x2bf   : > { %v2606_v23 = vsel %vm11954_vm3, %v2599_v27, %v2601_v18  ;;  %v2605_v33 = vsel %vm11954_vm3, %v2601_v18, %v2603_v60  ;;  %v2608_v55 = vsel %vm11954_vm3, %v2603_v60, %v2597_v51  ;;  %v2497_v27 = vsel %vm1942_vm11, %v2477_v5, 0 }
 0x2c0   : > { %v2626_v11 = vmul.f32 %v8776_v30, %v2606_v23  ;;  %v2627_v59 = vmul.f32 %v8784_v37, %v2605_v33  ;;  %v2628_v31 = vmul.f32 %v8788_v7, %v2608_v55  ;;  %7402 = vmatmul.mubr.msk.bf16.vlgmr.msra.gmra.mxu0 %vm1938_vm13, %v7534_v4  ;;  %7404 = vmatmul.mubr.msk.bf16.vlgmr.msra.gmra.mxu1 %vm1938_vm13, %v7534_v4  ;;  %v7535_v23 = vld [vmem:[%s11775_s3 + $0x20] sm:$0xff]   ;;  %vm3066_vm3 = vcmp.lt.s32.totalorder %v7845_v8, 94 }
 0x2c1   : > { %2517 = vmatpush1.bf16.msra.mxu0 %v2491_v48  ;;  %2560 = vmatpush1.bf16.msra.mxu1 %v2497_v27  ;;  %v2629_v33 = vpack.c.bf16 %v2625_v34, %v2625_v34  ;;  %12241 = vst [vmem:[#allocation120_spill] sm:$0xff] %v8815_v19  ;;  %v8828_v4 = vrot.slane %v8603_v25, %v8162_v56 }
 0x2c2   : > { %v2630_v0 = vpack.c.bf16 %v2626_v11, %v2626_v11  ;;  %v2751_v14 = vpop.permute.xlu0 %2750  ;;  %v2632_v18 = vpack.c.bf16 %v2628_v31, %v2628_v31  ;;  %v2753_v51 = vpop.permute.xlu1 %2752  ;;  %2534 = vmatprep.mubr.bf16.mxu0 %v12179_v26  ;;  %2577 = vmatprep.mubr.bf16.mxu1 %v12179_v26  ;;  %v2631_v5 = vpack.c.bf16 %v2627_v59, %v2627_v59 }
 0x2c3   : > { %v8819_v11 = vrot.slane %v8598_v32, %v8162_v56  ;;  %v8824_v31 = vrot.slane %v8587_v52, %v8162_v56  ;;  %12244 = vst [vmem:[#allocation123_spill] sm:$0xff] %v8828_v4  ;;  %v2761_v60 = vsel %vm11953_vm15, %v2751_v14, %v2753_v51 }
 0x2c4   : > { %7415 = vmatprep.subr.msk.bf16.mxu0 %vm1942_vm11, %v2630_v0  ;;  %7417 = vmatprep.subr.msk.bf16.mxu1 %vm1942_vm11, %v2632_v18  ;;  %v2645_v18 = vsel %vm1942_vm11, %v2629_v33, 0 }
 0x2c5   : > { %12242 = vst [vmem:[#allocation121_spill] sm:$0xff] %v8819_v11  ;;  %12243 = vst [vmem:[#allocation122_spill] sm:$0xff] %v8824_v31  ;;  %v2779_v7 = vmul.f32 %v8819_v11, %v2761_v60  ;;  %v8854_v60 = vrot.slane %v8598_v32, %v8223_v21  ;;  %v8870_v32 = vrot.slane %v8603_v25, %v8223_v21 }
 0x2c6   : > { %v2755_v34 = vpop.permute.xlu0 %2754  ;;  %v2757_v59 = vpop.permute.xlu1 %2756 }
 0x2c7   : > { %v2760_v55 = vsel %vm11953_vm15, %v2753_v51, %v2755_v34  ;;  %v2759_v27 = vsel %vm11953_vm15, %v2755_v34, %v2757_v59  ;;  %v2762_v0 = vsel %vm11953_vm15, %v2757_v59, %v2751_v14  ;;  %v2651_v51 = vsel %vm1942_vm11, %v2631_v5, 0  ;;  %12245 = vst [vmem:[#allocation124_spill] sm:$0xff] %v8854_v60  ;;  %12248 = vst [vmem:[#allocation127_spill] sm:$0xff] %v8870_v32 }
 0x2c8   : > { %v2780_v48 = vmul.f32 %v8815_v19, %v2760_v55  ;;  %v2781_v37 = vmul.f32 %v8824_v31, %v2759_v27  ;;  %v2782_v30 = vmul.f32 %v8828_v4, %v2762_v0  ;;  %7409 = vmatmul.mubr.msk.bf16.vlgmr.msra.gmra.mxu0 %vm1938_vm13, %v7535_v23  ;;  %7411 = vmatmul.mubr.msk.bf16.vlgmr.msra.gmra.mxu1 %vm1938_vm13, %v7535_v23  ;;  %vm2912_vm15 = vcmp.lt.s32.totalorder %v7845_v8, 96 }
 0x2c9   : > { %2671 = vmatpush1.bf16.msra.mxu0 %v2645_v18  ;;  %2714 = vmatpush1.bf16.msra.mxu1 %v2651_v51  ;;  %v8859_v5 = vrot.slane %v8577_v28, %v8223_v21  ;;  %v8863_v23 = vrot.slane %v8587_v52, %v8223_v21  ;;  %v7536_v28 = vld [vmem:[%s11775_s3 + $0x28] sm:$0xff]  }
 0x2ca   : > { %v2784_v55 = vpack.c.bf16 %v2780_v48, %v2780_v48  ;;  %v2905_v34 = vpop.permute.xlu0 %2904  ;;  %v2786_v14 = vpack.c.bf16 %v2782_v30, %v2782_v30  ;;  %v2907_v33 = vpop.permute.xlu1 %2906  ;;  %2688 = vmatprep.mubr.bf16.mxu0 %v12179_v26  ;;  %2731 = vmatprep.mubr.bf16.mxu1 %v12179_v26  ;;  %v2783_v30 = vpack.c.bf16 %v2779_v7, %v2779_v7 }
 0x2cb   : > { %12246 = vst [vmem:[#allocation125_spill] sm:$0xff] %v8859_v5  ;;  %12247 = vst [vmem:[#allocation126_spill] sm:$0xff] %v8863_v23  ;;  %v2785_v59 = vpack.c.bf16 %v2781_v37, %v2781_v37  ;;  %v2915_v48 = vsel %vm2912_vm15, %v2905_v34, %v2907_v33 }
 0x2cc   : > { %7422 = vmatprep.subr.msk.bf16.mxu0 %vm1942_vm11, %v2784_v55  ;;  %7424 = vmatprep.subr.msk.bf16.mxu1 %vm1942_vm11, %v2786_v14  ;;  %v2933_v37 = vmul.f32 %v8854_v60, %v2915_v48  ;;  %v2799_v14 = vsel %vm1942_vm11, %v2783_v30, 0  ;;  %v7434_v30 = vld [vmem:[%s11784_s12 + $0x28] ss:$0 sm:$0xff] }
 0x2ce   : > { %v2909_v27 = vpop.permute.xlu0 %2908  ;;  %v2911_v0 = vpop.permute.xlu1 %2910 }
 0x2cf   : > { %v2914_v52 = vsel %vm2912_vm15, %v2907_v33, %v2909_v27  ;;  %v2913_v18 = vsel %vm2912_vm15, %v2909_v27, %v2911_v0  ;;  %v2916_v25 = vsel %vm2912_vm15, %v2911_v0, %v2905_v34  ;;  %v2805_v33 = vsel %vm1942_vm11, %v2785_v59, 0  ;;  %v7537_v59 = vld [vmem:[%s11775_s3 + $0x30] sm:$0xff]  }
 0x2d0   : > { %v2934_v7 = vmul.f32 %v8859_v5, %v2914_v52  ;;  %v2935_v51 = vmul.f32 %v8863_v23, %v2913_v18  ;;  %v2936_v55 = vmul.f32 %v8870_v32, %v2916_v25  ;;  %7416 = vmatmul.mubr.msk.bf16.vlgmr.msra.gmra.mxu0 %vm1938_vm13, %v7536_v28  ;;  %7418 = vmatmul.mubr.msk.bf16.vlgmr.msra.gmra.mxu1 %vm1938_vm13, %v7536_v28  ;;  %v7435_v25 = vld [vmem:[%s11784_s12 + $0x30] ss:$0 sm:$0xff] }
 0x2d1   : > { %2825 = vmatpush1.bf16.msra.mxu0 %v2799_v14  ;;  %2868 = vmatpush1.bf16.msra.mxu1 %v2805_v33  ;;  %v2937_v0 = vpack.c.bf16 %v2933_v37, %v2933_v37 }
 0x2d2   : > { %v2938_v48 = vpack.c.bf16 %v2934_v7, %v2934_v7  ;;  %v3059_v52 = vpop.permute.xlu0 %3058  ;;  %v2940_v27 = vpack.c.bf16 %v2936_v55, %v2936_v55  ;;  %v3061_v34 = vpop.permute.xlu1 %3060  ;;  %2842 = vmatprep.mubr.bf16.mxu0 %v12179_v26  ;;  %2885 = vmatprep.mubr.bf16.mxu1 %v12179_v26  ;;  %v2939_v28 = vpack.c.bf16 %v2935_v51, %v2935_v51  ;;  %v7433_v7 = vld [vmem:[%s11784_s12 + $0x20] ss:$0 sm:$0xff]  ;;  %v7436_v51 = vld [vmem:[%s11784_s12 + $0x38] ss:$0 sm:$0xff] }
 0x2d3   : > { %v3069_v37 = vsel %vm3066_vm3, %v3059_v52, %v3061_v34  ;;  %v2953_v32 = vsel %vm1942_vm11, %v2937_v0, 0 }
 0x2d4   : > { %7429 = vmatprep.subr.msk.bf16.mxu0 %vm1942_vm11, %v2938_v48  ;;  %7431 = vmatprep.subr.msk.bf16.mxu1 %vm1942_vm11, %v2940_v27  ;;  %v3087_v23 = vmul.f32 %v7433_v7, %v3069_v37  ;;  %v2959_v31 = vsel %vm1942_vm11, %v2939_v28, 0 }
 0x2d6   : > { %v3063_v18 = vpop.permute.xlu0 %3062  ;;  %v3065_v14 = vpop.permute.xlu1 %3064 }
 0x2d7   : > { %v3068_v55 = vsel %vm3066_vm3, %v3061_v34, %v3063_v18  ;;  %v3067_v48 = vsel %vm3066_vm3, %v3063_v18, %v3065_v14  ;;  %v3070_v27 = vsel %vm3066_vm3, %v3065_v14, %v3059_v52  ;;  %v3091_v52 = vpack.c.bf16 %v3087_v23, %v3087_v23 }
 0x2d8   : > { %v3088_v33 = vmul.f32 %v7434_v30, %v3068_v55  ;;  %v3089_v5 = vmul.f32 %v7435_v25, %v3067_v48  ;;  %v3090_v4 = vmul.f32 %v7436_v51, %v3070_v27  ;;  %7423 = vmatmul.mubr.msk.bf16.vlgmr.msra.gmra.mxu0 %vm1938_vm13, %v7537_v59  ;;  %7425 = vmatmul.mubr.msk.bf16.vlgmr.msra.gmra.mxu1 %vm1938_vm13, %v7537_v59  ;;  %v7538_v59 = vld [vmem:[%s11775_s3 + $0x38] sm:$0xff]  }
 0x2d9   : > { %2979 = vmatpush1.bf16.msra.mxu0 %v2953_v32  ;;  %3022 = vmatpush1.bf16.msra.mxu1 %v2959_v31  ;;  %v3107_v31 = vsel %vm1942_vm11, %v3091_v52, 0 }
 0x2da   : > { %v3092_v34 = vpack.c.bf16 %v3088_v33, %v3088_v33  ;;  %v3094_v30 = vpack.c.bf16 %v3090_v4, %v3090_v4  ;;  %2996 = vmatprep.mubr.bf16.mxu0 %v12179_v26  ;;  %3039 = vmatprep.mubr.bf16.mxu1 %v12179_v26  ;;  %v3093_v0 = vpack.c.bf16 %v3089_v5, %v3089_v5  ;;  %v7539_v5 = vld [vmem:[%s11775_s3 + $0x40] sm:$0xff]  }
 0x2dc   : > { %7440 = vmatprep.subr.msk.bf16.mxu0 %vm1942_vm11, %v3092_v34  ;;  %7442 = vmatprep.subr.msk.bf16.mxu1 %vm1942_vm11, %v3094_v30  ;;  %v3113_v4 = vsel %vm1942_vm11, %v3093_v0, 0 }
 0x2e0   : > { %7430 = vmatmul.mubr.msk.bf16.vlgmr.msra.gmra.mxu0 %vm1938_vm13, %v7538_v59  ;;  %7432 = vmatmul.mubr.msk.bf16.vlgmr.msra.gmra.mxu1 %vm1938_vm13, %v7538_v59 }
 0x2e1   : > { %3133 = vmatpush1.bf16.msra.mxu0 %v3107_v31  ;;  %3176 = vmatpush1.bf16.msra.mxu1 %v3113_v4 }
 0x2e2   : > { %3150 = vmatprep.mubr.bf16.mxu0 %v12179_v26  ;;  %3193 = vmatprep.mubr.bf16.mxu1 %v12179_v26 }
 0x2e8   : > { %7441 = vmatmul.mubr.msk.bf16.vlgmr.msra.gmra.mxu0 %vm1938_vm13, %v7539_v5  ;;  %7443 = vmatmul.mubr.msk.bf16.vlgmr.msra.gmra.mxu1 %vm1938_vm13, %v7539_v5 }
 0x2e9   : > { %3679 = vmatprep.mubr.bf16.mxu0 %v12179_v26  ;;  %3720 = vmatprep.mubr.bf16.mxu1 %v12179_v26 }
 0x368   : > { %v1989_v23 = vpop.f32.mrf.mxu0  ;;  %v2032_v32 = vpop.f32.mrf.mxu1 }
 0x36a   : > { %v1991_v28 = vpop.f32.mrf.mxu0  ;;  %v2034_v7 = vpop.f32.mrf.mxu1 }
 0x36c   : > { %v1993_v37 = vpop.f32.mrf.mxu0  ;;  %v2036_v18 = vpop.f32.mrf.mxu1 }
 0x36e   : > { %v1995_v25 = vpop.f32.mrf.mxu0  ;;  %v2038_v51 = vpop.f32.mrf.mxu1 }
 0x370   : > { %v2095_v55 = vpop.f32.mrf.mxu0  ;;  %v2138_v14 = vpop.f32.mrf.mxu1 }
 0x371   : > { %v2096_v62 = vadd.f32 %v2095_v55, %v1989_v23  ;;  %v2139_v56 = vadd.f32 %v2138_v14, %v2032_v32 }
 0x372   : > { %v2097_v33 = vpop.f32.mrf.mxu0  ;;  %v2140_v48 = vpop.f32.mrf.mxu1 }
 0x373   : > { %v2098_v39 = vadd.f32 %v2097_v33, %v1991_v28  ;;  %v2141_v10 = vadd.f32 %v2140_v48, %v2034_v7 }
 0x374   : > { %v2099_v27 = vpop.f32.mrf.mxu0  ;;  %v2142_v34 = vpop.f32.mrf.mxu1 }
 0x376   : > { %v2101_v30 = vpop.f32.mrf.mxu0  ;;  %v2144_v52 = vpop.f32.mrf.mxu1 }
 0x377   : > { %v2102_v23 = vadd.f32 %v2101_v30, %v1995_v25  ;;  %v2145_v55 = vadd.f32 %v2144_v52, %v2038_v51 }
 0x378   : > { %v2241_v0 = vpop.f32.mrf.mxu0  ;;  %v2284_v59 = vpop.f32.mrf.mxu1 }
 0x379   : > { %v2293_v35 = vadd.f32 %v2241_v0, %v2096_v62  ;;  %v2295_v15 = vadd.f32 %v2284_v59, %v2139_v56 }
 0x37a   : > { %v2243_v31 = vpop.f32.mrf.mxu0  ;;  %v2286_v4 = vpop.f32.mrf.mxu1 }
 0x37b   : > { %v2294_v16 = vadd.f32 %v2243_v31, %v2098_v39  ;;  %v2296_v24 = vadd.f32 %v2286_v4, %v2141_v10 }
 0x37c   : > { %v2245_v5 = vpop.f32.mrf.mxu0  ;;  %v2288_v60 = vpop.f32.mrf.mxu1 }
 0x37e   : > { %v2247_v19 = vpop.f32.mrf.mxu0  ;;  %v2290_v11 = vpop.f32.mrf.mxu1 }
 0x37f   : > { %v2298_v62 = vadd.f32 %v2247_v19, %v2102_v23  ;;  %v2300_v56 = vadd.f32 %v2290_v11, %v2145_v55  ;;  %v8962_v23 = vld [vmem:[%s11785_s13] sm:$0xff] }
 0x380   : > { %v2395_v13 = vpop.f32.mrf.mxu0  ;;  %v2438_v54 = vpop.f32.mrf.mxu1 }
 0x382   : > { %v2397_v36 = vpop.f32.mrf.mxu0  ;;  %v2440_v22 = vpop.f32.mrf.mxu1 }
 0x384   : > { %v2399_v61 = vpop.f32.mrf.mxu0  ;;  %v2442_v20 = vpop.f32.mrf.mxu1 }
 0x386   : > { %v2401_v3 = vpop.f32.mrf.mxu0  ;;  %v2444_v2 = vpop.f32.mrf.mxu1 }
 0x388   : > { %v2536_v38 = vpop.f32.mrf.mxu0  ;;  %v2579_v17 = vpop.f32.mrf.mxu1 }
 0x38a   : > { %v2538_v12 = vpop.f32.mrf.mxu0  ;;  %v2581_v40 = vpop.f32.mrf.mxu1 }
 0x38c   : > { %v2540_v63 = vpop.f32.mrf.mxu0  ;;  %v2583_v49 = vpop.f32.mrf.mxu1 }
 0x38e   : > { %v2542_v6 = vpop.f32.mrf.mxu0  ;;  %v2585_v9 = vpop.f32.mrf.mxu1 }
 0x390   : > { %v2690_v41 = vpop.f32.mrf.mxu0  ;;  %v2733_v26 = vpop.f32.mrf.mxu1 }
 0x392   : > { %v2692_v42 = vpop.f32.mrf.mxu0  ;;  %v2735_v46 = vpop.f32.mrf.mxu1 }
 0x394   : > { %v8941_v53 = vpop.f32.mrf.mxu0  ;;  %v8943_v29 = vpop.f32.mrf.mxu1 }
 0x395   : > { %12249 = vst [vmem:[#allocation128_spill] sm:$0xff] %v8941_v53  ;;  %12250 = vst [vmem:[#allocation129_spill] sm:$0xff] %v8943_v29  ;;  %v2100_v29 = vadd.f32 %v2099_v27, %v1993_v37  ;;  %v2143_v53 = vadd.f32 %v2142_v34, %v2036_v18  ;;  %v2452_v37 = vadd.f32 %v2401_v3, %v2298_v62 }
 0x396   : > { %v8945_v45 = vpop.f32.mrf.mxu0  ;;  %v8947_v1 = vpop.f32.mrf.mxu1  ;;  %v2454_v18 = vadd.f32 %v2444_v2, %v2300_v56 }
 0x397   : > { %12251 = vst [vmem:[#allocation130_spill] sm:$0xff] %v8945_v45  ;;  %12252 = vst [vmem:[#allocation131_spill] sm:$0xff] %v8947_v1  ;;  %v2447_v45 = vadd.f32 %v2395_v13, %v2293_v35  ;;  %v2449_v1 = vadd.f32 %v2438_v54, %v2295_v15  ;;  %v2297_v7 = vadd.f32 %v2245_v5, %v2100_v29 }
 0x398   : > { %v2844_v57 = vpop.f32.mrf.mxu0  ;;  %v2887_v47 = vpop.f32.mrf.mxu1  ;;  %v2299_v48 = vadd.f32 %v2288_v60, %v2143_v53 }
 0x399   : > { %v2588_v28 = vadd.f32 %v2536_v38, %v2447_v45  ;;  %v2590_v33 = vadd.f32 %v2579_v17, %v2449_v1  ;;  %v2451_v54 = vadd.f32 %v2399_v61, %v2297_v7  ;;  %v2593_v38 = vadd.f32 %v2542_v6, %v2452_v37  ;;  %v12261_v7 = vld [vmem:[#allocation29_spill] sm:$0xff] }
 0x39a   : > { %v2846_v44 = vpop.f32.mrf.mxu0  ;;  %v2889_v21 = vpop.f32.mrf.mxu1  ;;  %v2453_v13 = vadd.f32 %v2442_v20, %v2299_v48  ;;  %v2595_v17 = vadd.f32 %v2585_v9, %v2454_v18  ;;  %v3251_v48 = vrot.slane %v8962_v23, %v12261_v7 }
 0x39b   : > { %v2742_v35 = vadd.f32 %v2690_v41, %v2588_v28  ;;  %v2744_v15 = vadd.f32 %v2733_v26, %v2590_v33  ;;  %v2592_v29 = vadd.f32 %v2540_v63, %v2451_v54  ;;  %v3217_v41 = vpop.permute.xlu1 %3216 }
 0x39c   : > { %v8949_v8 = vpop.f32.mrf.mxu0  ;;  %v8951_v58 = vpop.f32.mrf.mxu1  ;;  %v2594_v53 = vadd.f32 %v2583_v49, %v2453_v13  ;;  %v12256_v3 = vld [vmem:[#allocation129_spill] sm:$0xff] }
 0x39d   : > { %12253 = vst [vmem:[#allocation132_spill] sm:$0xff] %v8949_v8  ;;  %12254 = vst [vmem:[#allocation133_spill] sm:$0xff] %v8951_v58  ;;  %v2448_v8 = vadd.f32 %v2397_v36, %v2294_v16  ;;  %v2450_v58 = vadd.f32 %v2440_v22, %v2296_v24  ;;  %v2896_v45 = vadd.f32 %v2844_v57, %v2742_v35  ;;  %v3222_v13 = vpop.permute.xlu0 %3221 }
 0x39e   : > { %v2850_v43 = vpop.f32.mrf.mxu0  ;;  %v2893_v50 = vpop.f32.mrf.mxu1  ;;  %v2898_v1 = vadd.f32 %v2887_v47, %v2744_v15  ;;  %v2748_v20 = vadd.f32 %v12256_v3, %v2594_v53  ;;  %v12257_v2 = vld [vmem:[#allocation130_spill] sm:$0xff]  ;;  %v12267_v53 = vld [vmem:[#allocation5_spill] sm:$0xff]  ;;  %v12286_v3 = vld [vmem:[#allocation63_spill] sm:$0xff] }
 0x39f   : > { %v2589_v39 = vadd.f32 %v2538_v12, %v2448_v8  ;;  %v2591_v10 = vadd.f32 %v2581_v40, %v2450_v58  ;;  %v12255_v12 = vld [vmem:[#allocation128_spill] sm:$0xff] }
 0x3a0   : > { %v2998_v14 = vpop.f32.mrf.mxu0  ;;  %v3041_v32 = vpop.f32.mrf.mxu1  ;;  %v2746_v61 = vadd.f32 %v12255_v12, %v2592_v29 }
 0x3a1   : > { %v2743_v16 = vadd.f32 %v2692_v42, %v2589_v39  ;;  %v2745_v24 = vadd.f32 %v2735_v46, %v2591_v10  ;;  %v3050_v40 = vadd.f32 %v2998_v14, %v2896_v45  ;;  %v3052_v26 = vadd.f32 %v3041_v32, %v2898_v1  ;;  %v12258_v46 = vld [vmem:[#allocation131_spill] sm:$0xff] }
 0x3a2   : > { %v3000_v0 = vpop.f32.mrf.mxu0  ;;  %v3043_v59 = vpop.f32.mrf.mxu1  ;;  %v2747_v42 = vadd.f32 %v12257_v2, %v2593_v38  ;;  %v2749_v57 = vadd.f32 %v12258_v46, %v2595_v17  ;;  %v8986_v38 = vrot.slane %v3251_v48, %v12267_v53  ;;  %v12273_v2 = vld [vmem:[#allocation81_spill] sm:$0xff]  ;;  %v12275_v46 = vld [vmem:[#allocation80_spill] sm:$0xff] }
 0x3a3   : > { %v2897_v8 = vadd.f32 %v2846_v44, %v2743_v16  ;;  %v2899_v58 = vadd.f32 %v2889_v21, %v2745_v24 }
 0x3a4   : > { %v3002_v25 = vpop.f32.mrf.mxu0  ;;  %v3045_v51 = vpop.f32.mrf.mxu1  ;;  %v12259_v11 = vld [vmem:[#allocation132_spill] sm:$0xff]  ;;  %v12260_v21 = vld [vmem:[#allocation133_spill] sm:$0xff]  ;;  %v2901_v27 = vadd.f32 %v2850_v43, %v2747_v42  ;;  %v2903_v52 = vadd.f32 %v2893_v50, %v2749_v57  ;;  %v12274_v42 = vld [vmem:[#allocation83_spill] sm:$0xff] }
 0x3a5   : > { %v3051_v49 = vadd.f32 %v3000_v0, %v2897_v8  ;;  %v3053_v6 = vadd.f32 %v3043_v59, %v2899_v58  ;;  %v2900_v44 = vadd.f32 %v12259_v11, %v2746_v61  ;;  %v2902_v60 = vadd.f32 %v12260_v21, %v2748_v20  ;;  %v8971_v0 = vld [vmem:[%s11785_s13 + $0x8] sm:$0xff]  ;;  %v12272_v20 = vld [vmem:[#allocation82_spill] sm:$0xff]  ;;  %v9067_v57 = vpop.permute.xlu0 %3573 }
 0x3a6   : > { %v3004_v22 = vpop.f32.mrf.mxu0  ;;  %v3047_v36 = vpop.f32.mrf.mxu1  ;;  %v3259_v54 = vrot.slane %v8971_v0, %v12261_v7 }
 0x3a7   : > { %v3054_v55 = vadd.f32 %v3002_v25, %v2900_v44  ;;  %v3056_v14 = vadd.f32 %v3045_v51, %v2902_v60  ;;  %v3055_v32 = vadd.f32 %v3004_v22, %v2901_v27  ;;  %v3057_v43 = vadd.f32 %v3047_v36, %v2903_v52  ;;  %v12280_v52 = vld [vmem:[#allocation4_spill] sm:$0xff] }
 0x3a8   : > { %v3152_v47 = vpop.f32.mrf.mxu0  ;;  %v3195_v63 = vpop.f32.mrf.mxu1  ;;  %v8989_v17 = vrot.slane %v3259_v54, %v12267_v53 }
 0x3a9   : > { %v3204_v9 = vadd.f32 %v3152_v47, %v3050_v40  ;;  %v3206_v19 = vadd.f32 %v3195_v63, %v3052_v26  ;;  %v9071_v47 = vpop.permute.xlu0 %3579 }
 0x3aa   : > { %v3197_v34 = vpop.f32.mrf.mxu1  ;;  %v3154_v30 = vpop.f32.mrf.mxu0 }
 0x3ab   : > { %v3207_v31 = vadd.f32 %v3197_v34, %v3053_v6  ;;  %v3224_v4 = vadd.f32 %v3217_v41, %v3204_v9  ;;  %v3205_v5 = vadd.f32 %v3154_v30, %v3051_v49  ;;  %v3226_v62 = vadd.f32 %v3217_v41, %v3206_v19 }
 0x3ac   : > { %v3156_v28 = vpop.f32.mrf.mxu0  ;;  %v3199_v33 = vpop.f32.mrf.mxu1 }
 0x3ad   : > { %v8966_v56 = vmax.f32 %v3224_v4, 0.0  ;;  %v3225_v50 = vadd.f32 %v3217_v41, %v3205_v5  ;;  %v3227_v59 = vadd.f32 %v3217_v41, %v3207_v31  ;;  %v3208_v39 = vadd.f32 %v3156_v28, %v3054_v55  ;;  %v9077_v63 = vpop.permute.xlu0 %3585 }
 0x3ae   : > { %v3210_v10 = vadd.f32 %v3199_v33, %v3056_v14  ;;  %v3158_v35 = vpop.f32.mrf.mxu0  ;;  %v3201_v15 = vpop.f32.mrf.mxu1  ;;  %v8979_v24 = vmax.f32 %v3226_v62, 0.0  ;;  %v3315_v31 = vrot.slane %v8962_v23, %v12280_v52  ;;  %v3255_v5 = vrot.slane %v8971_v0, %v12267_v53  ;;  %v12282_v33 = vld [vmem:[#allocation38_spill] sm:$0xff] }
 0x3af   : > { %12262 = vst [vmem:[#allocation128_spill] sm:$0xff] %v8966_v56  ;;  %v8975_v37 = vmax.f32 %v3225_v50, 0.0  ;;  %v3209_v18 = vadd.f32 %v3158_v35, %v3055_v32  ;;  %v3211_v25 = vadd.f32 %v3201_v15, %v3057_v43  ;;  %3288 = vrot.lane.b32.xlu0 %v8966_v56, %s12264_s28  ;;  %v3228_v51 = vadd.f32 %v3222_v13, %v3208_v39  ;;  %v12281_v32 = vld [vmem:[#allocation15_spill] sm:$0xff] }
 0x3b0   : > { %v3230_v16 = vadd.f32 %v3222_v13, %v3210_v10  ;;  %12265 = vst [vmem:[#allocation130_spill] sm:$0xff] %v8979_v24  ;;  %v8983_v29 = vmax.f32 %v3227_v59, 0.0  ;;  %v3247_v55 = vrot.slane %v8962_v23, %v12267_v53  ;;  %v3391_v28 = vrot.slane %v8962_v23, %v12281_v32  ;;  %v12283_v59 = vld [vmem:[#allocation3_spill] sm:$0xff]  ;;  %v12284_v10 = vld [vmem:[#allocation54_spill] sm:$0xff] }
 0x3b1   : > { %12263 = vst [vmem:[#allocation129_spill] sm:$0xff] %v8975_v37  ;;  %v3229_v45 = vadd.f32 %v3222_v13, %v3209_v18  ;;  %v3231_v1 = vadd.f32 %v3222_v13, %v3211_v25  ;;  %3292 = vrot.lane.b32.xlu1 %v8975_v37, %s12264_s28  ;;  %v8991_v22 = vmax.f32 %v3228_v51, 0.0  ;;  %v9081_v49 = vpop.permute.xlu0 %3591  ;;  %v3319_v48 = vrot.slane %v8962_v23, %v12282_v33  ;;  %v12285_v51 = vld [vmem:[#allocation24_spill] sm:$0xff] }
 0x3b2   : > { %12266 = vst [vmem:[#allocation131_spill] sm:$0xff] %v8983_v29  ;;  %v8993_v36 = vmax.f32 %v3230_v16, 0.0  ;;  %v3323_v43 = vrot.slane %v8971_v0, %v12280_v52  ;;  %v9118_v62 = vrot.slane %v3315_v31, %v12280_v52  ;;  %v3395_v35 = vrot.slane %v8962_v23, %v12284_v10 }
 0x3b3   : > { %12268 = vst [vmem:[#allocation132_spill] sm:$0xff] %v8991_v22  ;;  %v8995_v8 = vmax.f32 %v3229_v45, 0.0  ;;  %v8997_v58 = vmax.f32 %v3231_v1, 0.0  ;;  %3296 = vrot.lane.b32.xlu0 %v8979_v24, %s12264_s28  ;;  %v3399_v15 = vrot.slane %v8971_v0, %v12281_v32  ;;  %v9128_v54 = vrot.slane %v3255_v5, %v12267_v53 }
 0x3b4   : > { %12269 = vst [vmem:[#allocation133_spill] sm:$0xff] %v8993_v36  ;;  %v9131_v13 = vrot.slane %v3247_v55, %v12267_v53  ;;  %v9134_v18 = vrot.slane %v3391_v28, %v12281_v32  ;;  %v3467_v16 = vrot.slane %v8962_v23, %v12285_v51  ;;  %v3339_v45 = vrot.slane %v3319_v48, %v12280_v52 }
 0x3b5   : > { %12270 = vst [vmem:[#allocation134_spill] sm:$0xff] %v8995_v8  ;;  %12271 = vst [vmem:[#allocation135_spill] sm:$0xff] %v8997_v58  ;;  %3300 = vrot.lane.b32.xlu1 %v8983_v29, %s12264_s28  ;;  %v9005_v40 = vmul.f32 %v8986_v38, %v8995_v8  ;;  %v9009_v26 = vmul.f32 %v8989_v17, %v8997_v58  ;;  %v9087_v6 = vpop.permute.xlu0 %3516  ;;  %v9140_v1 = vrot.slane %v3323_v43, %v12280_v52 }
 0x3b6   : > { %v3471_v28 = vrot.slane %v8962_v23, %v12286_v3  ;;  %v3475_v12 = vrot.slane %v8971_v0, %v12285_v51  ;;  %v3327_v43 = vrot.slane %v8971_v0, %v12282_v33  ;;  %v9157_v41 = vrot.slane %v3395_v35, %v12281_v32 }
 0x3b7   : > { %3364 = vrot.lane.b32.xlu0 %v8966_v56, %s12042_s29  ;;  %v3282_v23 = vmul.f32 %v9128_v54, %v8979_v24  ;;  %v3281_v33 = vmul.f32 %v8986_v38, %v8975_v37  ;;  %v3403_v38 = vrot.slane %v8971_v0, %v12284_v10 }
 0x3b8   : > { %v3347_v10 = vrot.slane %v3327_v43, %v12280_v52 }
 0x3b9   : > { %3368 = vrot.lane.b32.xlu1 %v8975_v37, %s12042_s29  ;;  %v9091_v9 = vpop.permute.xlu0 %3522 }
 0x3bb   : > { %3372 = vrot.lane.b32.xlu0 %v8979_v24, %s12042_s29 }
 0x3bd   : > { %3376 = vrot.lane.b32.xlu1 %v8983_v29, %s12042_s29  ;;  %v9093_v19 = vpop.permute.xlu0 %3528 }
 0x3be   : > { %12277 = vst [vmem:[#allocation82_spill] sm:$0xff] %v9093_v19 }
 0x3bf   : > { %3440 = vrot.lane.b32.xlu0 %v8966_v56, %s12115_s30 }
 0x3c1   : > { %3444 = vrot.lane.b32.xlu1 %v8975_v37, %s12115_s30  ;;  %v9095_v11 = vpop.permute.xlu0 %3534 }
 0x3c2   : > { %12278 = vst [vmem:[#allocation81_spill] sm:$0xff] %v9095_v11 }
 0x3c3   : > { %3448 = vrot.lane.b32.xlu0 %v8979_v24, %s12115_s30 }
 0x3c5   : > { %3452 = vrot.lane.b32.xlu1 %v8983_v29, %s12115_s30  ;;  %v9097_v44 = vpop.permute.xlu0 %3826 }
 0x3c6   : > { %12279 = vst [vmem:[#allocation83_spill] sm:$0xff] %v9097_v44  ;;  %v3479_v44 = vrot.slane %v8971_v0, %v12286_v3 }
 0x3c7   : > { %3290 = vrot.lane.b32.xlu0 %v8991_v22, %s12264_s28 }
 0x3c9   : > { %3294 = vrot.lane.b32.xlu1 %v8995_v8, %s12264_s28 }
 0x3cb   : > { %3298 = vrot.lane.b32.xlu0 %v8993_v36, %s12264_s28 }
 0x3cd   : > { %3302 = vrot.lane.b32.xlu1 %v8997_v58, %s12264_s28 }
 0x3cf   : > { %3366 = vrot.lane.b32.xlu0 %v8991_v22, %s12042_s29 }
 0x3d1   : > { %3370 = vrot.lane.b32.xlu1 %v8995_v8, %s12042_s29 }
 0x3d3   : > { %3374 = vrot.lane.b32.xlu0 %v8993_v36, %s12042_s29 }
 0x3d5   : > { %3378 = vrot.lane.b32.xlu1 %v8997_v58, %s12042_s29 }
 0x3d7   : > { %3442 = vrot.lane.b32.xlu0 %v8991_v22, %s12115_s30 }
 0x3d9   : > { %3446 = vrot.lane.b32.xlu1 %v8995_v8, %s12115_s30 }
 0x3db   : > { %3450 = vrot.lane.b32.xlu0 %v8993_v36, %s12115_s30 }
 0x3dd   : > { %3454 = vrot.lane.b32.xlu1 %v8997_v58, %s12115_s30 }
 0x3df   : > { %3832 = vrot.lane.b32.xlu0 %v12272_v20, %s12216_s17 }
 0x3e3   : > { %3838 = vrot.lane.b32.xlu0 %v12273_v2, %s12216_s17 }
 0x3e7   : > { %3844 = vrot.lane.b32.xlu0 %v12274_v42, %s12216_s17 }
 0x3eb   : > { %3985 = vrot.lane.b32.xlu0 %v12275_v46, %s12264_s28 }
 0x3ef   : > { %3991 = vrot.lane.b32.xlu0 %v12272_v20, %s12264_s28 }
 0x3f3   : > { %3997 = vrot.lane.b32.xlu0 %v12273_v2, %s12264_s28 }
 0x3f7   : > { %4003 = vrot.lane.b32.xlu0 %v12274_v42, %s12264_s28 }
 0x3fb   : > { %4414 = vrot.lane.b32.xlu0 %v12275_v46, %s12276_s0 }
 0x3ff   : > { %4420 = vrot.lane.b32.xlu0 %v12272_v20, %s12276_s0 }
 0x403   : > { %4426 = vrot.lane.b32.xlu0 %v12273_v2, %s12276_s0 }
 0x407   : > { %4432 = vrot.lane.b32.xlu0 %v12274_v42, %s12276_s0 }
 0x421   : > { %v3289_v21 = vpop.permute.xlu0 %3288 }
 0x423   : > { %v3293_v60 = vpop.permute.xlu1 %3292 }
 0x424   : > { %v3308_v5 = vsel %vm973_vm5, %v3289_v21, %v3293_v60 }
 0x425   : > { %v9099_v27 = vpop.permute.xlu0 %3296  ;;  %v3349_v35 = vmul.f32 %v3339_v45, %v3308_v5 }
 0x426   : > { %v3306_v48 = vsel %vm973_vm5, %v3293_v60, %v9099_v27  ;;  %v9168_v60 = vrot.slane %v3467_v16, %v12285_v51  ;;  %v9182_v16 = vrot.slane %v3475_v12, %v12285_v51 }
 0x427   : > { %v9101_v34 = vpop.permute.xlu1 %3300  ;;  %v3350_v58 = vmul.f32 %v9140_v1, %v3306_v48  ;;  %v3357_v37 = vadd.f32 %v3349_v35, %v3281_v33 }
 0x428   : > { %v3310_v39 = vsel %vm973_vm5, %v9101_v34, %v3289_v21  ;;  %v9160_v21 = vrot.slane %v3399_v15, %v12281_v32 }
 0x429   : > { %v3365_v30 = vpop.permute.xlu0 %3364  ;;  %v3348_v55 = vmul.f32 %v9118_v62, %v3310_v39  ;;  %v3280_v39 = vmul.f32 %v9131_v13, %v8966_v56  ;;  %v3358_v11 = vadd.f32 %v3350_v58, %v3282_v23 }
 0x42b   : > { %v3369_v4 = vpop.permute.xlu1 %3368  ;;  %v3356_v56 = vadd.f32 %v3348_v55, %v3280_v39 }
 0x42c   : > { %v3384_v15 = vsel %vm598_vm0, %v3365_v30, %v3369_v4 }
 0x42d   : > { %v9109_v14 = vpop.permute.xlu0 %3372  ;;  %v3425_v55 = vmul.f32 %v9157_v41, %v3384_v15 }
 0x42e   : > { %v3382_v24 = vsel %vm598_vm0, %v3369_v4, %v9109_v14 }
 0x42f   : > { %v3377_v50 = vpop.permute.xlu1 %3376  ;;  %v3433_v33 = vadd.f32 %v3425_v55, %v3357_v37 }
 0x430   : > { %v3386_v31 = vsel %vm598_vm0, %v3377_v50, %v3365_v30  ;;  %v3380_v23 = vsel %vm598_vm0, %v9109_v14, %v3377_v50 }
 0x431   : > { %v3441_v25 = vpop.permute.xlu0 %3440  ;;  %v3424_v7 = vmul.f32 %v9134_v18, %v3386_v31  ;;  %v9179_v31 = vrot.slane %v3471_v28, %v12285_v51  ;;  %v3426_v28 = vmul.f32 %v9160_v21, %v3382_v24 }
 0x433   : > { %v3445_v61 = vpop.permute.xlu1 %3444  ;;  %v3432_v48 = vadd.f32 %v3424_v7, %v3356_v56  ;;  %v3304_v7 = vsel %vm973_vm5, %v9099_v27, %v9101_v34  ;;  %v3423_v56 = vrot.slane %v3403_v38, %v12281_v32  ;;  %v3434_v0 = vadd.f32 %v3426_v28, %v3358_v11 }
 0x434   : > { %v3460_v30 = vsel %vm12074_vm1, %v3441_v25, %v3445_v61  ;;  %v3499_v27 = vrot.slane %v3479_v44, %v12285_v51  ;;  %v3351_v34 = vmul.f32 %v3347_v10, %v3304_v7 }
 0x435   : > { %v3449_v53 = vpop.permute.xlu0 %3448  ;;  %v3427_v14 = vmul.f32 %v3423_v56, %v3380_v23 }
 0x436   : > { %v3458_v5 = vsel %vm12074_vm1, %v3445_v61, %v3449_v53  ;;  %v3501_v61 = vmul.f32 %v9179_v31, %v3460_v30 }
 0x437   : > { %v3453_v8 = vpop.permute.xlu1 %3452  ;;  %v3502_v19 = vmul.f32 %v9182_v16, %v3458_v5  ;;  %v3283_v5 = vmul.f32 %v8989_v17, %v8983_v29  ;;  %v3603_v29 = vsel %vm598_vm0, %v9067_v57, %v9071_v47 }
 0x438   : > { %v3462_v4 = vsel %vm12074_vm1, %v3453_v8, %v3441_v25  ;;  %v9217_v35 = vadd.f32 %v3501_v61, %v3433_v33 }
 0x439   : > { %v3500_v12 = vmul.f32 %v9168_v60, %v3462_v4  ;;  %v3291_v39 = vpop.permute.xlu0 %3290  ;;  %v9219_v38 = vadd.f32 %v3502_v19, %v3434_v0 }
 0x43a   : > { %12289 = vst [vmem:[#allocation3_spill] sm:$0xff] %v9217_v35 }
 0x43b   : > { %v9200_v25 = vadd.f32 %v3500_v12, %v3432_v48  ;;  %v3295_v15 = vpop.permute.xlu1 %3294  ;;  %12290 = vst [vmem:[#allocation136_spill] sm:$0xff] %v9219_v38 }
 0x43c   : > { %v3309_v24 = vsel %vm973_vm5, %v3291_v39, %v3295_v15 }
 0x43d   : > { %12287 = vst [vmem:[#allocation80_spill] sm:$0xff] %v9200_v25  ;;  %v3353_v58 = vmul.f32 %v3339_v45, %v3309_v24  ;;  %v3299_v43 = vpop.permute.xlu0 %3298  ;;  %4267 = vrot.lane.b32.xlu0 %v9200_v25, %s12288_s18  ;;  %3575 = vrot.lane.b32.xlu1 %v9200_v25, %s12042_s29  ;;  %v3456_v45 = vsel %vm12074_vm1, %v3449_v53, %v3453_v8 }
 0x43e   : > { %v3503_v19 = vmul.f32 %v3499_v27, %v3456_v45  ;;  %v3307_v23 = vsel %vm973_vm5, %v3295_v15, %v3299_v43 }
 0x43f   : > { %v3361_v37 = vadd.f32 %v3353_v58, %v9005_v40  ;;  %v3303_v11 = vpop.permute.xlu1 %3302  ;;  %v3359_v40 = vadd.f32 %v3351_v34, %v3283_v5  ;;  %v3354_v45 = vmul.f32 %v9140_v1, %v3307_v23 }
 0x440   : > { %v3305_v30 = vsel %vm973_vm5, %v3299_v43, %v3303_v11 }
 0x441   : > { %v3355_v50 = vmul.f32 %v3347_v10, %v3305_v30  ;;  %v3367_v44 = vpop.permute.xlu0 %3366  ;;  %4275 = vrot.lane.b32.xlu0 %v9219_v38, %s12288_s18  ;;  %3581 = vrot.lane.b32.xlu1 %v9217_v35, %s12042_s29  ;;  %v3435_v55 = vadd.f32 %v3427_v14, %v3359_v40 }
 0x443   : > { %v3363_v4 = vadd.f32 %v3355_v50, %v9009_v26  ;;  %v3371_v53 = vpop.permute.xlu1 %3370  ;;  %v9240_v10 = vadd.f32 %v3503_v19, %v3435_v55  ;;  %v3311_v26 = vsel %vm973_vm5, %v3303_v11, %v3291_v39 }
 0x444   : > { %v3385_v8 = vsel %vm598_vm0, %v3367_v44, %v3371_v53  ;;  %v3352_v33 = vmul.f32 %v9118_v62, %v3311_v26 }
 0x445   : > { %v3429_v17 = vmul.f32 %v9157_v41, %v3385_v8  ;;  %v3375_v28 = vpop.permute.xlu0 %3374  ;;  %4573 = vrot.lane.b32.xlu0 %v9200_v25, %s12291_s20  ;;  %3587 = vrot.lane.b32.xlu1 %v9219_v38, %s12042_s29  ;;  %12292 = vst [vmem:[#allocation137_spill] sm:$0xff] %v9240_v10  ;;  %v4867_v8 = vld [vmem:[%s11778_s6] sm:$0xff] }
 0x446   : > { %v3383_v62 = vsel %vm598_vm0, %v3371_v53, %v3375_v28 }
 0x447   : > { %v3437_v48 = vadd.f32 %v3429_v17, %v3361_v37  ;;  %v3379_v12 = vpop.permute.xlu1 %3378  ;;  %v3430_v14 = vmul.f32 %v9160_v21, %v3383_v62  ;;  %v4890_v17 = vld [vmem:[%s11780_s8 + $0x8] sm:$0xff] }
 0x448   : > { %v3381_v61 = vsel %vm598_vm0, %v3375_v28, %v3379_v12  ;;  %v3387_v41 = vsel %vm598_vm0, %v3379_v12, %v3367_v44  ;;  %v5900_v28 = vld [vmem:[%s11782_s10 + $0x8] sm:$0x1] }
 0x449   : > { %v3431_v7 = vmul.f32 %v3423_v56, %v3381_v61  ;;  %v3443_v24 = vpop.permute.xlu0 %3442  ;;  %3593 = vrot.lane.b32.xlu1 %v9240_v10, %s12042_s29  ;;  %v3284_v56 = vmul.f32 %v9131_v13, %v8991_v22  ;;  %v3428_v34 = vmul.f32 %v9134_v18, %v3387_v41  ;;  %v3286_v13 = vmul.f32 %v9128_v54, %v8993_v36 }
 0x44b   : > { %v3439_v0 = vadd.f32 %v3431_v7, %v3363_v4  ;;  %v3447_v58 = vpop.permute.xlu1 %3446  ;;  %v3360_v15 = vadd.f32 %v3352_v33, %v3284_v56  ;;  %v3362_v40 = vadd.f32 %v3354_v45, %v3286_v13 }
 0x44c   : > { %v3461_v39 = vsel %vm12074_vm1, %v3443_v24, %v3447_v58 }
 0x44d   : > { %v3505_v37 = vmul.f32 %v9179_v31, %v3461_v39  ;;  %v3451_v11 = vpop.permute.xlu0 %3450  ;;  %3518 = vrot.lane.b32.xlu1 %v9200_v25, %s12115_s30  ;;  %v3436_v50 = vadd.f32 %v3428_v34, %v3360_v15  ;;  %v3438_v53 = vadd.f32 %v3430_v14, %v3362_v40  ;;  %v4889_v14 = vld [vmem:[%s11780_s8] sm:$0xff] }
 0x44e   : > { %v3459_v18 = vsel %vm12074_vm1, %v3447_v58, %v3451_v11 }
 0x44f   : > { %v9264_v43 = vadd.f32 %v3505_v37, %v3437_v48  ;;  %v3455_v30 = vpop.permute.xlu1 %3454  ;;  %v3506_v54 = vmul.f32 %v9182_v16, %v3459_v18 }
 0x450   : > { %v3457_v31 = vsel %vm12074_vm1, %v3451_v11, %v3455_v30  ;;  %v3463_v5 = vsel %vm12074_vm1, %v3455_v30, %v3443_v24 }
 0x451   : > { %v3504_v1 = vmul.f32 %v9168_v60, %v3463_v5  ;;  %v3507_v44 = vmul.f32 %v3499_v27, %v3457_v31  ;;  %3524 = vrot.lane.b32.xlu1 %v9217_v35, %s12115_s30  ;;  %v9287_v21 = vadd.f32 %v3506_v54, %v3438_v53  ;;  %v9345_v60 = vpop.permute.xlu0 %3832  ;;  %v5899_v54 = vld [vmem:[%s11782_s10] sm:$0xff] }
 0x453   : > { %v9279_v19 = vadd.f32 %v3504_v1, %v3436_v50  ;;  %v9281_v4 = vadd.f32 %v3507_v44, %v3439_v0  ;;  %v4891_v44 = vld [vmem:[%s11780_s8 + $0x10] sm:$0xff] }
 0x455   : > { %12293 = vst [vmem:[#allocation138_spill] sm:$0xff] %v9279_v19  ;;  %12294 = vst [vmem:[#allocation139_spill] sm:$0xff] %v9281_v4  ;;  %3577 = vrot.lane.b32.xlu0 %v9279_v19, %s12042_s29  ;;  %3530 = vrot.lane.b32.xlu1 %v9219_v38, %s12115_s30  ;;  %v9351_v16 = vpop.permute.xlu0 %3838 }
 0x459   : > { %3589 = vrot.lane.b32.xlu0 %v9287_v21, %s12042_s29  ;;  %3536 = vrot.lane.b32.xlu1 %v9240_v10, %s12115_s30  ;;  %v9361_v27 = vpop.permute.xlu0 %3844 }
 0x45d   : > { %3520 = vrot.lane.b32.xlu0 %v9279_v19, %s12115_s30  ;;  %3828 = vrot.lane.b32.xlu1 %v9200_v25, %s12216_s17  ;;  %v9370_v55 = vpop.permute.xlu0 %3985 }
 0x461   : > { %3532 = vrot.lane.b32.xlu0 %v9287_v21, %s12115_s30  ;;  %3834 = vrot.lane.b32.xlu1 %v9217_v35, %s12216_s17  ;;  %v9382_v48 = vpop.permute.xlu0 %3991 }
 0x465   : > { %3830 = vrot.lane.b32.xlu0 %v9279_v19, %s12216_s17  ;;  %3840 = vrot.lane.b32.xlu1 %v9219_v38, %s12216_s17  ;;  %v9386_v12 = vpop.permute.xlu0 %3997 }
 0x469   : > { %3842 = vrot.lane.b32.xlu0 %v9287_v21, %s12216_s17  ;;  %3846 = vrot.lane.b32.xlu1 %v9240_v10, %s12216_s17  ;;  %v9394_v61 = vpop.permute.xlu0 %4003 }
 0x46d   : > { %3989 = vrot.lane.b32.xlu0 %v9279_v19, %s12264_s28  ;;  %3987 = vrot.lane.b32.xlu1 %v9200_v25, %s12264_s28  ;;  %v9402_v41 = vpop.permute.xlu0 %4414 }
 0x46e   : > { %12296 = vst [vmem:[#allocation140_spill] sm:$0xff] %v9402_v41 }
 0x471   : > { %4001 = vrot.lane.b32.xlu0 %v9287_v21, %s12264_s28  ;;  %3993 = vrot.lane.b32.xlu1 %v9217_v35, %s12264_s28  ;;  %v9410_v0 = vpop.permute.xlu0 %4420 }
 0x472   : > { %12297 = vst [vmem:[#allocation141_spill] sm:$0xff] %v9410_v0  ;;  %v12327_v0 = vld [vmem:[#allocation8_spill] sm:$0xff] }
 0x475   : > { %4581 = vrot.lane.b32.xlu0 %v9219_v38, %s12291_s20  ;;  %3999 = vrot.lane.b32.xlu1 %v9219_v38, %s12264_s28  ;;  %v9418_v39 = vpop.permute.xlu0 %4426 }
 0x476   : > { %12298 = vst [vmem:[#allocation142_spill] sm:$0xff] %v9418_v39  ;;  %v12319_v39 = vld [vmem:[#allocation52_spill] sm:$0xff] }
 0x479   : > { %4720 = vrot.lane.b32.xlu0 %v9200_v25, %s12295_s22  ;;  %4005 = vrot.lane.b32.xlu1 %v9240_v10, %s12264_s28  ;;  %v9426_v34 = vpop.permute.xlu0 %4432 }
 0x47a   : > { %12299 = vst [vmem:[#allocation143_spill] sm:$0xff] %v9426_v34  ;;  %v12312_v34 = vld [vmem:[#allocation36_spill] sm:$0xff] }
 0x47d   : > { %4269 = vrot.lane.b32.xlu0 %v9279_v19, %s12288_s18  ;;  %4271 = vrot.lane.b32.xlu1 %v9217_v35, %s12288_s18 }
 0x481   : > { %4277 = vrot.lane.b32.xlu0 %v9287_v21, %s12288_s18  ;;  %4279 = vrot.lane.b32.xlu1 %v9240_v10, %s12288_s18 }
 0x485   : > { %4418 = vrot.lane.b32.xlu0 %v9279_v19, %s12276_s0  ;;  %4416 = vrot.lane.b32.xlu1 %v9200_v25, %s12276_s0  ;;  %v12331_v25 = vld [vmem:[#allocation10_spill] sm:$0xff] }
 0x489   : > { %4430 = vrot.lane.b32.xlu0 %v9287_v21, %s12276_s0  ;;  %4422 = vrot.lane.b32.xlu1 %v9217_v35, %s12276_s0 }
 0x48d   : > { %4575 = vrot.lane.b32.xlu0 %v9279_v19, %s12291_s20  ;;  %4428 = vrot.lane.b32.xlu1 %v9219_v38, %s12276_s0 }
 0x491   : > { %4583 = vrot.lane.b32.xlu0 %v9287_v21, %s12291_s20  ;;  %4434 = vrot.lane.b32.xlu1 %v9240_v10, %s12276_s0 }
 0x495   : > { %4722 = vrot.lane.b32.xlu0 %v9279_v19, %s12295_s22  ;;  %4577 = vrot.lane.b32.xlu1 %v9217_v35, %s12291_s20 }
 0x499   : > { %4730 = vrot.lane.b32.xlu0 %v9287_v21, %s12295_s22  ;;  %3583 = vrot.lane.b32.xlu1 %v9264_v43, %s12042_s29 }
 0x49d   : > { %4728 = vrot.lane.b32.xlu0 %v9219_v38, %s12295_s22  ;;  %3595 = vrot.lane.b32.xlu1 %v9281_v4, %s12042_s29  ;;  %s12465_s29 = smov 126  }
 0x4a1   : > { %4870 = vperm.xlu0 %7527, %v4867_v8   ;;  %3526 = vrot.lane.b32.xlu1 %v9264_v43, %s12115_s30 }
 0x4a5   : > { %4900 = vperm.xlu0 %7527, %v4890_v17   ;;  %3538 = vrot.lane.b32.xlu1 %v9281_v4, %s12115_s30 }
 0x4a9   : > { %5908 = vperm.xlu0 %7527, %v5900_v28   ;;  %3836 = vrot.lane.b32.xlu1 %v9264_v43, %s12216_s17 }
 0x4ad   : > { %3848 = vrot.lane.b32.xlu1 %v9281_v4, %s12216_s17 }
 0x4af   : > { %v9390_v26 = vpop.permute.xlu1 %3575  ;;  %v9432_v11 = vpop.permute.xlu0 %4267 }
 0x4b0   : > { %12300 = vst [vmem:[#allocation144_spill] sm:$0xff] %v9432_v11  ;;  %v12316_v11 = vld [vmem:[#allocation47_spill] sm:$0xff] }
 0x4b1   : > { %3995 = vrot.lane.b32.xlu1 %v9264_v43, %s12264_s28 }
 0x4b3   : > { %v9396_v7 = vpop.permute.xlu1 %3581  ;;  %v9440_v15 = vpop.permute.xlu0 %4275 }
 0x4b4   : > { %12301 = vst [vmem:[#allocation145_spill] sm:$0xff] %v9440_v15 }
 0x4b5   : > { %4007 = vrot.lane.b32.xlu1 %v9281_v4, %s12264_s28 }
 0x4b7   : > { %v9400_v24 = vpop.permute.xlu1 %3587  ;;  %v9448_v13 = vpop.permute.xlu0 %4573 }
 0x4b8   : > { %12302 = vst [vmem:[#allocation146_spill] sm:$0xff] %v9448_v13  ;;  %v3600_v13 = vsel %vm598_vm0, %v9071_v47, %v9077_v63  ;;  %v12320_v47 = vld [vmem:[#allocation84_spill] sm:$0xff] }
 0x4b9   : > { %4585 = vrot.lane.b32.xlu1 %v9240_v10, %s12291_s20  ;;  %v9525_v41 = vmul.f32 %v12320_v47, %v12319_v39  ;;  %v3597_v47 = vsel %vm598_vm0, %v9077_v63, %v9081_v49 }
 0x4bb   : > { %v9406_v33 = vpop.permute.xlu1 %3593  ;;  %12321 = vst [vmem:[#allocation84_spill] sm:$0xff] %v9525_v41  ;;  %v12328_v41 = vld [vmem:[#allocation9_spill] sm:$0xff] }
 0x4bd   : > { %4724 = vrot.lane.b32.xlu1 %v9217_v35, %s12295_s22 }
 0x4bf   : > { %v9412_v58 = vpop.permute.xlu1 %3518 }
 0x4c1   : > { %4273 = vrot.lane.b32.xlu1 %v9264_v43, %s12288_s18 }
 0x4c3   : > { %v9416_v23 = vpop.permute.xlu1 %3524 }
 0x4c5   : > { %4281 = vrot.lane.b32.xlu1 %v9281_v4, %s12288_s18 }
 0x4c7   : > { %v9422_v56 = vpop.permute.xlu1 %3530  ;;  %v3578_v31 = vpop.permute.xlu0 %3577 }
 0x4c9   : > { %4424 = vrot.lane.b32.xlu1 %v9264_v43, %s12276_s0 }
 0x4cb   : > { %v9428_v37 = vpop.permute.xlu1 %3536  ;;  %v3590_v1 = vpop.permute.xlu0 %3589 }
 0x4cd   : > { %4436 = vrot.lane.b32.xlu1 %v9281_v4, %s12276_s0 }
 0x4cf   : > { %v9434_v62 = vpop.permute.xlu1 %3828  ;;  %v9471_v53 = vpop.permute.xlu0 %3520 }
 0x4d1   : > { %4579 = vrot.lane.b32.xlu1 %v9264_v43, %s12291_s20 }
 0x4d3   : > { %v9438_v45 = vpop.permute.xlu1 %3834  ;;  %v9477_v28 = vpop.permute.xlu0 %3532 }
 0x4d5   : > { %4587 = vrot.lane.b32.xlu1 %v9281_v4, %s12291_s20 }
 0x4d7   : > { %v9444_v30 = vpop.permute.xlu1 %3840  ;;  %v9481_v3 = vpop.permute.xlu0 %3830 }
 0x4d9   : > { %4726 = vrot.lane.b32.xlu1 %v9264_v43, %s12295_s22 }
 0x4db   : > { %v9450_v18 = vpop.permute.xlu1 %3846  ;;  %v9487_v32 = vpop.permute.xlu0 %3842 }
 0x4dd   : > { %4734 = vrot.lane.b32.xlu1 %v9281_v4, %s12295_s22 }
 0x4df   : > { %v9454_v5 = vpop.permute.xlu1 %3987  ;;  %v9491_v36 = vpop.permute.xlu0 %3989 }
 0x4e1   : > { %4732 = vrot.lane.b32.xlu1 %v9240_v10, %s12295_s22  ;;  %v12332_v10 = vld [vmem:[#allocation82_spill] sm:$0xff] }
 0x4e3   : > { %v9461_v50 = vpop.permute.xlu1 %3993 }
 0x4e5   : > { %4895 = vperm.xlu1 %7528, %v4889_v14  }
 0x4e7   : > { %v9466_v40 = vpop.permute.xlu1 %3999 }
 0x4e9   : > { %4905 = vperm.xlu1 %7528, %v4891_v44  }
 0x4eb   : > { %v9473_v8 = vpop.permute.xlu1 %4005 }
 0x4ed   : > { %5903 = vperm.xlu1 %7528, %v5899_v54  }
 0x4ef   : > { %v9475_v17 = vpop.permute.xlu1 %4271 }
 0x4f0   : > { %12303 = vst [vmem:[#allocation147_spill] sm:$0xff] %v9475_v17  ;;  %v12317_v17 = vld [vmem:[#allocation85_spill] sm:$0xff] }
 0x4f1   : > { %v9521_v15 = vmul.f32 %v12317_v17, %v12316_v11  ;;  %v3610_v17 = vmul.f32 %v3603_v29, %v12327_v0  ;;  %v12330_v11 = vld [vmem:[#allocation7_spill] sm:$0xff] }
 0x4f3   : > { %v9479_v14 = vpop.permute.xlu1 %4279  ;;  %12318 = vst [vmem:[#allocation85_spill] sm:$0xff] %v9521_v15 }
 0x4f4   : > { %12304 = vst [vmem:[#allocation148_spill] sm:$0xff] %v9479_v14 }
 0x4f7   : > { %v9483_v51 = vpop.permute.xlu1 %4416 }
 0x4f8   : > { %12305 = vst [vmem:[#allocation149_spill] sm:$0xff] %v9483_v51  ;;  %v9505_v51 = vpop.permute.xlu0 %4001 }
 0x4fb   : > { %v9485_v44 = vpop.permute.xlu1 %4422 }
 0x4fc   : > { %12306 = vst [vmem:[#allocation150_spill] sm:$0xff] %v9485_v44  ;;  %v12310_v44 = vld [vmem:[#allocation34_spill] sm:$0xff] }
 0x4ff   : > { %v9489_v52 = vpop.permute.xlu1 %4428 }
 0x500   : > { %12307 = vst [vmem:[#allocation151_spill] sm:$0xff] %v9489_v52  ;;  %v9509_v52 = vmul.f32 %v12272_v20, %v12310_v44  ;;  %v3606_v20 = vsel %vm598_vm0, %v9081_v49, %v9067_v57  ;;  %v3546_v57 = vsel %vm12074_vm1, %v9087_v6, %v9091_v9  ;;  %v12329_v49 = vld [vmem:[#allocation6_spill] sm:$0xff] }
 0x501   : > { %v9570_v38 = vmul.f32 %v3546_v57, %v12331_v25  ;;  %v3601_v57 = vsel %vm598_vm0, %v9396_v7, %v9400_v24 }
 0x502   : > { %12311 = vst [vmem:[#allocation154_spill] sm:$0xff] %v9509_v52  ;;  %v12322_v52 = vld [vmem:[#allocation35_spill] sm:$0xff] }
 0x503   : > { %v9493_v22 = vpop.permute.xlu1 %4434 }
 0x504   : > { %12308 = vst [vmem:[#allocation152_spill] sm:$0xff] %v9493_v22  ;;  %v9513_v22 = vmul.f32 %v12275_v46, %v12312_v34  ;;  %v9533_v46 = vmul.f32 %v12274_v42, %v12322_v52  ;;  %v9549_v42 = vmul.f32 %v3600_v13, %v12328_v41  ;;  %v3598_v13 = vsel %vm598_vm0, %v9400_v24, %v9406_v33 }
 0x505   : > { %v3616_v52 = vmul.f32 %v3598_v13, %v12330_v11 }
 0x506   : > { %12313 = vst [vmem:[#allocation155_spill] sm:$0xff] %v9513_v22  ;;  %12323 = vst [vmem:[#allocation157_spill] sm:$0xff] %v9533_v46  ;;  %v12324_v22 = vld [vmem:[#allocation53_spill] sm:$0xff]  ;;  %v3612_v46 = vmul.f32 %v3597_v47, %v12330_v11 }
 0x507   : > { %v9495_v54 = vpop.permute.xlu1 %4577 }
 0x508   : > { %12309 = vst [vmem:[#allocation153_spill] sm:$0xff] %v9495_v54  ;;  %v12314_v54 = vld [vmem:[#allocation37_spill] sm:$0xff]  ;;  %v3624_v19 = vpack.c.bf16 %v3616_v52, %v3612_v46  ;;  %v3853_v52 = vsel %vm833_vm4, %v9345_v60, %v9351_v16  ;;  %v3544_v46 = vsel %vm12074_vm1, %v9416_v23, %v9422_v56 }
 0x509   : > { %v9517_v14 = vmul.f32 %v12273_v2, %v12314_v54  ;;  %v12325_v2 = vld [vmem:[#allocation90_spill] sm:$0xff] }
 0x50b   : > { %12315 = vst [vmem:[#allocation156_spill] sm:$0xff] %v9517_v14  ;;  %v9537_v14 = vmul.f32 %v12325_v2, %v12324_v22  ;;  %v3584_v15 = vpop.permute.xlu1 %3583  ;;  %v3604_v2 = vsel %vm598_vm0, %v9390_v26, %v9396_v7 }
 0x50c   : > { %v3602_v29 = vsel %vm598_vm0, %v3584_v15, %v3590_v1  ;;  %v3605_v63 = vsel %vm598_vm0, %v3578_v31, %v3584_v15  ;;  %v3543_v15 = vsel %vm12074_vm1, %v9091_v9, %v12332_v10  ;;  %v3614_v47 = vmul.f32 %v3604_v2, %v12327_v0 }
 0x50d   : > { %12326 = vst [vmem:[#allocation90_spill] sm:$0xff] %v9537_v14  ;;  %v9560_v14 = vmul.f32 %v3606_v20, %v12329_v49  ;;  %v3618_v22 = vmul.f32 %v3605_v63, %v12327_v0  ;;  %v3619_v39 = vmul.f32 %v3602_v29, %v12328_v41  ;;  %v12333_v20 = vld [vmem:[#allocation81_spill] sm:$0xff]  ;;  %v9589_v63 = vpop.permute.xlu0 %4581 }
 0x50e   : > { %v3540_v35 = vsel %vm12074_vm1, %v12332_v10, %v12333_v20  ;;  %v3549_v29 = vsel %vm12074_vm1, %v12333_v20, %v9087_v6  ;;  %12334 = vst [vmem:[#allocation82_spill] sm:$0xff] %v9589_v63  ;;  %v3607_v10 = vsel %vm598_vm0, %v9406_v33, %v9390_v26  ;;  %v12335_v20 = vld [vmem:[#allocation17_spill] sm:$0xff]  ;;  %v12336_v63 = vld [vmem:[#allocation16_spill] sm:$0xff]  ;;  %v12337_v33 = vld [vmem:[#allocation19_spill] sm:$0xff] }
 0x50f   : > { %v3626_v9 = vpack.c.bf16 %v3618_v22, %v3618_v22  ;;  %v3596_v4 = vpop.permute.xlu1 %3595  ;;  %v9601_v0 = vmul.f32 %v3543_v15, %v12335_v20  ;;  %v3627_v7 = vpack.c.bf16 %v3619_v39, %v3619_v39  ;;  %v9607_v26 = vmul.f32 %v3549_v29, %v12336_v63 }
 0x510   : > { %v3599_v6 = vsel %vm598_vm0, %v3590_v1, %v3596_v4  ;;  %v3608_v2 = vsel %vm598_vm0, %v3596_v4, %v3578_v31  ;;  %v9610_v13 = vmul.f32 %v3540_v35, %v12337_v33  ;;  %v12338_v1 = vld [vmem:[#allocation83_spill] sm:$0xff]  ;;  %v9618_v39 = vmul.f32 %v9264_v43, %v12310_v44 }
 0x511   : > { %v3617_v22 = vmul.f32 %v3608_v2, %v12329_v49  ;;  %v3620_v24 = vmul.f32 %v3599_v6, %v12330_v11  ;;  %7445 = vmatprep.subr.msk.bf16.mxu0 %vm1942_vm11, %v3626_v9  ;;  %v3856_v4 = vsel %vm833_vm4, %v12338_v1, %v9345_v60  ;;  %v3615_v31 = vmul.f32 %v3601_v57, %v12328_v41  ;;  %v9632_v57 = vpop.permute.xlu0 %4720 }
 0x512   : > { %v3613_v15 = vmul.f32 %v3607_v10, %v12329_v49  ;;  %v3622_v11 = vpack.c.bf16 %v3614_v47, %v3610_v17  ;;  %v3547_v43 = vsel %vm12074_vm1, %v9412_v58, %v9416_v23  ;;  %v3550_v23 = vsel %vm12074_vm1, %v9428_v37, %v9412_v58 }
 0x513   : > { %v3625_v9 = vpack.c.bf16 %v3617_v22, %v3617_v22  ;;  %v3628_v6 = vpack.c.bf16 %v3620_v24, %v3620_v24  ;;  %v3527_v29 = vpop.permute.xlu1 %3526  ;;  %v3642_v24 = vsel %vm1942_vm11, %v3627_v7, 0  ;;  %v3623_v47 = vpack.c.bf16 %v3615_v31, %v9549_v42 }
 0x514   : > { %v3545_v35 = vsel %vm12074_vm1, %v3527_v29, %v9477_v28  ;;  %v3548_v2 = vsel %vm12074_vm1, %v9471_v53, %v3527_v29  ;;  %v3541_v7 = vsel %vm12074_vm1, %v9422_v56, %v9428_v37  ;;  %v3558_v56 = vmul.f32 %v3544_v46, %v12335_v20 }
 0x515   : > { %v3561_v10 = vmul.f32 %v3548_v2, %v12331_v25  ;;  %7447 = vmatprep.subr.msk.bf16.mxu1 %vm1942_vm11, %v3628_v6  ;;  %v3636_v22 = vsel %vm1942_vm11, %v3625_v9, 0  ;;  %v3562_v17 = vmul.f32 %v3545_v35, %v12335_v20  ;;  %v3621_v9 = vpack.c.bf16 %v3613_v15, %v9560_v14  ;;  %v12339_v15 = vld [vmem:[#allocation20_spill] sm:$0xff] }
 0x516   : > { %3660 = vmatpush1.bf16.msra.mxu0 %v3636_v22  ;;  %3701 = vmatpush1.bf16.msra.mxu1 %v3642_v24  ;;  %v3557_v6 = vmul.f32 %v3547_v43, %v12331_v25  ;;  %v9668_v29 = vmul.f32 %v3856_v4, %v12339_v15  ;;  %v3559_v58 = vmul.f32 %v3541_v7, %v12337_v33  ;;  %v9678_v43 = vpop.permute.xlu0 %4269 }
 0x517   : > { %3661 = vmatprep.subr.bf16.mxu0 %v3622_v11  ;;  %3702 = vmatprep.subr.bf16.mxu1 %v3624_v19  ;;  %v3539_v60 = vpop.permute.xlu1 %3538  ;;  %v3569_v11 = vpack.c.bf16 %v3561_v10, %v3561_v10  ;;  %v3570_v37 = vpack.c.bf16 %v3562_v17, %v3562_v17  ;;  %v3556_v2 = vmul.f32 %v3550_v23, %v12336_v63 }
 0x518   : > { %v3542_v42 = vsel %vm12074_vm1, %v9477_v28, %v3539_v60  ;;  %v3551_v14 = vsel %vm12074_vm1, %v3539_v60, %v9471_v53  ;;  %v7444_v28 = vld [vmem:[%s11777_s5 + $0x4] sm:$0xf]  ;;  %vm3631_vm1 = vcmask 195584   ;;  %v3850_v24 = vsel %vm833_vm4, %v9351_v16, %v9361_v27 }
 0x519   : > { %v3560_v19 = vmul.f32 %v3551_v14, %v12336_v63  ;;  %v3563_v31 = vmul.f32 %v3542_v42, %v12337_v33  ;;  %v12340_v53 = vld [vmem:[#allocation26_spill] sm:$0xff]  ;;  %v3567_v60 = vpack.c.bf16 %v3559_v58, %v9610_v13  ;;  %v3564_v23 = vpack.c.bf16 %v3556_v2, %v9607_v26  ;;  %v12343_v58 = vld [vmem:[#allocation28_spill] sm:$0xff] }
 0x51a   : > { %3662 = vmatpush1.bf16.msra.mxu0 %v3621_v9  ;;  %3703 = vmatpush1.bf16.msra.mxu1 %v3623_v47  ;;  %v9675_v35 = vmul.f32 %v3853_v52, %v12340_v53  ;;  %v3859_v52 = vsel %vm833_vm4, %v9361_v27, %v12338_v1  ;;  %v3566_v47 = vpack.c.bf16 %v3558_v56, %v9601_v0  ;;  %v3739_v0 = vsel %vm1942_vm11, %v3570_v37, 0  ;;  %v9730_v56 = vpop.permute.xlu0 %4277 }
 0x51b   : > { %v3568_v10 = vpack.c.bf16 %v3560_v19, %v3560_v19  ;;  %v3571_v4 = vpack.c.bf16 %v3563_v31, %v3563_v31  ;;  %7449 = vmatprep.subr.msk.bf16.mxu0 %vm1942_vm11, %v3569_v11  ;;  %v3837_v22 = vpop.permute.xlu1 %3836  ;;  %v3565_v27 = vpack.c.bf16 %v3557_v6, %v9570_v38  ;;  %v3857_v1 = vsel %vm833_vm4, %v9434_v62, %v9438_v45  ;;  %v12342_v19 = vld [vmem:[#allocation25_spill] sm:$0xff] }
 0x51c   : > { %v3855_v46 = vsel %vm833_vm4, %v3837_v22, %v9487_v32  ;;  %v3858_v17 = vsel %vm833_vm4, %v9481_v3, %v3837_v22  ;;  %v3854_v38 = vsel %vm833_vm4, %v9438_v45, %v9444_v30  ;;  %v3851_v6 = vsel %vm833_vm4, %v9444_v30, %v9450_v18 }
 0x51d   : > { %v3871_v9 = vmul.f32 %v3858_v17, %v12339_v15  ;;  %7446 = vmatmul.mubr.msk.bf16.vlgmr.msra.gmra.mxu0 %vm3631_vm1, %v7444_v28  ;;  %7448 = vmatmul.mubr.msk.bf16.vlgmr.msra.gmra.mxu1 %vm3631_vm1, %v7444_v28  ;;  %v3733_v16 = vsel %vm1942_vm11, %v3568_v10, 0  ;;  %v3872_v7 = vmul.f32 %v3855_v46, %v12340_v53  ;;  %v3860_v13 = vsel %vm833_vm4, %v9450_v18, %v9434_v62  ;;  %v3572_v28 = vld [vmem:[%s11777_s5] sm:$0xf] }
 0x51e   : > { %7451 = vmatprep.subr.msk.bf16.mxu1 %vm1942_vm11, %v3571_v4  ;;  %3757 = vmatpush1.bf16.msra.mxu0 %v3733_v16  ;;  %v12341_v14 = vmov 0   ;;  %v3867_v30 = vmul.f32 %v3857_v1, %v12339_v15  ;;  %v3862_v18 = vmul.f32 %v3859_v52, %v12342_v19  ;;  %v3869_v37 = vmul.f32 %v3851_v6, %v12343_v58  ;;  %v12344_v16 = vld [vmem:[#allocation30_spill] sm:$0xff] }
 0x51f   : > { %3798 = vmatpush1.bf16.msra.mxu1 %v3739_v0  ;;  %3758 = vmatprep.subr.bf16.mxu0 %v3565_v27  ;;  %v3849_v42 = vpop.permute.xlu1 %3848  ;;  %v3879_v11 = vpack.c.bf16 %v3871_v9, %v3871_v9  ;;  %v3866_v2 = vmul.f32 %v3860_v13, %v12342_v19  ;;  %v3865_v52 = vmul.f32 %v3850_v24, %v12343_v58  ;;  %v12345_v0 = vld [vmem:[#allocation40_spill] sm:$0xff]  ;;  %v9775_v13 = vpop.permute.xlu0 %4418 }
 0x520   : > { %3799 = vmatprep.subr.bf16.mxu1 %v3567_v60  ;;  %v3852_v26 = vsel %vm833_vm4, %v9487_v32, %v3849_v42  ;;  %v3861_v45 = vsel %vm833_vm4, %v3849_v42, %v9481_v3  ;;  %3776 = vmatprep.mubr.bf16.mxu0 %v12341_v14  ;;  %v3868_v32 = vmul.f32 %v3854_v38, %v12340_v53 }
 0x521   : > { %v3870_v31 = vmul.f32 %v3861_v45, %v12342_v19  ;;  %v3873_v62 = vmul.f32 %v3852_v26, %v12343_v58  ;;  %3817 = vmatprep.mubr.bf16.mxu1 %v12341_v14  ;;  %v3880_v3 = vpack.c.bf16 %v3872_v7, %v3872_v7  ;;  %v4015_v46 = vsel %vm973_vm5, %v9370_v55, %v9382_v48 }
 0x522   : > { %3759 = vmatpush1.bf16.msra.mxu0 %v3564_v23  ;;  %v3875_v1 = vpack.c.bf16 %v3867_v30, %v9668_v29  ;;  %v4009_v7 = vsel %vm973_vm5, %v9386_v12, %v9394_v61  ;;  %v3877_v38 = vpack.c.bf16 %v3869_v37, %v3865_v52  ;;  %v3876_v6 = vpack.c.bf16 %v3868_v32, %v9675_v35  ;;  %v12347_v32 = vld [vmem:[#allocation42_spill] sm:$0xff] }
 0x523   : > { %v3878_v10 = vpack.c.bf16 %v3870_v31, %v3870_v31  ;;  %v3881_v4 = vpack.c.bf16 %v3873_v62, %v3873_v62  ;;  %3800 = vmatpush1.bf16.msra.mxu1 %v3566_v47  ;;  %7454 = vmatprep.subr.msk.bf16.mxu0 %vm1942_vm11, %v3879_v11  ;;  %v3996_v22 = vpop.permute.xlu1 %3995  ;;  %v4016_v47 = vsel %vm973_vm5, %v9454_v5, %v9461_v50  ;;  %v3894_v23 = vsel %vm1942_vm11, %v3880_v3, 0  ;;  %v12346_v62 = vld [vmem:[#allocation39_spill] sm:$0xff] }
 0x524   : > { %v4014_v17 = vsel %vm973_vm5, %v3996_v22, %v9505_v51  ;;  %v4017_v9 = vsel %vm973_vm5, %v9491_v36, %v3996_v22  ;;  %v3874_v42 = vpack.c.bf16 %v3866_v2, %v3862_v18  ;;  %v4010_v29 = vsel %vm973_vm5, %v9466_v40, %v9473_v8 }
 0x525   : > { %v4030_v24 = vmul.f32 %v4017_v9, %v12344_v16  ;;  %7450 = vmatmul.mubr.msk.bf16.vlgmr.msra.gmra.mxu0 %vm3631_vm1, %v3572_v28  ;;  %7456 = vmatprep.subr.msk.bf16.mxu1 %vm1942_vm11, %v3881_v4  ;;  %v3888_v27 = vsel %vm1942_vm11, %v3878_v10, 0  ;;  %v4031_v60 = vmul.f32 %v4014_v17, %v12345_v0  ;;  %v4026_v45 = vmul.f32 %v4016_v47, %v12344_v16 }
 0x526   : > { %7452 = vmatmul.mubr.msk.bf16.vlgmr.msra.gmra.mxu1 %vm3631_vm1, %v3572_v28  ;;  %3912 = vmatpush1.bf16.msra.mxu0 %v3888_v27  ;;  %v4019_v11 = vsel %vm973_vm5, %v9473_v8, %v9454_v5  ;;  %v4028_v3 = vmul.f32 %v4010_v29, %v12347_v32  ;;  %v7453_v5 = vld [vmem:[%s11777_s5 + $0x8] sm:$0xf]  ;;  %v4018_v8 = vsel %vm973_vm5, %v9394_v61, %v9370_v55  ;;  %v9817_v61 = vpop.permute.xlu0 %4430 }
 0x527   : > { %3953 = vmatpush1.bf16.msra.mxu1 %v3894_v23  ;;  %3913 = vmatprep.subr.bf16.mxu0 %v3875_v1  ;;  %v4008_v26 = vpop.permute.xlu1 %4007  ;;  %v4038_v31 = vpack.c.bf16 %v4030_v24, %v4030_v24  ;;  %v4039_v28 = vpack.c.bf16 %v4031_v60, %v4031_v60  ;;  %v4025_v22 = vmul.f32 %v4019_v11, %v12346_v62  ;;  %v12349_v24 = vld [vmem:[#allocation35_spill] sm:$0xff] }
 0x528   : > { %3954 = vmatprep.subr.bf16.mxu1 %v3877_v38  ;;  %v4011_v30 = vsel %vm973_vm5, %v9505_v51, %v4008_v26  ;;  %v4020_v35 = vsel %vm973_vm5, %v4008_v26, %v9491_v36  ;;  %3931 = vmatprep.mubr.bf16.mxu0 %v12341_v14  ;;  %v4022_v51 = vmul.f32 %v4015_v46, %v12344_v16  ;;  %v12350_v27 = vld [vmem:[#allocation139_spill] sm:$0xff] }
 0x529   : > { %v4029_v18 = vmul.f32 %v4020_v35, %v12346_v62  ;;  %v4032_v37 = vmul.f32 %v4011_v30, %v12347_v32  ;;  %3972 = vmatprep.mubr.bf16.mxu1 %v12341_v14  ;;  %v4013_v36 = vsel %vm973_vm5, %v9461_v50, %v9466_v40  ;;  %v4012_v50 = vsel %vm973_vm5, %v9382_v48, %v9386_v12  ;;  %v12348_v48 = vld [vmem:[#allocation138_spill] sm:$0xff]  ;;  %v12352_v60 = vld [vmem:[#allocation91_spill] sm:$0xff]  ;;  %v12355_v35 = vld [vmem:[#allocation136_spill] sm:$0xff] }
 0x52a   : > { %3914 = vmatpush1.bf16.msra.mxu0 %v3874_v42  ;;  %v4024_v40 = vmul.f32 %v4009_v7, %v12347_v32  ;;  %v4154_v52 = vmul.f32 %v9287_v21, %v12314_v54  ;;  %v4027_v55 = vmul.f32 %v4013_v36, %v12345_v0  ;;  %v4034_v17 = vpack.c.bf16 %v4026_v45, %v4022_v51  ;;  %v12351_v7 = vld [vmem:[#allocation51_spill] sm:$0xff]  ;;  %v12354_v45 = vld [vmem:[#allocation137_spill] sm:$0xff] }
 0x52b   : > { %v4037_v2 = vpack.c.bf16 %v4029_v18, %v4029_v18  ;;  %v4040_v10 = vpack.c.bf16 %v4032_v37, %v4032_v37  ;;  %3955 = vmatpush1.bf16.msra.mxu1 %v3876_v6  ;;  %7459 = vmatprep.subr.msk.bf16.mxu0 %vm1942_vm11, %v4038_v31  ;;  %v9806_v4 = vpop.permute.xlu1 %4585  ;;  %v4152_v12 = vmul.f32 %v12348_v48, %v12312_v34  ;;  %v4053_v21 = vsel %vm1942_vm11, %v4039_v28, 0  ;;  %v12353_v42 = vld [vmem:[#allocation3_spill] sm:$0xff]  ;;  %v12356_v31 = vld [vmem:[#allocation68_spill] sm:$0xff]  ;;  %v12358_v28 = vld [vmem:[#allocation70_spill] sm:$0xff] }
 0x52c   : > { %v4021_v9 = vmul.f32 %v4018_v8, %v12346_v62  ;;  %v4036_v47 = vpack.c.bf16 %v4028_v3, %v4024_v40  ;;  %v4155_v1 = vmul.f32 %v12350_v27, %v12349_v24  ;;  %v9831_v23 = vmul.f32 %v12352_v60, %v12351_v7  ;;  %v12357_v18 = vld [vmem:[#allocation87_spill] sm:$0xff]  ;;  %v12360_v40 = vld [vmem:[#allocation80_spill] sm:$0xff] }
 0x52d   : > { %7455 = vmatmul.mubr.msk.bf16.vlgmr.msra.gmra.mxu0 %vm3631_vm1, %v7453_v5  ;;  %7461 = vmatprep.subr.msk.bf16.mxu1 %vm1942_vm11, %v4040_v10  ;;  %v4047_v46 = vsel %vm1942_vm11, %v4037_v2, 0  ;;  %v4023_v38 = vmul.f32 %v4012_v50, %v12345_v0  ;;  %v4149_v29 = vmul.f32 %v12353_v42, %v12310_v44  ;;  %v4151_v30 = vmul.f32 %v12354_v45, %v12349_v24  ;;  %v7458_v10 = vld [vmem:[%s11777_s5 + $0xc] sm:$0xf]  ;;  %v12427_v62 = vld [vmem:[#allocation64_spill] sm:$0xff] }
 0x52e   : > { %7457 = vmatmul.mubr.msk.bf16.vlgmr.msra.gmra.mxu1 %vm3631_vm1, %v7453_v5  ;;  %4071 = vmatpush1.bf16.msra.mxu0 %v4047_v46  ;;  %v4033_v26 = vpack.c.bf16 %v4025_v22, %v4021_v9  ;;  %v4150_v11 = vmul.f32 %v12355_v35, %v12314_v54  ;;  %v9845_v37 = vmul.f32 %v12357_v18, %v12356_v31  ;;  %v12359_v5 = vld [vmem:[#allocation86_spill] sm:$0xff]  ;;  %v12362_v46 = vld [vmem:[#allocation140_spill] sm:$0xff]  ;;  %v12368_v45 = vld [vmem:[#allocation147_spill] sm:$0xff] }
 0x52f   : > { %4112 = vmatpush1.bf16.msra.mxu1 %v4053_v21  ;;  %4072 = vmatprep.subr.bf16.mxu0 %v4034_v17  ;;  %v9834_v6 = vpop.permute.xlu1 %4724  ;;  %v4035_v51 = vpack.c.bf16 %v4027_v55, %v4023_v38  ;;  %v4161_v36 = vpack.c.bf16 %v9618_v39, %v9618_v39  ;;  %v4160_v3 = vpack.c.bf16 %v4152_v12, %v4152_v12  ;;  %v12361_v55 = vld [vmem:[#allocation141_spill] sm:$0xff]  ;;  %v12363_v17 = vld [vmem:[#allocation142_spill] sm:$0xff]  ;;  %v9867_v12 = vpop.permute.xlu0 %4575  ;;  %v12366_v38 = vld [vmem:[#allocation156_spill] sm:$0xff] }
 0x530   : > { %4113 = vmatprep.subr.bf16.mxu1 %v4036_v47  ;;  %4090 = vmatprep.mubr.bf16.mxu0 %v12341_v14  ;;  %v9852_v8 = vmul.f32 %v12359_v5, %v12358_v28  ;;  %v4163_v2 = vpack.c.bf16 %v4155_v1, %v4155_v1  ;;  %v4162_v50 = vpack.c.bf16 %v4154_v52, %v4154_v52  ;;  %v12364_v52 = vld [vmem:[#allocation154_spill] sm:$0xff]  ;;  %v12365_v1 = vld [vmem:[#allocation157_spill] sm:$0xff] }
 0x531   : > { %4131 = vmatprep.mubr.bf16.mxu1 %v12341_v14  ;;  %v4148_v22 = vmul.f32 %v12360_v40, %v12312_v34  ;;  %v4444_v39 = vsel %vm1380_vm7, %v12362_v46, %v12361_v55  ;;  %v4441_v48 = vsel %vm1380_vm7, %v12361_v55, %v12363_v17  ;;  %v4157_v21 = vpack.c.bf16 %v4149_v29, %v12364_v52  ;;  %v12369_v29 = vld [vmem:[#allocation47_spill] sm:$0xff]  ;;  %v12372_v55 = vld [vmem:[#allocation61_spill] sm:$0xff] }
 0x532   : > { %4073 = vmatpush1.bf16.msra.mxu0 %v4033_v26  ;;  %v4159_v60 = vpack.c.bf16 %v4151_v30, %v12365_v1  ;;  %v4158_v42 = vpack.c.bf16 %v4150_v11, %v12366_v38  ;;  %v12367_v26 = vld [vmem:[#allocation145_spill] sm:$0xff]  ;;  %v4170_v5 = vsel %vm1942_vm11, %v4160_v3, 0  ;;  %v9892_v30 = vmul.f32 %v4441_v48, %v12372_v55  ;;  %v12375_v1 = vld [vmem:[#allocation148_spill] sm:$0xff]  ;;  %v12469_v34 = vld [vmem:[#allocation111_spill] sm:$0xff] }
 0x533   : > { %4114 = vmatpush1.bf16.msra.mxu1 %v4035_v51  ;;  %7464 = vmatprep.subr.msk.bf16.mxu0 %vm1942_vm11, %v4161_v36  ;;  %v4274_v9 = vpop.permute.xlu1 %4273  ;;  %v4285_v35 = vsel %vm1240_vm6, %v12368_v45, %v12367_v26  ;;  %v12370_v51 = vld [vmem:[#allocation52_spill] sm:$0xff]  ;;  %v4176_v11 = vsel %vm1942_vm11, %v4162_v50, 0  ;;  %v4283_v3 = vsel %vm1240_vm6, %v12367_v26, %v12375_v1  ;;  %v9917_v38 = vpop.permute.xlu0 %4583 }
 0x534   : > { %7466 = vmatprep.subr.msk.bf16.mxu1 %vm1942_vm11, %v4163_v2  ;;  %v4286_v47 = vsel %vm1240_vm6, %v4274_v9, %v9730_v56  ;;  %v4288_v27 = vsel %vm1240_vm6, %v9678_v43, %v4274_v9  ;;  %v12371_v2 = vld [vmem:[#allocation59_spill] sm:$0xff] }
 0x535   : > { %v4299_v18 = vmul.f32 %v4288_v27, %v12369_v29  ;;  %v4300_v36 = vmul.f32 %v4286_v47, %v12370_v51  ;;  %7460 = vmatmul.mubr.msk.bf16.vlgmr.msra.gmra.mxu0 %vm3631_vm1, %v7458_v10  ;;  %v9889_v40 = vmul.f32 %v4444_v39, %v12371_v2  ;;  %v12373_v9 = vld [vmem:[#allocation155_spill] sm:$0xff]  ;;  %v12374_v27 = vld [vmem:[#allocation144_spill] sm:$0xff] }
 0x536   : > { %7462 = vmatmul.mubr.msk.bf16.vlgmr.msra.gmra.mxu1 %vm3631_vm1, %v7458_v10  ;;  %4194 = vmatpush1.bf16.msra.mxu0 %v4170_v5  ;;  %v4156_v52 = vpack.c.bf16 %v4148_v22, %v12373_v9  ;;  %v4287_v47 = vsel %vm1240_vm6, %v12374_v27, %v12368_v45  ;;  %v4289_v10 = vsel %vm1240_vm6, %v12375_v1, %v12374_v27  ;;  %v12376_v5 = vld [vmem:[#allocation53_spill] sm:$0xff] }
 0x537   : > { %4235 = vmatpush1.bf16.msra.mxu1 %v4176_v11  ;;  %4195 = vmatprep.subr.bf16.mxu0 %v4157_v21  ;;  %v4282_v50 = vpop.permute.xlu1 %4281  ;;  %v4296_v22 = vmul.f32 %v4285_v35, %v12370_v51  ;;  %v4307_v26 = vpack.c.bf16 %v4299_v18, %v4299_v18  ;;  %v4308_v45 = vpack.c.bf16 %v4300_v36, %v4300_v36  ;;  %v7463_v18 = vld [vmem:[%s11777_s5 + $0x10] sm:$0xf] }
 0x538   : > { %4236 = vmatprep.subr.bf16.mxu1 %v4159_v60  ;;  %v4284_v39 = vsel %vm1240_vm6, %v9730_v56, %v4282_v50  ;;  %v4290_v48 = vsel %vm1240_vm6, %v4282_v50, %v9678_v43  ;;  %4213 = vmatprep.mubr.bf16.mxu0 %v12341_v14  ;;  %v12377_v60 = vld [vmem:[#allocation143_spill] sm:$0xff]  ;;  %v4295_v35 = vmul.f32 %v4287_v47, %v12369_v29 }
 0x539   : > { %v4301_v21 = vmul.f32 %v4284_v39, %v12376_v5  ;;  %v4302_v11 = vmul.f32 %v4290_v48, %v12351_v7  ;;  %4254 = vmatprep.mubr.bf16.mxu1 %v12341_v14  ;;  %v4438_v56 = vsel %vm1380_vm7, %v12363_v17, %v12377_v60  ;;  %v4297_v43 = vmul.f32 %v4283_v3, %v12376_v5  ;;  %v12378_v47 = vld [vmem:[#allocation151_spill] sm:$0xff]  ;;  %v12379_v3 = vld [vmem:[#allocation150_spill] sm:$0xff] }
 0x53a   : > { %v4298_v9 = vmul.f32 %v4289_v10, %v12351_v7  ;;  %4196 = vmatpush1.bf16.msra.mxu0 %v4156_v52  ;;  %v4447_v36 = vsel %vm1380_vm7, %v12377_v60, %v12362_v46  ;;  %v4442_v52 = vsel %vm1380_vm7, %v12379_v3, %v12378_v47  ;;  %v12380_v46 = vld [vmem:[#allocation84_spill] sm:$0xff]  ;;  %v12382_v7 = vld [vmem:[#allocation90_spill] sm:$0xff] }
 0x53b   : > { %v4309_v27 = vpack.c.bf16 %v4301_v21, %v4301_v21  ;;  %v4310_v1 = vpack.c.bf16 %v4302_v11, %v4302_v11  ;;  %4237 = vmatpush1.bf16.msra.mxu1 %v4158_v42  ;;  %v4425_v17 = vpop.permute.xlu1 %4424  ;;  %7469 = vmatprep.subr.msk.bf16.mxu0 %vm1942_vm11, %v4308_v45  ;;  %v4304_v39 = vpack.c.bf16 %v4296_v22, %v12380_v46  ;;  %v4317_v45 = vsel %vm1942_vm11, %v4307_v26, 0  ;;  %v12381_v11 = vld [vmem:[#allocation85_spill] sm:$0xff]  ;;  %v12386_v46 = vld [vmem:[#allocation60_spill] sm:$0xff] }
 0x53c   : > { %v4443_v10 = vsel %vm1380_vm7, %v4425_v17, %v9817_v61  ;;  %v4446_v50 = vsel %vm1380_vm7, %v9775_v13, %v4425_v17  ;;  %v4303_v60 = vpack.c.bf16 %v4295_v35, %v12381_v11  ;;  %v4305_v5 = vpack.c.bf16 %v4297_v43, %v12382_v7  ;;  %v12383_v17 = vld [vmem:[#allocation149_spill] sm:$0xff]  ;;  %v9970_v35 = vpop.permute.xlu0 %4722 }
 0x53d   : > { %v4458_v42 = vmul.f32 %v4446_v50, %v12371_v2  ;;  %v4459_v48 = vmul.f32 %v4443_v10, %v12372_v55  ;;  %7465 = vmatmul.mubr.msk.bf16.vlgmr.msra.gmra.mxu0 %vm3631_vm1, %v7463_v18  ;;  %7471 = vmatprep.subr.msk.bf16.mxu1 %vm1942_vm11, %v4310_v1  ;;  %v4323_v21 = vsel %vm1942_vm11, %v4309_v27, 0  ;;  %v4306_v22 = vpack.c.bf16 %v4298_v9, %v9831_v23  ;;  %v12384_v50 = vld [vmem:[#allocation152_spill] sm:$0xff] }
 0x53e   : > { %7467 = vmatmul.mubr.msk.bf16.vlgmr.msra.gmra.mxu1 %vm3631_vm1, %v7463_v18  ;;  %4341 = vmatpush1.bf16.msra.mxu0 %v4317_v45  ;;  %v4445_v10 = vsel %vm1380_vm7, %v12383_v17, %v12379_v3  ;;  %v4439_v26 = vsel %vm1380_vm7, %v12378_v47, %v12384_v50  ;;  %v4448_v7 = vsel %vm1380_vm7, %v12384_v50, %v12383_v17  ;;  %v12385_v47 = vld [vmem:[#allocation62_spill] sm:$0xff]  ;;  %v12388_v17 = vld [vmem:[#allocation153_spill] sm:$0xff] }
 0x53f   : > { %4382 = vmatpush1.bf16.msra.mxu1 %v4323_v21  ;;  %v4437_v43 = vpop.permute.xlu1 %4436  ;;  %4342 = vmatprep.subr.bf16.mxu0 %v4304_v39  ;;  %v4455_v23 = vmul.f32 %v4442_v52, %v12372_v55  ;;  %v4466_v27 = vpack.c.bf16 %v4458_v42, %v4458_v42  ;;  %v4467_v1 = vpack.c.bf16 %v4459_v48, %v4459_v48 }
 0x540   : > { %4383 = vmatprep.subr.bf16.mxu1 %v4306_v22  ;;  %v4440_v9 = vsel %vm1380_vm7, %v9817_v61, %v4437_v43  ;;  %v4449_v18 = vsel %vm1380_vm7, %v4437_v43, %v9775_v13  ;;  %4360 = vmatprep.mubr.bf16.mxu0 %v12341_v14  ;;  %v4452_v52 = vmul.f32 %v4438_v56, %v12385_v47  ;;  %v7468_v13 = vld [vmem:[%s11777_s5 + $0x14] sm:$0xf]  ;;  %v12387_v56 = vld [vmem:[#allocation82_spill] sm:$0xff] }
 0x541   : > { %v4460_v3 = vmul.f32 %v4440_v9, %v12385_v47  ;;  %v4461_v45 = vmul.f32 %v4449_v18, %v12386_v46  ;;  %4401 = vmatprep.mubr.bf16.mxu1 %v12341_v14  ;;  %v4454_v39 = vmul.f32 %v4445_v10, %v12371_v2  ;;  %v4456_v61 = vmul.f32 %v4439_v26, %v12385_v47  ;;  %v10003_v26 = vpop.permute.xlu0 %4730 }
 0x542   : > { %v4457_v21 = vmul.f32 %v4448_v7, %v12386_v46  ;;  %4343 = vmatpush1.bf16.msra.mxu0 %v4303_v60  ;;  %v4453_v42 = vmul.f32 %v4447_v36, %v12386_v46  ;;  %v4591_v10 = vsel %vm1520_vm8, %v12388_v17, %v12387_v56  ;;  %v4463_v36 = vpack.c.bf16 %v4455_v23, %v9892_v30  ;;  %v12389_v23 = vld [vmem:[#allocation146_spill] sm:$0xff] }
 0x543   : > { %v4468_v48 = vpack.c.bf16 %v4460_v3, %v4460_v3  ;;  %v4469_v11 = vpack.c.bf16 %v4461_v45, %v4461_v45  ;;  %4384 = vmatpush1.bf16.msra.mxu1 %v4305_v5  ;;  %v4580_v22 = vpop.permute.xlu1 %4579  ;;  %7474 = vmatprep.subr.msk.bf16.mxu0 %vm1942_vm11, %v4467_v1  ;;  %v4476_v43 = vsel %vm1942_vm11, %v4466_v27, 0  ;;  %v4462_v18 = vpack.c.bf16 %v4454_v39, %v9889_v40 }
 0x544   : > { %v4592_v60 = vsel %vm1520_vm8, %v4580_v22, %v9917_v38  ;;  %v4594_v50 = vsel %vm1520_vm8, %v9867_v12, %v4580_v22  ;;  %v4464_v1 = vpack.c.bf16 %v4456_v61, %v4452_v52  ;;  %v4465_v30 = vpack.c.bf16 %v4457_v21, %v4453_v42 }
 0x545   : > { %v4605_v5 = vmul.f32 %v4594_v50, %v12356_v31  ;;  %v4606_v7 = vmul.f32 %v4592_v60, %v12358_v28  ;;  %7470 = vmatmul.mubr.msk.bf16.vlgmr.msra.gmra.mxu0 %vm3631_vm1, %v7468_v13  ;;  %7476 = vmatprep.subr.msk.bf16.mxu1 %vm1942_vm11, %v4469_v11  ;;  %v4482_v9 = vsel %vm1942_vm11, %v4468_v48, 0  ;;  %v4593_v3 = vsel %vm1520_vm8, %v12389_v23, %v12388_v17  ;;  %v12391_v11 = vld [vmem:[#allocation69_spill] sm:$0xff]  ;;  %v4729_v50 = vpop.permute.xlu0 %4728 }
 0x546   : > { %7472 = vmatmul.mubr.msk.bf16.vlgmr.msra.gmra.mxu1 %vm3631_vm1, %v7468_v13  ;;  %4500 = vmatpush1.bf16.msra.mxu0 %v4476_v43  ;;  %v4602_v45 = vmul.f32 %v4591_v10, %v12358_v28  ;;  %v4595_v27 = vsel %vm1520_vm8, %v9806_v4, %v12389_v23  ;;  %v4589_v40 = vsel %vm1520_vm8, %v12387_v56, %v9806_v4  ;;  %v12390_v13 = vld [vmem:[#allocation71_spill] sm:$0xff]  ;;  %v12392_v4 = vld [vmem:[#allocation92_spill] sm:$0xff]  ;;  %v12393_v17 = vld [vmem:[#allocation93_spill] sm:$0xff] }
 0x547   : > { %4541 = vmatpush1.bf16.msra.mxu1 %v4482_v9  ;;  %v4588_v48 = vpop.permute.xlu1 %4587  ;;  %4501 = vmatprep.subr.bf16.mxu0 %v4463_v36  ;;  %v4613_v61 = vpack.c.bf16 %v4605_v5, %v4605_v5  ;;  %v4614_v21 = vpack.c.bf16 %v4606_v7, %v4606_v7  ;;  %v4599_v56 = vmul.f32 %v12392_v4, %v12390_v13  ;;  %v7473_v60 = vld [vmem:[%s11777_s5 + $0x18] sm:$0xf] }
 0x548   : > { %4542 = vmatprep.subr.bf16.mxu1 %v4465_v30  ;;  %v4590_v52 = vsel %vm1520_vm8, %v9917_v38, %v4588_v48  ;;  %v4596_v39 = vsel %vm1520_vm8, %v4588_v48, %v9867_v12  ;;  %4519 = vmatprep.mubr.bf16.mxu0 %v12341_v14  ;;  %v4600_v38 = vmul.f32 %v12393_v17, %v12391_v11 }
 0x549   : > { %v4607_v42 = vmul.f32 %v4590_v52, %v12390_v13  ;;  %v4608_v22 = vmul.f32 %v4596_v39, %v12391_v11  ;;  %4560 = vmatprep.mubr.bf16.mxu1 %v12341_v14  ;;  %v4601_v10 = vmul.f32 %v4593_v3, %v12356_v31  ;;  %v4604_v12 = vmul.f32 %v4595_v27, %v12391_v11  ;;  %v7624_v27 = vld [vmem:[%s11783_s11 + $0x28] ss:$0 sm:$0xff] }
 0x54a   : > { %4502 = vmatpush1.bf16.msra.mxu0 %v4462_v18  ;;  %v4603_v36 = vmul.f32 %v4589_v40, %v12390_v13  ;;  %v4738_v9 = vsel %vm1660_vm9, %v9834_v6, %v4729_v50  ;;  %v4610_v23 = vpack.c.bf16 %v4602_v45, %v9852_v8  ;;  %v4623_v40 = vsel %vm1942_vm11, %v4613_v61, 0 }
 0x54b   : > { %v4615_v5 = vpack.c.bf16 %v4607_v42, %v4607_v42  ;;  %v4616_v7 = vpack.c.bf16 %v4608_v22, %v4608_v22  ;;  %4543 = vmatpush1.bf16.msra.mxu1 %v4464_v1  ;;  %v4727_v43 = vpop.permute.xlu1 %4726  ;;  %7479 = vmatprep.subr.msk.bf16.mxu0 %vm1942_vm11, %v4614_v21  ;;  %v7623_v1 = vld [vmem:[%s11783_s11 + $0x20] ss:$0 sm:$0xff]  ;;  %v4612_v8 = vpack.c.bf16 %v4604_v12, %v4600_v38  ;;  %v7626_v38 = vld [vmem:[%s11783_s11 + $0x38] ss:$0 sm:$0xff] }
 0x54c   : > { %v4739_v18 = vsel %vm1660_vm9, %v4727_v43, %v10003_v26  ;;  %v4741_v30 = vsel %vm1660_vm9, %v9970_v35, %v4727_v43  ;;  %v4609_v45 = vpack.c.bf16 %v4601_v10, %v9845_v37  ;;  %v4611_v39 = vpack.c.bf16 %v4603_v36, %v4599_v56  ;;  %v7478_v36 = vld [vmem:[%s11777_s5 + $0x1c] sm:$0xf] }
 0x54d   : > { %v4752_v3 = vmul.f32 %v7623_v1, %v4741_v30  ;;  %v4753_v48 = vmul.f32 %v7624_v27, %v4739_v18  ;;  %7475 = vmatmul.mubr.msk.bf16.vlgmr.msra.gmra.mxu0 %vm3631_vm1, %v7473_v60  ;;  %7481 = vmatprep.subr.msk.bf16.mxu1 %vm1942_vm11, %v4616_v7  ;;  %v4629_v52 = vsel %vm1942_vm11, %v4615_v5, 0  ;;  %v4740_v21 = vsel %vm1660_vm9, %v9632_v57, %v9834_v6  ;;  %v7625_v6 = vld [vmem:[%s11783_s11 + $0x30] ss:$0 sm:$0xff]  ;;  %v12396_v5 = vld [vmem:[#allocation95_spill] sm:$0xff] }
 0x54e   : > { %7477 = vmatmul.mubr.msk.bf16.vlgmr.msra.gmra.mxu1 %vm3631_vm1, %v7473_v60  ;;  %4647 = vmatpush1.bf16.msra.mxu0 %v4623_v40  ;;  %v4749_v22 = vmul.f32 %v7624_v27, %v4738_v9  ;;  %v12395_v60 = vld [vmem:[#allocation94_spill] sm:$0xff]  ;;  %v4747_v7 = vmul.f32 %v7626_v38, %v12396_v5  ;;  %v4748_v30 = vmul.f32 %v7623_v1, %v4740_v21 }
 0x54f   : > { %4688 = vmatpush1.bf16.msra.mxu1 %v4629_v52  ;;  %v4735_v42 = vpop.permute.xlu1 %4734  ;;  %4648 = vmatprep.subr.bf16.mxu0 %v4610_v23  ;;  %v4760_v37 = vpack.c.bf16 %v4752_v3, %v4752_v3  ;;  %v4761_v56 = vpack.c.bf16 %v4753_v48, %v4753_v48 }
 0x550   : > { %4689 = vmatprep.subr.bf16.mxu1 %v4612_v8  ;;  %v4737_v61 = vsel %vm1660_vm9, %v10003_v26, %v4735_v42  ;;  %v4743_v4 = vsel %vm1660_vm9, %v4735_v42, %v9970_v35  ;;  %4666 = vmatprep.mubr.bf16.mxu0 %v12341_v14  ;;  %v12394_v26 = vld [vmem:[#allocation88_spill] sm:$0xff]  ;;  %v4746_v35 = vmul.f32 %v7625_v6, %v12395_v60  ;;  %v7483_v42 = vld [vmem:[%s11777_s5 + $0x20] sm:$0xf] }
 0x551   : > { %v4754_v17 = vmul.f32 %v7625_v6, %v4737_v61  ;;  %v4755_v10 = vmul.f32 %v7626_v38, %v4743_v4  ;;  %4707 = vmatprep.mubr.bf16.mxu1 %v12341_v14  ;;  %v4745_v12 = vmul.f32 %v7624_v27, %v12394_v26  ;;  %v4770_v52 = vsel %vm1942_vm11, %v4760_v37, 0 }
 0x552   : > { %4649 = vmatpush1.bf16.msra.mxu0 %v4609_v45  ;;  %v12397_v45 = vld [vmem:[#allocation89_spill] sm:$0xff] }
 0x553   : > { %v4762_v43 = vpack.c.bf16 %v4754_v17, %v4754_v17  ;;  %v4763_v9 = vpack.c.bf16 %v4755_v10, %v4755_v10  ;;  %4690 = vmatpush1.bf16.msra.mxu1 %v4611_v39  ;;  %v4733_v18 = vpop.permute.xlu1 %4732  ;;  %7484 = vmatprep.subr.msk.bf16.mxu0 %vm1942_vm11, %v4761_v56  ;;  %v4757_v27 = vpack.c.bf16 %v4749_v22, %v4745_v12 }
 0x554   : > { %v4736_v23 = vsel %vm1660_vm9, %v4729_v50, %v4733_v18  ;;  %v4742_v3 = vsel %vm1660_vm9, %v4733_v18, %v9632_v57  ;;  %v4744_v39 = vmul.f32 %v7623_v1, %v12397_v45 }
 0x555   : > { %v4750_v48 = vmul.f32 %v7625_v6, %v4736_v23  ;;  %v4751_v40 = vmul.f32 %v7626_v38, %v4742_v3  ;;  %7480 = vmatmul.mubr.msk.bf16.vlgmr.msra.gmra.mxu0 %vm3631_vm1, %v7478_v36  ;;  %7486 = vmatprep.subr.msk.bf16.mxu1 %vm1942_vm11, %v4763_v9  ;;  %v4776_v8 = vsel %vm1942_vm11, %v4762_v43, 0 }
 0x556   : > { %7482 = vmatmul.mubr.msk.bf16.vlgmr.msra.gmra.mxu1 %vm3631_vm1, %v7478_v36  ;;  %4794 = vmatpush1.bf16.msra.mxu0 %v4770_v52  ;;  %v4756_v21 = vpack.c.bf16 %v4748_v30, %v4744_v39 }
 0x557   : > { %v4758_v50 = vpack.c.bf16 %v4750_v48, %v4746_v35  ;;  %4835 = vmatpush1.bf16.msra.mxu1 %v4776_v8  ;;  %4795 = vmatprep.subr.bf16.mxu0 %v4757_v27  ;;  %v4759_v57 = vpack.c.bf16 %v4751_v40, %v4747_v7 }
 0x558   : > { %4813 = vmatprep.mubr.bf16.mxu0 %v12341_v14  ;;  %4854 = vmatprep.mubr.bf16.mxu1 %v12341_v14 }
 0x559   : > { %4836 = vmatprep.subr.bf16.mxu1 %v4759_v57 }
 0x55a   : > { %4796 = vmatpush1.bf16.msra.mxu0 %v4756_v21 }
 0x55b   : > { %4837 = vmatpush1.bf16.msra.mxu1 %v4758_v50 }
 0x55d   : > { %7485 = vmatmul.mubr.msk.bf16.vlgmr.msra.gmra.mxu0 %vm3631_vm1, %v7483_v42 }
 0x55e   : > { %7487 = vmatmul.mubr.msk.bf16.vlgmr.msra.gmra.mxu1 %vm3631_vm1, %v7483_v42  ;;  %4973 = vmatprep.mubr.bf16.mxu0 %v12341_v14  ;;  %vm5916_vm1 = vcmask 130048  }
 0x55f   : > { %5026 = vmatprep.mubr.bf16.mxu1 %v12341_v14 }
 0x5dd   : > { %v3681_v1 = vpop.f32.mrf.mxu0  ;;  %v3722_v22 = vpop.f32.mrf.mxu1 }
 0x5df   : > { %v3683_v61 = vpop.f32.mrf.mxu0  ;;  %v3724_v4 = vpop.f32.mrf.mxu1 }
 0x5e1   : > { %v3685_v37 = vpop.f32.mrf.mxu0  ;;  %v3726_v56 = vpop.f32.mrf.mxu1 }
 0x5e3   : > { %v3686_v6 = vpop.f32.mrf.mxu0  ;;  %v3727_v17 = vpop.f32.mrf.mxu1 }
 0x5e5   : > { %v3778_v38 = vpop.f32.mrf.mxu0 }
 0x5e6   : > { %v3819_v10 = vpop.f32.mrf.mxu1 }
 0x5e7   : > { %v3780_v26 = vpop.f32.mrf.mxu0  ;;  %v3820_v31 = vadd.f32 %v3819_v10, %v3722_v22 }
 0x5e8   : > { %v3821_v12 = vpop.f32.mrf.mxu1  ;;  %v3781_v47 = vadd.f32 %v3780_v26, %v3683_v61 }
 0x5e9   : > { %v3782_v60 = vpop.f32.mrf.mxu0 }
 0x5ea   : > { %v3823_v35 = vpop.f32.mrf.mxu1 }
 0x5eb   : > { %v3783_v36 = vpop.f32.mrf.mxu0 }
 0x5ec   : > { %v3824_v5 = vpop.f32.mrf.mxu1 }
 0x5ed   : > { %v3933_v7 = vpop.f32.mrf.mxu0 }
 0x5ee   : > { %v3974_v43 = vpop.f32.mrf.mxu1 }
 0x5ef   : > { %v3935_v9 = vpop.f32.mrf.mxu0 }
 0x5f0   : > { %v3976_v18 = vpop.f32.mrf.mxu1  ;;  %v3982_v2 = vadd.f32 %v3935_v9, %v3781_v47 }
 0x5f1   : > { %v3937_v30 = vpop.f32.mrf.mxu0 }
 0x5f2   : > { %v3978_v23 = vpop.f32.mrf.mxu1 }
 0x5f3   : > { %v3938_v3 = vpop.f32.mrf.mxu0 }
 0x5f4   : > { %v3979_v27 = vpop.f32.mrf.mxu1 }
 0x5f5   : > { %v4092_v48 = vpop.f32.mrf.mxu0 }
 0x5f6   : > { %v4133_v40 = vpop.f32.mrf.mxu1 }
 0x5f7   : > { %v4094_v52 = vpop.f32.mrf.mxu0 }
 0x5f8   : > { %v4135_v8 = vpop.f32.mrf.mxu1 }
 0x5f9   : > { %v4096_v45 = vpop.f32.mrf.mxu0 }
 0x5fa   : > { %v4137_v39 = vpop.f32.mrf.mxu1 }
 0x5fb   : > { %v4097_v50 = vpop.f32.mrf.mxu0 }
 0x5fc   : > { %v4138_v57 = vpop.f32.mrf.mxu1 }
 0x5fd   : > { %v4215_v21 = vpop.f32.mrf.mxu0  ;;  %v3779_v57 = vadd.f32 %v3778_v38, %v3681_v1 }
 0x5fe   : > { %v4256_v42 = vpop.f32.mrf.mxu1 }
 0x5ff   : > { %v4217_v37 = vpop.f32.mrf.mxu0 }
 0x600   : > { %v4258_v56 = vpop.f32.mrf.mxu1 }
 0x601   : > { %v4219_v6 = vpop.f32.mrf.mxu0 }
 0x602   : > { %v4260_v17 = vpop.f32.mrf.mxu1  ;;  %v3981_v6 = vadd.f32 %v3933_v7, %v3779_v57 }
 0x603   : > { %v4220_v60 = vpop.f32.mrf.mxu0 }
 0x604   : > { %v4261_v35 = vpop.f32.mrf.mxu1  ;;  %v3822_v60 = vadd.f32 %v3821_v12, %v3724_v4  ;;  %v4140_v51 = vadd.f32 %v4092_v48, %v3981_v6 }
 0x605   : > { %v4362_v36 = vpop.f32.mrf.mxu0  ;;  %v3983_v35 = vadd.f32 %v3974_v43, %v3820_v31 }
 0x606   : > { %v4403_v5 = vpop.f32.mrf.mxu1  ;;  %v4263_v24 = vadd.f32 %v4215_v21, %v4140_v51 }
 0x607   : > { %v4364_v30 = vpop.f32.mrf.mxu0 }
 0x608   : > { %v4405_v23 = vpop.f32.mrf.mxu1 }
 0x609   : > { %v4366_v3 = vpop.f32.mrf.mxu0 }
 0x60a   : > { %v4407_v27 = vpop.f32.mrf.mxu1  ;;  %v3984_v3 = vadd.f32 %v3976_v18, %v3822_v60 }
 0x60b   : > { %v4367_v11 = vpop.f32.mrf.mxu0  ;;  %v4142_v27 = vadd.f32 %v4133_v40, %v3983_v35 }
 0x60c   : > { %v4408_v13 = vpop.f32.mrf.mxu1  ;;  %v4143_v0 = vadd.f32 %v4135_v8, %v3984_v3 }
 0x60d   : > { %v4521_v45 = vpop.f32.mrf.mxu0  ;;  %v4141_v13 = vadd.f32 %v4094_v52, %v3982_v2  ;;  %v4265_v1 = vadd.f32 %v4256_v42, %v4142_v27 }
 0x60e   : > { %v4562_v39 = vpop.f32.mrf.mxu1  ;;  %v4266_v10 = vadd.f32 %v4258_v56, %v4143_v0 }
 0x60f   : > { %v4523_v50 = vpop.f32.mrf.mxu0  ;;  %v4264_v22 = vadd.f32 %v4217_v37, %v4141_v13  ;;  %v4412_v26 = vadd.f32 %v4403_v5, %v4265_v1  ;;  %v7540_v1 = vld [vmem:[%s11779_s7] sm:$0xff]  }
 0x610   : > { %v4564_v28 = vpop.f32.mrf.mxu1  ;;  %v4413_v12 = vadd.f32 %v4405_v23, %v4266_v10  ;;  %v12401_v10 = vld [vmem:[#allocation135_spill] sm:$0xff] }
 0x611   : > { %v4525_v46 = vpop.f32.mrf.mxu0  ;;  %v4411_v31 = vadd.f32 %v4364_v30, %v4264_v22  ;;  %v12398_v22 = vld [vmem:[#allocation134_spill] sm:$0xff] }
 0x612   : > { %v4566_v17 = vpop.f32.mrf.mxu1  ;;  %v4410_v46 = vadd.f32 %v4362_v36, %v4263_v24  ;;  %v4572_v51 = vadd.f32 %v4564_v28, %v4413_v12  ;;  %v4871_v24 = vpop.permute.xlu0 %4870  ;;  %v12407_v12 = vld [vmem:[#allocation133_spill] sm:$0xff] }
 0x613   : > { %v4526_v55 = vpop.f32.mrf.mxu0  ;;  %v4570_v43 = vadd.f32 %v4523_v50, %v4411_v31  ;;  %v12404_v31 = vld [vmem:[#allocation132_spill] sm:$0xff] }
 0x614   : > { %v4567_v29 = vpop.f32.mrf.mxu1  ;;  %v4569_v55 = vadd.f32 %v4521_v45, %v4410_v46  ;;  %v12399_v46 = vld [vmem:[#allocation129_spill] sm:$0xff] }
 0x615   : > { %v4668_v11 = vpop.f32.mrf.mxu0  ;;  %v4571_v29 = vadd.f32 %v4562_v39, %v4412_v26  ;;  %v12402_v26 = vld [vmem:[#allocation131_spill] sm:$0xff] }
 0x616   : > { %v4709_v32 = vpop.f32.mrf.mxu1  ;;  %v4716_v9 = vadd.f32 %v4668_v11, %v4569_v55  ;;  %v12405_v55 = vld [vmem:[#allocation128_spill] sm:$0xff] }
 0x617   : > { %v4670_v38 = vpop.f32.mrf.mxu0  ;;  %v4718_v18 = vadd.f32 %v4709_v32, %v4571_v29  ;;  %v12408_v29 = vld [vmem:[#allocation130_spill] sm:$0xff] }
 0x618   : > { %v4711_v61 = vpop.f32.mrf.mxu1  ;;  %v4717_v40 = vadd.f32 %v4670_v38, %v4570_v43  ;;  %v7541_v43 = vld [vmem:[%s11779_s7 + $0x8] sm:$0x3f]  }
 0x619   : > { %v4672_v4 = vpop.f32.mrf.mxu0  ;;  %v4719_v21 = vadd.f32 %v4711_v61, %v4572_v51  ;;  %v12400_v61 = vpack.c.bf16 %v12398_v22, %v12399_v46 }
 0x61a   : > { %v4713_v47 = vpop.f32.mrf.mxu1  ;;  %v12403_v4 = vpack.c.bf16 %v12401_v10, %v12402_v26 }
 0x61b   : > { %v4673_v7 = vpop.f32.mrf.mxu0  ;;  %v12406_v47 = vpack.c.bf16 %v12404_v31, %v12405_v55 }
 0x61c   : > { %v4714_v2 = vpop.f32.mrf.mxu1  ;;  %v12409_v7 = vpack.c.bf16 %v12407_v12, %v12408_v29 }
 0x61d   : > { %v4815_v48 = vpop.f32.mrf.mxu0 }
 0x61e   : > { %v4863_v52 = vadd.f32 %v4815_v48, %v4716_v9  ;;  %v4856_v8 = vpop.f32.mrf.mxu1  ;;  %v7542_v9 = vld [vmem:[%s11781_s9] sm:$0x1f]  }
 0x61f   : > { %v4865_v0 = vadd.f32 %v4856_v8, %v4718_v18  ;;  %v4817_v42 = vpop.f32.mrf.mxu0  ;;  %v4896_v18 = vpop.permute.xlu1 %4895 }
 0x620   : > { %v4873_v37 = vadd.f32 %v4871_v24, %v4863_v52  ;;  %v4864_v56 = vadd.f32 %v4817_v42, %v4717_v40  ;;  %v4858_v36 = vpop.f32.mrf.mxu1  ;;  %v4901_v8 = vpop.permute.xlu0 %4900 }
 0x621   : > { %v4875_v5 = vadd.f32 %v4871_v24, %v4865_v0  ;;  %v4866_v30 = vadd.f32 %v4858_v36, %v4719_v21  ;;  %v4819_v23 = vpop.f32.mrf.mxu0 }
 0x622   : > { %v4877_v45 = vmax.f32 %v4873_v37, 0.0  ;;  %v4874_v39 = vadd.f32 %v4871_v24, %v4864_v56  ;;  %v4860_v50 = vpop.f32.mrf.mxu1 }
 0x623   : > { %v4879_v57 = vmax.f32 %v4875_v5, 0.0  ;;  %v4876_v28 = vadd.f32 %v4871_v24, %v4866_v30  ;;  %v4820_v32 = vpop.f32.mrf.mxu0  ;;  %v4906_v37 = vpop.permute.xlu1 %4905 }
 0x624   : > { %v4885_v6 = vpack.c.bf16 %v4877_v45, %v4877_v45  ;;  %v4878_v17 = vmax.f32 %v4874_v39, 0.0  ;;  %v4861_v60 = vpop.f32.mrf.mxu1 }
 0x625   : > { %v4887_v35 = vpack.c.bf16 %v4879_v57, %v4879_v57  ;;  %v4880_v3 = vmax.f32 %v4876_v28, 0.0 }
 0x626   : > { %v4886_v27 = vpack.c.bf16 %v4878_v17, %v4878_v17  ;;  %v4930_v13 = vsel %vm1942_vm11, %v4885_v6, 0 }
 0x627   : > { %v4888_v11 = vpack.c.bf16 %v4880_v3, %v4880_v3  ;;  %v4936_v38 = vsel %vm1942_vm11, %v4887_v35, 0 }
 0x628   : > { %7490 = vmatprep.subr.msk.bf16.mxu0 %vm1942_vm11, %v4886_v27 }
 0x629   : > { %7493 = vmatprep.subr.msk.bf16.mxu1 %vm1942_vm11, %v4888_v11  ;;  %4956 = vmatpush1.bf16.msra.mxu0 %v4930_v13 }
 0x62a   : > { %5009 = vmatpush1.bf16.msra.mxu1 %v4936_v38  ;;  %5934 = vmatprep.subr.bf16.mxu0 %v12400_v61 }
 0x62b   : > { %5977 = vmatprep.subr.bf16.mxu1 %v12403_v4 }
 0x62c   : > { %7491 = vmatmul.mubr.msk.bf16.vlgmr.msra.gmra.mxu0 %vm1938_vm13, %v7540_v1 }
 0x62d   : > { %7494 = vmatmul.mubr.msk.bf16.vlgmr.msra.gmra.mxu1 %vm1938_vm13, %v7540_v1  ;;  %5935 = vmatpush1.bf16.msra.mxu0 %v12406_v47 }
 0x62e   : > { %5978 = vmatpush1.bf16.msra.mxu1 %v12409_v7  ;;  %4983 = vmatprep.mubr.bf16.mxu0 %v12341_v14 }
 0x62f   : > { %5036 = vmatprep.mubr.bf16.mxu1 %v12341_v14 }
 0x634   : > { %7492 = vmatmul.mubr.msk.bf16.gmra.mxu0 %vm1938_vm13, %v7541_v43 }
 0x635   : > { %7495 = vmatmul.mubr.msk.bf16.gmra.mxu1 %vm1938_vm13, %v7541_v43  ;;  %5952 = vmatprep.mubr.bf16.mxu0 %v12341_v14  ;;  %vm6006_vm13 = vcmask 1040384  }
 0x636   : > { %5995 = vmatprep.mubr.bf16.mxu1 %v12341_v14 }
 0x63c   : > { %7497 = vmatmul.mubr.msk.bf16.vlgmr.msra.gmra.mxu0 %vm5916_vm1, %v7542_v9 }
 0x63d   : > { %7498 = vmatmul.mubr.msk.bf16.vlgmr.msra.gmra.mxu1 %vm5916_vm1, %v7542_v9  ;;  %vm12474_vm1 = vcmp.lt.s32.totalorder %v12283_v59, 2 }
 0x6ec   : > { %v4975_v2 = vpop.f32.mrf.mxu0 }
 0x6ed   : > { %v5028_v51 = vpop.f32.mrf.mxu1  ;;  %v4976_v56 = vadd.f32 %v4975_v2, %v4896_v18 }
 0x6ee   : > { %v4977_v48 = vpop.f32.mrf.mxu0  ;;  %v5029_v30 = vadd.f32 %v5028_v51, %v4896_v18 }
 0x6ef   : > { %v5030_v40 = vpop.f32.mrf.mxu1  ;;  %v4978_v50 = vadd.f32 %v4977_v48, %v4896_v18 }
 0x6f0   : > { %v4979_v52 = vpop.f32.mrf.mxu0  ;;  %v10157_v6 = vadd.f32 %v5030_v40, %v4896_v18 }
 0x6f1   : > { %v5032_v24 = vpop.f32.mrf.mxu1  ;;  %v4980_v21 = vadd.f32 %v4979_v52, %v4901_v8 }
 0x6f2   : > { %v4981_v0 = vpop.f32.mrf.mxu0  ;;  %v10147_v42 = vadd.f32 %v5032_v24, %v4901_v8 }
 0x6f3   : > { %v5034_v14 = vpop.f32.mrf.mxu1  ;;  %v10149_v36 = vadd.f32 %v4981_v0, %v4901_v8  ;;  %v5047_v57 = vmax.f32 %v4976_v56, %v4980_v21 }
 0x6f4   : > { %v4985_v5 = vpop.f32.mrf.mxu0  ;;  %v10151_v23 = vadd.f32 %v5034_v14, %v4901_v8  ;;  %v5065_v17 = vmax.f32 %v5029_v30, %v10147_v42 }
 0x6f5   : > { %v10153_v45 = vadd.f32 %v4985_v5, %v4906_v37  ;;  %v5038_v39 = vpop.f32.mrf.mxu1  ;;  %v5056_v27 = vmax.f32 %v4978_v50, %v10149_v36 }
 0x6f6   : > { %v10155_v28 = vadd.f32 %v5038_v39, %v4906_v37  ;;  %v4987_v32 = vpop.f32.mrf.mxu0  ;;  %v5074_v38 = vmax.f32 %v10157_v6, %v10151_v23 }
 0x6f7   : > { %v5048_v60 = vsel %vm633_vm2, %v10153_v45, -inf  ;;  %v10162_v35 = vadd.f32 %v4987_v32, %v4906_v37  ;;  %v5040_v3 = vpop.f32.mrf.mxu1 }
 0x6f8   : > { %12410 = vst [vmem:[#allocation81_spill] sm:$0xff] %v10155_v28  ;;  %v5049_v11 = vmax.f32 %v5047_v57, %v5048_v60  ;;  %v5066_v13 = vsel %vm633_vm2, %v10155_v28, -inf  ;;  %v10167_v1 = vadd.f32 %v5040_v3, %v4906_v37 }
 0x6f9   : > { %12411 = vst [vmem:[#allocation83_spill] sm:$0xff] %v10162_v35  ;;  %v5067_v22 = vmax.f32 %v5065_v17, %v5066_v13  ;;  %v5057_v46 = vsel %vm633_vm2, %v10162_v35, -inf }
 0x6fa   : > { %12412 = vst [vmem:[#allocation138_spill] sm:$0xff] %v10167_v1  ;;  %v5050_v61 = vrot.slane %v5049_v11, 4  ;;  %v5058_v10 = vmax.f32 %v5056_v27, %v5057_v46  ;;  %v5075_v26 = vsel %vm633_vm2, %v10167_v1, -inf }
 0x6fb   : > { %v5068_v4 = vrot.slane %v5067_v22, 4  ;;  %v5076_v31 = vmax.f32 %v5074_v38, %v5075_v26 }
 0x6fc   : > { %v5051_v55 = vmax.f32 %v5049_v11, %v5050_v61  ;;  %v5059_v47 = vrot.slane %v5058_v10, 4 }
 0x6fd   : > { %v5069_v12 = vmax.f32 %v5067_v22, %v5068_v4  ;;  %v5077_v29 = vrot.slane %v5076_v31, 4 }
 0x6fe   : > { %v5052_v7 = vrot.slane %v5051_v55, 2  ;;  %v5060_v43 = vmax.f32 %v5058_v10, %v5059_v47 }
 0x6ff   : > { %v5070_v9 = vrot.slane %v5069_v12, 2  ;;  %v5078_v2 = vmax.f32 %v5076_v31, %v5077_v29 }
 0x700   : > { %v5053_v51 = vmax.f32 %v5051_v55, %v5052_v7  ;;  %v5061_v18 = vrot.slane %v5060_v43, 2 }
 0x701   : > { %v5071_v48 = vmax.f32 %v5069_v12, %v5070_v9  ;;  %v5079_v40 = vrot.slane %v5078_v2, 2 }
 0x702   : > { %v5054_v52 = vrot.slane %v5053_v51, 1  ;;  %v5062_v8 = vmax.f32 %v5060_v43, %v5061_v18 }
 0x703   : > { %v5072_v24 = vrot.slane %v5071_v48, 1  ;;  %v5080_v0 = vmax.f32 %v5078_v2, %v5079_v40 }
 0x704   : > { %v5055_v14 = vmax.f32 %v5053_v51, %v5054_v52  ;;  %v5063_v37 = vrot.slane %v5062_v8, 1 }
 0x705   : > { %v5073_v5 = vmax.f32 %v5071_v48, %v5072_v24  ;;  %v5081_v39 = vrot.slane %v5080_v0, 1 }
 0x706   : > { %v5083_v57 = vsub.f32 %v4976_v56, %v5055_v14  ;;  %v5087_v32 = vsub.f32 %v4980_v21, %v5055_v14  ;;  %v5091_v17 = vsub.f32 %v10153_v45, %v5055_v14  ;;  %v5064_v60 = vmax.f32 %v5062_v8, %v5063_v37 }
 0x707   : > { %v5085_v3 = vsub.f32 %v5029_v30, %v5073_v5  ;;  %v5089_v27 = vsub.f32 %v10147_v42, %v5073_v5  ;;  %v5093_v11 = vsub.f32 %v10155_v28, %v5073_v5  ;;  %v5082_v13 = vmax.f32 %v5080_v0, %v5081_v39 }
 0x708   : > { %v5095_v38 = vmul.f32 1.442695, %v5083_v57  ;;  %v5103_v22 = vmul.f32 1.442695, %v5087_v32  ;;  %v5111_v46 = vmul.f32 1.442695, %v5091_v17  ;;  %v5084_v61 = vsub.f32 %v4978_v50, %v5064_v60 }
 0x709   : > { %v5099_v10 = vmul.f32 1.442695, %v5085_v3  ;;  %v5088_v26 = vsub.f32 %v10149_v36, %v5064_v60  ;;  %v5107_v4 = vmul.f32 1.442695, %v5089_v27  ;;  %v5092_v21 = vsub.f32 %v10162_v35, %v5064_v60 }
 0x70a   : > { %7543 = vpow2.f32 %v5095_v38  ;;  %v5115_v56 = vmul.f32 1.442695, %v5093_v11  ;;  %v5086_v30 = vsub.f32 %v10157_v6, %v5082_v13  ;;  %v5097_v42 = vmul.f32 1.442695, %v5084_v61 }
 0x70b   : > { %7545 = vpow2.f32 %v5103_v22  ;;  %v5090_v31 = vsub.f32 %v10151_v23, %v5082_v13  ;;  %v5105_v55 = vmul.f32 1.442695, %v5088_v26  ;;  %v5094_v47 = vsub.f32 %v10167_v1, %v5082_v13 }
 0x70c   : > { %7547 = vpow2.f32 %v5111_v46  ;;  %v5113_v50 = vmul.f32 1.442695, %v5092_v21  ;;  %v5101_v36 = vmul.f32 1.442695, %v5086_v30 }
 0x70d   : > { %7549 = vpow2.f32 %v5099_v10  ;;  %v5109_v12 = vmul.f32 1.442695, %v5090_v31  ;;  %v5117_v29 = vmul.f32 1.442695, %v5094_v47 }
 0x70e   : > { %7551 = vpow2.f32 %v5107_v4 }
 0x70f   : > { %7553 = vpow2.f32 %v5115_v56 }
 0x710   : > { %7555 = vpow2.f32 %v5097_v42 }
 0x711   : > { %7557 = vpow2.f32 %v5105_v55 }
 0x712   : > { %7559 = vpow2.f32 %v5113_v50 }
 0x713   : > { %7561 = vpow2.f32 %v5101_v36 }
 0x714   : > { %7563 = vpow2.f32 %v5109_v12 }
 0x715   : > { %7565 = vpow2.f32 %v5117_v29 }
 0x717   : > { %v7544_v6 = vpop.eup %7543 }
 0x718   : > { %v7546_v7 = vpop.eup %7545 }
 0x719   : > { %v10183_v43 = vpop.eup %7547  ;;  %v5119_v23 = vadd.f32 %v7546_v7, %v7544_v6 }
 0x71a   : > { %v10185_v9 = vpop.eup %7549  ;;  %v5120_v2 = vsel %vm633_vm2, %v10183_v43, 0.0 }
 0x71b   : > { %v10189_v51 = vpop.eup %7551  ;;  %v5121_v18 = vadd.f32 %v5120_v2, %v5119_v23 }
 0x71c   : > { %v10191_v48 = vpop.eup %7553  ;;  %v5137_v40 = vadd.f32 %v10189_v51, %v10185_v9 }
 0x71d   : > { %v10195_v52 = vpop.eup %7555  ;;  %v5122_v8 = vrot.slane %v5121_v18, 4  ;;  %v5138_v24 = vsel %vm633_vm2, %v10191_v48, 0.0 }
 0x71e   : > { %v10199_v0 = vpop.eup %7557  ;;  %v5139_v14 = vadd.f32 %v5138_v24, %v5137_v40 }
 0x71f   : > { %v10201_v37 = vpop.eup %7559  ;;  %v5123_v5 = vadd.f32 %v5122_v8, %v5121_v18  ;;  %v5128_v39 = vadd.f32 %v10199_v0, %v10195_v52 }
 0x720   : > { %v10205_v57 = vpop.eup %7561  ;;  %v5140_v32 = vrot.slane %v5139_v14, 4  ;;  %v5129_v17 = vsel %vm633_vm2, %v10201_v37, 0.0 }
 0x721   : > { %v10209_v60 = vpop.eup %7563  ;;  %v5124_v3 = vrot.slane %v5123_v5, 2  ;;  %v5130_v27 = vadd.f32 %v5129_v17, %v5128_v39 }
 0x722   : > { %v10211_v11 = vpop.eup %7565  ;;  %v5141_v13 = vadd.f32 %v5140_v32, %v5139_v14  ;;  %v5146_v38 = vadd.f32 %v10209_v60, %v10205_v57  ;;  %v12414_v32 = vld [vmem:[#allocation4_spill] sm:$0xff] }
 0x723   : > { %v5125_v22 = vadd.f32 %v5124_v3, %v5123_v5  ;;  %v5131_v46 = vrot.slane %v5130_v27, 4  ;;  %v5147_v61 = vsel %vm633_vm2, %v10211_v11, 0.0  ;;  %v12413_v5 = vld [vmem:[#allocation5_spill] sm:$0xff] }
 0x724   : > { %v5142_v10 = vrot.slane %v5141_v13, 2  ;;  %v5148_v26 = vadd.f32 %v5147_v61, %v5146_v38  ;;  %v12416_v38 = vld [vmem:[#allocation21_spill] sm:$0xff] }
 0x725   : > { %v5126_v4 = vrot.slane %v5125_v22, 1  ;;  %v5132_v21 = vadd.f32 %v5131_v46, %v5130_v27  ;;  %v12415_v27 = vld [vmem:[#allocation15_spill] sm:$0xff] }
 0x726   : > { %v5143_v56 = vadd.f32 %v5142_v10, %v5141_v13  ;;  %v5149_v30 = vrot.slane %v5148_v26, 4  ;;  %v12417_v46 = vld [vmem:[#allocation11_spill] sm:$0xff] }
 0x727   : > { %v5127_v42 = vadd.f32 %v5126_v4, %v5125_v22  ;;  %v5133_v31 = vrot.slane %v5132_v21, 2 }
 0x728   : > { %v5150_v55 = vadd.f32 %v5149_v30, %v5148_v26  ;;  %v5144_v47 = vrot.slane %v5143_v56, 1 }
 0x729   : > { %7567 = vrcp.f32 %v5127_v42  ;;  %v5134_v50 = vadd.f32 %v5133_v31, %v5132_v21  ;;  %v12419_v31 = vld [vmem:[#allocation29_spill] sm:$0xff] }
 0x72a   : > { %v5151_v36 = vrot.slane %v5150_v55, 2  ;;  %v5145_v23 = vadd.f32 %v5144_v47, %v5143_v56  ;;  %v12418_v56 = vld [vmem:[#allocation24_spill] sm:$0xff] }
 0x72b   : > { %v5135_v12 = vrot.slane %v5134_v50, 1 }
 0x72c   : > { %v5152_v29 = vadd.f32 %v5151_v36, %v5150_v55  ;;  %7569 = vrcp.f32 %v5145_v23 }
 0x72d   : > { %v5136_v2 = vadd.f32 %v5135_v12, %v5134_v50 }
 0x72e   : > { %v5153_v18 = vrot.slane %v5152_v29, 1 }
 0x72f   : > { %7571 = vrcp.f32 %v5136_v2  ;;  %v12420_v2 = vld [vmem:[#allocation31_spill] sm:$0xff] }
 0x730   : > { %v5154_v40 = vadd.f32 %v5153_v18, %v5152_v29 }
 0x732   : > { %7573 = vrcp.f32 %v5154_v40  ;;  %v12421_v40 = vld [vmem:[#allocation48_spill] sm:$0xff] }
 0x736   : > { %v7568_v8 = vpop.eup %7567 }
 0x737   : > { %v5159_v24 = vmul.f32 %v7568_v8, %v7544_v6  ;;  %v10217_v14 = vmul.f32 %v7568_v8, %v7546_v7  ;;  %v5167_v47 = vmul.f32 %v7568_v8, %v10183_v43 }
 0x739   : > { %v5308_v39 = vrot.slane %v5159_v24, %v12413_v5  ;;  %v5328_v17 = vrot.slane %v10217_v14, %v12414_v32  ;;  %v5364_v3 = vrot.slane %v5159_v24, %v12414_v32  ;;  %v5384_v13 = vrot.slane %v10217_v14, %v12415_v27  ;;  %v10229_v7 = vpop.eup %7569 }
 0x73a   : > { %v5424_v21 = vrot.slane %v5159_v24, %v12415_v27  ;;  %v5444_v30 = vrot.slane %v10217_v14, %v12418_v56  ;;  %v5504_v55 = vrot.slane %v10217_v14, %v12419_v31  ;;  %v5484_v12 = vrot.slane %v5159_v24, %v12418_v56 }
 0x73b   : > { %v5341_v22 = vmul.f32 %v5328_v17, %v12416_v38  ;;  %v5397_v61 = vmul.f32 %v5384_v13, %v12417_v46  ;;  %v5321_v10 = vmul.f32 %v5308_v39, %v12416_v38  ;;  %v5377_v6 = vmul.f32 %v5364_v3, %v12417_v46  ;;  %v12422_v3 = vld [vmem:[#allocation38_spill] sm:$0xff] }
 0x73c   : > { %v7572_v42 = vpop.eup %7571  ;;  %v10240_v29 = vmul.f32 %v10229_v7, %v10185_v9  ;;  %v10244_v23 = vmul.f32 %v10229_v7, %v10189_v51  ;;  %v5457_v18 = vmul.f32 %v5444_v30, %v12420_v2  ;;  %v5517_v39 = vmul.f32 %v5504_v55, %v12421_v40  ;;  %v12423_v46 = vld [vmem:[#allocation54_spill] sm:$0xff]  ;;  %v12425_v55 = vld [vmem:[#allocation55_spill] sm:$0xff] }
 0x73d   : > { %v5349_v26 = vrot.slane %v5341_v22, 2  ;;  %v5405_v4 = vrot.slane %v5397_v61, 2  ;;  %v10249_v17 = vmul.f32 %v7572_v42, %v10195_v52  ;;  %v5437_v43 = vmul.f32 %v5424_v21, %v12420_v2  ;;  %v12424_v52 = vld [vmem:[#allocation45_spill] sm:$0xff] }
 0x73e   : > { %v5544_v8 = vrot.slane %v5159_v24, %v12419_v31  ;;  %v5564_v13 = vrot.slane %v10217_v14, %v12422_v3  ;;  %v5465_v38 = vrot.slane %v5457_v18, 2  ;;  %v5525_v22 = vrot.slane %v5517_v39, 2 }
 0x73f   : > { %v5357_v50 = vadd.f32 %v5349_v26, %v5321_v10  ;;  %v5413_v36 = vadd.f32 %v5405_v4, %v5377_v6  ;;  %v5624_v51 = vrot.slane %v10217_v14, %v12423_v46  ;;  %v10258_v61 = vmul.f32 %v7572_v42, %v10199_v0  ;;  %v10263_v4 = vpop.eup %7573 }
 0x740   : > { %v5497_v10 = vmul.f32 %v5484_v12, %v12421_v40  ;;  %v5577_v6 = vmul.f32 %v5564_v13, %v12424_v52  ;;  %v5604_v26 = vrot.slane %v5159_v24, %v12422_v3  ;;  %v5473_v21 = vadd.f32 %v5465_v38, %v5437_v43  ;;  %v12428_v38 = vld [vmem:[#allocation72_spill] sm:$0xff] }
 0x741   : > { %v5417_v9 = vadd.f32 %v5413_v36, %v5357_v50  ;;  %v5557_v30 = vmul.f32 %v5544_v8, %v12424_v52  ;;  %v5637_v50 = vmul.f32 %v5624_v51, %v12425_v55  ;;  %v12426_v36 = vld [vmem:[#allocation63_spill] sm:$0xff]  ;;  %v5664_v0 = vrot.slane %v5159_v24, %v12423_v46 }
 0x742   : > { %v5684_v2 = vrot.slane %v10217_v14, %v12426_v36  ;;  %v5585_v18 = vrot.slane %v5577_v6, 2  ;;  %v5724_v39 = vrot.slane %v5159_v24, %v12426_v36  ;;  %v5744_v12 = vrot.slane %v5167_v47, %v12413_v5 }
 0x743   : > { %v5477_v40 = vadd.f32 %v5473_v21, %v5417_v9  ;;  %v5533_v13 = vadd.f32 %v5525_v22, %v5497_v10  ;;  %v5645_v58 = vrot.slane %v5637_v50, 2  ;;  %v10275_v43 = vmul.f32 %v10263_v4, %v10205_v57 }
 0x744   : > { %v5697_v16 = vmul.f32 %v5684_v2, %v12427_v62  ;;  %v10279_v8 = vmul.f32 %v10263_v4, %v10209_v60  ;;  %v5757_v51 = vmul.f32 %v5744_v12, %v12428_v38  ;;  %v5784_v24 = vrot.slane %v10217_v14, %v12413_v5 }
 0x745   : > { %v5537_v52 = vadd.f32 %v5533_v13, %v5477_v40  ;;  %v5593_v6 = vadd.f32 %v5585_v18, %v5557_v30  ;;  %v5617_v9 = vmul.f32 %v5604_v26, %v12425_v55  ;;  %v5677_v10 = vmul.f32 %v5664_v0, %v12427_v62  ;;  %v12429_v40 = vld [vmem:[#allocation76_spill] sm:$0xff]  ;;  %v12430_v18 = vld [vmem:[#allocation18_spill] sm:$0xff] }
 0x746   : > { %v5705_v22 = vrot.slane %v5697_v16, 2  ;;  %v5737_v21 = vmul.f32 %v5724_v39, %v12428_v38  ;;  %v5765_v57 = vrot.slane %v5757_v51, 2  ;;  %v5804_v50 = vrot.slane %v5167_v47, %v12414_v32  ;;  %v12431_v38 = vld [vmem:[#allocation13_spill] sm:$0xff] }
 0x747   : > { %v5597_v2 = vadd.f32 %v5593_v6, %v5537_v52  ;;  %v5653_v60 = vadd.f32 %v5645_v58, %v5617_v9  ;;  %v5312_v12 = vrot.slane %v10249_v17, %v12413_v5  ;;  %v5332_v14 = vrot.slane %v10258_v61, %v12414_v32 }
 0x748   : > { %v5797_v30 = vmul.f32 %v5784_v24, %v12429_v40  ;;  %v5817_v26 = vmul.f32 %v5804_v50, %v12429_v40  ;;  %v5368_v16 = vrot.slane %v10249_v17, %v12414_v32  ;;  %v5388_v62 = vrot.slane %v10258_v61, %v12415_v27 }
 0x749   : > { %v5657_v55 = vadd.f32 %v5653_v60, %v5597_v2  ;;  %v5713_v47 = vadd.f32 %v5705_v22, %v5677_v10  ;;  %v5168_v58 = vmul.f32 %v7572_v42, %v10201_v37  ;;  %v5342_v0 = vmul.f32 %v5332_v14, %v12430_v18  ;;  %v12432_v60 = vld [vmem:[#allocation27_spill] sm:$0xff] }
 0x74a   : > { %v5773_v39 = vadd.f32 %v5765_v57, %v5737_v21  ;;  %v5825_v13 = vrot.slane %v5817_v26, 2  ;;  %v5398_v51 = vmul.f32 %v5388_v62, %v12431_v38  ;;  %v5428_v24 = vrot.slane %v10249_v17, %v12415_v27  ;;  %v12433_v26 = vld [vmem:[#allocation41_spill] sm:$0xff] }
 0x74b   : > { %v5717_v52 = vadd.f32 %v5713_v47, %v5657_v55  ;;  %v5322_v6 = vmul.f32 %v5312_v12, %v12430_v18  ;;  %v5350_v9 = vrot.slane %v5342_v0, 2  ;;  %v5448_v50 = vrot.slane %v10258_v61, %v12418_v56 }
 0x74c   : > { %v5378_v22 = vmul.f32 %v5368_v16, %v12431_v38  ;;  %v5406_v10 = vrot.slane %v5398_v51, 2  ;;  %v5488_v37 = vrot.slane %v10249_v17, %v12418_v56  ;;  %v5508_v42 = vrot.slane %v10258_v61, %v12419_v31 }
 0x74d   : > { %v5777_v21 = vadd.f32 %v5773_v39, %v5717_v52  ;;  %v5833_v57 = vadd.f32 %v5825_v13, %v5797_v30  ;;  %v5358_v2 = vadd.f32 %v5350_v9, %v5322_v6  ;;  %v5458_v14 = vmul.f32 %v5448_v50, %v12432_v60  ;;  %v12436_v50 = vld [vmem:[#allocation57_spill] sm:$0xff] }
 0x74e   : > { %v5414_v40 = vadd.f32 %v5406_v10, %v5378_v22  ;;  %v5438_v12 = vmul.f32 %v5428_v24, %v12432_v60  ;;  %v5518_v62 = vmul.f32 %v5508_v42, %v12433_v26  ;;  %v5548_v16 = vrot.slane %v10249_v17, %v12419_v31  ;;  %v12435_v24 = vld [vmem:[#allocation43_spill] sm:$0xff] }
 0x74f   : > { %v10316_v55 = vadd.f32 %v5833_v57, %v5777_v21  ;;  %v5466_v47 = vrot.slane %v5458_v14, 2  ;;  %v5568_v18 = vrot.slane %v10258_v61, %v12422_v3  ;;  %v5608_v30 = vrot.slane %v10249_v17, %v12422_v3 }
 0x750   : > { %v5418_v0 = vadd.f32 %v5414_v40, %v5358_v2  ;;  %v5498_v39 = vmul.f32 %v5488_v37, %v12433_v26  ;;  %v5526_v13 = vrot.slane %v5518_v62, 2  ;;  %v5628_v38 = vrot.slane %v10258_v61, %v12423_v46  ;;  %v12437_v40 = vld [vmem:[#allocation66_spill] sm:$0xff] }
 0x751   : > { %12434 = vst [vmem:[#allocation139_spill] sm:$0xff] %v10316_v55  ;;  %5841 = vrot.lane.b32.xlu0 %v10316_v55, %s12288_s18  ;;  %v5474_v51 = vadd.f32 %v5466_v47, %v5438_v12  ;;  %v5558_v52 = vmul.f32 %v5548_v16, %v12435_v24  ;;  %v5578_v6 = vmul.f32 %v5568_v18, %v12435_v24  ;;  %v12438_v18 = vld [vmem:[#allocation74_spill] sm:$0xff] }
 0x752   : > { %v5668_v9 = vrot.slane %v10249_v17, %v12423_v46  ;;  %v5618_v22 = vmul.f32 %v5608_v30, %v12436_v50  ;;  %v5638_v10 = vmul.f32 %v5628_v38, %v12436_v50  ;;  %v5688_v37 = vrot.slane %v10258_v61, %v12426_v36 }
 0x753   : > { %v5728_v42 = vrot.slane %v10249_v17, %v12426_v36  ;;  %v5478_v21 = vadd.f32 %v5474_v51, %v5418_v0  ;;  %v5534_v57 = vadd.f32 %v5526_v13, %v5498_v39  ;;  %v5586_v2 = vrot.slane %v5578_v6, 2  ;;  %v12439_v13 = vld [vmem:[#allocation78_spill] sm:$0xff] }
 0x754   : > { %v5748_v60 = vrot.slane %v5168_v58, %v12413_v5  ;;  %v5646_v14 = vrot.slane %v5638_v10, 2  ;;  %v5678_v12 = vmul.f32 %v5668_v9, %v12437_v40  ;;  %v5698_v26 = vmul.f32 %v5688_v37, %v12437_v40 }
 0x755   : > { %v5788_v62 = vrot.slane %v10258_v61, %v12413_v5  ;;  %v5538_v16 = vadd.f32 %v5534_v57, %v5478_v21  ;;  %v5594_v47 = vadd.f32 %v5586_v2, %v5558_v52  ;;  %v5808_v38 = vrot.slane %v5168_v58, %v12414_v32  ;;  %v12440_v57 = vld [vmem:[#allocation22_spill] sm:$0xff] }
 0x756   : > { %v5758_v30 = vmul.f32 %v5748_v60, %v12438_v18  ;;  %v5654_v17 = vadd.f32 %v5646_v14, %v5618_v22  ;;  %v5706_v0 = vrot.slane %v5698_v26, 2  ;;  %v5738_v39 = vmul.f32 %v5728_v42, %v12438_v18  ;;  %v12441_v14 = vld [vmem:[#allocation14_spill] sm:$0xff] }
 0x757   : > { %v5798_v51 = vmul.f32 %v5788_v62, %v12439_v13  ;;  %v5598_v24 = vadd.f32 %v5594_v47, %v5538_v16  ;;  %v5818_v9 = vmul.f32 %v5808_v38, %v12439_v13  ;;  %v5316_v50 = vrot.slane %v10240_v29, %v12413_v5 }
 0x758   : > { %v5766_v6 = vrot.slane %v5758_v30, 2  ;;  %v10351_v61 = vmul.f32 %v10229_v7, %v10191_v48  ;;  %v5336_v58 = vrot.slane %v10244_v23, %v12414_v32  ;;  %v5372_v52 = vrot.slane %v10240_v29, %v12414_v32 }
 0x759   : > { %v5392_v22 = vrot.slane %v10244_v23, %v12415_v27  ;;  %v5658_v10 = vadd.f32 %v5654_v17, %v5598_v24  ;;  %v5714_v37 = vadd.f32 %v5706_v0, %v5678_v12  ;;  %v5826_v21 = vrot.slane %v5818_v9, 2  ;;  %v12442_v17 = vld [vmem:[#allocation32_spill] sm:$0xff]  ;;  %v12443_v9 = vld [vmem:[#allocation49_spill] sm:$0xff] }
 0x75a   : > { %v5774_v42 = vadd.f32 %v5766_v6, %v5738_v39  ;;  %v5323_v2 = vmul.f32 %v5316_v50, %v12440_v57  ;;  %v5343_v60 = vmul.f32 %v5336_v58, %v12440_v57  ;;  %v5432_v7 = vrot.slane %v10240_v29, %v12415_v27 }
 0x75b   : > { %v5399_v48 = vmul.f32 %v5392_v22, %v12441_v14  ;;  %v5718_v40 = vadd.f32 %v5714_v37, %v5658_v10  ;;  %v5379_v26 = vmul.f32 %v5372_v52, %v12441_v14  ;;  %v5452_v62 = vrot.slane %v10244_v23, %v12418_v56 }
 0x75c   : > { %v5492_v12 = vrot.slane %v10240_v29, %v12418_v56  ;;  %v5834_v16 = vadd.f32 %v5826_v21, %v5798_v51  ;;  %v5351_v47 = vrot.slane %v5343_v60, 2  ;;  %v5512_v30 = vrot.slane %v10244_v23, %v12419_v31  ;;  %v12445_v21 = vld [vmem:[#allocation46_spill] sm:$0xff] }
 0x75d   : > { %v5407_v18 = vrot.slane %v5399_v48, 2  ;;  %v5778_v38 = vadd.f32 %v5774_v42, %v5718_v40  ;;  %v5439_v0 = vmul.f32 %v5432_v7, %v12442_v17  ;;  %v5459_v39 = vmul.f32 %v5452_v62, %v12442_v17 }
 0x75e   : > { %v5552_v13 = vrot.slane %v10240_v29, %v12419_v31  ;;  %v5359_v24 = vadd.f32 %v5351_v47, %v5323_v2  ;;  %v5519_v50 = vmul.f32 %v5512_v30, %v12443_v9  ;;  %v5572_v51 = vrot.slane %v10244_v23, %v12422_v3  ;;  %v12447_v30 = vld [vmem:[#allocation67_spill] sm:$0xff] }
 0x75f   : > { %v5415_v6 = vadd.f32 %v5407_v18, %v5379_v26  ;;  %v10378_v58 = vadd.f32 %v5834_v16, %v5778_v38  ;;  %v5467_v52 = vrot.slane %v5459_v39, 2  ;;  %v5499_v22 = vmul.f32 %v5492_v12, %v12443_v9  ;;  %v12446_v26 = vld [vmem:[#allocation58_spill] sm:$0xff] }
 0x760   : > { %v5612_v10 = vrot.slane %v10240_v29, %v12422_v3  ;;  %v5527_v42 = vrot.slane %v5519_v50, 2  ;;  %v5579_v57 = vmul.f32 %v5572_v51, %v12445_v21  ;;  %v5632_v2 = vrot.slane %v10244_v23, %v12423_v46  ;;  %v12448_v50 = vld [vmem:[#allocation75_spill] sm:$0xff] }
 0x761   : > { %12444 = vst [vmem:[#allocation91_spill] sm:$0xff] %v10378_v58  ;;  %v5419_v37 = vadd.f32 %v5415_v6, %v5359_v24  ;;  %5843 = vrot.lane.b32.xlu1 %v10378_v58, %s12288_s18  ;;  %v5475_v60 = vadd.f32 %v5467_v52, %v5439_v0  ;;  %v5559_v14 = vmul.f32 %v5552_v13, %v12445_v21 }
 0x762   : > { %v5672_v48 = vrot.slane %v10240_v29, %v12423_v46  ;;  %v5692_v7 = vrot.slane %v10244_v23, %v12426_v36  ;;  %v5587_v40 = vrot.slane %v5579_v57, 2  ;;  %v5619_v62 = vmul.f32 %v5612_v10, %v12446_v26  ;;  %v12449_v10 = vld [vmem:[#allocation79_spill] sm:$0xff] }
 0x763   : > { %v5639_v12 = vmul.f32 %v5632_v2, %v12446_v26  ;;  %v5732_v16 = vrot.slane %v10240_v29, %v12426_v36  ;;  %v5479_v47 = vadd.f32 %v5475_v60, %v5419_v37  ;;  %v5535_v18 = vadd.f32 %v5527_v42, %v5499_v22  ;;  %v12450_v26 = vld [vmem:[#allocation23_spill] sm:$0xff] }
 0x764   : > { %v5699_v38 = vmul.f32 %v5692_v7, %v12447_v30  ;;  %v5752_v17 = vrot.slane %v10351_v61, %v12413_v5  ;;  %v5595_v0 = vadd.f32 %v5587_v40, %v5559_v14  ;;  %v5679_v13 = vmul.f32 %v5672_v48, %v12447_v30 }
 0x765   : > { %v5647_v39 = vrot.slane %v5639_v12, 2  ;;  %v5792_v24 = vrot.slane %v10244_v23, %v12413_v5  ;;  %v5539_v6 = vadd.f32 %v5535_v18, %v5479_v47  ;;  %v5812_v29 = vrot.slane %v10351_v61, %v12414_v32 }
 0x766   : > { %v5707_v9 = vrot.slane %v5699_v38, 2  ;;  %v5759_v51 = vmul.f32 %v5752_v17, %v12448_v50  ;;  %v5739_v22 = vmul.f32 %v5732_v16, %v12448_v50  ;;  %v5320_v42 = vrot.slane %v10275_v43, %v12413_v5 }
 0x767   : > { %v5655_v52 = vadd.f32 %v5647_v39, %v5619_v62  ;;  %v5799_v37 = vmul.f32 %v5792_v24, %v12449_v10  ;;  %v5599_v21 = vadd.f32 %v5595_v0, %v5539_v6  ;;  %v5819_v2 = vmul.f32 %v5812_v29, %v12449_v10  ;;  %v12452_v24 = vld [vmem:[#allocation33_spill] sm:$0xff] }
 0x768   : > { %v5767_v57 = vrot.slane %v5759_v51, 2  ;;  %v5170_v23 = vmul.f32 %v10263_v4, %v10211_v11  ;;  %v5715_v60 = vadd.f32 %v5707_v9, %v5679_v13  ;;  %v5340_v14 = vrot.slane %v10279_v8, %v12414_v32  ;;  %v12451_v4 = vld [vmem:[#allocation12_spill] sm:$0xff] }
 0x769   : > { %v5376_v61 = vrot.slane %v10275_v43, %v12414_v32  ;;  %v5396_v48 = vrot.slane %v10279_v8, %v12415_v27  ;;  %v5659_v7 = vadd.f32 %v5655_v52, %v5599_v21  ;;  %v5827_v40 = vrot.slane %v5819_v2, 2 }
 0x76a   : > { %v5324_v62 = vmul.f32 %v5320_v42, %v12450_v26  ;;  %v5436_v12 = vrot.slane %v10275_v43, %v12415_v27  ;;  %v5775_v16 = vadd.f32 %v5767_v57, %v5739_v22  ;;  %v5344_v11 = vmul.f32 %v5340_v14, %v12450_v26  ;;  %v12453_v42 = vld [vmem:[#allocation50_spill] sm:$0xff] }
 0x76b   : > { %v5400_v47 = vmul.f32 %v5396_v48, %v12451_v4  ;;  %v5456_v18 = vrot.slane %v10279_v8, %v12418_v56  ;;  %v5719_v30 = vadd.f32 %v5715_v60, %v5659_v7  ;;  %v5835_v38 = vadd.f32 %v5827_v40, %v5799_v37  ;;  %v12455_v60 = vld [vmem:[#allocation44_spill] sm:$0xff] }
 0x76c   : > { %v5380_v17 = vmul.f32 %v5376_v61, %v12451_v4  ;;  %v5496_v0 = vrot.slane %v10275_v43, %v12418_v56  ;;  %v5352_v39 = vrot.slane %v5344_v11, 2  ;;  %v5516_v9 = vrot.slane %v10279_v8, %v12419_v31 }
 0x76d   : > { %v5408_v13 = vrot.slane %v5400_v47, 2  ;;  %v5460_v6 = vmul.f32 %v5456_v18, %v12452_v24  ;;  %v5779_v50 = vadd.f32 %v5775_v16, %v5719_v30  ;;  %v5440_v51 = vmul.f32 %v5436_v12, %v12452_v24  ;;  %v12456_v47 = vld [vmem:[#allocation56_spill] sm:$0xff] }
 0x76e   : > { %v5556_v29 = vrot.slane %v10275_v43, %v12419_v31  ;;  %v5576_v52 = vrot.slane %v10279_v8, %v12422_v3  ;;  %v5360_v22 = vadd.f32 %v5352_v39, %v5324_v62  ;;  %v5520_v21 = vmul.f32 %v5516_v9, %v12453_v42 }
 0x76f   : > { %v5416_v10 = vadd.f32 %v5408_v13, %v5380_v17  ;;  %v5468_v37 = vrot.slane %v5460_v6, 2  ;;  %v10438_v57 = vadd.f32 %v5835_v38, %v5779_v50  ;;  %v5500_v2 = vmul.f32 %v5496_v0, %v12453_v42  ;;  %v12457_v17 = vld [vmem:[#allocation65_spill] sm:$0xff] }
 0x770   : > { %v5580_v14 = vmul.f32 %v5576_v52, %v12455_v60  ;;  %v5616_v61 = vrot.slane %v10275_v43, %v12422_v3  ;;  %v5528_v40 = vrot.slane %v5520_v21, 2  ;;  %v5636_v26 = vrot.slane %v10279_v8, %v12423_v46 }
 0x771   : > { %12454 = vst [vmem:[#allocation3_spill] sm:$0xff] %v10438_v57  ;;  %v5420_v48 = vadd.f32 %v5416_v10, %v5360_v22  ;;  %v5476_v7 = vadd.f32 %v5468_v37, %v5440_v51  ;;  %5845 = vrot.lane.b32.xlu0 %v10438_v57, %s12288_s18  ;;  %v5560_v62 = vmul.f32 %v5556_v29, %v12455_v60  ;;  %v12458_v51 = vld [vmem:[#allocation73_spill] sm:$0xff] }
 0x772   : > { %v5588_v12 = vrot.slane %v5580_v14, 2  ;;  %v5696_v16 = vrot.slane %v10279_v8, %v12426_v36  ;;  %v5536_v4 = vadd.f32 %v5528_v40, %v5500_v2  ;;  %v5640_v18 = vmul.f32 %v5636_v26, %v12456_v47  ;;  %v12459_v2 = vld [vmem:[#allocation77_spill] sm:$0xff] }
 0x773   : > { %v5480_v11 = vadd.f32 %v5476_v7, %v5420_v48  ;;  %v5676_v30 = vrot.slane %v10275_v43, %v12423_v46  ;;  %v5620_v38 = vmul.f32 %v5616_v61, %v12456_v47  ;;  %v5756_v39 = vrot.slane %v5170_v23, %v12413_v5 }
 0x774   : > { %v5700_v0 = vmul.f32 %v5696_v16, %v12457_v17  ;;  %v5596_v24 = vadd.f32 %v5588_v12, %v5560_v62  ;;  %v5648_v6 = vrot.slane %v5640_v18, 2  ;;  %v5736_v9 = vrot.slane %v10275_v43, %v12426_v36  ;;  %v10487_v12 = vpop.permute.xlu0 %5908 }
 0x775   : > { %v5540_v13 = vadd.f32 %v5536_v4, %v5480_v11  ;;  %v5760_v29 = vmul.f32 %v5756_v39, %v12458_v51  ;;  %v5816_v52 = vrot.slane %v5170_v23, %v12414_v32  ;;  %5857 = vrot.lane.b32.xlu0 %v10316_v55, %s12291_s20  ;;  %v5680_v37 = vmul.f32 %v5676_v30, %v12457_v17  ;;  %v10489_v4 = vpop.permute.xlu1 %5903 }
 0x776   : > { %v5708_v50 = vrot.slane %v5700_v0, 2  ;;  %v5656_v10 = vadd.f32 %v5648_v6, %v5620_v38  ;;  %v5796_v42 = vrot.slane %v10279_v8, %v12413_v5  ;;  %v5740_v61 = vmul.f32 %v5736_v9, %v12458_v51 }
 0x777   : > { %v5600_v22 = vadd.f32 %v5596_v24, %v5540_v13  ;;  %v5768_v21 = vrot.slane %v5760_v29, 2  ;;  %v5820_v60 = vmul.f32 %v5816_v52, %v12459_v2 }
 0x778   : > { %v5716_v43 = vadd.f32 %v5708_v50, %v5680_v37  ;;  %v5800_v40 = vmul.f32 %v5796_v42, %v12459_v2 }
 0x779   : > { %v5660_v14 = vadd.f32 %v5656_v10, %v5600_v22  ;;  %v5828_v48 = vrot.slane %v5820_v60, 2  ;;  %5861 = vrot.lane.b32.xlu0 %v10438_v57, %s12291_s20  ;;  %v5776_v7 = vadd.f32 %v5768_v21, %v5740_v61 }
 0x77b   : > { %v5720_v23 = vadd.f32 %v5716_v43, %v5660_v14  ;;  %v5836_v62 = vadd.f32 %v5828_v48, %v5800_v40 }
 0x77d   : > { %v5780_v26 = vadd.f32 %v5776_v7, %v5720_v23  ;;  %5873 = vrot.lane.b32.xlu0 %v10316_v55, %s12295_s22 }
 0x77f   : > { %v10473_v8 = vadd.f32 %v5836_v62, %v5780_v26 }
 0x781   : > { %12460 = vst [vmem:[#allocation137_spill] sm:$0xff] %v10473_v8  ;;  %5847 = vrot.lane.b32.xlu1 %v10473_v8, %s12288_s18  ;;  %5877 = vrot.lane.b32.xlu0 %v10438_v57, %s12295_s22 }
 0x785   : > { %5859 = vrot.lane.b32.xlu1 %v10378_v58, %s12291_s20 }
 0x789   : > { %5863 = vrot.lane.b32.xlu1 %v10473_v8, %s12291_s20 }
 0x78d   : > { %5875 = vrot.lane.b32.xlu1 %v10378_v58, %s12295_s22 }
 0x791   : > { %5879 = vrot.lane.b32.xlu1 %v10473_v8, %s12295_s22 }
 0x7c3   : > { %v5842_v16 = vpop.permute.xlu0 %5841 }
 0x7d3   : > { %v5844_v18 = vpop.permute.xlu1 %5843 }
 0x7d4   : > { %v5851_v39 = vsel %vm1240_vm6, %v5842_v16, %v5844_v18 }
 0x7d5   : > { %v5853_v50 = vadd.f32 %v5851_v39, %v10316_v55  ;;  %v10531_v39 = vpop.f32.mrf.mxu0 }
 0x7e3   : > { %v5846_v11 = vpop.permute.xlu0 %5845 }
 0x7e4   : > { %v5850_v13 = vsel %vm1240_vm6, %v5844_v18, %v5846_v11 }
 0x7e5   : > { %v5854_v51 = vadd.f32 %v5850_v13, %v10378_v58  ;;  %v10533_v13 = vpop.f32.mrf.mxu1 }
 0x7e7   : > { %v5858_v47 = vpop.permute.xlu0 %5857 }
 0x7eb   : > { %v5862_v30 = vpop.permute.xlu0 %5861 }
 0x7ef   : > { %v5874_v0 = vpop.permute.xlu0 %5873 }
 0x7f3   : > { %v5848_v38 = vpop.permute.xlu1 %5847  ;;  %v5878_v29 = vpop.permute.xlu0 %5877 }
 0x7f4   : > { %v5849_v52 = vsel %vm1240_vm6, %v5846_v11, %v5848_v38  ;;  %v5852_v22 = vsel %vm1240_vm6, %v5848_v38, %v5842_v16 }
 0x7f5   : > { %v5855_v43 = vadd.f32 %v5849_v52, %v10438_v57  ;;  %v5856_v61 = vadd.f32 %v5852_v22, %v10473_v8  ;;  %v12471_v8 = vld [vmem:[#allocation110_spill] sm:$0xff] }
 0x7f7   : > { %v5860_v17 = vpop.permute.xlu1 %5859 }
 0x7f8   : > { %v5867_v6 = vsel %vm1520_vm8, %v5858_v47, %v5860_v17  ;;  %v5866_v9 = vsel %vm1520_vm8, %v5860_v17, %v5862_v30 }
 0x7f9   : > { %v5869_v10 = vadd.f32 %v5867_v6, %v5853_v50  ;;  %v5870_v37 = vadd.f32 %v5866_v9, %v5854_v51 }
 0x7fb   : > { %v5864_v24 = vpop.permute.xlu1 %5863 }
 0x7fc   : > { %v5865_v21 = vsel %vm1520_vm8, %v5862_v30, %v5864_v24  ;;  %v5868_v2 = vsel %vm1520_vm8, %v5864_v24, %v5858_v47  ;;  %v10541_v24 = vpop.f32.mrf.mxu1 }
 0x7fd   : > { %v5871_v7 = vadd.f32 %v5865_v21, %v5855_v43  ;;  %v5872_v40 = vadd.f32 %v5868_v2, %v5856_v61 }
 0x7fe   : > { %v5997_v9 = vpop.f32.mrf.mxu1 }
 0x7ff   : > { %v5876_v42 = vpop.permute.xlu1 %5875  ;;  %v10585_v61 = vadd.f32 %v5997_v9, %v10489_v4 }
 0x800   : > { %v5883_v60 = vsel %vm1660_vm9, %v5874_v0, %v5876_v42  ;;  %v5882_v14 = vsel %vm1660_vm9, %v5876_v42, %v5878_v29  ;;  %v5999_v51 = vpop.f32.mrf.mxu1 }
 0x801   : > { %v5885_v48 = vadd.f32 %v5883_v60, %v5869_v10  ;;  %v5886_v23 = vadd.f32 %v5882_v14, %v5870_v37 }
 0x802   : > { %v6001_v52 = vpop.f32.mrf.mxu1 }
 0x803   : > { %v10515_v26 = vmul.f32 0.25, %v5885_v48  ;;  %v10517_v62 = vmul.f32 0.25, %v5886_v23  ;;  %v5880_v16 = vpop.permute.xlu1 %5879  ;;  %v10567_v42 = vadd.f32 %v6001_v52, %v10487_v12 }
 0x804   : > { %v5881_v11 = vsel %vm1660_vm9, %v5878_v29, %v5880_v16  ;;  %v5884_v47 = vsel %vm1660_vm9, %v5880_v16, %v5874_v0  ;;  %v10539_v0 = vpop.f32.mrf.mxu0  ;;  %v6003_v37 = vpop.f32.mrf.mxu1 }
 0x805   : > { %v5887_v18 = vadd.f32 %v5881_v11, %v5871_v7  ;;  %v5888_v30 = vadd.f32 %v5884_v47, %v5872_v40  ;;  %6107 = vrot.lane.b32.xlu0 %v10515_v26, %s12461_s19  ;;  %6109 = vrot.lane.b32.xlu1 %v10517_v62, %s12461_s19  ;;  %v10575_v60 = vadd.f32 %v6003_v37, %v10487_v12  ;;  %v6023_v43 = vsel %vm6006_vm13, %v10567_v42, -inf }
 0x806   : > { %v5954_v6 = vpop.f32.mrf.mxu0  ;;  %v10595_v40 = vadd.f32 %v5999_v51, %v10489_v4  ;;  %v6024_v16 = vmax.f32 %v10585_v61, %v6023_v43  ;;  %v6263_v25 = vmul.f32 %v10515_v26, %v12469_v34 }
 0x807   : > { %v10527_v38 = vmul.f32 0.25, %v5887_v18  ;;  %v10529_v17 = vmul.f32 0.25, %v5888_v30  ;;  %v5955_v14 = vadd.f32 %v5954_v6, %v10489_v4  ;;  %v6031_v7 = vsel %vm6006_vm13, %v10575_v60, -inf }
 0x808   : > { %v5956_v50 = vpop.f32.mrf.mxu0  ;;  %v6032_v18 = vmax.f32 %v10595_v40, %v6031_v7  ;;  %v6025_v30 = vrot.slane %v6024_v16, 4 }
 0x809   : > { %6111 = vrot.lane.b32.xlu0 %v10527_v38, %s12461_s19  ;;  %6113 = vrot.lane.b32.xlu1 %v10529_v17, %s12461_s19  ;;  %s12467_s19 = smov 96  }
 0x80a   : > { %v5958_v29 = vpop.f32.mrf.mxu0  ;;  %v6033_v9 = vrot.slane %v6032_v18, 4 }
 0x80b   : > { %v10560_v22 = vadd.f32 %v5958_v29, %v10487_v12 }
 0x80c   : > { %v5960_v10 = vpop.f32.mrf.mxu0  ;;  %v6034_v52 = vmax.f32 %v6032_v18, %v6033_v9 }
 0x80d   : > { %6143 = vrot.lane.b32.xlu0 %v10515_v26, %s12462_s27  ;;  %6145 = vrot.lane.b32.xlu1 %v10517_v62, %s12462_s27  ;;  %v10570_v21 = vadd.f32 %v5960_v10, %v10487_v12  ;;  %v6007_v2 = vsel %vm6006_vm13, %v10560_v22, -inf  ;;  %v10590_v12 = vadd.f32 %v5956_v50, %v10489_v4  ;;  %v6026_v50 = vmax.f32 %v6024_v16, %v6025_v30 }
 0x80e   : > { %v6008_v48 = vmax.f32 %v5955_v14, %v6007_v2  ;;  %v6035_v43 = vrot.slane %v6034_v52, 2 }
 0x80f   : > { %v6015_v23 = vsel %vm6006_vm13, %v10570_v21, -inf  ;;  %v6027_v10 = vrot.slane %v6026_v50, 2 }
 0x810   : > { %v6016_v11 = vmax.f32 %v10590_v12, %v6015_v23  ;;  %v6009_v47 = vrot.slane %v6008_v48, 4  ;;  %v6036_v16 = vmax.f32 %v6034_v52, %v6035_v43 }
 0x811   : > { %6147 = vrot.lane.b32.xlu0 %v10527_v38, %s12462_s27  ;;  %6149 = vrot.lane.b32.xlu1 %v10529_v17, %s12462_s27 }
 0x812   : > { %v6017_v4 = vrot.slane %v6016_v11, 4  ;;  %v6010_v6 = vmax.f32 %v6008_v48, %v6009_v47  ;;  %v6028_v48 = vmax.f32 %v6026_v50, %v6027_v10  ;;  %v6037_v30 = vrot.slane %v6036_v16, 1 }
 0x814   : > { %v6018_v51 = vmax.f32 %v6016_v11, %v6017_v4  ;;  %v6011_v29 = vrot.slane %v6010_v6, 2  ;;  %v6029_v11 = vrot.slane %v6028_v48, 1  ;;  %v6038_v50 = vmax.f32 %v6036_v16, %v6037_v30 }
 0x815   : > { %6183 = vrot.lane.b32.xlu0 %v10515_v26, %s12463_s24  ;;  %6185 = vrot.lane.b32.xlu1 %v10517_v62, %s12463_s24 }
 0x816   : > { %v6019_v37 = vrot.slane %v6018_v51, 2  ;;  %v6012_v2 = vmax.f32 %v6010_v6, %v6011_v29  ;;  %v6030_v4 = vmax.f32 %v6028_v48, %v6029_v11 }
 0x818   : > { %v6020_v23 = vmax.f32 %v6018_v51, %v6019_v37  ;;  %v6013_v7 = vrot.slane %v6012_v2, 1  ;;  %v6045_v29 = vsub.f32 %v10567_v42, %v6030_v4  ;;  %v6046_v37 = vsub.f32 %v10575_v60, %v6038_v50 }
 0x819   : > { %6187 = vrot.lane.b32.xlu0 %v10527_v38, %s12463_s24  ;;  %6189 = vrot.lane.b32.xlu1 %v10529_v17, %s12463_s24  ;;  %s12468_s24 = smov 94   ;;  %v6041_v43 = vsub.f32 %v10585_v61, %v6030_v4  ;;  %v6042_v42 = vsub.f32 %v10595_v40, %v6038_v50 }
 0x81a   : > { %v6021_v47 = vrot.slane %v6020_v23, 1  ;;  %v6014_v18 = vmax.f32 %v6012_v2, %v6013_v7 }
 0x81b   : > { %v6051_v7 = vmul.f32 1.442695, %v6041_v43 }
 0x81c   : > { %v6022_v6 = vmax.f32 %v6020_v23, %v6021_v47  ;;  %v6039_v9 = vsub.f32 %v5955_v14, %v6014_v18  ;;  %v6043_v51 = vsub.f32 %v10560_v22, %v6014_v18  ;;  %v6059_v14 = vmul.f32 1.442695, %v6045_v29 }
 0x81d   : > { %6223 = vrot.lane.b32.xlu0 %v10515_v26, %s12464_s25  ;;  %6225 = vrot.lane.b32.xlu1 %v10517_v62, %s12464_s25  ;;  %v6061_v23 = vmul.f32 1.442695, %v6046_v37 }
 0x81e   : > { %v6044_v52 = vsub.f32 %v10570_v21, %v6022_v6  ;;  %v6047_v10 = vmul.f32 1.442695, %v6039_v9  ;;  %v6055_v2 = vmul.f32 1.442695, %v6043_v51  ;;  %v6040_v48 = vsub.f32 %v10590_v12, %v6022_v6 }
 0x81f   : > { %v6053_v21 = vmul.f32 1.442695, %v6042_v42 }
 0x820   : > { %v6057_v22 = vmul.f32 1.442695, %v6044_v52  ;;  %7575 = vpow2.f32 %v6047_v10  ;;  %v6049_v16 = vmul.f32 1.442695, %v6040_v48 }
 0x821   : > { %6227 = vrot.lane.b32.xlu0 %v10527_v38, %s12464_s25  ;;  %6229 = vrot.lane.b32.xlu1 %v10529_v17, %s12464_s25  ;;  %7577 = vpow2.f32 %v6055_v2 }
 0x822   : > { %7579 = vpow2.f32 %v6059_v14 }
 0x823   : > { %7581 = vpow2.f32 %v6057_v22 }
 0x824   : > { %7583 = vpow2.f32 %v6061_v23 }
 0x825   : > { %6291 = vrot.lane.b32.xlu0 %v10515_v26, %s12465_s29  ;;  %6293 = vrot.lane.b32.xlu1 %v10517_v62, %s12465_s29  ;;  %7585 = vpow2.f32 %v6051_v7 }
 0x826   : > { %7587 = vpow2.f32 %v6049_v16 }
 0x827   : > { %7589 = vpow2.f32 %v6053_v21 }
 0x829   : > { %6295 = vrot.lane.b32.xlu0 %v10527_v38, %s12465_s29  ;;  %6297 = vrot.lane.b32.xlu1 %v10529_v17, %s12465_s29 }
 0x82d   : > { %6331 = vrot.lane.b32.xlu0 %v10515_v26, %s12466_s26  ;;  %6333 = vrot.lane.b32.xlu1 %v10517_v62, %s12466_s26  ;;  %v7576_v60 = vpop.eup %7575 }
 0x82e   : > { %v10639_v61 = vpop.eup %7577 }
 0x82f   : > { %v10641_v11 = vpop.eup %7579  ;;  %v6063_v47 = vsel %vm6006_vm13, %v10639_v61, 0.0 }
 0x830   : > { %v10643_v12 = vpop.eup %7581  ;;  %v6079_v30 = vsel %vm6006_vm13, %v10641_v11, 0.0  ;;  %v6064_v50 = vadd.f32 %v7576_v60, %v6063_v47 }
 0x831   : > { %6335 = vrot.lane.b32.xlu0 %v10527_v38, %s12466_s26  ;;  %6337 = vrot.lane.b32.xlu1 %v10529_v17, %s12466_s26  ;;  %v10645_v40 = vpop.eup %7583  ;;  %v6071_v6 = vsel %vm6006_vm13, %v10643_v12, 0.0 }
 0x832   : > { %v7586_v18 = vpop.eup %7585  ;;  %v6087_v51 = vsel %vm6006_vm13, %v10645_v40, 0.0  ;;  %v6065_v37 = vrot.slane %v6064_v50, 4  ;;  %vm12481_vm13 = vmmov %vm12474_vm1 }
 0x833   : > { %v7588_v4 = vpop.eup %7587  ;;  %v6080_v29 = vadd.f32 %v7586_v18, %v6079_v30 }
 0x834   : > { %v7590_v9 = vpop.eup %7589  ;;  %v6072_v52 = vadd.f32 %v7588_v4, %v6071_v6  ;;  %v6066_v48 = vadd.f32 %v6065_v37, %v6064_v50 }
 0x835   : > { %6371 = vrot.lane.b32.xlu0 %v10515_v26, %s12467_s19  ;;  %6373 = vrot.lane.b32.xlu1 %v10517_v62, %s12467_s19  ;;  %v6088_v10 = vadd.f32 %v7590_v9, %v6087_v51  ;;  %v6081_v2 = vrot.slane %v6080_v29, 4 }
 0x836   : > { %v6073_v43 = vrot.slane %v6072_v52, 4  ;;  %v6067_v7 = vrot.slane %v6066_v48, 2 }
 0x837   : > { %v6089_v14 = vrot.slane %v6088_v10, 4  ;;  %v6082_v22 = vadd.f32 %v6081_v2, %v6080_v29 }
 0x838   : > { %v6074_v42 = vadd.f32 %v6073_v43, %v6072_v52  ;;  %v6068_v19 = vadd.f32 %v6067_v7, %v6066_v48 }
 0x839   : > { %6375 = vrot.lane.b32.xlu0 %v10527_v38, %s12467_s19  ;;  %6377 = vrot.lane.b32.xlu1 %v10529_v17, %s12467_s19  ;;  %v6090_v23 = vadd.f32 %v6089_v14, %v6088_v10  ;;  %v6083_v16 = vrot.slane %v6082_v22, 2 }
 0x83a   : > { %v6075_v21 = vrot.slane %v6074_v42, 2  ;;  %v6069_v49 = vrot.slane %v6068_v19, 1 }
 0x83b   : > { %v6091_v53 = vrot.slane %v6090_v23, 2  ;;  %v6084_v47 = vadd.f32 %v6083_v16, %v6082_v22 }
 0x83c   : > { %v6076_v15 = vadd.f32 %v6075_v21, %v6074_v42  ;;  %v6070_v54 = vadd.f32 %v6069_v49, %v6068_v19 }
 0x83d   : > { %6411 = vrot.lane.b32.xlu0 %v10515_v26, %s12468_s24  ;;  %6413 = vrot.lane.b32.xlu1 %v10517_v62, %s12468_s24  ;;  %v6092_v41 = vadd.f32 %v6091_v53, %v6090_v23  ;;  %v6085_v30 = vrot.slane %v6084_v47, 1 }
 0x83e   : > { %v6077_v6 = vrot.slane %v6076_v15, 1  ;;  %7591 = vrcp.f32 %v6070_v54 }
 0x83f   : > { %v6093_v51 = vrot.slane %v6092_v41, 1  ;;  %v6086_v33 = vadd.f32 %v6085_v30, %v6084_v47 }
 0x840   : > { %v6078_v63 = vadd.f32 %v6077_v6, %v6076_v15  ;;  %v6266_v6 = vmul.f32 %v10529_v17, %v12471_v8  ;;  %v12473_v8 = vld [vmem:[#allocation102_spill] sm:$0xff] }
 0x841   : > { %6415 = vrot.lane.b32.xlu0 %v10527_v38, %s12468_s24  ;;  %6417 = vrot.lane.b32.xlu1 %v10529_v17, %s12468_s24  ;;  %v6094_v44 = vadd.f32 %v6093_v51, %v6092_v41  ;;  %7593 = vrcp.f32 %v6086_v33 }
 0x842   : > { %7595 = vrcp.f32 %v6078_v63 }
 0x843   : > { %7597 = vrcp.f32 %v6094_v44 }
 0x84b   : > { %v7592_v41 = vpop.eup %7591 }
 0x84c   : > { %v10675_v44 = vmul.f32 %v7592_v41, %v7576_v60  ;;  %v10744_v16 = vmul.f32 %v7592_v41, %v10639_v61  ;;  %v12470_v61 = vld [vmem:[#allocation109_spill] sm:$0xff] }
 0x84d   : > { %v6264_v41 = vmul.f32 %v10517_v62, %v12470_v61 }
 0x84e   : > { %v7594_v54 = vpop.eup %7593  ;;  %v6270_v23 = vrot.slane %v10675_v44, %v12419_v31 }
 0x84f   : > { %v7596_v19 = vpop.eup %7595  ;;  %v10677_v33 = vmul.f32 %v7594_v54, %v7586_v18  ;;  %v10750_v20 = vmul.f32 %v7594_v54, %v10641_v11  ;;  %v12472_v54 = vld [vmem:[#allocation98_spill] sm:$0xff] }
 0x850   : > { %v7598_v2 = vpop.eup %7597  ;;  %v10679_v14 = vmul.f32 %v7596_v19, %v7588_v4  ;;  %v10801_v11 = vmul.f32 %v6270_v23, %v6263_v25  ;;  %v12475_v23 = vld [vmem:[#allocation113_spill] sm:$0xff] }
 0x851   : > { %v10681_v48 = vmul.f32 %v7598_v2, %v7590_v9  ;;  %v6278_v21 = vrot.slane %v10677_v33, %v12419_v31  ;;  %v10747_v9 = vmul.f32 %v7596_v19, %v10643_v12  ;;  %v10777_v19 = vmul.f32 %v7598_v2, %v10645_v40 }
 0x852   : > { %v6274_v7 = vrot.slane %v10679_v14, %v12419_v31  ;;  %v6265_v58 = vmul.f32 %v10527_v38, %v12475_v23  ;;  %v12488_v35 = vrot.slane %v10679_v14, %v12414_v32 }
 0x853   : > { %v6282_v47 = vrot.slane %v10681_v48, %v12419_v31 }
 0x854   : > { %v10814_v57 = vmul.f32 %v6274_v7, %v6264_v41  ;;  %v12477_v41 = vld [vmem:[#allocation106_spill] sm:$0xff] }
 0x877   : > { %v10655_v50 = vpop.permute.xlu0 %6107  ;;  %v10657_v29 = vpop.permute.xlu1 %6109 }
 0x878   : > { %v6117_v62 = vsel %vm1862_vm12, %v10655_v50, %v10657_v29 }
 0x87b   : > { %v10659_v52 = vpop.permute.xlu0 %6111  ;;  %v10661_v10 = vpop.permute.xlu1 %6113 }
 0x87c   : > { %v6118_v61 = vsel %vm1862_vm12, %v10661_v10, %v10655_v50  ;;  %v6116_v25 = vsel %vm1862_vm12, %v10657_v29, %v10659_v52  ;;  %v6115_v38 = vsel %vm1862_vm12, %v10659_v52, %v10661_v10  ;;  %v12483_v10 = vld [vmem:[#allocation101_spill] sm:$0xff]  ;;  %vm12492_vm12 = vmmov %vm12474_vm1 }
 0x87d   : > { %v6119_v17 = vmul.f32 %v6118_v61, %v12473_v8  ;;  %v12478_v8 = vld [vmem:[#allocation100_spill] sm:$0xff] }
 0x87e   : > { %v6120_v1 = vmul.f32 %v6117_v62, %v12478_v8 }
 0x87f   : > { %v10663_v53 = vpop.permute.xlu0 %6143  ;;  %v10665_v37 = vpop.permute.xlu1 %6145 }
 0x880   : > { %v6153_v40 = vsel %vm1901_vm10, %v10663_v53, %v10665_v37 }
 0x883   : > { %v10667_v49 = vpop.permute.xlu0 %6147  ;;  %v10669_v15 = vpop.permute.xlu1 %6149 }
 0x884   : > { %v6154_v26 = vsel %vm1901_vm10, %v10669_v15, %v10663_v53  ;;  %v6152_v53 = vsel %vm1901_vm10, %v10665_v37, %v10667_v49  ;;  %v12476_v37 = vld [vmem:[#allocation96_spill] sm:$0xff]  ;;  %v6151_v7 = vsel %vm1901_vm10, %v10667_v49, %v10669_v15  ;;  %v10845_v49 = vmul.f32 %v6282_v47, %v6266_v6  ;;  %v12484_v47 = vld [vmem:[#allocation99_spill] sm:$0xff] }
 0x885   : > { %v6155_v30 = vmul.f32 %v6154_v26, %v12472_v54  ;;  %v6156_v55 = vmul.f32 %v6153_v40, %v12476_v37  ;;  %v12479_v40 = vld [vmem:[#allocation97_spill] sm:$0xff]  ;;  %v12480_v15 = vrot.slane %v10675_v44, %v12414_v32  ;;  %v12482_v37 = vld [vmem:[#allocation114_spill] sm:$0xff]  ;;  %v6158_v6 = vmul.f32 %v6151_v7, %v12484_v47 }
 0x886   : > { %v6157_v23 = vmul.f32 %v6152_v53, %v12479_v40  ;;  %v6121_v53 = vmul.f32 %v6116_v25, %v12483_v10  ;;  %v10862_v40 = vmul.f32 %v6278_v21, %v6265_v58  ;;  %v12490_v10 = vld [vmem:[#allocation105_spill] sm:$0xff]  ;;  %v12491_v21 = vld [vmem:[#allocation108_spill] sm:$0xff] }
 0x887   : > { %v10671_v43 = vpop.permute.xlu0 %6183  ;;  %v10673_v63 = vpop.permute.xlu1 %6185 }
 0x888   : > { %v6193_v29 = vsel %vm2155_vm14, %v10671_v43, %v10673_v63 }
 0x88b   : > { %v10683_v22 = vpop.permute.xlu0 %6187  ;;  %v10685_v42 = vpop.permute.xlu1 %6189 }
 0x88c   : > { %v6194_v2 = vsel %vm2155_vm14, %v10685_v42, %v10671_v43  ;;  %v6175_v43 = vmul.f32 %v12480_v15, %v6155_v30  ;;  %v12486_v30 = vld [vmem:[#allocation103_spill] sm:$0xff]  ;;  %v6191_v58 = vsel %vm2155_vm14, %v10683_v22, %v10685_v42  ;;  %v12496_v42 = vrot.slane %v10677_v33, %v12413_v5 }
 0x88d   : > { %v6195_v26 = vmul.f32 %v6194_v2, %v12477_v41  ;;  %v6192_v2 = vsel %vm2155_vm14, %v10673_v63, %v10683_v22  ;;  %v12485_v41 = vld [vmem:[#allocation104_spill] sm:$0xff]  ;;  %v6122_v15 = vmul.f32 %v6115_v38, %v12486_v30  ;;  %v12487_v63 = vrot.slane %v10675_v44, %v12413_v5  ;;  %vm12499_vm14 = vmmov %vm12474_vm1 }
 0x88e   : > { %v6196_v8 = vmul.f32 %v6193_v29, %v12485_v41  ;;  %v6197_v29 = vmul.f32 %v6192_v2, %v12490_v10  ;;  %v12495_v41 = vrot.slane %v10675_v44, %v12418_v56 }
 0x88f   : > { %v10709_v51 = vpop.permute.xlu0 %6223  ;;  %v10711_v18 = vpop.permute.xlu1 %6225  ;;  %v6139_v28 = vmul.f32 %v12487_v63, %v6119_v17 }
 0x890   : > { %v6233_v62 = vsel %vm12481_vm13, %v10709_v51, %v10711_v18 }
 0x891   : > { %v6236_v38 = vmul.f32 %v6233_v62, %v12491_v21  ;;  %v6179_v47 = vadd.f32 %v6175_v43, %v6139_v28  ;;  %v6141_v62 = vmul.f32 %v12496_v42, %v6121_v53 }
 0x893   : > { %v10737_v4 = vpop.permute.xlu0 %6227  ;;  %v10739_v60 = vpop.permute.xlu1 %6229 }
 0x894   : > { %v6234_v50 = vsel %vm12474_vm1, %v10739_v60, %v10709_v51  ;;  %v6176_v51 = vmul.f32 %v12488_v35, %v6156_v55  ;;  %v6232_v35 = vsel %vm12492_vm12, %v10711_v18, %v10737_v4  ;;  %v12493_v55 = vrot.slane %v10679_v14, %v12413_v5 }
 0x895   : > { %v6235_v52 = vmul.f32 %v6234_v50, %v12482_v37  ;;  %v12489_v50 = vrot.slane %v10675_v44, %v12415_v27  ;;  %v12497_v18 = vrot.slane %v10681_v48, %v12414_v32  ;;  %v6231_v28 = vsel %vm12499_vm14, %v10737_v4, %v10739_v60 }
 0x896   : > { %v6140_v17 = vmul.f32 %v12493_v55, %v6120_v1  ;;  %v12498_v1 = vrot.slane %v10679_v14, %v12415_v27  ;;  %vm12502_vm1 = vcmp.lt.s32.totalorder %v12283_v59, 126  ;;  %v12504_v60 = vrot.slane %v10677_v33, %v12415_v27 }
 0x897   : > { %v10783_v34 = vpop.permute.xlu0 %6291  ;;  %v10785_v12 = vpop.permute.xlu1 %6293  ;;  %v6215_v25 = vmul.f32 %v12489_v50, %v6195_v26  ;;  %v12494_v26 = vrot.slane %v10677_v33, %v12414_v32  ;;  %v6255_v22 = vmul.f32 %v12495_v41, %v6235_v52  ;;  %v6178_v30 = vmul.f32 %v12497_v18, %v6158_v6  ;;  %v12501_v50 = vld [vmem:[#allocation112_spill] sm:$0xff]  ;;  %vm12507_vm13 = vmmov %vm12502_vm1 }
 0x898   : > { %v6216_v63 = vmul.f32 %v12498_v1, %v6196_v8  ;;  %v6237_v10 = vmul.f32 %v6232_v35, %v12501_v50  ;;  %v6301_v53 = vsel %vm12502_vm1, %v10783_v34, %v10785_v12  ;;  %v12503_v8 = vrot.slane %v10681_v48, %v12413_v5  ;;  %vm12512_vm14 = vmmov %vm12502_vm1 }
 0x899   : > { %v6177_v2 = vmul.f32 %v12494_v26, %v6157_v23  ;;  %v12500_v23 = vld [vmem:[#allocation107_spill] sm:$0xff]  ;;  %v6219_v52 = vadd.f32 %v6215_v25, %v6179_v47  ;;  %v6180_v26 = vadd.f32 %v6176_v51, %v6140_v17  ;;  %v6217_v4 = vmul.f32 %v12504_v60, %v6197_v29 }
 0x89a   : > { %v6198_v43 = vmul.f32 %v6191_v58, %v12500_v23  ;;  %v6142_v55 = vmul.f32 %v12503_v8, %v6122_v15  ;;  %v12505_v25 = vrot.slane %v10679_v14, %v12418_v56  ;;  %v12506_v47 = vld [vmem:[#allocation115_spill] sm:$0xff]  ;;  %v12508_v15 = vld [vmem:[#allocation116_spill] sm:$0xff]  ;;  %vm12509_vm12 = vcmp.lt.s32.totalorder %v12283_v59, 98 }
 0x89b   : > { %v6296_v54 = vpop.permute.xlu0 %6295  ;;  %v10837_v61 = vpop.permute.xlu1 %6297  ;;  %v6181_v35 = vadd.f32 %v6177_v2, %v6141_v62  ;;  %v6238_v41 = vmul.f32 %v6231_v28, %v12506_v47  ;;  %v6259_v42 = vadd.f32 %v6255_v22, %v6219_v52  ;;  %v6220_v23 = vadd.f32 %v6216_v63, %v6180_v26  ;;  %vm12513_vm1 = vmmov %vm12509_vm12  ;;  %v12514_v52 = vld [vmem:[#allocation117_spill] sm:$0xff]  ;;  %v12521_v47 = vld [vmem:[#allocation120_spill] sm:$0xff] }
 0x89c   : > { %v6256_v58 = vmul.f32 %v12505_v25, %v6236_v38  ;;  %v6300_v18 = vsel %vm12507_vm13, %v10785_v12, %v6296_v54  ;;  %v6182_v1 = vadd.f32 %v6178_v30, %v6142_v55  ;;  %v6303_v51 = vmul.f32 %v6301_v53, %v12508_v15  ;;  %v12516_v26 = vld [vmem:[#allocation121_spill] sm:$0xff]  ;;  %vm12517_vm13 = vmmov %vm12513_vm1 }
 0x89d   : > { %v12510_v29 = vrot.slane %v10681_v48, %v12415_v27  ;;  %v12511_v38 = vrot.slane %v10677_v33, %v12418_v56  ;;  %v6299_v22 = vsel %vm12512_vm14, %v6296_v54, %v10837_v61  ;;  %v6221_v63 = vadd.f32 %v6217_v4, %v6181_v35 }
 0x89e   : > { %v6260_v28 = vadd.f32 %v6256_v58, %v6220_v23  ;;  %v6304_v53 = vmul.f32 %v6300_v18, %v12514_v52  ;;  %v12515_v8 = vrot.slane %v10681_v48, %v12418_v56  ;;  %v6287_v55 = vadd.f32 %v10801_v11, %v6259_v42  ;;  %v12520_v58 = vld [vmem:[#allocation118_spill] sm:$0xff]  ;;  %v12523_v23 = vld [vmem:[#allocation124_spill] sm:$0xff] }
 0x89f   : > { %v6332_v37 = vpop.permute.xlu0 %6331  ;;  %v6334_v7 = vpop.permute.xlu1 %6333  ;;  %v6218_v50 = vmul.f32 %v12510_v29, %v6198_v43  ;;  %v6257_v2 = vmul.f32 %v12511_v38, %v6237_v10  ;;  %v12518_v60 = vrot.slane %v10675_v44, %v12422_v3  ;;  %v6305_v35 = vmul.f32 %v6299_v22, %v12520_v58  ;;  %v12525_v38 = vld [vmem:[#allocation122_spill] sm:$0xff] }
 0x8a0   : > { %v6341_v17 = vsel %vm12509_vm12, %v6332_v37, %v6334_v7  ;;  %v6258_v10 = vmul.f32 %v12515_v8, %v6238_v41  ;;  %vm12519_vm12 = vmmov %vm12512_vm14  ;;  %v12530_v8 = vld [vmem:[#allocation123_spill] sm:$0xff] }
 0x8a1   : > { %v6343_v54 = vmul.f32 %v6341_v17, %v12516_v26  ;;  %v6323_v4 = vmul.f32 %v12518_v60, %v6303_v51  ;;  %v6302_v25 = vsel %vm12519_vm12, %v10837_v61, %v10783_v34  ;;  %v6222_v18 = vadd.f32 %v6218_v50, %v6182_v1  ;;  %vm12522_vm14 = vmmov %vm12513_vm1 }
 0x8a2   : > { %v6261_v11 = vadd.f32 %v6257_v2, %v6221_v63  ;;  %v12524_v51 = vrot.slane %v10679_v14, %v12422_v3  ;;  %v6288_v50 = vadd.f32 %v10814_v57, %v6260_v28  ;;  %v12527_v2 = vrot.slane %v10675_v44, %v12423_v46 }
 0x8a3   : > { %v6336_v6 = vpop.permute.xlu0 %6335  ;;  %v6338_v21 = vpop.permute.xlu1 %6337  ;;  %v6262_v1 = vadd.f32 %v6258_v10, %v6222_v18  ;;  %v12528_v63 = vrot.slane %v10677_v33, %v12422_v3  ;;  %v12531_v57 = vrot.slane %v10675_v44, %v12426_v36  ;;  %v12532_v10 = vld [vmem:[#allocation125_spill] sm:$0xff] }
 0x8a4   : > { %v6340_v12 = vsel %vm12513_vm1, %v6334_v7, %v6336_v6  ;;  %v6339_v7 = vsel %vm12517_vm13, %v6336_v6, %v6338_v21  ;;  %v6342_v42 = vsel %vm12522_vm14, %v6338_v21, %v6332_v37  ;;  %v6324_v29 = vmul.f32 %v12524_v51, %v6304_v53  ;;  %v12526_v37 = vld [vmem:[#allocation119_spill] sm:$0xff] }
 0x8a5   : > { %v6344_v41 = vmul.f32 %v6340_v12, %v12521_v47  ;;  %v6345_v52 = vmul.f32 %v6339_v7, %v12525_v38  ;;  %v6306_v21 = vmul.f32 %v6302_v25, %v12526_v37  ;;  %v6363_v22 = vmul.f32 %v12527_v2, %v6343_v54 }
 0x8a6   : > { %v6327_v12 = vadd.f32 %v6323_v4, %v6287_v55  ;;  %v6325_v53 = vmul.f32 %v12528_v63, %v6305_v35  ;;  %v6346_v26 = vmul.f32 %v6342_v42, %v12530_v8  ;;  %v12533_v55 = vld [vmem:[#allocation126_spill] sm:$0xff]  ;;  %v6328_v58 = vadd.f32 %v6324_v29, %v6288_v50  ;;  %v12537_v29 = vld [vmem:[#allocation127_spill] sm:$0xff]  ;;  %v7630_v8 = vld [vmem:[%s11784_s12 + $0x38] ss:$0 sm:$0xff] }
 0x8a7   : > { %v6372_v62 = vpop.permute.xlu0 %6371  ;;  %v6374_v30 = vpop.permute.xlu1 %6373  ;;  %v6289_v35 = vadd.f32 %v10862_v40, %v6261_v11  ;;  %v12534_v47 = vrot.slane %v10677_v33, %v12423_v46  ;;  %v6290_v18 = vadd.f32 %v10845_v49, %v6262_v1  ;;  %v12535_v42 = vrot.slane %v10681_v48, %v12422_v3 }
 0x8a8   : > { %v6381_v43 = vsel %vm2912_vm15, %v6372_v62, %v6374_v30  ;;  %v12538_v49 = vrot.slane %v10679_v14, %v12426_v36  ;;  %v12540_v50 = vrot.slane %v10744_v16, %v12413_v5 }
 0x8a9   : > { %v6383_v6 = vmul.f32 %v6381_v43, %v12523_v23  ;;  %v6367_v23 = vadd.f32 %v6363_v22, %v6327_v12  ;;  %v6329_v40 = vadd.f32 %v6325_v53, %v6289_v35 }
 0x8ab   : > { %v6376_v15 = vpop.permute.xlu0 %6375  ;;  %v6378_v17 = vpop.permute.xlu1 %6377  ;;  %v6403_v28 = vmul.f32 %v12531_v57, %v6383_v6  ;;  %v7627_v6 = vld [vmem:[%s11784_s12 + $0x20] ss:$0 sm:$0xff] }
 0x8ac   : > { %v6380_v34 = vsel %vm2912_vm15, %v6374_v30, %v6376_v15  ;;  %v6379_v61 = vsel %vm2912_vm15, %v6376_v15, %v6378_v17  ;;  %v12529_v30 = vrot.slane %v10679_v14, %v12423_v46  ;;  %v6382_v54 = vsel %vm2912_vm15, %v6378_v17, %v6372_v62 }
 0x8ad   : > { %v6384_v7 = vmul.f32 %v6380_v34, %v12532_v10  ;;  %v6385_v60 = vmul.f32 %v6379_v61, %v12533_v55  ;;  %v6326_v62 = vmul.f32 %v12535_v42, %v6306_v21  ;;  %v12536_v17 = vrot.slane %v10681_v48, %v12423_v46 }
 0x8ae   : > { %v6364_v43 = vmul.f32 %v12529_v30, %v6344_v41  ;;  %v6365_v41 = vmul.f32 %v12534_v47, %v6345_v52  ;;  %v6386_v38 = vmul.f32 %v6382_v54, %v12537_v29  ;;  %v6407_v52 = vadd.f32 %v6403_v28, %v6367_v23  ;;  %v7629_v30 = vld [vmem:[%s11784_s12 + $0x30] ss:$0 sm:$0xff]  ;;  %v11071_v23 = vld [vmem:[%s11786_s14 + $0x8] sm:$0xff] }
 0x8af   : > { %v6412_v4 = vpop.permute.xlu0 %6411  ;;  %v6414_v25 = vpop.permute.xlu1 %6413  ;;  %v6366_v51 = vmul.f32 %v12536_v17, %v6346_v26  ;;  %v6404_v34 = vmul.f32 %v12538_v49, %v6384_v7  ;;  %v12539_v61 = vrot.slane %v10677_v33, %v12426_v36  ;;  %v7628_v33 = vld [vmem:[%s11784_s12 + $0x28] ss:$0 sm:$0xff]  ;;  %v6330_v57 = vadd.f32 %v6326_v62, %v6290_v18  ;;  %v6451_v62 = vld [vmem:[%s11786_s14] sm:$0xff] }
 0x8b0   : > { %v6421_v44 = vsel %vm3066_vm3, %v6412_v4, %v6414_v25  ;;  %v6368_v11 = vadd.f32 %v6364_v43, %v6328_v58  ;;  %v6369_v22 = vadd.f32 %v6365_v41, %v6329_v40  ;;  %v12541_v28 = vrot.slane %v10681_v48, %v12426_v36 }
 0x8b1   : > { %v6423_v15 = vmul.f32 %v7627_v6, %v6421_v44  ;;  %v6405_v1 = vmul.f32 %v12539_v61, %v6385_v60  ;;  %v6442_v7 = vrot.slane %v10777_v19, %v12413_v5  ;;  %v12542_v60 = vrot.slane %v10747_v9, %v12413_v5 }
 0x8b2   : > { %v6406_v10 = vmul.f32 %v12541_v28, %v6386_v38  ;;  %v6408_v54 = vadd.f32 %v6404_v34, %v6368_v11  ;;  %v6370_v35 = vadd.f32 %v6366_v51, %v6330_v57  ;;  %v6512_v6 = vrot.slane %v6451_v62, %v12414_v32 }
 0x8b3   : > { %v6443_v37 = vmul.f32 %v12540_v50, %v6423_v15  ;;  %v6416_v21 = vpop.permute.xlu0 %6415  ;;  %v6418_v2 = vpop.permute.xlu1 %6417  ;;  %v6409_v55 = vadd.f32 %v6405_v1, %v6369_v22  ;;  %v6476_v15 = vrot.slane %v6451_v62, %v12419_v31  ;;  %v6516_v40 = vrot.slane %v6451_v62, %v12422_v3 }
 0x8b4   : > { %v6420_v12 = vsel %vm3066_vm3, %v6414_v25, %v6416_v21  ;;  %v6419_v63 = vsel %vm3066_vm3, %v6416_v21, %v6418_v2  ;;  %v6422_v14 = vsel %vm3066_vm3, %v6418_v2, %v6412_v4  ;;  %v12543_v25 = vrot.slane %v10750_v20, %v12413_v5  ;;  %v4892_v20 = vld [vmem:[%s11780_s8 + $0x18] sm:$0xf] }
 0x8b5   : > { %v11020_v53 = vadd.f32 %v6443_v37, %v6407_v52  ;;  %v6424_v16 = vmul.f32 %v7628_v33, %v6420_v12  ;;  %v6425_v43 = vmul.f32 %v7629_v30, %v6419_v63  ;;  %v6426_v26 = vmul.f32 %v7630_v8, %v6422_v14 }
 0x8b6   : > { %v6410_v44 = vadd.f32 %v6406_v10, %v6370_v35  ;;  %v6472_v51 = vrot.slane %v6451_v62, %v12413_v5  ;;  %v6520_v29 = vrot.slane %v11071_v23, %v12414_v32  ;;  %v6524_v38 = vrot.slane %v11071_v23, %v12422_v3 }
 0x8b7   : > { %v6444_v4 = vmul.f32 %v12542_v60, %v6424_v16  ;;  %v6445_v58 = vmul.f32 %v12543_v25, %v6425_v43  ;;  %6455 = vrot.lane.b32.xlu0 %v11020_v53, %s12288_s18  ;;  %v6446_v48 = vmul.f32 %v6442_v7, %v6426_v26  ;;  %v6572_v52 = vrot.slane %v6451_v62, %v12423_v46 }
 0x8b8   : > { %v6480_v49 = vrot.slane %v11071_v23, %v12413_v5  ;;  %v6484_v34 = vrot.slane %v11071_v23, %v12419_v31  ;;  %v6532_v61 = vrot.slane %v6512_v6, %v12414_v32  ;;  %v6496_v1 = vrot.slane %v6476_v15, %v12413_v5 }
 0x8b9   : > { %v6448_v47 = vadd.f32 %v6444_v4, %v6408_v54  ;;  %v11044_v41 = vadd.f32 %v6445_v58, %v6409_v55  ;;  %v6450_v9 = vadd.f32 %v6446_v48, %v6410_v44  ;;  %v6536_v50 = vrot.slane %v6516_v40, %v12414_v32 }
 0x8ba   : > { %v6492_v2 = vrot.slane %v6472_v51, %v12413_v5  ;;  %v6540_v12 = vrot.slane %v6520_v29, %v12414_v32  ;;  %v6544_v63 = vrot.slane %v6524_v38, %v12414_v32  ;;  %v6592_v14 = vrot.slane %v6572_v52, %v12415_v27 }
 0x8bb   : > { %6457 = vrot.lane.b32.xlu1 %v6448_v47, %s12288_s18  ;;  %6459 = vrot.lane.b32.xlu0 %v11044_v41, %s12288_s18  ;;  %v6568_v33 = vrot.slane %v6451_v62, %v12415_v27  ;;  %v6580_v16 = vrot.slane %v11071_v23, %v12423_v46  ;;  %v6628_v30 = vrot.slane %v6451_v62, %v12426_v36  ;;  %vm12544_vm15 = vcmp.lt.s32.totalorder %v12283_v59, 2 }
 0x8bc   : > { %v6500_v43 = vrot.slane %v6480_v49, %v12413_v5  ;;  %v6504_v8 = vrot.slane %v6484_v34, %v12413_v5  ;;  %v6576_v57 = vrot.slane %v11071_v23, %v12415_v27  ;;  %v6545_v28 = vmul.f32 %v6532_v61, %v11020_v53  ;;  %vm12545_vm3 = vmmov %vm12544_vm15 }
 0x8bd   : > { %v6546_v10 = vmul.f32 %v6536_v50, %v6448_v47  ;;  %v6624_v60 = vrot.slane %v6451_v62, %v12418_v56  ;;  %v6548_v25 = vmul.f32 %v6544_v63, %v6450_v9  ;;  %v6636_v35 = vrot.slane %v11071_v23, %v12426_v36  ;;  %vm12546_vm1 = vmmov %vm12545_vm3 }
 0x8be   : > { %v6588_v44 = vrot.slane %v6568_v33, %v12415_v27  ;;  %v6547_v50 = vmul.f32 %v6540_v12, %v11044_v41  ;;  %vm12547_vm13 = vmmov %vm12546_vm1 }
 0x8bf   : > { %6461 = vrot.lane.b32.xlu1 %v6450_v9, %s12288_s18  ;;  %6553 = vrot.lane.b32.xlu0 %v11020_v53, %s12264_s28  ;;  %v6644_v51 = vrot.slane %v6624_v60, %v12418_v56  ;;  %v6453_v60 = vld [vmem:[%s11787_s15] sm:$0xff] }
 0x8c3   : > { %6555 = vrot.lane.b32.xlu1 %v6448_v47, %s12264_s28  ;;  %6557 = vrot.lane.b32.xlu0 %v11044_v41, %s12264_s28 }
 0x8c7   : > { %6559 = vrot.lane.b32.xlu1 %v6450_v9, %s12264_s28  ;;  %6609 = vrot.lane.b32.xlu0 %v11020_v53, %s12464_s25  ;;  %v6600_v53 = vrot.slane %v6580_v16, %v12415_v27 }
 0x8cb   : > { %6611 = vrot.lane.b32.xlu1 %v6448_v47, %s12464_s25  ;;  %6613 = vrot.lane.b32.xlu0 %v11044_v41, %s12464_s25  ;;  %v6648_v47 = vrot.slane %v6628_v30, %v12418_v56 }
 0x8cf   : > { %6615 = vrot.lane.b32.xlu1 %v6450_v9, %s12464_s25  ;;  %4910 = vperm.xlu0 %7527, %v4892_v20   ;;  %v6596_v20 = vrot.slane %v6576_v57, %v12415_v27  ;;  %s12548_s25 = smov 16  }
 0x929   : > { %v6456_v19 = vpop.permute.xlu0 %6455 }
 0x92d   : > { %v6458_v18 = vpop.permute.xlu1 %6457  ;;  %v6460_v42 = vpop.permute.xlu0 %6459 }
 0x92e   : > { %v6464_v22 = vsel %vm1240_vm6, %v6458_v18, %v6460_v42  ;;  %v6465_v4 = vsel %vm1240_vm6, %v6456_v19, %v6458_v18 }
 0x92f   : > { %v6506_v7 = vmul.f32 %v6496_v1, %v6464_v22  ;;  %v6505_v18 = vmul.f32 %v6492_v2, %v6465_v4  ;;  %v11164_v4 = vld [vmem:[%s11787_s15 + $0x8] sm:$0xff] }
 0x931   : > { %v6462_v11 = vpop.permute.xlu1 %6461  ;;  %v6554_v17 = vpop.permute.xlu0 %6553  ;;  %v6550_v6 = vadd.f32 %v6546_v10, %v6506_v7  ;;  %v6549_v22 = vadd.f32 %v6545_v28, %v6505_v18 }
 0x932   : > { %v6466_v58 = vsel %vm1240_vm6, %v6462_v11, %v6456_v19  ;;  %v6632_v19 = vrot.slane %v11071_v23, %v12418_v56  ;;  %v6463_v29 = vsel %vm1240_vm6, %v6460_v42, %v6462_v11 }
 0x933   : > { %v6508_v15 = vmul.f32 %v6504_v8, %v6466_v58  ;;  %v6507_v63 = vmul.f32 %v6500_v43, %v6463_v29 }
 0x934   : > { %v6652_v2 = vrot.slane %v6632_v19, %v12418_v56 }
 0x935   : > { %v6556_v37 = vpop.permute.xlu1 %6555  ;;  %v6558_v21 = vpop.permute.xlu0 %6557  ;;  %v6552_v42 = vadd.f32 %v6548_v25, %v6508_v15  ;;  %v6551_v43 = vadd.f32 %v6547_v50, %v6507_v63  ;;  %v6782_v15 = vrot.slane %v6453_v60, %v12423_v46  ;;  %v6786_v63 = vrot.slane %v11164_v4, %v12415_v27 }
 0x936   : > { %v6563_v26 = vsel %vm973_vm5, %v6554_v17, %v6556_v37  ;;  %v6562_v38 = vsel %vm973_vm5, %v6556_v37, %v6558_v21 }
 0x937   : > { %v6602_v48 = vmul.f32 %v6592_v14, %v6563_v26  ;;  %v6603_v37 = vmul.f32 %v6596_v20, %v6562_v38  ;;  %v6686_v20 = vrot.slane %v6453_v60, %v12419_v31 }
 0x939   : > { %v6560_v54 = vpop.permute.xlu1 %6559  ;;  %v6610_v55 = vpop.permute.xlu0 %6609  ;;  %v6606_v49 = vadd.f32 %v6602_v48, %v6550_v6  ;;  %v6607_v10 = vadd.f32 %v6603_v37, %v6551_v43  ;;  %v6730_v48 = vrot.slane %v11164_v4, %v12414_v32  ;;  %v6838_v37 = vrot.slane %v6453_v60, %v12426_v36 }
 0x93a   : > { %v6561_v62 = vsel %vm973_vm5, %v6558_v21, %v6560_v54  ;;  %v6564_v9 = vsel %vm973_vm5, %v6560_v54, %v6554_v17  ;;  %v6656_v17 = vrot.slane %v6636_v35, %v12418_v56  ;;  %v6726_v35 = vrot.slane %v6453_v60, %v12422_v3 }
 0x93b   : > { %v6601_v34 = vmul.f32 %v6588_v44, %v6564_v9  ;;  %v6604_v23 = vmul.f32 %v6600_v53, %v6561_v62  ;;  %v6682_v44 = vrot.slane %v6453_v60, %v12413_v5  ;;  %v6722_v53 = vrot.slane %v6453_v60, %v12414_v32 }
 0x93c   : > { %v6694_v62 = vrot.slane %v11164_v4, %v12419_v31  ;;  %v6690_v9 = vrot.slane %v11164_v4, %v12413_v5  ;;  %v6746_v19 = vrot.slane %v6726_v35, %v12414_v32 }
 0x93d   : > { %v6612_v40 = vpop.permute.xlu1 %6611  ;;  %v6614_v1 = vpop.permute.xlu0 %6613  ;;  %v6605_v30 = vadd.f32 %v6601_v34, %v6549_v22  ;;  %v6608_v8 = vadd.f32 %v6604_v23, %v6552_v42  ;;  %v6702_v29 = vrot.slane %v6682_v44, %v12413_v5  ;;  %v6742_v38 = vrot.slane %v6722_v53, %v12414_v32 }
 0x93e   : > { %v6619_v52 = vsel %vm12544_vm15, %v6610_v55, %v6612_v40  ;;  %v6618_v21 = vsel %vm12545_vm3, %v6612_v40, %v6614_v1  ;;  %v6750_v40 = vrot.slane %v6730_v48, %v12414_v32  ;;  %v6710_v34 = vrot.slane %v6690_v9, %v12413_v5 }
 0x93f   : > { %v6658_v61 = vmul.f32 %v6648_v47, %v6619_v52  ;;  %v6659_v26 = vmul.f32 %v6652_v2, %v6618_v21  ;;  %v6734_v47 = vrot.slane %v11164_v4, %v12422_v3  ;;  %v6802_v22 = vrot.slane %v6782_v15, %v12415_v27 }
 0x940   : > { %v6790_v42 = vrot.slane %v11164_v4, %v12423_v46  ;;  %v6834_v21 = vrot.slane %v6453_v60, %v12418_v56  ;;  %v6858_v53 = vrot.slane %v6838_v37, %v12418_v56 }
 0x941   : > { %v6662_v11 = vadd.f32 %v6658_v61, %v6606_v49  ;;  %v6616_v14 = vpop.permute.xlu1 %6615  ;;  %v6663_v7 = vadd.f32 %v6659_v26, %v6607_v10  ;;  %v6754_v52 = vrot.slane %v6734_v47, %v12414_v32  ;;  %v6714_v49 = vrot.slane %v6694_v62, %v12413_v5 }
 0x942   : > { %v6617_v33 = vsel %vm12546_vm1, %v6614_v1, %v6616_v14  ;;  %v6620_v16 = vsel %vm12547_vm13, %v6616_v14, %v6610_v55  ;;  %v6842_v10 = vrot.slane %v11164_v4, %v12418_v56  ;;  %v6810_v35 = vrot.slane %v6790_v42, %v12415_v27 }
 0x943   : > { %v6657_v41 = vmul.f32 %v6644_v51, %v6620_v16  ;;  %v6660_v12 = vmul.f32 %v6656_v17, %v6617_v33  ;;  %6667 = vrot.lane.b32.xlu0 %v6662_v11, %s12291_s20  ;;  %v6778_v51 = vrot.slane %v6453_v60, %v12415_v27  ;;  %v6706_v17 = vrot.slane %v6686_v20, %v12413_v5 }
 0x944   : > { %v6756_v23 = vmul.f32 %v6746_v19, %v6662_v11  ;;  %v6854_v47 = vrot.slane %v6834_v21, %v12418_v56  ;;  %v6862_v15 = vrot.slane %v6842_v10, %v12418_v56 }
 0x945   : > { %v6661_v57 = vadd.f32 %v6657_v41, %v6605_v30  ;;  %v11140_v28 = vadd.f32 %v6660_v12, %v6608_v8  ;;  %v6757_v30 = vmul.f32 %v6750_v40, %v6663_v7 }
 0x947   : > { %6665 = vrot.lane.b32.xlu1 %v6661_v57, %s12291_s20  ;;  %6671 = vrot.lane.b32.xlu0 %v11140_v28, %s12291_s20  ;;  %v6755_v33 = vmul.f32 %v6742_v38, %v6661_v57  ;;  %v6758_v20 = vmul.f32 %v6754_v52, %v11140_v28 }
 0x94a   : > { %v11156_v54 = vpop.permute.xlu0 %4910 }
 0x94b   : > { %6669 = vrot.lane.b32.xlu1 %v6663_v7, %s12291_s20  ;;  %6765 = vrot.lane.b32.xlu0 %v6662_v11, %s12548_s25 }
 0x94f   : > { %6763 = vrot.lane.b32.xlu1 %v6661_v57, %s12548_s25  ;;  %6769 = vrot.lane.b32.xlu0 %v11140_v28, %s12548_s25 }
 0x953   : > { %6767 = vrot.lane.b32.xlu1 %v6663_v7, %s12548_s25  ;;  %6821 = vrot.lane.b32.xlu0 %v6662_v11, %s12462_s27  ;;  %v6798_v11 = vrot.slane %v6778_v51, %v12415_v27 }
 0x957   : > { %6819 = vrot.lane.b32.xlu1 %v6661_v57, %s12462_s27  ;;  %6825 = vrot.lane.b32.xlu0 %v11140_v28, %s12462_s27 }
 0x95b   : > { %6823 = vrot.lane.b32.xlu1 %v6663_v7, %s12462_s27  ;;  %v6806_v7 = vrot.slane %v6786_v63, %v12415_v27  ;;  %s12549_s27 = smov 17  }
 0x9b5   : > { %v6668_v55 = vpop.permute.xlu0 %6667 }
 0x9b9   : > { %v6666_v25 = vpop.permute.xlu1 %6665  ;;  %v6672_v58 = vpop.permute.xlu0 %6671 }
 0x9ba   : > { %v6675_v2 = vsel %vm1520_vm8, %v6666_v25, %v6668_v55  ;;  %v6676_v57 = vsel %vm1520_vm8, %v6672_v58, %v6666_v25 }
 0x9bb   : > { %v6715_v41 = vmul.f32 %v6702_v29, %v6675_v2  ;;  %v6718_v9 = vmul.f32 %v6714_v49, %v6676_v57  ;;  %v12552_v57 = vld [vmem:[#allocation138_spill] sm:$0xff] }
 0x9bd   : > { %v6670_v18 = vpop.permute.xlu1 %6669  ;;  %v6766_v6 = vpop.permute.xlu0 %6765  ;;  %v6762_v49 = vadd.f32 %v6758_v20, %v6718_v9 }
 0x9be   : > { %v6674_v61 = vsel %vm1520_vm8, %v6668_v55, %v6670_v18  ;;  %v6673_v12 = vsel %vm1520_vm8, %v6670_v18, %v6672_v58  ;;  %v6846_v55 = vrot.slane %v11164_v4, %v12426_v36  ;;  %v6759_v58 = vadd.f32 %v6755_v33, %v6715_v41 }
 0x9bf   : > { %v6716_v16 = vmul.f32 %v6706_v17, %v6674_v61  ;;  %v6717_v62 = vmul.f32 %v6710_v34, %v6673_v12  ;;  %v11253_v33 = vadd.f32 %v10531_v39, %v11156_v54  ;;  %v12550_v12 = vld [vmem:[#allocation83_spill] sm:$0xff] }
 0x9c0   : > { %v6866_v40 = vrot.slane %v6846_v55, %v12418_v56 }
 0x9c1   : > { %v6764_v1 = vpop.permute.xlu1 %6763  ;;  %v6770_v50 = vpop.permute.xlu0 %6769  ;;  %v6760_v4 = vadd.f32 %v6756_v23, %v6716_v16  ;;  %v6761_v23 = vadd.f32 %v6757_v30, %v6717_v62  ;;  %v11261_v16 = vadd.f32 %v10539_v0, %v11156_v54  ;;  %v11265_v30 = vadd.f32 %v10533_v13, %v11156_v54 }
 0x9c2   : > { %v6773_v14 = vsel %vm598_vm0, %v6764_v1, %v6766_v6  ;;  %v6774_v8 = vsel %vm598_vm0, %v6770_v50, %v6764_v1  ;;  %v5173_v39 = vsel %vm1942_vm11, %v11253_v33, -inf }
 0x9c3   : > { %v6812_v60 = vmul.f32 %v6802_v22, %v6773_v14  ;;  %v6811_v48 = vmul.f32 %v6798_v11, %v6774_v8  ;;  %v11269_v8 = vadd.f32 %v10541_v24, %v11156_v54  ;;  %v5182_v0 = vsel %vm1942_vm11, %v11261_v16, -inf }
 0x9c4   : > { %v5191_v41 = vsel %vm1942_vm11, %v11265_v30, -inf }
 0x9c5   : > { %v6768_v43 = vpop.permute.xlu1 %6767  ;;  %v6822_v26 = vpop.permute.xlu0 %6821  ;;  %v6815_v38 = vadd.f32 %v6811_v48, %v6759_v58 }
 0x9c6   : > { %v6772_v44 = vsel %vm598_vm0, %v6766_v6, %v6768_v43  ;;  %v6771_v25 = vsel %vm598_vm0, %v6768_v43, %v6770_v50  ;;  %v6816_v6 = vadd.f32 %v6812_v60, %v6760_v4  ;;  %v5200_v43 = vsel %vm1942_vm11, %v11269_v8, -inf }
 0x9c7   : > { %v6813_v51 = vmul.f32 %v6806_v7, %v6772_v44  ;;  %v6814_v52 = vmul.f32 %v6810_v35, %v6771_v25  ;;  %vm5240_vm11 = vcmask 1045504  }
 0x9c9   : > { %v6820_v19 = vpop.permute.xlu1 %6819  ;;  %v6826_v18 = vpop.permute.xlu0 %6825  ;;  %v6817_v2 = vadd.f32 %v6813_v51, %v6761_v23  ;;  %v6818_v42 = vadd.f32 %v6814_v52, %v6762_v49 }
 0x9ca   : > { %v6829_v29 = vsel %vm1901_vm10, %v6820_v19, %v6822_v26  ;;  %v6830_v28 = vsel %vm1901_vm10, %v6826_v18, %v6820_v19 }
 0x9cb   : > { %v6868_v17 = vmul.f32 %v6858_v53, %v6829_v29  ;;  %v6867_v34 = vmul.f32 %v6854_v47, %v6830_v28 }
 0x9cd   : > { %v11227_v61 = vadd.f32 %v6868_v17, %v6816_v6  ;;  %v11229_v1 = vadd.f32 %v6867_v34, %v6815_v38  ;;  %v6824_v50 = vpop.permute.xlu1 %6823 }
 0x9ce   : > { %v6827_v22 = vsel %vm1901_vm10, %v6824_v50, %v6826_v18  ;;  %v6828_v63 = vsel %vm1901_vm10, %v6822_v26, %v6824_v50  ;;  %vm5171_vm10 = vcmask 1047554   ;;  %v12551_v26 = vld [vmem:[#allocation81_spill] sm:$0xff] }
 0x9cf   : > { %v6869_v14 = vmul.f32 %v6862_v15, %v6828_v63  ;;  %v6870_v11 = vmul.f32 %v6866_v40, %v6827_v22  ;;  %6897 = vrot.lane.b32.xlu0 %v11227_v61, %s12549_s27  ;;  %6895 = vrot.lane.b32.xlu1 %v11229_v1, %s12549_s27  ;;  %v5172_v13 = vsel %vm5171_vm10, %v10153_v45, -inf  ;;  %v5181_v24 = vsel %vm5171_vm10, %v12550_v12, -inf }
 0x9d0   : > { %v5174_v54 = vmax.f32 %v5172_v13, %v5173_v39  ;;  %v5190_v10 = vsel %vm5171_vm10, %v12551_v26, -inf  ;;  %v5183_v55 = vmax.f32 %v5181_v24, %v5182_v0  ;;  %v5199_v60 = vsel %vm5171_vm10, %v12552_v57, -inf }
 0x9d1   : > { %v11239_v37 = vadd.f32 %v6869_v14, %v6817_v2  ;;  %v11241_v21 = vadd.f32 %v6870_v11, %v6818_v42  ;;  %v5192_v7 = vmax.f32 %v5190_v10, %v5191_v41  ;;  %v5201_v35 = vmax.f32 %v5199_v60, %v5200_v43 }
 0x9d2   : > { %v5175_v48 = vrot.slane %v5174_v54, 4  ;;  %v5184_v44 = vrot.slane %v5183_v55, 4 }
 0x9d3   : > { %6899 = vrot.lane.b32.xlu1 %v11239_v37, %s12549_s27  ;;  %6901 = vrot.lane.b32.xlu0 %v11241_v21, %s12549_s27  ;;  %v5193_v53 = vrot.slane %v5192_v7, 4  ;;  %v5202_v47 = vrot.slane %v5201_v35, 4 }
 0x9d4   : > { %v5176_v20 = vmax.f32 %v5174_v54, %v5175_v48  ;;  %v5185_v62 = vmax.f32 %v5183_v55, %v5184_v44 }
 0x9d5   : > { %v5194_v4 = vmax.f32 %v5192_v7, %v5193_v53  ;;  %v5203_v25 = vmax.f32 %v5201_v35, %v5202_v47 }
 0x9d6   : > { %v5177_v58 = vrot.slane %v5176_v20, 2  ;;  %v5186_v9 = vrot.slane %v5185_v62, 2 }
 0x9d7   : > { %6935 = vrot.lane.b32.xlu1 %v11229_v1, %s12548_s25  ;;  %6937 = vrot.lane.b32.xlu0 %v11227_v61, %s12548_s25  ;;  %v5195_v19 = vrot.slane %v5194_v4, 2  ;;  %v5204_v18 = vrot.slane %v5203_v25, 2 }
 0x9d8   : > { %v5178_v15 = vmax.f32 %v5176_v20, %v5177_v58  ;;  %v5187_v40 = vmax.f32 %v5185_v62, %v5186_v9 }
 0x9d9   : > { %v5196_v6 = vmax.f32 %v5194_v4, %v5195_v19  ;;  %v5205_v51 = vmax.f32 %v5203_v25, %v5204_v18 }
 0x9da   : > { %v5179_v29 = vrot.slane %v5178_v15, 1  ;;  %v5188_v28 = vrot.slane %v5187_v40, 1 }
 0x9db   : > { %6939 = vrot.lane.b32.xlu1 %v11239_v37, %s12548_s25  ;;  %6941 = vrot.lane.b32.xlu0 %v11241_v21, %s12548_s25  ;;  %v5197_v38 = vrot.slane %v5196_v6, 1  ;;  %v5206_v52 = vrot.slane %v5205_v51, 1  ;;  %s7330_s25 = sshll.u32 %s12621_s23, 1 }
 0x9dc   : > { %v5180_v17 = vmax.f32 %v5178_v15, %v5179_v29  ;;  %v5189_v34 = vmax.f32 %v5187_v40, %v5188_v28  ;;  %s523_s19 = scalar_lea.vmem %s11788_s16, %s7330_s25 }
 0x9dd   : > { %v5198_v23 = vmax.f32 %v5196_v6, %v5197_v38  ;;  %v5207_v49 = vmax.f32 %v5205_v51, %v5206_v52 }
 0x9de   : > { %v5208_v50 = vsub.f32 %v10153_v45, %v5180_v17  ;;  %v5209_v2 = vsub.f32 %v12550_v12, %v5189_v34  ;;  %v5212_v42 = vsub.f32 %v11253_v33, %v5180_v17  ;;  %v5213_v11 = vsub.f32 %v11261_v16, %v5189_v34 }
 0x9df   : > { %6975 = vrot.lane.b32.xlu1 %v11229_v1, %s12216_s17  ;;  %6977 = vrot.lane.b32.xlu0 %v11227_v61, %s12216_s17  ;;  %v5210_v22 = vsub.f32 %v12551_v26, %v5198_v23  ;;  %v5211_v63 = vsub.f32 %v12552_v57, %v5207_v49  ;;  %v5214_v45 = vsub.f32 %v11265_v30, %v5198_v23 }
 0x9e0   : > { %v5216_v14 = vmul.f32 1.442695, %v5208_v50  ;;  %v5218_v39 = vmul.f32 1.442695, %v5209_v2  ;;  %v5215_v13 = vsub.f32 %v11269_v8, %v5207_v49  ;;  %v5224_v12 = vmul.f32 1.442695, %v5212_v42 }
 0x9e1   : > { %v5220_v0 = vmul.f32 1.442695, %v5210_v22  ;;  %v5222_v41 = vmul.f32 1.442695, %v5211_v63  ;;  %v5226_v33 = vmul.f32 1.442695, %v5213_v11 }
 0x9e2   : > { %7599 = vpow2.f32 %v5216_v14  ;;  %v5228_v16 = vmul.f32 1.442695, %v5214_v45  ;;  %v5230_v24 = vmul.f32 1.442695, %v5215_v13 }
 0x9e3   : > { %6979 = vrot.lane.b32.xlu1 %v11239_v37, %s12216_s17  ;;  %6981 = vrot.lane.b32.xlu0 %v11241_v21, %s12216_s17  ;;  %7601 = vpow2.f32 %v5218_v39 }
 0x9e4   : > { %7603 = vpow2.f32 %v5220_v0 }
 0x9e5   : > { %7605 = vpow2.f32 %v5222_v41 }
 0x9e6   : > { %7607 = vpow2.f32 %v5224_v12 }
 0x9e7   : > { %7015 = vrot.lane.b32.xlu1 %v11229_v1, %s12264_s28  ;;  %7017 = vrot.lane.b32.xlu0 %v11227_v61, %s12264_s28  ;;  %7609 = vpow2.f32 %v5226_v33 }
 0x9e8   : > { %7611 = vpow2.f32 %v5228_v16 }
 0x9e9   : > { %7613 = vpow2.f32 %v5230_v24 }
 0x9eb   : > { %7019 = vrot.lane.b32.xlu1 %v11239_v37, %s12264_s28  ;;  %7021 = vrot.lane.b32.xlu0 %v11241_v21, %s12264_s28 }
 0x9ef   : > { %7083 = vrot.lane.b32.xlu1 %v11229_v1, %s12288_s18  ;;  %7085 = vrot.lane.b32.xlu0 %v11227_v61, %s12288_s18  ;;  %v11339_v30 = vpop.eup %7599 }
 0x9f0   : > { %v11341_v8 = vpop.eup %7601  ;;  %v5241_v60 = vrot.slane %v11339_v30, 2 }
 0x9f1   : > { %v11343_v54 = vpop.eup %7603  ;;  %v5244_v35 = vrot.slane %v11341_v8, 2 }
 0x9f2   : > { %v11345_v43 = vpop.eup %7605  ;;  %v5247_v44 = vrot.slane %v11343_v54, 2 }
 0x9f3   : > { %7087 = vrot.lane.b32.xlu1 %v11239_v37, %s12288_s18  ;;  %7089 = vrot.lane.b32.xlu0 %v11241_v21, %s12288_s18  ;;  %v11347_v26 = vpop.eup %7607  ;;  %v5250_v47 = vrot.slane %v11345_v43, 2 }
 0x9f4   : > { %v11349_v10 = vpop.eup %7609  ;;  %v5242_v7 = vrot.slane %v11347_v26, 2 }
 0x9f5   : > { %v11351_v55 = vpop.eup %7611  ;;  %v5245_v48 = vrot.slane %v11349_v10, 2 }
 0x9f6   : > { %v11353_v57 = vpop.eup %7613  ;;  %v5248_v53 = vrot.slane %v11351_v55, 2  ;;  %v5243_v62 = vsel %vm5240_vm11, %v5241_v60, %v5242_v7  ;;  %v5261_v4 = vsel %vm633_vm2, %v5242_v7, 0.0 }
 0x9f7   : > { %7123 = vrot.lane.b32.xlu1 %v11229_v1, %s12276_s0  ;;  %7125 = vrot.lane.b32.xlu0 %v11227_v61, %s12276_s0  ;;  %v5251_v20 = vrot.slane %v11353_v57, 2  ;;  %v5246_v25 = vsel %vm5240_vm11, %v5244_v35, %v5245_v48  ;;  %v5269_v58 = vsel %vm633_vm2, %v5245_v48, 0.0  ;;  %v5262_v15 = vadd.f32 %v5261_v4, %v5243_v62 }
 0x9f8   : > { %v5249_v9 = vsel %vm5240_vm11, %v5247_v44, %v5248_v53  ;;  %v5277_v19 = vsel %vm633_vm2, %v5248_v53, 0.0  ;;  %v5270_v6 = vadd.f32 %v5269_v58, %v5246_v25 }
 0x9f9   : > { %v5252_v18 = vsel %vm5240_vm11, %v5250_v47, %v5251_v20  ;;  %v5285_v40 = vsel %vm633_vm2, %v5251_v20, 0.0  ;;  %v5278_v51 = vadd.f32 %v5277_v19, %v5249_v9  ;;  %v5263_v28 = vrot.slane %v5262_v15, 4 }
 0x9fa   : > { %v5286_v29 = vadd.f32 %v5285_v40, %v5252_v18  ;;  %v5271_v38 = vrot.slane %v5270_v6, 4  ;;  %vm12556_vm2 = vcmp.lt.s32.totalorder %v12283_v59, 17  ;;  %v7634_v59 = vld [vmem:[%s11783_s11 + $0x38] ss:$0 sm:$0xff] }
 0x9fb   : > { %7127 = vrot.lane.b32.xlu1 %v11239_v37, %s12276_s0  ;;  %7129 = vrot.lane.b32.xlu0 %v11241_v21, %s12276_s0  ;;  %v5279_v52 = vrot.slane %v5278_v51, 4  ;;  %v5264_v34 = vadd.f32 %v5263_v28, %v5262_v15  ;;  %vm12560_vm12 = vmmov %vm12556_vm2 }
 0x9fc   : > { %v5287_v17 = vrot.slane %v5286_v29, 4  ;;  %v5272_v23 = vadd.f32 %v5271_v38, %v5270_v6  ;;  %vm12561_vm14 = vmmov %vm12556_vm2 }
 0x9fd   : > { %v5280_v49 = vadd.f32 %v5279_v52, %v5278_v51  ;;  %v5265_v2 = vrot.slane %v5264_v34, 2  ;;  %v12553_v52 = vld [vmem:[#allocation139_spill] sm:$0xff]  ;;  %vm12562_vm15 = vmmov %vm12556_vm2 }
 0x9fe   : > { %v5288_v50 = vadd.f32 %v5287_v17, %v5286_v29  ;;  %v5273_v22 = vrot.slane %v5272_v23, 2 }
 0x9ff   : > { %7163 = vrot.lane.b32.xlu1 %v11229_v1, %s12291_s20  ;;  %7165 = vrot.lane.b32.xlu0 %v11227_v61, %s12291_s20  ;;  %v5281_v63 = vrot.slane %v5280_v49, 2  ;;  %v5266_v14 = vadd.f32 %v5265_v2, %v5264_v34 }
 0xa00   : > { %v5289_v42 = vrot.slane %v5288_v50, 2  ;;  %v5274_v11 = vadd.f32 %v5273_v22, %v5272_v23 }
 0xa01   : > { %v5282_v39 = vadd.f32 %v5281_v63, %v5280_v49  ;;  %v5267_v0 = vrot.slane %v5266_v14, 1  ;;  %v12554_v49 = vld [vmem:[#allocation91_spill] sm:$0xff] }
 0xa02   : > { %v5290_v45 = vadd.f32 %v5289_v42, %v5288_v50  ;;  %v5275_v13 = vrot.slane %v5274_v11, 1  ;;  %v12555_v42 = vld [vmem:[#allocation3_spill] sm:$0xff] }
 0xa03   : > { %7167 = vrot.lane.b32.xlu1 %v11239_v37, %s12291_s20  ;;  %7169 = vrot.lane.b32.xlu0 %v11241_v21, %s12291_s20  ;;  %v5283_v41 = vrot.slane %v5282_v39, 1  ;;  %v5268_v33 = vadd.f32 %v5267_v0, %v5266_v14 }
 0xa04   : > { %v5291_v12 = vrot.slane %v5290_v45, 1  ;;  %v5276_v16 = vadd.f32 %v5275_v13, %v5274_v11  ;;  %v12557_v13 = vld [vmem:[#allocation137_spill] sm:$0xff] }
 0xa05   : > { %v5284_v24 = vadd.f32 %v5283_v41, %v5282_v39  ;;  %7615 = vrcp.f32 %v5268_v33 }
 0xa06   : > { %v5292_v60 = vadd.f32 %v5291_v12, %v5290_v45  ;;  %7617 = vrcp.f32 %v5276_v16  ;;  %v12559_v16 = vld [vmem:[#allocation36_spill] sm:$0xff] }
 0xa07   : > { %7203 = vrot.lane.b32.xlu1 %v11229_v1, %s12295_s22  ;;  %7205 = vrot.lane.b32.xlu0 %v11227_v61, %s12295_s22  ;;  %7619 = vrcp.f32 %v5284_v24  ;;  %v12566_v12 = vld [vmem:[#allocation8_spill] sm:$0xff] }
 0xa08   : > { %7621 = vrcp.f32 %v5292_v60 }
 0xa0b   : > { %7207 = vrot.lane.b32.xlu1 %v11239_v37, %s12295_s22  ;;  %7209 = vrot.lane.b32.xlu0 %v11241_v21, %s12295_s22 }
 0xa12   : > { %v7616_v20 = vpop.eup %7615 }
 0xa13   : > { %v7618_v62 = vpop.eup %7617  ;;  %v11380_v58 = vmul.f32 %v7616_v20, %v11347_v26  ;;  %v11402_v26 = vmul.f32 %v7616_v20, %v11339_v30 }
 0xa14   : > { %v7620_v4 = vpop.eup %7619  ;;  %v11387_v18 = vmul.f32 %v7618_v62, %v11349_v10  ;;  %v11396_v6 = vmul.f32 %v7618_v62, %v11341_v8 }
 0xa15   : > { %v7622_v25 = vpop.eup %7621  ;;  %v11390_v15 = vmul.f32 %v7620_v4, %v11351_v55  ;;  %v11399_v51 = vmul.f32 %v7620_v4, %v11343_v54  ;;  %v6878_v29 = vrot.slane %v11380_v58, %v12418_v56  ;;  %v6914_v34 = vrot.slane %v11402_v26, %v12415_v27 }
 0xa16   : > { %v11393_v40 = vmul.f32 %v7622_v25, %v11353_v57  ;;  %v6882_v55 = vrot.slane %v11387_v18, %v12418_v56  ;;  %v11413_v57 = vmul.f32 %v7622_v25, %v11345_v43  ;;  %v6918_v54 = vrot.slane %v11396_v6, %v12415_v27 }
 0xa17   : > { %v6886_v8 = vrot.slane %v11390_v15, %v12418_v56  ;;  %v6922_v38 = vrot.slane %v11399_v51, %v12415_v27  ;;  %v11424_v17 = vmul.f32 %v6878_v29, %v12553_v52  ;;  %v6958_v22 = vrot.slane %v11396_v6, %v12418_v56 }
 0xa18   : > { %v6890_v30 = vrot.slane %v11393_v40, %v12418_v56  ;;  %v6892_v50 = vmul.f32 %v6882_v55, %v12554_v49  ;;  %v6926_v2 = vrot.slane %v11413_v57, %v12415_v27  ;;  %v6962_v63 = vrot.slane %v11399_v51, %v12418_v56 }
 0xa19   : > { %v11440_v14 = vmul.f32 %v6886_v8, %v12555_v42  ;;  %v6954_v11 = vrot.slane %v11402_v26, %v12418_v56  ;;  %v6998_v45 = vrot.slane %v11396_v6, %v12419_v31  ;;  %v6994_v33 = vrot.slane %v11402_v26, %v12419_v31 }
 0xa1a   : > { %v11453_v41 = vmul.f32 %v6890_v30, %v12557_v13  ;;  %v7062_v29 = vrot.slane %v11402_v26, %v12423_v46  ;;  %v12558_v30 = vld [vmem:[#allocation10_spill] sm:$0xff]  ;;  %v7055_v42 = vmul.f32 %v11229_v1, %v12559_v16  ;;  %v12563_v16 = vld [vmem:[#allocation17_spill] sm:$0xff] }
 0xa1c   : > { %v11537_v4 = vmul.f32 %v7062_v29, %v7055_v42  ;;  %v12567_v42 = vld [vmem:[#allocation19_spill] sm:$0xff] }
 0xa41   : > { %v11367_v7 = vpop.permute.xlu1 %6895  ;;  %v11369_v35 = vpop.permute.xlu0 %6897 }
 0xa42   : > { %v6905_v0 = vsel %vm12556_vm2, %v11367_v7, %v11369_v35 }
 0xa43   : > { %v6908_v52 = vmul.f32 %v6905_v0, %v12558_v30 }
 0xa45   : > { %v11371_v48 = vpop.permute.xlu1 %6899  ;;  %v11373_v44 = vpop.permute.xlu0 %6901  ;;  %v6928_v13 = vmul.f32 %v6918_v54, %v6908_v52  ;;  %v12565_v52 = vld [vmem:[#allocation16_spill] sm:$0xff] }
 0xa46   : > { %v6904_v62 = vsel %vm12560_vm12, %v11369_v35, %v11371_v48  ;;  %v6906_v55 = vsel %vm12561_vm14, %v11373_v44, %v11367_v7  ;;  %v6903_v1 = vsel %vm12562_vm15, %v11371_v48, %v11373_v44  ;;  %v12564_v44 = vld [vmem:[#allocation34_spill] sm:$0xff] }
 0xa47   : > { %v6909_v25 = vmul.f32 %v6904_v62, %v12563_v16  ;;  %v7056_v54 = vmul.f32 %v11227_v61, %v12564_v44  ;;  %v6907_v60 = vmul.f32 %v6906_v55, %v12565_v52  ;;  %v6932_v29 = vadd.f32 %v6928_v13, %v6892_v50  ;;  %v12568_v55 = vld [vmem:[#allocation37_spill] sm:$0xff]  ;;  %v12571_v44 = vld [vmem:[#allocation20_spill] sm:$0xff] }
 0xa48   : > { %v6910_v16 = vmul.f32 %v6903_v1, %v12567_v42 }
 0xa49   : > { %v11375_v53 = vpop.permute.xlu1 %6935  ;;  %v11377_v47 = vpop.permute.xlu0 %6937 }
 0xa4a   : > { %v6945_v35 = vsel %vm598_vm0, %v11375_v53, %v11377_v47 }
 0xa4b   : > { %v6948_v7 = vmul.f32 %v6945_v35, %v12566_v12  ;;  %v7057_v12 = vmul.f32 %v11239_v37, %v12568_v55  ;;  %v12569_v35 = vld [vmem:[#allocation6_spill] sm:$0xff]  ;;  %v6929_v37 = vmul.f32 %v6922_v38, %v6909_v25  ;;  %v12572_v25 = vld [vmem:[#allocation25_spill] sm:$0xff] }
 0xa4d   : > { %v11382_v9 = vpop.permute.xlu1 %6939  ;;  %v11384_v19 = vpop.permute.xlu0 %6941  ;;  %v6968_v55 = vmul.f32 %v6958_v22, %v6948_v7  ;;  %v6930_v22 = vmul.f32 %v6926_v2, %v6910_v16  ;;  %v12577_v2 = vld [vmem:[#allocation28_spill] sm:$0xff] }
 0xa4e   : > { %v6946_v0 = vsel %vm598_vm0, %v11384_v19, %v11375_v53  ;;  %v6944_v62 = vsel %vm598_vm0, %v11377_v47, %v11382_v9  ;;  %v6943_v47 = vsel %vm598_vm0, %v11382_v9, %v11384_v19 }
 0xa4f   : > { %v6947_v52 = vmul.f32 %v6946_v0, %v12569_v35 }
 0xa51   : > { %v11406_v10 = vpop.permute.xlu1 %6975  ;;  %v11408_v28 = vpop.permute.xlu0 %6977 }
 0xa52   : > { %v6985_v53 = vsel %vm833_vm4, %v11406_v10, %v11408_v28 }
 0xa53   : > { %v6988_v42 = vmul.f32 %v6985_v53, %v12571_v44  ;;  %v12573_v53 = vld [vmem:[#allocation7_spill] sm:$0xff]  ;;  %v12575_v44 = vld [vmem:[#allocation30_spill] sm:$0xff] }
 0xa54   : > { %v6950_v35 = vmul.f32 %v6943_v47, %v12573_v53  ;;  %v6934_v53 = vadd.f32 %v6930_v22, %v11453_v41  ;;  %v12589_v22 = vrot.slane %v11413_v57, %v12422_v3 }
 0xa55   : > { %v11428_v43 = vpop.permute.xlu1 %6979  ;;  %v11430_v23 = vpop.permute.xlu0 %6981 }
 0xa56   : > { %v6986_v61 = vsel %vm833_vm4, %v11430_v23, %v11406_v10  ;;  %v6984_v50 = vsel %vm833_vm4, %v11408_v28, %v11428_v43  ;;  %v12570_v10 = vld [vmem:[#allocation9_spill] sm:$0xff]  ;;  %v6927_v28 = vmul.f32 %v6914_v34, %v6907_v60  ;;  %v6983_v38 = vsel %vm833_vm4, %v11428_v43, %v11430_v23  ;;  %v12576_v60 = vld [vmem:[#allocation39_spill] sm:$0xff] }
 0xa57   : > { %v6949_v1 = vmul.f32 %v6944_v62, %v12570_v10  ;;  %v6987_v62 = vmul.f32 %v6986_v61, %v12572_v25  ;;  %v6967_v43 = vmul.f32 %v6954_v11, %v6947_v52  ;;  %v6933_v61 = vadd.f32 %v6929_v37, %v11440_v14  ;;  %v12578_v14 = vld [vmem:[#allocation40_spill] sm:$0xff]  ;;  %v12585_v25 = vld [vmem:[#allocation35_spill] sm:$0xff] }
 0xa58   : > { %v6990_v16 = vmul.f32 %v6983_v38, %v12577_v2  ;;  %v6931_v11 = vadd.f32 %v6927_v28, %v11424_v17  ;;  %v6972_v52 = vadd.f32 %v6968_v55, %v6932_v29  ;;  %v12582_v17 = vld [vmem:[#allocation42_spill] sm:$0xff]  ;;  %v12584_v38 = vrot.slane %v11396_v6, %v12423_v46 }
 0xa59   : > { %v7016_v24 = vpop.permute.xlu1 %7015  ;;  %v11463_v20 = vpop.permute.xlu0 %7017  ;;  %v6969_v47 = vmul.f32 %v6962_v63, %v6949_v1  ;;  %v12579_v63 = vrot.slane %v11413_v57, %v12418_v56 }
 0xa5a   : > { %v7025_v13 = vsel %vm973_vm5, %v7016_v24, %v11463_v20  ;;  %v6971_v28 = vadd.f32 %v6967_v43, %v6931_v11  ;;  %v7076_v56 = vmul.f32 %v12584_v38, %v7056_v54  ;;  %v12588_v54 = vrot.slane %v11399_v51, %v12423_v46 }
 0xa5b   : > { %v7028_v39 = vmul.f32 %v7025_v13, %v12575_v44  ;;  %v6970_v37 = vmul.f32 %v12579_v63, %v6950_v35  ;;  %v6973_v35 = vadd.f32 %v6969_v47, %v6933_v61  ;;  %v12590_v11 = vrot.slane %v11413_v57, %v12423_v46 }
 0xa5d   : > { %v7020_v30 = vpop.permute.xlu1 %7019  ;;  %v7022_v49 = vpop.permute.xlu0 %7021 }
 0xa5e   : > { %v7026_v9 = vsel %vm973_vm5, %v7022_v49, %v7016_v24  ;;  %v12574_v24 = vld [vmem:[#allocation26_spill] sm:$0xff]  ;;  %v7024_v34 = vsel %vm973_vm5, %v11463_v20, %v7020_v30  ;;  %v7023_v23 = vsel %vm973_vm5, %v7020_v30, %v7022_v49  ;;  %v7008_v20 = vmul.f32 %v6998_v45, %v6988_v42 }
 0xa5f   : > { %v6989_v10 = vmul.f32 %v6984_v50, %v12574_v24  ;;  %v7027_v7 = vmul.f32 %v7026_v9, %v12576_v60  ;;  %v7007_v49 = vmul.f32 %v6994_v33, %v6987_v62  ;;  %v7029_v30 = vmul.f32 %v7024_v34, %v12578_v14 }
 0xa60   : > { %v12580_v45 = vrot.slane %v11399_v51, %v12419_v31  ;;  %v12581_v42 = vrot.slane %v11396_v6, %v12422_v3  ;;  %v7030_v29 = vmul.f32 %v7023_v23, %v12582_v17  ;;  %v12583_v33 = vrot.slane %v11402_v26, %v12422_v3 }
 0xa61   : > { %v11535_v8 = vpop.permute.xlu1 %7083  ;;  %v11539_v48 = vpop.permute.xlu0 %7085  ;;  %v7058_v62 = vmul.f32 %v11241_v21, %v12585_v25  ;;  %v7012_v24 = vadd.f32 %v7008_v20, %v6972_v52  ;;  %v7011_v43 = vadd.f32 %v7007_v49, %v6971_v28  ;;  %v12587_v23 = vrot.slane %v11399_v51, %v12422_v3  ;;  %v12595_v25 = vld [vmem:[#allocation59_spill] sm:$0xff] }
 0xa62   : > { %v7009_v1 = vmul.f32 %v12580_v45, %v6989_v10  ;;  %v7048_v9 = vmul.f32 %v12581_v42, %v7028_v39  ;;  %v7047_v55 = vmul.f32 %v12583_v33, %v7027_v7  ;;  %v12586_v39 = vrot.slane %v11413_v57, %v12419_v31  ;;  %v12591_v45 = vld [vmem:[#allocation47_spill] sm:$0xff]  ;;  %v12592_v42 = vld [vmem:[#allocation52_spill] sm:$0xff] }
 0xa63   : > { %v7049_v60 = vmul.f32 %v12587_v23, %v7029_v30  ;;  %v7077_v7 = vmul.f32 %v12588_v54, %v7057_v12  ;;  %v6974_v21 = vadd.f32 %v6970_v37, %v6934_v53  ;;  %v7050_v61 = vmul.f32 %v12589_v22, %v7030_v29 }
 0xa64   : > { %v7010_v10 = vmul.f32 %v12586_v39, %v6990_v16  ;;  %v7013_v2 = vadd.f32 %v7009_v1, %v6973_v35  ;;  %v7052_v41 = vadd.f32 %v7048_v9, %v7012_v24  ;;  %v7051_v31 = vadd.f32 %v7047_v55, %v7011_v43  ;;  %v12594_v55 = vld [vmem:[#allocation51_spill] sm:$0xff]  ;;  %v12597_v35 = vld [vmem:[#allocation62_spill] sm:$0xff]  ;;  %v12598_v43 = vld [vmem:[#allocation60_spill] sm:$0xff] }
 0xa65   : > { %v7088_v19 = vpop.permute.xlu1 %7087  ;;  %v7090_v0 = vpop.permute.xlu0 %7089  ;;  %v7093_v47 = vsel %vm1240_vm6, %v11535_v8, %v11539_v48  ;;  %v7078_v52 = vmul.f32 %v12590_v11, %v7058_v62  ;;  %v7660_v30 = vmov 1983009808   ;;  %v12596_v62 = vld [vmem:[#allocation61_spill] sm:$0xff]  ;;  %v12600_v54 = vrot.slane %v11396_v6, %v12426_v36  ;;  %v12605_v11 = vld [vmem:[#allocation71_spill] sm:$0xff] }
 0xa66   : > { %v7092_v20 = vsel %vm1240_vm6, %v11539_v48, %v7088_v19  ;;  %v7091_v12 = vsel %vm1240_vm6, %v7088_v19, %v7090_v0  ;;  %v7014_v16 = vadd.f32 %v7010_v10, %v6974_v21  ;;  %v7094_v3 = vsel %vm1240_vm6, %v7090_v0, %v11535_v8  ;;  %v12593_v8 = vld [vmem:[#allocation53_spill] sm:$0xff] }
 0xa67   : > { %v11664_v63 = vunpack.c.l.s4 %v7660_v30  ;;  %v7053_v37 = vadd.f32 %v7049_v60, %v7013_v2  ;;  %v7095_v1 = vmul.f32 %v7093_v47, %v12591_v45  ;;  %v7096_v9 = vmul.f32 %v7092_v20, %v12592_v42  ;;  %v12603_v47 = vld [vmem:[#allocation68_spill] sm:$0xff] }
 0xa68   : > { %v7097_v0 = vmul.f32 %v7091_v12, %v12593_v8  ;;  %v7054_v29 = vadd.f32 %v7050_v61, %v7014_v16  ;;  %v7079_v28 = vadd.f32 %v11537_v4, %v7051_v31  ;;  %v7080_v33 = vadd.f32 %v7076_v56, %v7052_v41  ;;  %v12604_v12 = vld [vmem:[#allocation70_spill] sm:$0xff] }
 0xa69   : > { %v7124_v50 = vpop.permute.xlu1 %7123  ;;  %v7126_v13 = vpop.permute.xlu0 %7125  ;;  %v7098_v38 = vmul.f32 %v7094_v3, %v12594_v55  ;;  %v7116_v21 = vmul.f32 %v12600_v54, %v7096_v9  ;;  %v7081_v2 = vadd.f32 %v7077_v7, %v7053_v37  ;;  %v12601_v41 = vrot.slane %v11399_v51, %v12426_v36 }
 0xa6a   : > { %v7133_v48 = vsel %vm1380_vm7, %v7124_v50, %v7126_v13  ;;  %v12602_v61 = vrot.slane %v11413_v57, %v12426_v36  ;;  %v12606_v3 = vrot.slane %v11380_v58, %v12413_v5  ;;  %v12607_v7 = vrot.slane %v11387_v18, %v12413_v5 }
 0xa6b   : > { %v7117_v22 = vmul.f32 %v12601_v41, %v7097_v0  ;;  %v12608_v51 = vrot.slane %v11390_v15, %v12413_v5  ;;  %v7120_v9 = vadd.f32 %v7116_v21, %v7080_v33  ;;  %v7631_v0 = vld [vmem:[%s11783_s11 + $0x20] ss:$0 sm:$0xff]  ;;  %v12616_v41 = vrot.slane %v11387_v18, %v12415_v27 }
 0xa6c   : > { %v7118_v31 = vmul.f32 %v12602_v61, %v7098_v38  ;;  %v12617_v61 = vrot.slane %v11390_v15, %v12415_v27 }
 0xa6d   : > { %v7128_v44 = vpop.permute.xlu1 %7127  ;;  %v7130_v34 = vpop.permute.xlu0 %7129  ;;  %v7121_v8 = vadd.f32 %v7117_v22, %v7081_v2 }
 0xa6e   : > { %v7132_v19 = vsel %vm1380_vm7, %v7126_v13, %v7128_v44  ;;  %v7131_v46 = vsel %vm1380_vm7, %v7128_v44, %v7130_v34  ;;  %v7134_v17 = vsel %vm1380_vm7, %v7130_v34, %v7124_v50  ;;  %v7135_v13 = vmul.f32 %v7133_v48, %v12595_v25 }
 0xa6f   : > { %v7136_v53 = vmul.f32 %v7132_v19, %v12596_v62  ;;  %v7137_v24 = vmul.f32 %v7131_v46, %v12597_v35  ;;  %v7138_v23 = vmul.f32 %v7134_v17, %v12598_v43  ;;  %v12599_v34 = vrot.slane %v11402_v26, %v12426_v36  ;;  %v12609_v36 = vld [vmem:[#allocation69_spill] sm:$0xff] }
 0xa70   : > { %v7155_v6 = vmul.f32 %v12606_v3, %v7135_v13  ;;  %v7082_v48 = vadd.f32 %v7078_v52, %v7054_v29  ;;  %v12610_v19 = vrot.slane %v11393_v40, %v12413_v5  ;;  %v12611_v52 = vrot.slane %v11380_v58, %v12414_v32 }
 0xa71   : > { %v7164_v49 = vpop.permute.xlu1 %7163  ;;  %v7166_v14 = vpop.permute.xlu0 %7165  ;;  %v7115_v60 = vmul.f32 %v12599_v34, %v7095_v1  ;;  %v7251_v1 = vunpack.c.0.s8 %v11664_v63  ;;  %v12612_v5 = vrot.slane %v11387_v18, %v12414_v32  ;;  %v12613_v63 = vrot.slane %v11390_v15, %v12414_v32 }
 0xa72   : > { %v7173_v39 = vsel %vm1520_vm8, %v7164_v49, %v7166_v14  ;;  %v7158_v46 = vmul.f32 %v12610_v19, %v7138_v23  ;;  %v7122_v55 = vadd.f32 %v7118_v31, %v7082_v48  ;;  %v12614_v62 = vrot.slane %v11393_v40, %v12414_v32  ;;  %v7632_v32 = vld [vmem:[%s11783_s11 + $0x28] ss:$0 sm:$0xff] }
 0xa73   : > { %v7175_v20 = vmul.f32 %v7173_v39, %v12603_v47  ;;  %v7119_v42 = vadd.f32 %v7115_v60, %v7079_v28  ;;  %v12615_v23 = vrot.slane %v11380_v58, %v12415_v27  ;;  %v12618_v47 = vrot.slane %v11393_v40, %v12415_v27 }
 0xa74   : > { %v7162_v39 = vadd.f32 %v7158_v46, %v7122_v55 }
 0xa75   : > { %v7168_v10 = vpop.permute.xlu1 %7167  ;;  %v7170_v44 = vpop.permute.xlu0 %7169  ;;  %v7195_v29 = vmul.f32 %v12611_v52, %v7175_v20  ;;  %v7159_v33 = vadd.f32 %v7155_v6, %v7119_v42 }
 0xa76   : > { %v7172_v50 = vsel %vm1520_vm8, %v7166_v14, %v7168_v10  ;;  %v7171_v4 = vsel %vm1520_vm8, %v7168_v10, %v7170_v44  ;;  %v7174_v56 = vsel %vm1520_vm8, %v7170_v44, %v7164_v49  ;;  %v7156_v49 = vmul.f32 %v12607_v7, %v7136_v53 }
 0xa77   : > { %v7176_v16 = vmul.f32 %v7172_v50, %v12604_v12  ;;  %v7177_v26 = vmul.f32 %v7171_v4, %v12605_v11  ;;  %v7157_v14 = vmul.f32 %v12608_v51, %v7137_v24  ;;  %v7178_v57 = vmul.f32 %v7174_v56, %v12609_v36  ;;  %v7633_v56 = vld [vmem:[%s11783_s11 + $0x30] ss:$0 sm:$0xff]  ;;  %v12619_v12 = vld [vmem:[#allocation2_spill] sm:$0xff] }
 0xa78   : > { %v7160_v25 = vadd.f32 %v7156_v49, %v7120_v9  ;;  %v7199_v54 = vadd.f32 %v7195_v29, %v7159_v33 }
 0xa79   : > { %v7204_v30 = vpop.permute.xlu1 %7203  ;;  %v7206_v37 = vpop.permute.xlu0 %7205  ;;  %v7196_v38 = vmul.f32 %v12612_v5, %v7176_v16  ;;  %v7197_v28 = vmul.f32 %v12613_v63, %v7177_v26  ;;  %v7161_v13 = vadd.f32 %v7157_v14, %v7121_v8  ;;  %v7198_v53 = vmul.f32 %v12614_v62, %v7178_v57 }
 0xa7a   : > { %v7213_v45 = vsel %vm1660_vm9, %v7204_v30, %v7206_v37  ;;  %v7254_v16 = vsub.s32 %v7251_v1, %v12619_v12 }
 0xa7b   : > { %v7215_v17 = vmul.f32 %v7631_v0, %v7213_v45  ;;  %v7200_v21 = vadd.f32 %v7196_v38, %v7160_v25  ;;  %v7201_v58 = vadd.f32 %v7197_v28, %v7161_v13  ;;  %v7202_v2 = vadd.f32 %v7198_v53, %v7162_v39 }
 0xa7d   : > { %v7208_v35 = vpop.permute.xlu1 %7207  ;;  %v7210_v24 = vpop.permute.xlu0 %7209  ;;  %v7235_v50 = vmul.f32 %v12615_v23, %v7215_v17 }
 0xa7e   : > { %v7212_v10 = vsel %vm1660_vm9, %v7206_v37, %v7208_v35  ;;  %v7211_v44 = vsel %vm1660_vm9, %v7208_v35, %v7210_v24  ;;  %v7214_v43 = vsel %vm1660_vm9, %v7210_v24, %v7204_v30 }
 0xa7f   : > { %v7216_v4 = vmul.f32 %v7632_v32, %v7212_v10  ;;  %v7217_v34 = vmul.f32 %v7633_v56, %v7211_v44  ;;  %v7218_v60 = vmul.f32 %v7634_v59, %v7214_v43  ;;  %v7239_v11 = vadd.f32 %v7235_v50, %v7199_v54 }
 0xa81   : > { %v7236_v22 = vmul.f32 %v12616_v41, %v7216_v4  ;;  %v7237_v31 = vmul.f32 %v12617_v61, %v7217_v34  ;;  %v7238_v20 = vmul.f32 %v12618_v47, %v7218_v60 }
 0xa83   : > { %v7240_v26 = vadd.f32 %v7236_v22, %v7200_v21  ;;  %v7241_v3 = vadd.f32 %v7237_v31, %v7201_v58  ;;  %v7242_v6 = vadd.f32 %v7238_v20, %v7202_v2 }
 0xa85   : > { %v7247_v7 = vcombine.low %v7239_v11, %v7240_v26  ;;  %v7248_v49 = vcombine.low %v7241_v3, %v7242_v6 }
 0xa87   : > { %v7255_v51 = vrot.slane %v7247_v7, %v7254_v16  ;;  %v7262_v18 = vrot.slane %v7248_v49, %v7254_v16 }
 0xa89   : > { %v7263_v15 = vcombine.low %v7255_v51, %v7262_v18 }
 0xa8b   : > { %7265 = vst [vmem:[%s523_s19] sm:$0xff] %v7263_v15 }
 0xa8c PF: > { %s26_s21 = sadd.s32 1, %s7641_s21  }
 0xa8d   : > { %p23_p4 = scmp.ge.s32.totalorder %s26_s21, 4  }
 0xa8f   :  { %25 = sbr.rel (!%p23_p4) target bundleno = 3 (0x3), region = 138 }

</bundles_post_ra>
